<compile_context>
chip_gen: v7x
topology: tpu7x:2x2x1
jax: 0.10.0
libtpu: 0.0.40
codegen_flags: <defaults>
</compile_context>

<pallas_src>
import jax
import jax.numpy as jnp
import numpy as np
from jax.experimental import pallas as pl
from jax.experimental.pallas import tpu as pltpu


def _dw_taps(w_kkc, K, d, C, H, W, ch_lo, ch_hi):
    """Per-tap masked weight planes (K*K, C, H*W) and their flat lane shifts.

    Tap (ky, kx) of a depthwise conv reads input (h+dy, w+dx) with dy = ky*d - p,
    dx = kx*d - p, i.e. a constant shift s = dy*W + dx of the flattened (C, H*W)
    image.  The returned plane holds w[ky, kx, c] on channels [ch_lo, ch_hi)
    (zero elsewhere), masked to zero wherever (h+dy, w+dx) falls outside the HxW
    image ("same" zero padding).
    """
    p = ((K - 1) * d) // 2
    M = H * W
    hh = np.arange(H).reshape(H, 1)
    ww = np.arange(W).reshape(1, W)
    planes, shifts = [], []
    for ky in range(K):
        for kx in range(K):
            dy = ky * d - p
            dx = kx * d - p
            valid = ((hh + dy >= 0) & (hh + dy < H) &
                     (ww + dx >= 0) & (ww + dx < W)).astype(np.float32)
            wch = jnp.zeros((C,), jnp.float32).at[ch_lo:ch_hi].set(w_kkc[ky, kx, :])
            planes.append(wch[:, None] * jnp.asarray(valid.reshape(1, M)))
            shifts.append(dy * W + dx)
    return jnp.stack(planes), shifts


def _make_kernel(C, M, MPAD, OFF, shifts_a, shifts_b, mm_dtype=jnp.float32):
    def silu(z):
        # exact sigmoid: exp on the EUP + one divide (pl.reciprocal(approx=True)
        # is the perf knob but deviates ~1e-3 from the exact reference).
        return z * (1.0 / (1.0 + jnp.exp(-z)))

    def mm(w_ref, x, b_ref):
        # (C,C)@(C,M) on the MXU; f32 accumulation always, operand dtype a knob.
        return jnp.dot(w_ref[...].astype(mm_dtype), x.astype(mm_dtype),
                       preferred_element_type=jnp.float32) + b_ref[...]

    def dw_accumulate(tab_ref, shifts, pad_ref):
        # One aligned slab load (C, MPAD) ~ 12 vregs at this size; every tap is a
        # static lane slice of the held slab times its masked weight plane.
        slab = pad_ref[...]
        acc = jnp.zeros((C, M), jnp.float32)
        for i, s in enumerate(shifts):
            acc = acc + slab[:, OFF + s:OFF + s + M] * tab_ref[i]
        return acc

    def kernel(x_ref, w1_ref, b1_ref, sigma_ref, wg_ref, bg_ref,
               taba_ref, bdw0_ref, tabb_ref, bdw12_ref,
               wpw_ref, bpw_ref, w2_ref, b2_ref,
               out_ref, pad_ref):
        # Zero only the two halo lane-bands (aligned, 8 vregs total); the interior
        # is always overwritten.  Re-done every step so the parallel batch axis is
        # safe to split across cores (no cross-step scratch state).
        pad_ref[:, 0:OFF] = jnp.zeros((C, OFF), jnp.float32)
        pad_ref[:, OFF + M:] = jnp.zeros((C, MPAD - OFF - M), jnp.float32)

        x = x_ref[...]                                        # (C, M), lane-dense

        # ---- feat_decompose: proj_1 (1x1) + GAP residual scale + SiLU
        y = mm(w1_ref, x, b1_ref)
        y_mean = jnp.sum(y, axis=1, keepdims=True) * (1.0 / float(M))
        y = y + sigma_ref[...] * (y - y_mean)
        y = silu(y)

        # ---- value branch: DW_conv0 (5x5, d=1) on y
        pad_ref[:, OFF:OFF + M] = y
        x0 = dw_accumulate(taba_ref, shifts_a, pad_ref) + bdw0_ref[...]

        # dilated DW_conv1 (5x5, d=2) / DW_conv2 (7x7, d=3) + the channel concat
        # of the three orders, all folded into one masked tap table applied to x0.
        pad_ref[:, OFF:OFF + M] = x0
        v = dw_accumulate(tabb_ref, shifts_b, pad_ref) + bdw12_ref[...]
        v = mm(wpw_ref, v, bpw_ref)                           # PW 1x1 conv

        # ---- gate branch + gated aggregation + shortcut
        g = mm(wg_ref, y, bg_ref)
        o = mm(w2_ref, silu(g) * silu(v), b2_ref)
        out_ref[...] = (o + x).astype(out_ref.dtype)

    return kernel


def init_params(key, C):
    assert C % 8 == 0, "embed_dims must be divisible by sum(channel_split)=8"
    c1 = (3 * C) // 8
    c2 = (4 * C) // 8
    ks = jax.random.split(key, 14)
    s = 0.2
    return dict(
        # 1x1 conv weights are (C_out, C_in); biases are (C_out,)
        w_proj1=s * jax.random.normal(ks[0], (C, C), jnp.float32),
        b_proj1=s * jax.random.normal(ks[1], (C,), jnp.float32),
        sigma=jnp.full((C,), 1e-5, jnp.float32),     # ElementScale init_value=1e-5
        w_gate=s * jax.random.normal(ks[2], (C, C), jnp.float32),
        b_gate=s * jax.random.normal(ks[3], (C,), jnp.float32),
        # depthwise weights are (K, K, C_group)
        w_dw0=s * jax.random.normal(ks[4], (5, 5, C), jnp.float32),
        b_dw0=s * jax.random.normal(ks[5], (C,), jnp.float32),
        w_dw1=s * jax.random.normal(ks[6], (5, 5, c1), jnp.float32),
        b_dw1=s * jax.random.normal(ks[7], (c1,), jnp.float32),
        w_dw2=s * jax.random.normal(ks[8], (7, 7, c2), jnp.float32),
        b_dw2=s * jax.random.normal(ks[9], (c2,), jnp.float32),
        w_pw=s * jax.random.normal(ks[10], (C, C), jnp.float32),
        b_pw=s * jax.random.normal(ks[11], (C,), jnp.float32),
        w_proj2=s * jax.random.normal(ks[12], (C, C), jnp.float32),
        b_proj2=s * jax.random.normal(ks[13], (C,), jnp.float32),
    )


def moga_forward(x_nchw, params, mm_dtype=jnp.float32):
    """Pallas forward. x_nchw: (B, C, H, W) float32 -> (B, C, H, W) float32."""
    B, C, H, W = x_nchw.shape
    assert C % 8 == 0
    M = H * W
    c1 = (3 * C) // 8
    c2 = (4 * C) // 8
    c0 = C - c1 - c2

    # NCHW consumed natively: (B,C,H,W) -> (B,C,M) is a free row-major reshape.
    x = x_nchw.reshape(B, C, M).astype(jnp.float32)

    # Host-side tap tables (masked per-channel weight planes) + static lane shifts.
    tab_a, shifts_a = _dw_taps(params['w_dw0'], 5, 1, C, H, W, 0, C)
    tab1, sh1 = _dw_taps(params['w_dw1'], 5, 2, C, H, W, c0, c0 + c1)
    tab2, sh2 = _dw_taps(params['w_dw2'], 7, 3, C, H, W, c0 + c1, C)
    # identity tap routes x0[:, :c0] into the channel concat [x0_0, x1, x2]
    id_plane = ((jnp.arange(C) < c0).astype(jnp.float32)[:, None]
                * jnp.ones((1, M), jnp.float32))
    tab_b = jnp.concatenate([tab1, tab2, id_plane[None]], axis=0)
    shifts_b = sh1 + sh2 + [0]

    b_dw12 = (jnp.zeros((C,), jnp.float32)
              .at[c0:c0 + c1].set(params['b_dw1'])
              .at[c0 + c1:].set(params['b_dw2']))

    # Zero-halo line buffer: image at 128-aligned lane offset OFF; halos wide
    # enough for the largest flat shift (7x7 conv, d=3: |s| <= 9*W + 9).
    smax = max(abs(s) for s in shifts_a + shifts_b)
    OFF = ((smax + 127) // 128) * 128
    MPAD = OFF + M + OFF

    kernel = _make_kernel(C, M, MPAD, OFF, shifts_a, shifts_b, mm_dtype=mm_dtype)

    col = lambda v: v.reshape(C, 1)

    def full_spec(shape):
        n = len(shape)
        return pl.BlockSpec(shape, lambda b, _n=n: (0,) * _n)

    n_a = int(tab_a.shape[0])
    n_b = int(tab_b.shape[0])
    in_specs = [
        pl.BlockSpec((None, C, M), lambda b: (b, 0, 0)),     # x: one sample / step
        full_spec((C, C)), full_spec((C, 1)), full_spec((C, 1)),  # proj_1 w/b, sigma
        full_spec((C, C)), full_spec((C, 1)),                     # gate w/b
        full_spec((n_a, C, M)), full_spec((C, 1)),                # DW_conv0 taps + bias
        full_spec((n_b, C, M)), full_spec((C, 1)),                # DW_conv1/2+id taps + bias
        full_spec((C, C)), full_spec((C, 1)),                     # PW_conv w/b
        full_spec((C, C)), full_spec((C, 1)),                     # proj_2 w/b
    ]

    out = pl.pallas_call(
        kernel,
        out_shape=jax.ShapeDtypeStruct((B, C, M), jnp.float32),
        grid=(B,),
        in_specs=in_specs,
        out_specs=pl.BlockSpec((None, C, M), lambda b: (b, 0, 0)),
        scratch_shapes=[pltpu.VMEM((C, MPAD), jnp.float32)],
        compiler_params=pltpu.CompilerParams(
            dimension_semantics=("parallel",)),
    )(x, params['w_proj1'], col(params['b_proj1']), col(params['sigma']),
      params['w_gate'], col(params['b_gate']),
      tab_a, col(params['b_dw0']), tab_b, col(b_dw12),
      params['w_pw'], col(params['b_pw']),
      params['w_proj2'], col(params['b_proj2']))

    # (B,C,M) -> (B,C,H,W) is again a free reshape: NCHW end-to-end, no transposes.
    return out.reshape(B, C, H, W)


def moga_reference(x_nchw, params):
    """Pure-JAX reference mirroring the PyTorch module (f32)."""
    B, C, H, W = x_nchw.shape
    c1 = (3 * C) // 8
    c2 = (4 * C) // 8
    c0 = C - c1 - c2
    x = jnp.transpose(x_nchw, (0, 2, 3, 1)).astype(jnp.float32)

    def conv1x1(t, w, b):
        return jnp.einsum('bhwc,dc->bhwd', t, w,
                          precision=jax.lax.Precision.HIGHEST) + b

    def dwconv(t, w, b, dil):
        K = w.shape[0]
        p = ((K - 1) * dil) // 2
        rhs = w[:, :, None, :]   # HWIO, I = 1 (depthwise)
        out = jax.lax.conv_general_dilated(
            t, rhs, window_strides=(1, 1), padding=[(p, p), (p, p)],
            rhs_dilation=(dil, dil), dimension_numbers=('NHWC', 'HWIO', 'NHWC'),
            feature_group_count=t.shape[-1],
            precision=jax.lax.Precision.HIGHEST)
        return out + b

    silu = lambda z: z * (1.0 / (1.0 + jnp.exp(-z)))

    shortcut = x
    y = conv1x1(x, params['w_proj1'], params['b_proj1'])
    yd = jnp.mean(y, axis=(1, 2), keepdims=True)
    y = y + params['sigma'] * (y - yd)
    y = silu(y)
    g = conv1x1(y, params['w_gate'], params['b_gate'])
    x0 = dwconv(y, params['w_dw0'], params['b_dw0'], 1)
    x1 = dwconv(x0[..., c0:c0 + c1], params['w_dw1'], params['b_dw1'], 2)
    x2 = dwconv(x0[..., c0 + c1:], params['w_dw2'], params['b_dw2'], 3)
    v = jnp.concatenate([x0[..., :c0], x1, x2], axis=-1)
    v = conv1x1(v, params['w_pw'], params['b_pw'])
    out = conv1x1(silu(g) * silu(v), params['w_proj2'], params['b_proj2']) + shortcut
    return jnp.transpose(out, (0, 3, 1, 2))


if __name__ == "__main__":
    key = jax.random.PRNGKey(0)
    kx, kp = jax.random.split(key)
    B, C, H, W = 2, 16, 16, 16          # embed_dims must be divisible by 8
    x = jax.random.normal(kx, (B, C, H, W), jnp.float32)
    params = init_params(kp, C)

    out = jax.block_until_ready(moga_forward(x, params))
    ref = moga_reference(x, params)

    assert out.shape == (B, C, H, W)
    if not bool(jnp.allclose(out, ref, atol=2e-2, rtol=2e-2)):
        raise AssertionError(
            f"mismatch: max abs diff = {float(jnp.max(jnp.abs(out - ref)))}")
    print("KERNEL_OK")
</pallas_src>

<mosaic_0001>
module attributes {stable_mosaic.version = 11 : i64} {
  func.func @kernel(%arg0: i32, %arg1: memref<1x16x256xf32, #tpu.memory_space<vmem>>, %arg2: memref<16x16xf32, #tpu.memory_space<vmem>>, %arg3: memref<16x1xf32, #tpu.memory_space<vmem>>, %arg4: memref<16x1xf32, #tpu.memory_space<vmem>>, %arg5: memref<16x16xf32, #tpu.memory_space<vmem>>, %arg6: memref<16x1xf32, #tpu.memory_space<vmem>>, %arg7: memref<25x16x256xf32, #tpu.memory_space<vmem>>, %arg8: memref<16x1xf32, #tpu.memory_space<vmem>>, %arg9: memref<75x16x256xf32, #tpu.memory_space<vmem>>, %arg10: memref<16x1xf32, #tpu.memory_space<vmem>>, %arg11: memref<16x16xf32, #tpu.memory_space<vmem>>, %arg12: memref<16x1xf32, #tpu.memory_space<vmem>>, %arg13: memref<16x16xf32, #tpu.memory_space<vmem>>, %arg14: memref<16x1xf32, #tpu.memory_space<vmem>>, %arg15: memref<1x16x256xf32, #tpu.memory_space<vmem>>, %arg16: memref<16x768xf32, #tpu.memory_space<vmem>>) attributes {dimension_semantics = [#tpu.dimension_semantics<parallel>], iteration_bounds = array<i64: 2>, scalar_prefetch = 0 : i64, scratch_operands = 1 : i64, tpu.core_type = #tpu.core_type<tc>, window_params = [{transform_indices = @transform_0, window_bounds = array<i64: 1, 16, 256>}, {pipeline_mode = #tpu.pipeline_mode<synchronous>, transform_indices = @transform_1, window_bounds = array<i64: 16, 16>}, {pipeline_mode = #tpu.pipeline_mode<synchronous>, transform_indices = @transform_2, window_bounds = array<i64: 16, 1>}, {pipeline_mode = #tpu.pipeline_mode<synchronous>, transform_indices = @transform_3, window_bounds = array<i64: 16, 1>}, {pipeline_mode = #tpu.pipeline_mode<synchronous>, transform_indices = @transform_4, window_bounds = array<i64: 16, 16>}, {pipeline_mode = #tpu.pipeline_mode<synchronous>, transform_indices = @transform_5, window_bounds = array<i64: 16, 1>}, {pipeline_mode = #tpu.pipeline_mode<synchronous>, transform_indices = @transform_6, window_bounds = array<i64: 25, 16, 256>}, {pipeline_mode = #tpu.pipeline_mode<synchronous>, transform_indices = @transform_7, window_bounds = array<i64: 16, 1>}, {pipeline_mode = #tpu.pipeline_mode<synchronous>, transform_indices = @transform_8, window_bounds = array<i64: 75, 16, 256>}, {pipeline_mode = #tpu.pipeline_mode<synchronous>, transform_indices = @transform_9, window_bounds = array<i64: 16, 1>}, {pipeline_mode = #tpu.pipeline_mode<synchronous>, transform_indices = @transform_10, window_bounds = array<i64: 16, 16>}, {pipeline_mode = #tpu.pipeline_mode<synchronous>, transform_indices = @transform_11, window_bounds = array<i64: 16, 1>}, {pipeline_mode = #tpu.pipeline_mode<synchronous>, transform_indices = @transform_12, window_bounds = array<i64: 16, 16>}, {pipeline_mode = #tpu.pipeline_mode<synchronous>, transform_indices = @transform_13, window_bounds = array<i64: 16, 1>}, {transform_indices = @transform_14, window_bounds = array<i64: 1, 16, 256>}]} {
    %cst = arith.constant 0.000000e+00 : f32
    %0 = vector.broadcast %cst : f32 to vector<16x256xf32>
    %c0 = arith.constant 0 : index
    %c0_0 = arith.constant 0 : index
    %1 = vector.load %arg16[%c0, %c0_0] : memref<16x768xf32, #tpu.memory_space<vmem>>, vector<16x256xf32>
    tpu.vector_store %arg16[%c0, %c0_0], %0 {strides = array<i32>} : memref<16x768xf32, #tpu.memory_space<vmem>>, vector<16x256xf32>,
    %cst_1 = arith.constant 0.000000e+00 : f32
    %2 = vector.broadcast %cst_1 : f32 to vector<16x256xf32>
    %c0_2 = arith.constant 0 : index
    %c512 = arith.constant 512 : index
    %3 = vector.load %arg16[%c0_2, %c512] : memref<16x768xf32, #tpu.memory_space<vmem>>, vector<16x256xf32>
    tpu.vector_store %arg16[%c0_2, %c512], %2 {strides = array<i32>} : memref<16x768xf32, #tpu.memory_space<vmem>>, vector<16x256xf32>,
    %c0_3 = arith.constant 0 : index
    %c0_4 = arith.constant 0 : index
    %c0_5 = arith.constant 0 : index
    %4 = vector.load %arg1[%c0_3, %c0_4, %c0_5] : memref<1x16x256xf32, #tpu.memory_space<vmem>>, vector<1x16x256xf32>
    %5 = vector.shape_cast %4 : vector<1x16x256xf32> to vector<16x256xf32>
    %c0_6 = arith.constant 0 : index
    %c0_7 = arith.constant 0 : index
    %6 = vector.load %arg2[%c0_6, %c0_7] : memref<16x16xf32, #tpu.memory_space<vmem>>, vector<16x16xf32>
    %cst_8 = arith.constant dense<0.000000e+00> : vector<16x256xf32>
    %7 = tpu.matmul %6, %5, %cst_8 {dimension_numbers = #tpu.dot_dimension_numbers<[1], [0], [0], [1], [0, 0, 1, 1], [], []>} : vector<16x16xf32>, vector<16x256xf32>, vector<16x256xf32> -> vector<16x256xf32>
    %c0_9 = arith.constant 0 : index
    %c0_10 = arith.constant 0 : index
    %8 = vector.load %arg3[%c0_9, %c0_10] : memref<16x1xf32, #tpu.memory_space<vmem>>, vector<16x1xf32>
    %9 = vector.broadcast %8 : vector<16x1xf32> to vector<16x256xf32>
    %10 = arith.addf %7, %9 : vector<16x256xf32>
    %cst_11 = arith.constant dense<0.000000e+00> : vector<16xf32>
    %11 = vector.multi_reduction <add>, %10, %cst_11 [1] : vector<16x256xf32> to vector<16xf32>
    %12 = vector.shape_cast %11 : vector<16xf32> to vector<16x1xf32>
    %cst_12 = arith.constant 3.906250e-03 : f32
    %13 = vector.broadcast %cst_12 : f32 to vector<16x1xf32>
    %14 = arith.mulf %12, %13 : vector<16x1xf32>
    %c0_13 = arith.constant 0 : index
    %c0_14 = arith.constant 0 : index
    %15 = vector.load %arg4[%c0_13, %c0_14] : memref<16x1xf32, #tpu.memory_space<vmem>>, vector<16x1xf32>
    %16 = vector.broadcast %14 : vector<16x1xf32> to vector<16x256xf32>
    %17 = arith.subf %10, %16 : vector<16x256xf32>
    %18 = vector.broadcast %15 : vector<16x1xf32> to vector<16x256xf32>
    %19 = arith.mulf %18, %17 : vector<16x256xf32>
    %20 = arith.addf %10, %19 : vector<16x256xf32>
    %cst_15 = arith.constant 0.000000e+00 : f32
    %21 = vector.broadcast %cst_15 : f32 to vector<16x256xf32>
    %22 = arith.subf %21, %20 : vector<16x256xf32>
    %23 = math.exp %22 : vector<16x256xf32>
    %cst_16 = arith.constant 1.000000e+00 : f32
    %24 = vector.broadcast %cst_16 : f32 to vector<16x256xf32>
    %25 = arith.addf %24, %23 : vector<16x256xf32>
    %cst_17 = arith.constant 1.000000e+00 : f32
    %26 = vector.broadcast %cst_17 : f32 to vector<16x256xf32>
    %27 = arith.divf %26, %25 : vector<16x256xf32>
    %28 = arith.mulf %20, %27 : vector<16x256xf32>
    %c0_18 = arith.constant 0 : index
    %c256 = arith.constant 256 : index
    %29 = vector.load %arg16[%c0_18, %c256] : memref<16x768xf32, #tpu.memory_space<vmem>>, vector<16x256xf32>
    tpu.vector_store %arg16[%c0_18, %c256], %28 {strides = array<i32>} : memref<16x768xf32, #tpu.memory_space<vmem>>, vector<16x256xf32>,
    %c0_19 = arith.constant 0 : index
    %c0_20 = arith.constant 0 : index
    %30 = vector.load %arg16[%c0_19, %c0_20] : memref<16x768xf32, #tpu.memory_space<vmem>>, vector<16x768xf32>
    %cst_21 = arith.constant 0.000000e+00 : f32
    %31 = vector.broadcast %cst_21 : f32 to vector<16x256xf32>
    %32 = vector.extract_strided_slice %30 {offsets = [0, 222], sizes = [16, 256], strides = [1, 1]} : vector<16x768xf32> to vector<16x256xf32>
    %c0_22 = arith.constant 0 : index
    %c0_23 = arith.constant 0 : index
    %c0_24 = arith.constant 0 : index
    %33 = vector.load %arg7[%c0_22, %c0_23, %c0_24] : memref<25x16x256xf32, #tpu.memory_space<vmem>>, vector<1x16x256xf32>
    %34 = vector.shape_cast %33 : vector<1x16x256xf32> to vector<16x256xf32>
    %35 = arith.mulf %32, %34 : vector<16x256xf32>
    %36 = arith.addf %31, %35 : vector<16x256xf32>
    %37 = vector.extract_strided_slice %30 {offsets = [0, 223], sizes = [16, 256], strides = [1, 1]} : vector<16x768xf32> to vector<16x256xf32>
    %c1 = arith.constant 1 : index
    %c0_25 = arith.constant 0 : index
    %c0_26 = arith.constant 0 : index
    %38 = vector.load %arg7[%c1, %c0_25, %c0_26] : memref<25x16x256xf32, #tpu.memory_space<vmem>>, vector<1x16x256xf32>
    %39 = vector.shape_cast %38 : vector<1x16x256xf32> to vector<16x256xf32>
    %40 = arith.mulf %37, %39 : vector<16x256xf32>
    %41 = arith.addf %36, %40 : vector<16x256xf32>
    %42 = vector.extract_strided_slice %30 {offsets = [0, 224], sizes = [16, 256], strides = [1, 1]} : vector<16x768xf32> to vector<16x256xf32>
    %c2 = arith.constant 2 : index
    %c0_27 = arith.constant 0 : index
    %c0_28 = arith.constant 0 : index
    %43 = vector.load %arg7[%c2, %c0_27, %c0_28] : memref<25x16x256xf32, #tpu.memory_space<vmem>>, vector<1x16x256xf32>
    %44 = vector.shape_cast %43 : vector<1x16x256xf32> to vector<16x256xf32>
    %45 = arith.mulf %42, %44 : vector<16x256xf32>
    %46 = arith.addf %41, %45 : vector<16x256xf32>
    %47 = vector.extract_strided_slice %30 {offsets = [0, 225], sizes = [16, 256], strides = [1, 1]} : vector<16x768xf32> to vector<16x256xf32>
    %c3 = arith.constant 3 : index
    %c0_29 = arith.constant 0 : index
    %c0_30 = arith.constant 0 : index
    %48 = vector.load %arg7[%c3, %c0_29, %c0_30] : memref<25x16x256xf32, #tpu.memory_space<vmem>>, vector<1x16x256xf32>
    %49 = vector.shape_cast %48 : vector<1x16x256xf32> to vector<16x256xf32>
    %50 = arith.mulf %47, %49 : vector<16x256xf32>
    %51 = arith.addf %46, %50 : vector<16x256xf32>
    %52 = vector.extract_strided_slice %30 {offsets = [0, 226], sizes = [16, 256], strides = [1, 1]} : vector<16x768xf32> to vector<16x256xf32>
    %c4 = arith.constant 4 : index
    %c0_31 = arith.constant 0 : index
    %c0_32 = arith.constant 0 : index
    %53 = vector.load %arg7[%c4, %c0_31, %c0_32] : memref<25x16x256xf32, #tpu.memory_space<vmem>>, vector<1x16x256xf32>
    %54 = vector.shape_cast %53 : vector<1x16x256xf32> to vector<16x256xf32>
    %55 = arith.mulf %52, %54 : vector<16x256xf32>
    %56 = arith.addf %51, %55 : vector<16x256xf32>
    %57 = vector.extract_strided_slice %30 {offsets = [0, 238], sizes = [16, 256], strides = [1, 1]} : vector<16x768xf32> to vector<16x256xf32>
    %c5 = arith.constant 5 : index
    %c0_33 = arith.constant 0 : index
    %c0_34 = arith.constant 0 : index
    %58 = vector.load %arg7[%c5, %c0_33, %c0_34] : memref<25x16x256xf32, #tpu.memory_space<vmem>>, vector<1x16x256xf32>
    %59 = vector.shape_cast %58 : vector<1x16x256xf32> to vector<16x256xf32>
    %60 = arith.mulf %57, %59 : vector<16x256xf32>
    %61 = arith.addf %56, %60 : vector<16x256xf32>
    %62 = vector.extract_strided_slice %30 {offsets = [0, 239], sizes = [16, 256], strides = [1, 1]} : vector<16x768xf32> to vector<16x256xf32>
    %c6 = arith.constant 6 : index
    %c0_35 = arith.constant 0 : index
    %c0_36 = arith.constant 0 : index
    %63 = vector.load %arg7[%c6, %c0_35, %c0_36] : memref<25x16x256xf32, #tpu.memory_space<vmem>>, vector<1x16x256xf32>
    %64 = vector.shape_cast %63 : vector<1x16x256xf32> to vector<16x256xf32>
    %65 = arith.mulf %62, %64 : vector<16x256xf32>
    %66 = arith.addf %61, %65 : vector<16x256xf32>
    %67 = vector.extract_strided_slice %30 {offsets = [0, 240], sizes = [16, 256], strides = [1, 1]} : vector<16x768xf32> to vector<16x256xf32>
    %c7 = arith.constant 7 : index
    %c0_37 = arith.constant 0 : index
    %c0_38 = arith.constant 0 : index
    %68 = vector.load %arg7[%c7, %c0_37, %c0_38] : memref<25x16x256xf32, #tpu.memory_space<vmem>>, vector<1x16x256xf32>
    %69 = vector.shape_cast %68 : vector<1x16x256xf32> to vector<16x256xf32>
    %70 = arith.mulf %67, %69 : vector<16x256xf32>
    %71 = arith.addf %66, %70 : vector<16x256xf32>
    %72 = vector.extract_strided_slice %30 {offsets = [0, 241], sizes = [16, 256], strides = [1, 1]} : vector<16x768xf32> to vector<16x256xf32>
    %c8 = arith.constant 8 : index
    %c0_39 = arith.constant 0 : index
    %c0_40 = arith.constant 0 : index
    %73 = vector.load %arg7[%c8, %c0_39, %c0_40] : memref<25x16x256xf32, #tpu.memory_space<vmem>>, vector<1x16x256xf32>
    %74 = vector.shape_cast %73 : vector<1x16x256xf32> to vector<16x256xf32>
    %75 = arith.mulf %72, %74 : vector<16x256xf32>
    %76 = arith.addf %71, %75 : vector<16x256xf32>
    %77 = vector.extract_strided_slice %30 {offsets = [0, 242], sizes = [16, 256], strides = [1, 1]} : vector<16x768xf32> to vector<16x256xf32>
    %c9 = arith.constant 9 : index
    %c0_41 = arith.constant 0 : index
    %c0_42 = arith.constant 0 : index
    %78 = vector.load %arg7[%c9, %c0_41, %c0_42] : memref<25x16x256xf32, #tpu.memory_space<vmem>>, vector<1x16x256xf32>
    %79 = vector.shape_cast %78 : vector<1x16x256xf32> to vector<16x256xf32>
    %80 = arith.mulf %77, %79 : vector<16x256xf32>
    %81 = arith.addf %76, %80 : vector<16x256xf32>
    %82 = vector.extract_strided_slice %30 {offsets = [0, 254], sizes = [16, 256], strides = [1, 1]} : vector<16x768xf32> to vector<16x256xf32>
    %c10 = arith.constant 10 : index
    %c0_43 = arith.constant 0 : index
    %c0_44 = arith.constant 0 : index
    %83 = vector.load %arg7[%c10, %c0_43, %c0_44] : memref<25x16x256xf32, #tpu.memory_space<vmem>>, vector<1x16x256xf32>
    %84 = vector.shape_cast %83 : vector<1x16x256xf32> to vector<16x256xf32>
    %85 = arith.mulf %82, %84 : vector<16x256xf32>
    %86 = arith.addf %81, %85 : vector<16x256xf32>
    %87 = vector.extract_strided_slice %30 {offsets = [0, 255], sizes = [16, 256], strides = [1, 1]} : vector<16x768xf32> to vector<16x256xf32>
    %c11 = arith.constant 11 : index
    %c0_45 = arith.constant 0 : index
    %c0_46 = arith.constant 0 : index
    %88 = vector.load %arg7[%c11, %c0_45, %c0_46] : memref<25x16x256xf32, #tpu.memory_space<vmem>>, vector<1x16x256xf32>
    %89 = vector.shape_cast %88 : vector<1x16x256xf32> to vector<16x256xf32>
    %90 = arith.mulf %87, %89 : vector<16x256xf32>
    %91 = arith.addf %86, %90 : vector<16x256xf32>
    %92 = vector.extract_strided_slice %30 {offsets = [0, 256], sizes = [16, 256], strides = [1, 1]} : vector<16x768xf32> to vector<16x256xf32>
    %c12 = arith.constant 12 : index
    %c0_47 = arith.constant 0 : index
    %c0_48 = arith.constant 0 : index
    %93 = vector.load %arg7[%c12, %c0_47, %c0_48] : memref<25x16x256xf32, #tpu.memory_space<vmem>>, vector<1x16x256xf32>
    %94 = vector.shape_cast %93 : vector<1x16x256xf32> to vector<16x256xf32>
    %95 = arith.mulf %92, %94 : vector<16x256xf32>
    %96 = arith.addf %91, %95 : vector<16x256xf32>
    %97 = vector.extract_strided_slice %30 {offsets = [0, 257], sizes = [16, 256], strides = [1, 1]} : vector<16x768xf32> to vector<16x256xf32>
    %c13 = arith.constant 13 : index
    %c0_49 = arith.constant 0 : index
    %c0_50 = arith.constant 0 : index
    %98 = vector.load %arg7[%c13, %c0_49, %c0_50] : memref<25x16x256xf32, #tpu.memory_space<vmem>>, vector<1x16x256xf32>
    %99 = vector.shape_cast %98 : vector<1x16x256xf32> to vector<16x256xf32>
    %100 = arith.mulf %97, %99 : vector<16x256xf32>
    %101 = arith.addf %96, %100 : vector<16x256xf32>
    %102 = vector.extract_strided_slice %30 {offsets = [0, 258], sizes = [16, 256], strides = [1, 1]} : vector<16x768xf32> to vector<16x256xf32>
    %c14 = arith.constant 14 : index
    %c0_51 = arith.constant 0 : index
    %c0_52 = arith.constant 0 : index
    %103 = vector.load %arg7[%c14, %c0_51, %c0_52] : memref<25x16x256xf32, #tpu.memory_space<vmem>>, vector<1x16x256xf32>
    %104 = vector.shape_cast %103 : vector<1x16x256xf32> to vector<16x256xf32>
    %105 = arith.mulf %102, %104 : vector<16x256xf32>
    %106 = arith.addf %101, %105 : vector<16x256xf32>
    %107 = vector.extract_strided_slice %30 {offsets = [0, 270], sizes = [16, 256], strides = [1, 1]} : vector<16x768xf32> to vector<16x256xf32>
    %c15 = arith.constant 15 : index
    %c0_53 = arith.constant 0 : index
    %c0_54 = arith.constant 0 : index
    %108 = vector.load %arg7[%c15, %c0_53, %c0_54] : memref<25x16x256xf32, #tpu.memory_space<vmem>>, vector<1x16x256xf32>
    %109 = vector.shape_cast %108 : vector<1x16x256xf32> to vector<16x256xf32>
    %110 = arith.mulf %107, %109 : vector<16x256xf32>
    %111 = arith.addf %106, %110 : vector<16x256xf32>
    %112 = vector.extract_strided_slice %30 {offsets = [0, 271], sizes = [16, 256], strides = [1, 1]} : vector<16x768xf32> to vector<16x256xf32>
    %c16 = arith.constant 16 : index
    %c0_55 = arith.constant 0 : index
    %c0_56 = arith.constant 0 : index
    %113 = vector.load %arg7[%c16, %c0_55, %c0_56] : memref<25x16x256xf32, #tpu.memory_space<vmem>>, vector<1x16x256xf32>
    %114 = vector.shape_cast %113 : vector<1x16x256xf32> to vector<16x256xf32>
    %115 = arith.mulf %112, %114 : vector<16x256xf32>
    %116 = arith.addf %111, %115 : vector<16x256xf32>
    %117 = vector.extract_strided_slice %30 {offsets = [0, 272], sizes = [16, 256], strides = [1, 1]} : vector<16x768xf32> to vector<16x256xf32>
    %c17 = arith.constant 17 : index
    %c0_57 = arith.constant 0 : index
    %c0_58 = arith.constant 0 : index
    %118 = vector.load %arg7[%c17, %c0_57, %c0_58] : memref<25x16x256xf32, #tpu.memory_space<vmem>>, vector<1x16x256xf32>
    %119 = vector.shape_cast %118 : vector<1x16x256xf32> to vector<16x256xf32>
    %120 = arith.mulf %117, %119 : vector<16x256xf32>
    %121 = arith.addf %116, %120 : vector<16x256xf32>
    %122 = vector.extract_strided_slice %30 {offsets = [0, 273], sizes = [16, 256], strides = [1, 1]} : vector<16x768xf32> to vector<16x256xf32>
    %c18 = arith.constant 18 : index
    %c0_59 = arith.constant 0 : index
    %c0_60 = arith.constant 0 : index
    %123 = vector.load %arg7[%c18, %c0_59, %c0_60] : memref<25x16x256xf32, #tpu.memory_space<vmem>>, vector<1x16x256xf32>
    %124 = vector.shape_cast %123 : vector<1x16x256xf32> to vector<16x256xf32>
    %125 = arith.mulf %122, %124 : vector<16x256xf32>
    %126 = arith.addf %121, %125 : vector<16x256xf32>
    %127 = vector.extract_strided_slice %30 {offsets = [0, 274], sizes = [16, 256], strides = [1, 1]} : vector<16x768xf32> to vector<16x256xf32>
    %c19 = arith.constant 19 : index
    %c0_61 = arith.constant 0 : index
    %c0_62 = arith.constant 0 : index
    %128 = vector.load %arg7[%c19, %c0_61, %c0_62] : memref<25x16x256xf32, #tpu.memory_space<vmem>>, vector<1x16x256xf32>
    %129 = vector.shape_cast %128 : vector<1x16x256xf32> to vector<16x256xf32>
    %130 = arith.mulf %127, %129 : vector<16x256xf32>
    %131 = arith.addf %126, %130 : vector<16x256xf32>
    %132 = vector.extract_strided_slice %30 {offsets = [0, 286], sizes = [16, 256], strides = [1, 1]} : vector<16x768xf32> to vector<16x256xf32>
    %c20 = arith.constant 20 : index
    %c0_63 = arith.constant 0 : index
    %c0_64 = arith.constant 0 : index
    %133 = vector.load %arg7[%c20, %c0_63, %c0_64] : memref<25x16x256xf32, #tpu.memory_space<vmem>>, vector<1x16x256xf32>
    %134 = vector.shape_cast %133 : vector<1x16x256xf32> to vector<16x256xf32>
    %135 = arith.mulf %132, %134 : vector<16x256xf32>
    %136 = arith.addf %131, %135 : vector<16x256xf32>
    %137 = vector.extract_strided_slice %30 {offsets = [0, 287], sizes = [16, 256], strides = [1, 1]} : vector<16x768xf32> to vector<16x256xf32>
    %c21 = arith.constant 21 : index
    %c0_65 = arith.constant 0 : index
    %c0_66 = arith.constant 0 : index
    %138 = vector.load %arg7[%c21, %c0_65, %c0_66] : memref<25x16x256xf32, #tpu.memory_space<vmem>>, vector<1x16x256xf32>
    %139 = vector.shape_cast %138 : vector<1x16x256xf32> to vector<16x256xf32>
    %140 = arith.mulf %137, %139 : vector<16x256xf32>
    %141 = arith.addf %136, %140 : vector<16x256xf32>
    %142 = vector.extract_strided_slice %30 {offsets = [0, 288], sizes = [16, 256], strides = [1, 1]} : vector<16x768xf32> to vector<16x256xf32>
    %c22 = arith.constant 22 : index
    %c0_67 = arith.constant 0 : index
    %c0_68 = arith.constant 0 : index
    %143 = vector.load %arg7[%c22, %c0_67, %c0_68] : memref<25x16x256xf32, #tpu.memory_space<vmem>>, vector<1x16x256xf32>
    %144 = vector.shape_cast %143 : vector<1x16x256xf32> to vector<16x256xf32>
    %145 = arith.mulf %142, %144 : vector<16x256xf32>
    %146 = arith.addf %141, %145 : vector<16x256xf32>
    %147 = vector.extract_strided_slice %30 {offsets = [0, 289], sizes = [16, 256], strides = [1, 1]} : vector<16x768xf32> to vector<16x256xf32>
    %c23 = arith.constant 23 : index
    %c0_69 = arith.constant 0 : index
    %c0_70 = arith.constant 0 : index
    %148 = vector.load %arg7[%c23, %c0_69, %c0_70] : memref<25x16x256xf32, #tpu.memory_space<vmem>>, vector<1x16x256xf32>
    %149 = vector.shape_cast %148 : vector<1x16x256xf32> to vector<16x256xf32>
    %150 = arith.mulf %147, %149 : vector<16x256xf32>
    %151 = arith.addf %146, %150 : vector<16x256xf32>
    %152 = vector.extract_strided_slice %30 {offsets = [0, 290], sizes = [16, 256], strides = [1, 1]} : vector<16x768xf32> to vector<16x256xf32>
    %c24 = arith.constant 24 : index
    %c0_71 = arith.constant 0 : index
    %c0_72 = arith.constant 0 : index
    %153 = vector.load %arg7[%c24, %c0_71, %c0_72] : memref<25x16x256xf32, #tpu.memory_space<vmem>>, vector<1x16x256xf32>
    %154 = vector.shape_cast %153 : vector<1x16x256xf32> to vector<16x256xf32>
    %155 = arith.mulf %152, %154 : vector<16x256xf32>
    %156 = arith.addf %151, %155 : vector<16x256xf32>
    %c0_73 = arith.constant 0 : index
    %c0_74 = arith.constant 0 : index
    %157 = vector.load %arg8[%c0_73, %c0_74] : memref<16x1xf32, #tpu.memory_space<vmem>>, vector<16x1xf32>
    %158 = vector.broadcast %157 : vector<16x1xf32> to vector<16x256xf32>
    %159 = arith.addf %156, %158 : vector<16x256xf32>
    %c0_75 = arith.constant 0 : index
    %c256_76 = arith.constant 256 : index
    %160 = vector.load %arg16[%c0_75, %c256_76] : memref<16x768xf32, #tpu.memory_space<vmem>>, vector<16x256xf32>
    tpu.vector_store %arg16[%c0_75, %c256_76], %159 {strides = array<i32>} : memref<16x768xf32, #tpu.memory_space<vmem>>, vector<16x256xf32>,
    %c0_77 = arith.constant 0 : index
    %c0_78 = arith.constant 0 : index
    %161 = vector.load %arg16[%c0_77, %c0_78] : memref<16x768xf32, #tpu.memory_space<vmem>>, vector<16x768xf32>
    %cst_79 = arith.constant 0.000000e+00 : f32
    %162 = vector.broadcast %cst_79 : f32 to vector<16x256xf32>
    %163 = vector.extract_strided_slice %161 {offsets = [0, 188], sizes = [16, 256], strides = [1, 1]} : vector<16x768xf32> to vector<16x256xf32>
    %c0_80 = arith.constant 0 : index
    %c0_81 = arith.constant 0 : index
    %c0_82 = arith.constant 0 : index
    %164 = vector.load %arg9[%c0_80, %c0_81, %c0_82] : memref<75x16x256xf32, #tpu.memory_space<vmem>>, vector<1x16x256xf32>
    %165 = vector.shape_cast %164 : vector<1x16x256xf32> to vector<16x256xf32>
    %166 = arith.mulf %163, %165 : vector<16x256xf32>
    %167 = arith.addf %162, %166 : vector<16x256xf32>
    %168 = vector.extract_strided_slice %161 {offsets = [0, 190], sizes = [16, 256], strides = [1, 1]} : vector<16x768xf32> to vector<16x256xf32>
    %c1_83 = arith.constant 1 : index
    %c0_84 = arith.constant 0 : index
    %c0_85 = arith.constant 0 : index
    %169 = vector.load %arg9[%c1_83, %c0_84, %c0_85] : memref<75x16x256xf32, #tpu.memory_space<vmem>>, vector<1x16x256xf32>
    %170 = vector.shape_cast %169 : vector<1x16x256xf32> to vector<16x256xf32>
    %171 = arith.mulf %168, %170 : vector<16x256xf32>
    %172 = arith.addf %167, %171 : vector<16x256xf32>
    %173 = vector.extract_strided_slice %161 {offsets = [0, 192], sizes = [16, 256], strides = [1, 1]} : vector<16x768xf32> to vector<16x256xf32>
    %c2_86 = arith.constant 2 : index
    %c0_87 = arith.constant 0 : index
    %c0_88 = arith.constant 0 : index
    %174 = vector.load %arg9[%c2_86, %c0_87, %c0_88] : memref<75x16x256xf32, #tpu.memory_space<vmem>>, vector<1x16x256xf32>
    %175 = vector.shape_cast %174 : vector<1x16x256xf32> to vector<16x256xf32>
    %176 = arith.mulf %173, %175 : vector<16x256xf32>
    %177 = arith.addf %172, %176 : vector<16x256xf32>
    %178 = vector.extract_strided_slice %161 {offsets = [0, 194], sizes = [16, 256], strides = [1, 1]} : vector<16x768xf32> to vector<16x256xf32>
    %c3_89 = arith.constant 3 : index
    %c0_90 = arith.constant 0 : index
    %c0_91 = arith.constant 0 : index
    %179 = vector.load %arg9[%c3_89, %c0_90, %c0_91] : memref<75x16x256xf32, #tpu.memory_space<vmem>>, vector<1x16x256xf32>
    %180 = vector.shape_cast %179 : vector<1x16x256xf32> to vector<16x256xf32>
    %181 = arith.mulf %178, %180 : vector<16x256xf32>
    %182 = arith.addf %177, %181 : vector<16x256xf32>
    %183 = vector.extract_strided_slice %161 {offsets = [0, 196], sizes = [16, 256], strides = [1, 1]} : vector<16x768xf32> to vector<16x256xf32>
    %c4_92 = arith.constant 4 : index
    %c0_93 = arith.constant 0 : index
    %c0_94 = arith.constant 0 : index
    %184 = vector.load %arg9[%c4_92, %c0_93, %c0_94] : memref<75x16x256xf32, #tpu.memory_space<vmem>>, vector<1x16x256xf32>
    %185 = vector.shape_cast %184 : vector<1x16x256xf32> to vector<16x256xf32>
    %186 = arith.mulf %183, %185 : vector<16x256xf32>
    %187 = arith.addf %182, %186 : vector<16x256xf32>
    %188 = vector.extract_strided_slice %161 {offsets = [0, 220], sizes = [16, 256], strides = [1, 1]} : vector<16x768xf32> to vector<16x256xf32>
    %c5_95 = arith.constant 5 : index
    %c0_96 = arith.constant 0 : index
    %c0_97 = arith.constant 0 : index
    %189 = vector.load %arg9[%c5_95, %c0_96, %c0_97] : memref<75x16x256xf32, #tpu.memory_space<vmem>>, vector<1x16x256xf32>
    %190 = vector.shape_cast %189 : vector<1x16x256xf32> to vector<16x256xf32>
    %191 = arith.mulf %188, %190 : vector<16x256xf32>
    %192 = arith.addf %187, %191 : vector<16x256xf32>
    %193 = vector.extract_strided_slice %161 {offsets = [0, 222], sizes = [16, 256], strides = [1, 1]} : vector<16x768xf32> to vector<16x256xf32>
    %c6_98 = arith.constant 6 : index
    %c0_99 = arith.constant 0 : index
    %c0_100 = arith.constant 0 : index
    %194 = vector.load %arg9[%c6_98, %c0_99, %c0_100] : memref<75x16x256xf32, #tpu.memory_space<vmem>>, vector<1x16x256xf32>
    %195 = vector.shape_cast %194 : vector<1x16x256xf32> to vector<16x256xf32>
    %196 = arith.mulf %193, %195 : vector<16x256xf32>
    %197 = arith.addf %192, %196 : vector<16x256xf32>
    %198 = vector.extract_strided_slice %161 {offsets = [0, 224], sizes = [16, 256], strides = [1, 1]} : vector<16x768xf32> to vector<16x256xf32>
    %c7_101 = arith.constant 7 : index
    %c0_102 = arith.constant 0 : index
    %c0_103 = arith.constant 0 : index
    %199 = vector.load %arg9[%c7_101, %c0_102, %c0_103] : memref<75x16x256xf32, #tpu.memory_space<vmem>>, vector<1x16x256xf32>
    %200 = vector.shape_cast %199 : vector<1x16x256xf32> to vector<16x256xf32>
    %201 = arith.mulf %198, %200 : vector<16x256xf32>
    %202 = arith.addf %197, %201 : vector<16x256xf32>
    %203 = vector.extract_strided_slice %161 {offsets = [0, 226], sizes = [16, 256], strides = [1, 1]} : vector<16x768xf32> to vector<16x256xf32>
    %c8_104 = arith.constant 8 : index
    %c0_105 = arith.constant 0 : index
    %c0_106 = arith.constant 0 : index
    %204 = vector.load %arg9[%c8_104, %c0_105, %c0_106] : memref<75x16x256xf32, #tpu.memory_space<vmem>>, vector<1x16x256xf32>
    %205 = vector.shape_cast %204 : vector<1x16x256xf32> to vector<16x256xf32>
    %206 = arith.mulf %203, %205 : vector<16x256xf32>
    %207 = arith.addf %202, %206 : vector<16x256xf32>
    %208 = vector.extract_strided_slice %161 {offsets = [0, 228], sizes = [16, 256], strides = [1, 1]} : vector<16x768xf32> to vector<16x256xf32>
    %c9_107 = arith.constant 9 : index
    %c0_108 = arith.constant 0 : index
    %c0_109 = arith.constant 0 : index
    %209 = vector.load %arg9[%c9_107, %c0_108, %c0_109] : memref<75x16x256xf32, #tpu.memory_space<vmem>>, vector<1x16x256xf32>
    %210 = vector.shape_cast %209 : vector<1x16x256xf32> to vector<16x256xf32>
    %211 = arith.mulf %208, %210 : vector<16x256xf32>
    %212 = arith.addf %207, %211 : vector<16x256xf32>
    %213 = vector.extract_strided_slice %161 {offsets = [0, 252], sizes = [16, 256], strides = [1, 1]} : vector<16x768xf32> to vector<16x256xf32>
    %c10_110 = arith.constant 10 : index
    %c0_111 = arith.constant 0 : index
    %c0_112 = arith.constant 0 : index
    %214 = vector.load %arg9[%c10_110, %c0_111, %c0_112] : memref<75x16x256xf32, #tpu.memory_space<vmem>>, vector<1x16x256xf32>
    %215 = vector.shape_cast %214 : vector<1x16x256xf32> to vector<16x256xf32>
    %216 = arith.mulf %213, %215 : vector<16x256xf32>
    %217 = arith.addf %212, %216 : vector<16x256xf32>
    %218 = vector.extract_strided_slice %161 {offsets = [0, 254], sizes = [16, 256], strides = [1, 1]} : vector<16x768xf32> to vector<16x256xf32>
    %c11_113 = arith.constant 11 : index
    %c0_114 = arith.constant 0 : index
    %c0_115 = arith.constant 0 : index
    %219 = vector.load %arg9[%c11_113, %c0_114, %c0_115] : memref<75x16x256xf32, #tpu.memory_space<vmem>>, vector<1x16x256xf32>
    %220 = vector.shape_cast %219 : vector<1x16x256xf32> to vector<16x256xf32>
    %221 = arith.mulf %218, %220 : vector<16x256xf32>
    %222 = arith.addf %217, %221 : vector<16x256xf32>
    %223 = vector.extract_strided_slice %161 {offsets = [0, 256], sizes = [16, 256], strides = [1, 1]} : vector<16x768xf32> to vector<16x256xf32>
    %c12_116 = arith.constant 12 : index
    %c0_117 = arith.constant 0 : index
    %c0_118 = arith.constant 0 : index
    %224 = vector.load %arg9[%c12_116, %c0_117, %c0_118] : memref<75x16x256xf32, #tpu.memory_space<vmem>>, vector<1x16x256xf32>
    %225 = vector.shape_cast %224 : vector<1x16x256xf32> to vector<16x256xf32>
    %226 = arith.mulf %223, %225 : vector<16x256xf32>
    %227 = arith.addf %222, %226 : vector<16x256xf32>
    %228 = vector.extract_strided_slice %161 {offsets = [0, 258], sizes = [16, 256], strides = [1, 1]} : vector<16x768xf32> to vector<16x256xf32>
    %c13_119 = arith.constant 13 : index
    %c0_120 = arith.constant 0 : index
    %c0_121 = arith.constant 0 : index
    %229 = vector.load %arg9[%c13_119, %c0_120, %c0_121] : memref<75x16x256xf32, #tpu.memory_space<vmem>>, vector<1x16x256xf32>
    %230 = vector.shape_cast %229 : vector<1x16x256xf32> to vector<16x256xf32>
    %231 = arith.mulf %228, %230 : vector<16x256xf32>
    %232 = arith.addf %227, %231 : vector<16x256xf32>
    %233 = vector.extract_strided_slice %161 {offsets = [0, 260], sizes = [16, 256], strides = [1, 1]} : vector<16x768xf32> to vector<16x256xf32>
    %c14_122 = arith.constant 14 : index
    %c0_123 = arith.constant 0 : index
    %c0_124 = arith.constant 0 : index
    %234 = vector.load %arg9[%c14_122, %c0_123, %c0_124] : memref<75x16x256xf32, #tpu.memory_space<vmem>>, vector<1x16x256xf32>
    %235 = vector.shape_cast %234 : vector<1x16x256xf32> to vector<16x256xf32>
    %236 = arith.mulf %233, %235 : vector<16x256xf32>
    %237 = arith.addf %232, %236 : vector<16x256xf32>
    %238 = vector.extract_strided_slice %161 {offsets = [0, 284], sizes = [16, 256], strides = [1, 1]} : vector<16x768xf32> to vector<16x256xf32>
    %c15_125 = arith.constant 15 : index
    %c0_126 = arith.constant 0 : index
    %c0_127 = arith.constant 0 : index
    %239 = vector.load %arg9[%c15_125, %c0_126, %c0_127] : memref<75x16x256xf32, #tpu.memory_space<vmem>>, vector<1x16x256xf32>
    %240 = vector.shape_cast %239 : vector<1x16x256xf32> to vector<16x256xf32>
    %241 = arith.mulf %238, %240 : vector<16x256xf32>
    %242 = arith.addf %237, %241 : vector<16x256xf32>
    %243 = vector.extract_strided_slice %161 {offsets = [0, 286], sizes = [16, 256], strides = [1, 1]} : vector<16x768xf32> to vector<16x256xf32>
    %c16_128 = arith.constant 16 : index
    %c0_129 = arith.constant 0 : index
    %c0_130 = arith.constant 0 : index
    %244 = vector.load %arg9[%c16_128, %c0_129, %c0_130] : memref<75x16x256xf32, #tpu.memory_space<vmem>>, vector<1x16x256xf32>
    %245 = vector.shape_cast %244 : vector<1x16x256xf32> to vector<16x256xf32>
    %246 = arith.mulf %243, %245 : vector<16x256xf32>
    %247 = arith.addf %242, %246 : vector<16x256xf32>
    %248 = vector.extract_strided_slice %161 {offsets = [0, 288], sizes = [16, 256], strides = [1, 1]} : vector<16x768xf32> to vector<16x256xf32>
    %c17_131 = arith.constant 17 : index
    %c0_132 = arith.constant 0 : index
    %c0_133 = arith.constant 0 : index
    %249 = vector.load %arg9[%c17_131, %c0_132, %c0_133] : memref<75x16x256xf32, #tpu.memory_space<vmem>>, vector<1x16x256xf32>
    %250 = vector.shape_cast %249 : vector<1x16x256xf32> to vector<16x256xf32>
    %251 = arith.mulf %248, %250 : vector<16x256xf32>
    %252 = arith.addf %247, %251 : vector<16x256xf32>
    %253 = vector.extract_strided_slice %161 {offsets = [0, 290], sizes = [16, 256], strides = [1, 1]} : vector<16x768xf32> to vector<16x256xf32>
    %c18_134 = arith.constant 18 : index
    %c0_135 = arith.constant 0 : index
    %c0_136 = arith.constant 0 : index
    %254 = vector.load %arg9[%c18_134, %c0_135, %c0_136] : memref<75x16x256xf32, #tpu.memory_space<vmem>>, vector<1x16x256xf32>
    %255 = vector.shape_cast %254 : vector<1x16x256xf32> to vector<16x256xf32>
    %256 = arith.mulf %253, %255 : vector<16x256xf32>
    %257 = arith.addf %252, %256 : vector<16x256xf32>
    %258 = vector.extract_strided_slice %161 {offsets = [0, 292], sizes = [16, 256], strides = [1, 1]} : vector<16x768xf32> to vector<16x256xf32>
    %c19_137 = arith.constant 19 : index
    %c0_138 = arith.constant 0 : index
    %c0_139 = arith.constant 0 : index
    %259 = vector.load %arg9[%c19_137, %c0_138, %c0_139] : memref<75x16x256xf32, #tpu.memory_space<vmem>>, vector<1x16x256xf32>
    %260 = vector.shape_cast %259 : vector<1x16x256xf32> to vector<16x256xf32>
    %261 = arith.mulf %258, %260 : vector<16x256xf32>
    %262 = arith.addf %257, %261 : vector<16x256xf32>
    %263 = vector.extract_strided_slice %161 {offsets = [0, 316], sizes = [16, 256], strides = [1, 1]} : vector<16x768xf32> to vector<16x256xf32>
    %c20_140 = arith.constant 20 : index
    %c0_141 = arith.constant 0 : index
    %c0_142 = arith.constant 0 : index
    %264 = vector.load %arg9[%c20_140, %c0_141, %c0_142] : memref<75x16x256xf32, #tpu.memory_space<vmem>>, vector<1x16x256xf32>
    %265 = vector.shape_cast %264 : vector<1x16x256xf32> to vector<16x256xf32>
    %266 = arith.mulf %263, %265 : vector<16x256xf32>
    %267 = arith.addf %262, %266 : vector<16x256xf32>
    %268 = vector.extract_strided_slice %161 {offsets = [0, 318], sizes = [16, 256], strides = [1, 1]} : vector<16x768xf32> to vector<16x256xf32>
    %c21_143 = arith.constant 21 : index
    %c0_144 = arith.constant 0 : index
    %c0_145 = arith.constant 0 : index
    %269 = vector.load %arg9[%c21_143, %c0_144, %c0_145] : memref<75x16x256xf32, #tpu.memory_space<vmem>>, vector<1x16x256xf32>
    %270 = vector.shape_cast %269 : vector<1x16x256xf32> to vector<16x256xf32>
    %271 = arith.mulf %268, %270 : vector<16x256xf32>
    %272 = arith.addf %267, %271 : vector<16x256xf32>
    %273 = vector.extract_strided_slice %161 {offsets = [0, 320], sizes = [16, 256], strides = [1, 1]} : vector<16x768xf32> to vector<16x256xf32>
    %c22_146 = arith.constant 22 : index
    %c0_147 = arith.constant 0 : index
    %c0_148 = arith.constant 0 : index
    %274 = vector.load %arg9[%c22_146, %c0_147, %c0_148] : memref<75x16x256xf32, #tpu.memory_space<vmem>>, vector<1x16x256xf32>
    %275 = vector.shape_cast %274 : vector<1x16x256xf32> to vector<16x256xf32>
    %276 = arith.mulf %273, %275 : vector<16x256xf32>
    %277 = arith.addf %272, %276 : vector<16x256xf32>
    %278 = vector.extract_strided_slice %161 {offsets = [0, 322], sizes = [16, 256], strides = [1, 1]} : vector<16x768xf32> to vector<16x256xf32>
    %c23_149 = arith.constant 23 : index
    %c0_150 = arith.constant 0 : index
    %c0_151 = arith.constant 0 : index
    %279 = vector.load %arg9[%c23_149, %c0_150, %c0_151] : memref<75x16x256xf32, #tpu.memory_space<vmem>>, vector<1x16x256xf32>
    %280 = vector.shape_cast %279 : vector<1x16x256xf32> to vector<16x256xf32>
    %281 = arith.mulf %278, %280 : vector<16x256xf32>
    %282 = arith.addf %277, %281 : vector<16x256xf32>
    %283 = vector.extract_strided_slice %161 {offsets = [0, 324], sizes = [16, 256], strides = [1, 1]} : vector<16x768xf32> to vector<16x256xf32>
    %c24_152 = arith.constant 24 : index
    %c0_153 = arith.constant 0 : index
    %c0_154 = arith.constant 0 : index
    %284 = vector.load %arg9[%c24_152, %c0_153, %c0_154] : memref<75x16x256xf32, #tpu.memory_space<vmem>>, vector<1x16x256xf32>
    %285 = vector.shape_cast %284 : vector<1x16x256xf32> to vector<16x256xf32>
    %286 = arith.mulf %283, %285 : vector<16x256xf32>
    %287 = arith.addf %282, %286 : vector<16x256xf32>
    %288 = vector.extract_strided_slice %161 {offsets = [0, 103], sizes = [16, 256], strides = [1, 1]} : vector<16x768xf32> to vector<16x256xf32>
    %c25 = arith.constant 25 : index
    %c0_155 = arith.constant 0 : index
    %c0_156 = arith.constant 0 : index
    %289 = vector.load %arg9[%c25, %c0_155, %c0_156] : memref<75x16x256xf32, #tpu.memory_space<vmem>>, vector<1x16x256xf32>
    %290 = vector.shape_cast %289 : vector<1x16x256xf32> to vector<16x256xf32>
    %291 = arith.mulf %288, %290 : vector<16x256xf32>
    %292 = arith.addf %287, %291 : vector<16x256xf32>
    %293 = vector.extract_strided_slice %161 {offsets = [0, 106], sizes = [16, 256], strides = [1, 1]} : vector<16x768xf32> to vector<16x256xf32>
    %c26 = arith.constant 26 : index
    %c0_157 = arith.constant 0 : index
    %c0_158 = arith.constant 0 : index
    %294 = vector.load %arg9[%c26, %c0_157, %c0_158] : memref<75x16x256xf32, #tpu.memory_space<vmem>>, vector<1x16x256xf32>
    %295 = vector.shape_cast %294 : vector<1x16x256xf32> to vector<16x256xf32>
    %296 = arith.mulf %293, %295 : vector<16x256xf32>
    %297 = arith.addf %292, %296 : vector<16x256xf32>
    %298 = vector.extract_strided_slice %161 {offsets = [0, 109], sizes = [16, 256], strides = [1, 1]} : vector<16x768xf32> to vector<16x256xf32>
    %c27 = arith.constant 27 : index
    %c0_159 = arith.constant 0 : index
    %c0_160 = arith.constant 0 : index
    %299 = vector.load %arg9[%c27, %c0_159, %c0_160] : memref<75x16x256xf32, #tpu.memory_space<vmem>>, vector<1x16x256xf32>
    %300 = vector.shape_cast %299 : vector<1x16x256xf32> to vector<16x256xf32>
    %301 = arith.mulf %298, %300 : vector<16x256xf32>
    %302 = arith.addf %297, %301 : vector<16x256xf32>
    %303 = vector.extract_strided_slice %161 {offsets = [0, 112], sizes = [16, 256], strides = [1, 1]} : vector<16x768xf32> to vector<16x256xf32>
    %c28 = arith.constant 28 : index
    %c0_161 = arith.constant 0 : index
    %c0_162 = arith.constant 0 : index
    %304 = vector.load %arg9[%c28, %c0_161, %c0_162] : memref<75x16x256xf32, #tpu.memory_space<vmem>>, vector<1x16x256xf32>
    %305 = vector.shape_cast %304 : vector<1x16x256xf32> to vector<16x256xf32>
    %306 = arith.mulf %303, %305 : vector<16x256xf32>
    %307 = arith.addf %302, %306 : vector<16x256xf32>
    %308 = vector.extract_strided_slice %161 {offsets = [0, 115], sizes = [16, 256], strides = [1, 1]} : vector<16x768xf32> to vector<16x256xf32>
    %c29 = arith.constant 29 : index
    %c0_163 = arith.constant 0 : index
    %c0_164 = arith.constant 0 : index
    %309 = vector.load %arg9[%c29, %c0_163, %c0_164] : memref<75x16x256xf32, #tpu.memory_space<vmem>>, vector<1x16x256xf32>
    %310 = vector.shape_cast %309 : vector<1x16x256xf32> to vector<16x256xf32>
    %311 = arith.mulf %308, %310 : vector<16x256xf32>
    %312 = arith.addf %307, %311 : vector<16x256xf32>
    %313 = vector.extract_strided_slice %161 {offsets = [0, 118], sizes = [16, 256], strides = [1, 1]} : vector<16x768xf32> to vector<16x256xf32>
    %c30 = arith.constant 30 : index
    %c0_165 = arith.constant 0 : index
    %c0_166 = arith.constant 0 : index
    %314 = vector.load %arg9[%c30, %c0_165, %c0_166] : memref<75x16x256xf32, #tpu.memory_space<vmem>>, vector<1x16x256xf32>
    %315 = vector.shape_cast %314 : vector<1x16x256xf32> to vector<16x256xf32>
    %316 = arith.mulf %313, %315 : vector<16x256xf32>
    %317 = arith.addf %312, %316 : vector<16x256xf32>
    %318 = vector.extract_strided_slice %161 {offsets = [0, 121], sizes = [16, 256], strides = [1, 1]} : vector<16x768xf32> to vector<16x256xf32>
    %c31 = arith.constant 31 : index
    %c0_167 = arith.constant 0 : index
    %c0_168 = arith.constant 0 : index
    %319 = vector.load %arg9[%c31, %c0_167, %c0_168] : memref<75x16x256xf32, #tpu.memory_space<vmem>>, vector<1x16x256xf32>
    %320 = vector.shape_cast %319 : vector<1x16x256xf32> to vector<16x256xf32>
    %321 = arith.mulf %318, %320 : vector<16x256xf32>
    %322 = arith.addf %317, %321 : vector<16x256xf32>
    %323 = vector.extract_strided_slice %161 {offsets = [0, 151], sizes = [16, 256], strides = [1, 1]} : vector<16x768xf32> to vector<16x256xf32>
    %c32 = arith.constant 32 : index
    %c0_169 = arith.constant 0 : index
    %c0_170 = arith.constant 0 : index
    %324 = vector.load %arg9[%c32, %c0_169, %c0_170] : memref<75x16x256xf32, #tpu.memory_space<vmem>>, vector<1x16x256xf32>
    %325 = vector.shape_cast %324 : vector<1x16x256xf32> to vector<16x256xf32>
    %326 = arith.mulf %323, %325 : vector<16x256xf32>
    %327 = arith.addf %322, %326 : vector<16x256xf32>
    %328 = vector.extract_strided_slice %161 {offsets = [0, 154], sizes = [16, 256], strides = [1, 1]} : vector<16x768xf32> to vector<16x256xf32>
    %c33 = arith.constant 33 : index
    %c0_171 = arith.constant 0 : index
    %c0_172 = arith.constant 0 : index
    %329 = vector.load %arg9[%c33, %c0_171, %c0_172] : memref<75x16x256xf32, #tpu.memory_space<vmem>>, vector<1x16x256xf32>
    %330 = vector.shape_cast %329 : vector<1x16x256xf32> to vector<16x256xf32>
    %331 = arith.mulf %328, %330 : vector<16x256xf32>
    %332 = arith.addf %327, %331 : vector<16x256xf32>
    %333 = vector.extract_strided_slice %161 {offsets = [0, 157], sizes = [16, 256], strides = [1, 1]} : vector<16x768xf32> to vector<16x256xf32>
    %c34 = arith.constant 34 : index
    %c0_173 = arith.constant 0 : index
    %c0_174 = arith.constant 0 : index
    %334 = vector.load %arg9[%c34, %c0_173, %c0_174] : memref<75x16x256xf32, #tpu.memory_space<vmem>>, vector<1x16x256xf32>
    %335 = vector.shape_cast %334 : vector<1x16x256xf32> to vector<16x256xf32>
    %336 = arith.mulf %333, %335 : vector<16x256xf32>
    %337 = arith.addf %332, %336 : vector<16x256xf32>
    %338 = vector.extract_strided_slice %161 {offsets = [0, 160], sizes = [16, 256], strides = [1, 1]} : vector<16x768xf32> to vector<16x256xf32>
    %c35 = arith.constant 35 : index
    %c0_175 = arith.constant 0 : index
    %c0_176 = arith.constant 0 : index
    %339 = vector.load %arg9[%c35, %c0_175, %c0_176] : memref<75x16x256xf32, #tpu.memory_space<vmem>>, vector<1x16x256xf32>
    %340 = vector.shape_cast %339 : vector<1x16x256xf32> to vector<16x256xf32>
    %341 = arith.mulf %338, %340 : vector<16x256xf32>
    %342 = arith.addf %337, %341 : vector<16x256xf32>
    %343 = vector.extract_strided_slice %161 {offsets = [0, 163], sizes = [16, 256], strides = [1, 1]} : vector<16x768xf32> to vector<16x256xf32>
    %c36 = arith.constant 36 : index
    %c0_177 = arith.constant 0 : index
    %c0_178 = arith.constant 0 : index
    %344 = vector.load %arg9[%c36, %c0_177, %c0_178] : memref<75x16x256xf32, #tpu.memory_space<vmem>>, vector<1x16x256xf32>
    %345 = vector.shape_cast %344 : vector<1x16x256xf32> to vector<16x256xf32>
    %346 = arith.mulf %343, %345 : vector<16x256xf32>
    %347 = arith.addf %342, %346 : vector<16x256xf32>
    %348 = vector.extract_strided_slice %161 {offsets = [0, 166], sizes = [16, 256], strides = [1, 1]} : vector<16x768xf32> to vector<16x256xf32>
    %c37 = arith.constant 37 : index
    %c0_179 = arith.constant 0 : index
    %c0_180 = arith.constant 0 : index
    %349 = vector.load %arg9[%c37, %c0_179, %c0_180] : memref<75x16x256xf32, #tpu.memory_space<vmem>>, vector<1x16x256xf32>
    %350 = vector.shape_cast %349 : vector<1x16x256xf32> to vector<16x256xf32>
    %351 = arith.mulf %348, %350 : vector<16x256xf32>
    %352 = arith.addf %347, %351 : vector<16x256xf32>
    %353 = vector.extract_strided_slice %161 {offsets = [0, 169], sizes = [16, 256], strides = [1, 1]} : vector<16x768xf32> to vector<16x256xf32>
    %c38 = arith.constant 38 : index
    %c0_181 = arith.constant 0 : index
    %c0_182 = arith.constant 0 : index
    %354 = vector.load %arg9[%c38, %c0_181, %c0_182] : memref<75x16x256xf32, #tpu.memory_space<vmem>>, vector<1x16x256xf32>
    %355 = vector.shape_cast %354 : vector<1x16x256xf32> to vector<16x256xf32>
    %356 = arith.mulf %353, %355 : vector<16x256xf32>
    %357 = arith.addf %352, %356 : vector<16x256xf32>
    %358 = vector.extract_strided_slice %161 {offsets = [0, 199], sizes = [16, 256], strides = [1, 1]} : vector<16x768xf32> to vector<16x256xf32>
    %c39 = arith.constant 39 : index
    %c0_183 = arith.constant 0 : index
    %c0_184 = arith.constant 0 : index
    %359 = vector.load %arg9[%c39, %c0_183, %c0_184] : memref<75x16x256xf32, #tpu.memory_space<vmem>>, vector<1x16x256xf32>
    %360 = vector.shape_cast %359 : vector<1x16x256xf32> to vector<16x256xf32>
    %361 = arith.mulf %358, %360 : vector<16x256xf32>
    %362 = arith.addf %357, %361 : vector<16x256xf32>
    %363 = vector.extract_strided_slice %161 {offsets = [0, 202], sizes = [16, 256], strides = [1, 1]} : vector<16x768xf32> to vector<16x256xf32>
    %c40 = arith.constant 40 : index
    %c0_185 = arith.constant 0 : index
    %c0_186 = arith.constant 0 : index
    %364 = vector.load %arg9[%c40, %c0_185, %c0_186] : memref<75x16x256xf32, #tpu.memory_space<vmem>>, vector<1x16x256xf32>
    %365 = vector.shape_cast %364 : vector<1x16x256xf32> to vector<16x256xf32>
    %366 = arith.mulf %363, %365 : vector<16x256xf32>
    %367 = arith.addf %362, %366 : vector<16x256xf32>
    %368 = vector.extract_strided_slice %161 {offsets = [0, 205], sizes = [16, 256], strides = [1, 1]} : vector<16x768xf32> to vector<16x256xf32>
    %c41 = arith.constant 41 : index
    %c0_187 = arith.constant 0 : index
    %c0_188 = arith.constant 0 : index
    %369 = vector.load %arg9[%c41, %c0_187, %c0_188] : memref<75x16x256xf32, #tpu.memory_space<vmem>>, vector<1x16x256xf32>
    %370 = vector.shape_cast %369 : vector<1x16x256xf32> to vector<16x256xf32>
    %371 = arith.mulf %368, %370 : vector<16x256xf32>
    %372 = arith.addf %367, %371 : vector<16x256xf32>
    %373 = vector.extract_strided_slice %161 {offsets = [0, 208], sizes = [16, 256], strides = [1, 1]} : vector<16x768xf32> to vector<16x256xf32>
    %c42 = arith.constant 42 : index
    %c0_189 = arith.constant 0 : index
    %c0_190 = arith.constant 0 : index
    %374 = vector.load %arg9[%c42, %c0_189, %c0_190] : memref<75x16x256xf32, #tpu.memory_space<vmem>>, vector<1x16x256xf32>
    %375 = vector.shape_cast %374 : vector<1x16x256xf32> to vector<16x256xf32>
    %376 = arith.mulf %373, %375 : vector<16x256xf32>
    %377 = arith.addf %372, %376 : vector<16x256xf32>
    %378 = vector.extract_strided_slice %161 {offsets = [0, 211], sizes = [16, 256], strides = [1, 1]} : vector<16x768xf32> to vector<16x256xf32>
    %c43 = arith.constant 43 : index
    %c0_191 = arith.constant 0 : index
    %c0_192 = arith.constant 0 : index
    %379 = vector.load %arg9[%c43, %c0_191, %c0_192] : memref<75x16x256xf32, #tpu.memory_space<vmem>>, vector<1x16x256xf32>
    %380 = vector.shape_cast %379 : vector<1x16x256xf32> to vector<16x256xf32>
    %381 = arith.mulf %378, %380 : vector<16x256xf32>
    %382 = arith.addf %377, %381 : vector<16x256xf32>
    %383 = vector.extract_strided_slice %161 {offsets = [0, 214], sizes = [16, 256], strides = [1, 1]} : vector<16x768xf32> to vector<16x256xf32>
    %c44 = arith.constant 44 : index
    %c0_193 = arith.constant 0 : index
    %c0_194 = arith.constant 0 : index
    %384 = vector.load %arg9[%c44, %c0_193, %c0_194] : memref<75x16x256xf32, #tpu.memory_space<vmem>>, vector<1x16x256xf32>
    %385 = vector.shape_cast %384 : vector<1x16x256xf32> to vector<16x256xf32>
    %386 = arith.mulf %383, %385 : vector<16x256xf32>
    %387 = arith.addf %382, %386 : vector<16x256xf32>
    %388 = vector.extract_strided_slice %161 {offsets = [0, 217], sizes = [16, 256], strides = [1, 1]} : vector<16x768xf32> to vector<16x256xf32>
    %c45 = arith.constant 45 : index
    %c0_195 = arith.constant 0 : index
    %c0_196 = arith.constant 0 : index
    %389 = vector.load %arg9[%c45, %c0_195, %c0_196] : memref<75x16x256xf32, #tpu.memory_space<vmem>>, vector<1x16x256xf32>
    %390 = vector.shape_cast %389 : vector<1x16x256xf32> to vector<16x256xf32>
    %391 = arith.mulf %388, %390 : vector<16x256xf32>
    %392 = arith.addf %387, %391 : vector<16x256xf32>
    %393 = vector.extract_strided_slice %161 {offsets = [0, 247], sizes = [16, 256], strides = [1, 1]} : vector<16x768xf32> to vector<16x256xf32>
    %c46 = arith.constant 46 : index
    %c0_197 = arith.constant 0 : index
    %c0_198 = arith.constant 0 : index
    %394 = vector.load %arg9[%c46, %c0_197, %c0_198] : memref<75x16x256xf32, #tpu.memory_space<vmem>>, vector<1x16x256xf32>
    %395 = vector.shape_cast %394 : vector<1x16x256xf32> to vector<16x256xf32>
    %396 = arith.mulf %393, %395 : vector<16x256xf32>
    %397 = arith.addf %392, %396 : vector<16x256xf32>
    %398 = vector.extract_strided_slice %161 {offsets = [0, 250], sizes = [16, 256], strides = [1, 1]} : vector<16x768xf32> to vector<16x256xf32>
    %c47 = arith.constant 47 : index
    %c0_199 = arith.constant 0 : index
    %c0_200 = arith.constant 0 : index
    %399 = vector.load %arg9[%c47, %c0_199, %c0_200] : memref<75x16x256xf32, #tpu.memory_space<vmem>>, vector<1x16x256xf32>
    %400 = vector.shape_cast %399 : vector<1x16x256xf32> to vector<16x256xf32>
    %401 = arith.mulf %398, %400 : vector<16x256xf32>
    %402 = arith.addf %397, %401 : vector<16x256xf32>
    %403 = vector.extract_strided_slice %161 {offsets = [0, 253], sizes = [16, 256], strides = [1, 1]} : vector<16x768xf32> to vector<16x256xf32>
    %c48 = arith.constant 48 : index
    %c0_201 = arith.constant 0 : index
    %c0_202 = arith.constant 0 : index
    %404 = vector.load %arg9[%c48, %c0_201, %c0_202] : memref<75x16x256xf32, #tpu.memory_space<vmem>>, vector<1x16x256xf32>
    %405 = vector.shape_cast %404 : vector<1x16x256xf32> to vector<16x256xf32>
    %406 = arith.mulf %403, %405 : vector<16x256xf32>
    %407 = arith.addf %402, %406 : vector<16x256xf32>
    %408 = vector.extract_strided_slice %161 {offsets = [0, 256], sizes = [16, 256], strides = [1, 1]} : vector<16x768xf32> to vector<16x256xf32>
    %c49 = arith.constant 49 : index
    %c0_203 = arith.constant 0 : index
    %c0_204 = arith.constant 0 : index
    %409 = vector.load %arg9[%c49, %c0_203, %c0_204] : memref<75x16x256xf32, #tpu.memory_space<vmem>>, vector<1x16x256xf32>
    %410 = vector.shape_cast %409 : vector<1x16x256xf32> to vector<16x256xf32>
    %411 = arith.mulf %408, %410 : vector<16x256xf32>
    %412 = arith.addf %407, %411 : vector<16x256xf32>
    %413 = vector.extract_strided_slice %161 {offsets = [0, 259], sizes = [16, 256], strides = [1, 1]} : vector<16x768xf32> to vector<16x256xf32>
    %c50 = arith.constant 50 : index
    %c0_205 = arith.constant 0 : index
    %c0_206 = arith.constant 0 : index
    %414 = vector.load %arg9[%c50, %c0_205, %c0_206] : memref<75x16x256xf32, #tpu.memory_space<vmem>>, vector<1x16x256xf32>
    %415 = vector.shape_cast %414 : vector<1x16x256xf32> to vector<16x256xf32>
    %416 = arith.mulf %413, %415 : vector<16x256xf32>
    %417 = arith.addf %412, %416 : vector<16x256xf32>
    %418 = vector.extract_strided_slice %161 {offsets = [0, 262], sizes = [16, 256], strides = [1, 1]} : vector<16x768xf32> to vector<16x256xf32>
    %c51 = arith.constant 51 : index
    %c0_207 = arith.constant 0 : index
    %c0_208 = arith.constant 0 : index
    %419 = vector.load %arg9[%c51, %c0_207, %c0_208] : memref<75x16x256xf32, #tpu.memory_space<vmem>>, vector<1x16x256xf32>
    %420 = vector.shape_cast %419 : vector<1x16x256xf32> to vector<16x256xf32>
    %421 = arith.mulf %418, %420 : vector<16x256xf32>
    %422 = arith.addf %417, %421 : vector<16x256xf32>
    %423 = vector.extract_strided_slice %161 {offsets = [0, 265], sizes = [16, 256], strides = [1, 1]} : vector<16x768xf32> to vector<16x256xf32>
    %c52 = arith.constant 52 : index
    %c0_209 = arith.constant 0 : index
    %c0_210 = arith.constant 0 : index
    %424 = vector.load %arg9[%c52, %c0_209, %c0_210] : memref<75x16x256xf32, #tpu.memory_space<vmem>>, vector<1x16x256xf32>
    %425 = vector.shape_cast %424 : vector<1x16x256xf32> to vector<16x256xf32>
    %426 = arith.mulf %423, %425 : vector<16x256xf32>
    %427 = arith.addf %422, %426 : vector<16x256xf32>
    %428 = vector.extract_strided_slice %161 {offsets = [0, 295], sizes = [16, 256], strides = [1, 1]} : vector<16x768xf32> to vector<16x256xf32>
    %c53 = arith.constant 53 : index
    %c0_211 = arith.constant 0 : index
    %c0_212 = arith.constant 0 : index
    %429 = vector.load %arg9[%c53, %c0_211, %c0_212] : memref<75x16x256xf32, #tpu.memory_space<vmem>>, vector<1x16x256xf32>
    %430 = vector.shape_cast %429 : vector<1x16x256xf32> to vector<16x256xf32>
    %431 = arith.mulf %428, %430 : vector<16x256xf32>
    %432 = arith.addf %427, %431 : vector<16x256xf32>
    %433 = vector.extract_strided_slice %161 {offsets = [0, 298], sizes = [16, 256], strides = [1, 1]} : vector<16x768xf32> to vector<16x256xf32>
    %c54 = arith.constant 54 : index
    %c0_213 = arith.constant 0 : index
    %c0_214 = arith.constant 0 : index
    %434 = vector.load %arg9[%c54, %c0_213, %c0_214] : memref<75x16x256xf32, #tpu.memory_space<vmem>>, vector<1x16x256xf32>
    %435 = vector.shape_cast %434 : vector<1x16x256xf32> to vector<16x256xf32>
    %436 = arith.mulf %433, %435 : vector<16x256xf32>
    %437 = arith.addf %432, %436 : vector<16x256xf32>
    %438 = vector.extract_strided_slice %161 {offsets = [0, 301], sizes = [16, 256], strides = [1, 1]} : vector<16x768xf32> to vector<16x256xf32>
    %c55 = arith.constant 55 : index
    %c0_215 = arith.constant 0 : index
    %c0_216 = arith.constant 0 : index
    %439 = vector.load %arg9[%c55, %c0_215, %c0_216] : memref<75x16x256xf32, #tpu.memory_space<vmem>>, vector<1x16x256xf32>
    %440 = vector.shape_cast %439 : vector<1x16x256xf32> to vector<16x256xf32>
    %441 = arith.mulf %438, %440 : vector<16x256xf32>
    %442 = arith.addf %437, %441 : vector<16x256xf32>
    %443 = vector.extract_strided_slice %161 {offsets = [0, 304], sizes = [16, 256], strides = [1, 1]} : vector<16x768xf32> to vector<16x256xf32>
    %c56 = arith.constant 56 : index
    %c0_217 = arith.constant 0 : index
    %c0_218 = arith.constant 0 : index
    %444 = vector.load %arg9[%c56, %c0_217, %c0_218] : memref<75x16x256xf32, #tpu.memory_space<vmem>>, vector<1x16x256xf32>
    %445 = vector.shape_cast %444 : vector<1x16x256xf32> to vector<16x256xf32>
    %446 = arith.mulf %443, %445 : vector<16x256xf32>
    %447 = arith.addf %442, %446 : vector<16x256xf32>
    %448 = vector.extract_strided_slice %161 {offsets = [0, 307], sizes = [16, 256], strides = [1, 1]} : vector<16x768xf32> to vector<16x256xf32>
    %c57 = arith.constant 57 : index
    %c0_219 = arith.constant 0 : index
    %c0_220 = arith.constant 0 : index
    %449 = vector.load %arg9[%c57, %c0_219, %c0_220] : memref<75x16x256xf32, #tpu.memory_space<vmem>>, vector<1x16x256xf32>
    %450 = vector.shape_cast %449 : vector<1x16x256xf32> to vector<16x256xf32>
    %451 = arith.mulf %448, %450 : vector<16x256xf32>
    %452 = arith.addf %447, %451 : vector<16x256xf32>
    %453 = vector.extract_strided_slice %161 {offsets = [0, 310], sizes = [16, 256], strides = [1, 1]} : vector<16x768xf32> to vector<16x256xf32>
    %c58 = arith.constant 58 : index
    %c0_221 = arith.constant 0 : index
    %c0_222 = arith.constant 0 : index
    %454 = vector.load %arg9[%c58, %c0_221, %c0_222] : memref<75x16x256xf32, #tpu.memory_space<vmem>>, vector<1x16x256xf32>
    %455 = vector.shape_cast %454 : vector<1x16x256xf32> to vector<16x256xf32>
    %456 = arith.mulf %453, %455 : vector<16x256xf32>
    %457 = arith.addf %452, %456 : vector<16x256xf32>
    %458 = vector.extract_strided_slice %161 {offsets = [0, 313], sizes = [16, 256], strides = [1, 1]} : vector<16x768xf32> to vector<16x256xf32>
    %c59 = arith.constant 59 : index
    %c0_223 = arith.constant 0 : index
    %c0_224 = arith.constant 0 : index
    %459 = vector.load %arg9[%c59, %c0_223, %c0_224] : memref<75x16x256xf32, #tpu.memory_space<vmem>>, vector<1x16x256xf32>
    %460 = vector.shape_cast %459 : vector<1x16x256xf32> to vector<16x256xf32>
    %461 = arith.mulf %458, %460 : vector<16x256xf32>
    %462 = arith.addf %457, %461 : vector<16x256xf32>
    %463 = vector.extract_strided_slice %161 {offsets = [0, 343], sizes = [16, 256], strides = [1, 1]} : vector<16x768xf32> to vector<16x256xf32>
    %c60 = arith.constant 60 : index
    %c0_225 = arith.constant 0 : index
    %c0_226 = arith.constant 0 : index
    %464 = vector.load %arg9[%c60, %c0_225, %c0_226] : memref<75x16x256xf32, #tpu.memory_space<vmem>>, vector<1x16x256xf32>
    %465 = vector.shape_cast %464 : vector<1x16x256xf32> to vector<16x256xf32>
    %466 = arith.mulf %463, %465 : vector<16x256xf32>
    %467 = arith.addf %462, %466 : vector<16x256xf32>
    %468 = vector.extract_strided_slice %161 {offsets = [0, 346], sizes = [16, 256], strides = [1, 1]} : vector<16x768xf32> to vector<16x256xf32>
    %c61 = arith.constant 61 : index
    %c0_227 = arith.constant 0 : index
    %c0_228 = arith.constant 0 : index
    %469 = vector.load %arg9[%c61, %c0_227, %c0_228] : memref<75x16x256xf32, #tpu.memory_space<vmem>>, vector<1x16x256xf32>
    %470 = vector.shape_cast %469 : vector<1x16x256xf32> to vector<16x256xf32>
    %471 = arith.mulf %468, %470 : vector<16x256xf32>
    %472 = arith.addf %467, %471 : vector<16x256xf32>
    %473 = vector.extract_strided_slice %161 {offsets = [0, 349], sizes = [16, 256], strides = [1, 1]} : vector<16x768xf32> to vector<16x256xf32>
    %c62 = arith.constant 62 : index
    %c0_229 = arith.constant 0 : index
    %c0_230 = arith.constant 0 : index
    %474 = vector.load %arg9[%c62, %c0_229, %c0_230] : memref<75x16x256xf32, #tpu.memory_space<vmem>>, vector<1x16x256xf32>
    %475 = vector.shape_cast %474 : vector<1x16x256xf32> to vector<16x256xf32>
    %476 = arith.mulf %473, %475 : vector<16x256xf32>
    %477 = arith.addf %472, %476 : vector<16x256xf32>
    %478 = vector.extract_strided_slice %161 {offsets = [0, 352], sizes = [16, 256], strides = [1, 1]} : vector<16x768xf32> to vector<16x256xf32>
    %c63 = arith.constant 63 : index
    %c0_231 = arith.constant 0 : index
    %c0_232 = arith.constant 0 : index
    %479 = vector.load %arg9[%c63, %c0_231, %c0_232] : memref<75x16x256xf32, #tpu.memory_space<vmem>>, vector<1x16x256xf32>
    %480 = vector.shape_cast %479 : vector<1x16x256xf32> to vector<16x256xf32>
    %481 = arith.mulf %478, %480 : vector<16x256xf32>
    %482 = arith.addf %477, %481 : vector<16x256xf32>
    %483 = vector.extract_strided_slice %161 {offsets = [0, 355], sizes = [16, 256], strides = [1, 1]} : vector<16x768xf32> to vector<16x256xf32>
    %c64 = arith.constant 64 : index
    %c0_233 = arith.constant 0 : index
    %c0_234 = arith.constant 0 : index
    %484 = vector.load %arg9[%c64, %c0_233, %c0_234] : memref<75x16x256xf32, #tpu.memory_space<vmem>>, vector<1x16x256xf32>
    %485 = vector.shape_cast %484 : vector<1x16x256xf32> to vector<16x256xf32>
    %486 = arith.mulf %483, %485 : vector<16x256xf32>
    %487 = arith.addf %482, %486 : vector<16x256xf32>
    %488 = vector.extract_strided_slice %161 {offsets = [0, 358], sizes = [16, 256], strides = [1, 1]} : vector<16x768xf32> to vector<16x256xf32>
    %c65 = arith.constant 65 : index
    %c0_235 = arith.constant 0 : index
    %c0_236 = arith.constant 0 : index
    %489 = vector.load %arg9[%c65, %c0_235, %c0_236] : memref<75x16x256xf32, #tpu.memory_space<vmem>>, vector<1x16x256xf32>
    %490 = vector.shape_cast %489 : vector<1x16x256xf32> to vector<16x256xf32>
    %491 = arith.mulf %488, %490 : vector<16x256xf32>
    %492 = arith.addf %487, %491 : vector<16x256xf32>
    %493 = vector.extract_strided_slice %161 {offsets = [0, 361], sizes = [16, 256], strides = [1, 1]} : vector<16x768xf32> to vector<16x256xf32>
    %c66 = arith.constant 66 : index
    %c0_237 = arith.constant 0 : index
    %c0_238 = arith.constant 0 : index
    %494 = vector.load %arg9[%c66, %c0_237, %c0_238] : memref<75x16x256xf32, #tpu.memory_space<vmem>>, vector<1x16x256xf32>
    %495 = vector.shape_cast %494 : vector<1x16x256xf32> to vector<16x256xf32>
    %496 = arith.mulf %493, %495 : vector<16x256xf32>
    %497 = arith.addf %492, %496 : vector<16x256xf32>
    %498 = vector.extract_strided_slice %161 {offsets = [0, 391], sizes = [16, 256], strides = [1, 1]} : vector<16x768xf32> to vector<16x256xf32>
    %c67 = arith.constant 67 : index
    %c0_239 = arith.constant 0 : index
    %c0_240 = arith.constant 0 : index
    %499 = vector.load %arg9[%c67, %c0_239, %c0_240] : memref<75x16x256xf32, #tpu.memory_space<vmem>>, vector<1x16x256xf32>
    %500 = vector.shape_cast %499 : vector<1x16x256xf32> to vector<16x256xf32>
    %501 = arith.mulf %498, %500 : vector<16x256xf32>
    %502 = arith.addf %497, %501 : vector<16x256xf32>
    %503 = vector.extract_strided_slice %161 {offsets = [0, 394], sizes = [16, 256], strides = [1, 1]} : vector<16x768xf32> to vector<16x256xf32>
    %c68 = arith.constant 68 : index
    %c0_241 = arith.constant 0 : index
    %c0_242 = arith.constant 0 : index
    %504 = vector.load %arg9[%c68, %c0_241, %c0_242] : memref<75x16x256xf32, #tpu.memory_space<vmem>>, vector<1x16x256xf32>
    %505 = vector.shape_cast %504 : vector<1x16x256xf32> to vector<16x256xf32>
    %506 = arith.mulf %503, %505 : vector<16x256xf32>
    %507 = arith.addf %502, %506 : vector<16x256xf32>
    %508 = vector.extract_strided_slice %161 {offsets = [0, 397], sizes = [16, 256], strides = [1, 1]} : vector<16x768xf32> to vector<16x256xf32>
    %c69 = arith.constant 69 : index
    %c0_243 = arith.constant 0 : index
    %c0_244 = arith.constant 0 : index
    %509 = vector.load %arg9[%c69, %c0_243, %c0_244] : memref<75x16x256xf32, #tpu.memory_space<vmem>>, vector<1x16x256xf32>
    %510 = vector.shape_cast %509 : vector<1x16x256xf32> to vector<16x256xf32>
    %511 = arith.mulf %508, %510 : vector<16x256xf32>
    %512 = arith.addf %507, %511 : vector<16x256xf32>
    %513 = vector.extract_strided_slice %161 {offsets = [0, 400], sizes = [16, 256], strides = [1, 1]} : vector<16x768xf32> to vector<16x256xf32>
    %c70 = arith.constant 70 : index
    %c0_245 = arith.constant 0 : index
    %c0_246 = arith.constant 0 : index
    %514 = vector.load %arg9[%c70, %c0_245, %c0_246] : memref<75x16x256xf32, #tpu.memory_space<vmem>>, vector<1x16x256xf32>
    %515 = vector.shape_cast %514 : vector<1x16x256xf32> to vector<16x256xf32>
    %516 = arith.mulf %513, %515 : vector<16x256xf32>
    %517 = arith.addf %512, %516 : vector<16x256xf32>
    %518 = vector.extract_strided_slice %161 {offsets = [0, 403], sizes = [16, 256], strides = [1, 1]} : vector<16x768xf32> to vector<16x256xf32>
    %c71 = arith.constant 71 : index
    %c0_247 = arith.constant 0 : index
    %c0_248 = arith.constant 0 : index
    %519 = vector.load %arg9[%c71, %c0_247, %c0_248] : memref<75x16x256xf32, #tpu.memory_space<vmem>>, vector<1x16x256xf32>
    %520 = vector.shape_cast %519 : vector<1x16x256xf32> to vector<16x256xf32>
    %521 = arith.mulf %518, %520 : vector<16x256xf32>
    %522 = arith.addf %517, %521 : vector<16x256xf32>
    %523 = vector.extract_strided_slice %161 {offsets = [0, 406], sizes = [16, 256], strides = [1, 1]} : vector<16x768xf32> to vector<16x256xf32>
    %c72 = arith.constant 72 : index
    %c0_249 = arith.constant 0 : index
    %c0_250 = arith.constant 0 : index
    %524 = vector.load %arg9[%c72, %c0_249, %c0_250] : memref<75x16x256xf32, #tpu.memory_space<vmem>>, vector<1x16x256xf32>
    %525 = vector.shape_cast %524 : vector<1x16x256xf32> to vector<16x256xf32>
    %526 = arith.mulf %523, %525 : vector<16x256xf32>
    %527 = arith.addf %522, %526 : vector<16x256xf32>
    %528 = vector.extract_strided_slice %161 {offsets = [0, 409], sizes = [16, 256], strides = [1, 1]} : vector<16x768xf32> to vector<16x256xf32>
    %c73 = arith.constant 73 : index
    %c0_251 = arith.constant 0 : index
    %c0_252 = arith.constant 0 : index
    %529 = vector.load %arg9[%c73, %c0_251, %c0_252] : memref<75x16x256xf32, #tpu.memory_space<vmem>>, vector<1x16x256xf32>
    %530 = vector.shape_cast %529 : vector<1x16x256xf32> to vector<16x256xf32>
    %531 = arith.mulf %528, %530 : vector<16x256xf32>
    %532 = arith.addf %527, %531 : vector<16x256xf32>
    %533 = vector.extract_strided_slice %161 {offsets = [0, 256], sizes = [16, 256], strides = [1, 1]} : vector<16x768xf32> to vector<16x256xf32>
    %c74 = arith.constant 74 : index
    %c0_253 = arith.constant 0 : index
    %c0_254 = arith.constant 0 : index
    %534 = vector.load %arg9[%c74, %c0_253, %c0_254] : memref<75x16x256xf32, #tpu.memory_space<vmem>>, vector<1x16x256xf32>
    %535 = vector.shape_cast %534 : vector<1x16x256xf32> to vector<16x256xf32>
    %536 = arith.mulf %533, %535 : vector<16x256xf32>
    %537 = arith.addf %532, %536 : vector<16x256xf32>
    %c0_255 = arith.constant 0 : index
    %c0_256 = arith.constant 0 : index
    %538 = vector.load %arg10[%c0_255, %c0_256] : memref<16x1xf32, #tpu.memory_space<vmem>>, vector<16x1xf32>
    %539 = vector.broadcast %538 : vector<16x1xf32> to vector<16x256xf32>
    %540 = arith.addf %537, %539 : vector<16x256xf32>
    %c0_257 = arith.constant 0 : index
    %c0_258 = arith.constant 0 : index
    %541 = vector.load %arg11[%c0_257, %c0_258] : memref<16x16xf32, #tpu.memory_space<vmem>>, vector<16x16xf32>
    %cst_259 = arith.constant dense<0.000000e+00> : vector<16x256xf32>
    %542 = tpu.matmul %541, %540, %cst_259 {dimension_numbers = #tpu.dot_dimension_numbers<[1], [0], [0], [1], [0, 0, 1, 1], [], []>} : vector<16x16xf32>, vector<16x256xf32>, vector<16x256xf32> -> vector<16x256xf32>
    %c0_260 = arith.constant 0 : index
    %c0_261 = arith.constant 0 : index
    %543 = vector.load %arg12[%c0_260, %c0_261] : memref<16x1xf32, #tpu.memory_space<vmem>>, vector<16x1xf32>
    %544 = vector.broadcast %543 : vector<16x1xf32> to vector<16x256xf32>
    %545 = arith.addf %542, %544 : vector<16x256xf32>
    %c0_262 = arith.constant 0 : index
    %c0_263 = arith.constant 0 : index
    %546 = vector.load %arg5[%c0_262, %c0_263] : memref<16x16xf32, #tpu.memory_space<vmem>>, vector<16x16xf32>
    %cst_264 = arith.constant dense<0.000000e+00> : vector<16x256xf32>
    %547 = tpu.matmul %546, %28, %cst_264 {dimension_numbers = #tpu.dot_dimension_numbers<[1], [0], [0], [1], [0, 0, 1, 1], [], []>} : vector<16x16xf32>, vector<16x256xf32>, vector<16x256xf32> -> vector<16x256xf32>
    %c0_265 = arith.constant 0 : index
    %c0_266 = arith.constant 0 : index
    %548 = vector.load %arg6[%c0_265, %c0_266] : memref<16x1xf32, #tpu.memory_space<vmem>>, vector<16x1xf32>
    %549 = vector.broadcast %548 : vector<16x1xf32> to vector<16x256xf32>
    %550 = arith.addf %547, %549 : vector<16x256xf32>
    %cst_267 = arith.constant 0.000000e+00 : f32
    %551 = vector.broadcast %cst_267 : f32 to vector<16x256xf32>
    %552 = arith.subf %551, %550 : vector<16x256xf32>
    %553 = math.exp %552 : vector<16x256xf32>
    %cst_268 = arith.constant 1.000000e+00 : f32
    %554 = vector.broadcast %cst_268 : f32 to vector<16x256xf32>
    %555 = arith.addf %554, %553 : vector<16x256xf32>
    %cst_269 = arith.constant 1.000000e+00 : f32
    %556 = vector.broadcast %cst_269 : f32 to vector<16x256xf32>
    %557 = arith.divf %556, %555 : vector<16x256xf32>
    %558 = arith.mulf %550, %557 : vector<16x256xf32>
    %cst_270 = arith.constant 0.000000e+00 : f32
    %559 = vector.broadcast %cst_270 : f32 to vector<16x256xf32>
    %560 = arith.subf %559, %545 : vector<16x256xf32>
    %561 = math.exp %560 : vector<16x256xf32>
    %cst_271 = arith.constant 1.000000e+00 : f32
    %562 = vector.broadcast %cst_271 : f32 to vector<16x256xf32>
    %563 = arith.addf %562, %561 : vector<16x256xf32>
    %cst_272 = arith.constant 1.000000e+00 : f32
    %564 = vector.broadcast %cst_272 : f32 to vector<16x256xf32>
    %565 = arith.divf %564, %563 : vector<16x256xf32>
    %566 = arith.mulf %545, %565 : vector<16x256xf32>
    %567 = arith.mulf %558, %566 : vector<16x256xf32>
    %c0_273 = arith.constant 0 : index
    %c0_274 = arith.constant 0 : index
    %568 = vector.load %arg13[%c0_273, %c0_274] : memref<16x16xf32, #tpu.memory_space<vmem>>, vector<16x16xf32>
    %cst_275 = arith.constant dense<0.000000e+00> : vector<16x256xf32>
    %569 = tpu.matmul %568, %567, %cst_275 {dimension_numbers = #tpu.dot_dimension_numbers<[1], [0], [0], [1], [0, 0, 1, 1], [], []>} : vector<16x16xf32>, vector<16x256xf32>, vector<16x256xf32> -> vector<16x256xf32>
    %c0_276 = arith.constant 0 : index
    %c0_277 = arith.constant 0 : index
    %570 = vector.load %arg14[%c0_276, %c0_277] : memref<16x1xf32, #tpu.memory_space<vmem>>, vector<16x1xf32>
    %571 = vector.broadcast %570 : vector<16x1xf32> to vector<16x256xf32>
    %572 = arith.addf %569, %571 : vector<16x256xf32>
    %573 = arith.addf %572, %5 : vector<16x256xf32>
    %c0_278 = arith.constant 0 : index
    %c0_279 = arith.constant 0 : index
    %c0_280 = arith.constant 0 : index
    %574 = vector.load %arg15[%c0_278, %c0_279, %c0_280] : memref<1x16x256xf32, #tpu.memory_space<vmem>>, vector<1x16x256xf32>
    %575 = vector.shape_cast %574 : vector<1x16x256xf32> to vector<16x256xf32>
    %576 = vector.shape_cast %573 : vector<16x256xf32> to vector<1x16x256xf32>
    tpu.vector_store %arg15[%c0_278, %c0_279, %c0_280], %576 {strides = array<i32>} : memref<1x16x256xf32, #tpu.memory_space<vmem>>, vector<1x16x256xf32>,
    return
  }
  func.func @transform_0(%arg0: i32) -> (i32, i32, i32) {
    %c0_i32 = arith.constant 0 : i32
    %c0_i32_0 = arith.constant 0 : i32
    %c0_i32_1 = arith.constant 0 : i32
    return %arg0, %c0_i32, %c0_i32_0 : i32, i32, i32
  }
  func.func @transform_1(%arg0: i32) -> (i32, i32) {
    %c0_i32 = arith.constant 0 : i32
    %c0_i32_0 = arith.constant 0 : i32
    %c0_i32_1 = arith.constant 0 : i32
    return %c0_i32, %c0_i32_0 : i32, i32
  }
  func.func @transform_2(%arg0: i32) -> (i32, i32) {
    %c0_i32 = arith.constant 0 : i32
    %c0_i32_0 = arith.constant 0 : i32
    %c0_i32_1 = arith.constant 0 : i32
    return %c0_i32, %c0_i32_0 : i32, i32
  }
  func.func @transform_3(%arg0: i32) -> (i32, i32) {
    %c0_i32 = arith.constant 0 : i32
    %c0_i32_0 = arith.constant 0 : i32
    %c0_i32_1 = arith.constant 0 : i32
    return %c0_i32, %c0_i32_0 : i32, i32
  }
  func.func @transform_4(%arg0: i32) -> (i32, i32) {
    %c0_i32 = arith.constant 0 : i32
    %c0_i32_0 = arith.constant 0 : i32
    %c0_i32_1 = arith.constant 0 : i32
    return %c0_i32, %c0_i32_0 : i32, i32
  }
  func.func @transform_5(%arg0: i32) -> (i32, i32) {
    %c0_i32 = arith.constant 0 : i32
    %c0_i32_0 = arith.constant 0 : i32
    %c0_i32_1 = arith.constant 0 : i32
    return %c0_i32, %c0_i32_0 : i32, i32
  }
  func.func @transform_6(%arg0: i32) -> (i32, i32, i32) {
    %c0_i32 = arith.constant 0 : i32
    %c0_i32_0 = arith.constant 0 : i32
    %c0_i32_1 = arith.constant 0 : i32
    %c0_i32_2 = arith.constant 0 : i32
    return %c0_i32, %c0_i32_0, %c0_i32_1 : i32, i32, i32
  }
  func.func @transform_7(%arg0: i32) -> (i32, i32) {
    %c0_i32 = arith.constant 0 : i32
    %c0_i32_0 = arith.constant 0 : i32
    %c0_i32_1 = arith.constant 0 : i32
    return %c0_i32, %c0_i32_0 : i32, i32
  }
  func.func @transform_8(%arg0: i32) -> (i32, i32, i32) {
    %c0_i32 = arith.constant 0 : i32
    %c0_i32_0 = arith.constant 0 : i32
    %c0_i32_1 = arith.constant 0 : i32
    %c0_i32_2 = arith.constant 0 : i32
    return %c0_i32, %c0_i32_0, %c0_i32_1 : i32, i32, i32
  }
  func.func @transform_9(%arg0: i32) -> (i32, i32) {
    %c0_i32 = arith.constant 0 : i32
    %c0_i32_0 = arith.constant 0 : i32
    %c0_i32_1 = arith.constant 0 : i32
    return %c0_i32, %c0_i32_0 : i32, i32
  }
  func.func @transform_10(%arg0: i32) -> (i32, i32) {
    %c0_i32 = arith.constant 0 : i32
    %c0_i32_0 = arith.constant 0 : i32
    %c0_i32_1 = arith.constant 0 : i32
    return %c0_i32, %c0_i32_0 : i32, i32
  }
  func.func @transform_11(%arg0: i32) -> (i32, i32) {
    %c0_i32 = arith.constant 0 : i32
    %c0_i32_0 = arith.constant 0 : i32
    %c0_i32_1 = arith.constant 0 : i32
    return %c0_i32, %c0_i32_0 : i32, i32
  }
  func.func @transform_12(%arg0: i32) -> (i32, i32) {
    %c0_i32 = arith.constant 0 : i32
    %c0_i32_0 = arith.constant 0 : i32
    %c0_i32_1 = arith.constant 0 : i32
    return %c0_i32, %c0_i32_0 : i32, i32
  }
  func.func @transform_13(%arg0: i32) -> (i32, i32) {
    %c0_i32 = arith.constant 0 : i32
    %c0_i32_0 = arith.constant 0 : i32
    %c0_i32_1 = arith.constant 0 : i32
    return %c0_i32, %c0_i32_0 : i32, i32
  }
  func.func @transform_14(%arg0: i32) -> (i32, i32, i32) {
    %c0_i32 = arith.constant 0 : i32
    %c0_i32_0 = arith.constant 0 : i32
    %c0_i32_1 = arith.constant 0 : i32
    return %arg0, %c0_i32, %c0_i32_0 : i32, i32, i32
  }
}

</mosaic_0001>

<bundles_post_ra>
// kernel: tpu_custom_call.1
= control target key start
LH: loop header
LB: loop body
LE: loop exit
PB: predicated region body
PF: predicated region fallthrough
CT: control target
= control target key end

     0   :  { %s13643_s0 = inlined_call_operand.hbm [shape: f32[2,16,256], index: 0, kind: input, shape index: {}]   ;;  %s13644_s1 = inlined_call_operand.hbm [shape: f32[16,16], index: 1, kind: input, shape index: {}]   ;;  %s13645_s2 = inlined_call_operand.vmem [shape: f32[16,1], index: 2, kind: input, shape index: {}]   ;;  %s13646_s3 = inlined_call_operand.vmem [shape: f32[16,1], index: 3, kind: input, shape index: {}]   ;;  %s13647_s4 = inlined_call_operand.hbm [shape: f32[16,16], index: 4, kind: input, shape index: {}]   ;;  %s13648_s5 = inlined_call_operand.vmem [shape: f32[16,1], index: 5, kind: input, shape index: {}]   ;;  %s13649_s6 = inlined_call_operand.hbm [shape: f32[25,16,256], index: 6, kind: input, shape index: {}]   ;;  %s13650_s7 = inlined_call_operand.vmem [shape: f32[16,1], index: 7, kind: input, shape index: {}]   ;;  %s13651_s8 = inlined_call_operand.hbm [shape: f32[75,16,256], index: 8, kind: input, shape index: {}]   ;;  %s13652_s9 = inlined_call_operand.vmem [shape: f32[16,1], index: 9, kind: input, shape index: {}]   ;;  %s13653_s10 = inlined_call_operand.hbm [shape: f32[16,16], index: 10, kind: input, shape index: {}]   ;;  %s13654_s11 = inlined_call_operand.vmem [shape: f32[16,1], index: 11, kind: input, shape index: {}]   ;;  %s13655_s12 = inlined_call_operand.hbm [shape: f32[16,16], index: 12, kind: input, shape index: {}]   ;;  %s13656_s13 = inlined_call_operand.vmem [shape: f32[16,1], index: 13, kind: input, shape index: {}]   ;;  %s13657_s14 = inlined_call_operand.hbm [shape: f32[2,16,256], index: 14, kind: output, shape index: {}]  }
   0x1   :  { %14173 = sst [smem:[#allocation337_spill]] %s13643_s0 }
   0x2   :  { %14174 = sst [smem:[#allocation338_spill]] %s13644_s1 }
   0x3   :  { %14175 = sst [smem:[#allocation339_spill]] %s13645_s2 }
   0x4   :  { %14176 = sst [smem:[#allocation340_spill]] %s13646_s3 }
   0x5   :  { %14177 = sst [smem:[#allocation341_spill]] %s13647_s4 }
   0x6   :  { %14178 = sst [smem:[#allocation342_spill]] %s13648_s5 }
   0x7   :  { %14179 = sst [smem:[#allocation343_spill]] %s13649_s6 }
   0x8   :  { %14180 = sst [smem:[#allocation344_spill]] %s13650_s7 }
   0x9   :  { %14181 = sst [smem:[#allocation345_spill]] %s13651_s8 }
   0xa   :  { %14182 = sst [smem:[#allocation346_spill]] %s13652_s9 }
   0xb   :  { %14183 = sst [smem:[#allocation347_spill]] %s13653_s10 }
   0xc   :  { %14184 = sst [smem:[#allocation348_spill]] %s13654_s11 }
   0xd   :  { %14185 = sst [smem:[#allocation349_spill]] %s13655_s12 }
   0xe   :  { %14186 = sst [smem:[#allocation350_spill]] %s13656_s13 }
   0xf   :  { %14187 = sst [smem:[#allocation351_spill]] %s13657_s14 }
  0x10   :  { %19 = vsyncpa [#allocation4], 0 }
  0x11   :  { %21 = vsyncpa [#allocation4 + $0x1], 0 }
  0x12   :  { %22 = vsyncpa [#allocation7], 0 }
  0x13   :  { %23 = vsyncpa [#allocation10], 0 }
  0x14   :  { %24 = vsyncpa [#allocation13], 0 }
  0x15   :  { %25 = vsyncpa [#allocation5], 0 }
  0x16   :  { %27 = vsyncpa [#allocation5 + $0x1], 0  ;;  %s8573_s29 = smov 0   ;;  %s8575_s30 = smov 0  }
  0x17   :  { %s8577_s15 = smov 0   ;;  %s8579_s16 = smov 0  }
  0x18 LB: > { %14188 = sst [smem:[#allocation21_spill]] %s8364_s29  ;;  %s8378_s17 = smov [#allocation6]   ;;  %s8376_s16 = sphi %s8579_s16, %s15452_s16   ;;  %s8372_s15 = sphi %s8577_s15, %s15455_s15   ;;  %s8368_s30 = sphi %s8575_s30, %s15454_s30   ;;  %s8364_s29 = sphi %s8573_s29, %s15453_s29  }
  0x19   : > { %14189 = sst [smem:[#allocation22_spill]] %s8368_s30  ;;  %s375_s18 = sshll.u32 %s8378_s17, 4  ;;  %s8599_s18 = int_to_ptr.vmem [resolvable:$true] %s375_s18 }
  0x1a   : > { %14190 = sst [smem:[#allocation23_spill]] %s8372_s15  ;;  %s8594_s19 = sadd.s32 4294967295, %s8376_s16  }
  0x1b   : > { %14191 = sst [smem:[#allocation24_spill]] %s8376_s16  ;;  %p7761_p0 = scmp.ge.s32.totalorder %s8376_s16, 1 }
  0x1c   : > { %p13666_p1 = scmp.eq.s32.totalorder %s8594_s19, 0  ;;  %p363_p2 = scmp.lt.s32.totalorder %s8376_s16, 3 }
  0x1d   : > { %s8379_s21 = smov [#allocation9]   ;;  %s8380_s24 = smov [#allocation12]  }
  0x1e   : > { %p8601_p3 = pnand %p7761_p0, %p363_p2  ;;  %s410_s22 = sshll.u32 %s8379_s21, 4  ;;  %s8614_s22 = int_to_ptr.vmem [resolvable:$true] %s410_s22 }
  0x1f   : > { %s8616_s25 = sshll.u32 %s8380_s24, 4  ;;  %s14194_s1 = sld [smem:[#allocation338_spill]]  ;;  %s443_s25 = int_to_ptr.vmem [resolvable:$true] %s8616_s25 }
  0x20   : > { %s14192_s20 = scalar_select %p8601_p3, 1, 0 }
  0x21   : > { %p7840_p5 = pneg %p8601_p3 }
  0x23   : > { %p8610_p6 = pnand %p7840_p5, %p13666_p1 }
  0x25   : > { %s8100_s28 = scalar_lea.hbm %s14194_s1, 256  ;;  %p8626_p8 = pneg %p8610_p6 }
  0x26   : > { %p8101_p7 = scmp.ne.s32.totalorder %s14194_s1, %s8100_s28  ;;  %p8107_p11 = scmp.lt.u32.totalorder %s8100_s28, %s14194_s1 }
  0x28   : > { %p8103_p9 = pnand %p8626_p8, %p8101_p7 }
  0x2a   : > { %p8104_p10 = pneg %p8103_p9 }
  0x2c   : > { %p8109_p12 = pnand %p8107_p11, %p8104_p10 }
  0x2e   : > { %8112 = shalt.err (!%p8109_p12)
}
  0x2f   : > { %s8113_s14 = scalar_lea.vmem %s8599_s18, 256  ;;  %p8121_p5 = scmp.lt.s32.totalorder %s8599_s18, %s8599_s18 }
  0x30   : > { %p8114_p13 = scmp.ne.s32.totalorder %s8599_s18, %s8113_s14  ;;  %p8122_p4 = scmp.lt.s32.totalorder %s8113_s14, %s8113_s14 }
  0x32   : > { %p8116_p0 = pnand %p8114_p13, %p8626_p8  ;;  %p8123_p7 = por %p8122_p4, %p8121_p5 }
  0x34   : > { %p8117_p2 = pneg %p8116_p0 }
  0x36   : > { %p8124_p9 = pnand %p8123_p7, %p8117_p2 }
  0x38   : > { %8127 = shalt.err (!%p8124_p9)
}
  0x39   : > { %s13664_s26 = smov 128   ;;  %s13672_s13 = smov 8  }
  0x3a   : > { %7843 = dma.hbm_to_vmem [thread:$0]  (!%p8610_p6), %s14194_s1, 256, %s8599_s18, [#allocation7], %s13664_s26, %s13664_s26, %s13672_s13  }
  0x3b   : > { %s14196_s6 = sld [smem:[#allocation343_spill]] }
  0x41   : > { %s8128_s14 = scalar_lea.hbm %s14196_s6, 12800 }
  0x42   : > { %p8129_p4 = scmp.ne.s32.totalorder %s14196_s6, %s8128_s14  ;;  %p8135_p12 = scmp.lt.u32.totalorder %s8128_s14, %s14196_s6 }
  0x44   : > { %p8131_p10 = pnand %p8129_p4, %p8626_p8 }
  0x46   : > { %p8132_p11 = pneg %p8131_p10 }
  0x48   : > { %p8137_p13 = pnand %p8135_p12, %p8132_p11 }
  0x4a   : > { %8140 = shalt.err (!%p8137_p13)
}
  0x4b   : > { %s8141_s18 = scalar_lea.vmem %s8614_s22, 12800  ;;  %p8149_p7 = scmp.lt.s32.totalorder %s8614_s22, %s8614_s22 }
  0x4c   : > { %p8142_p0 = scmp.ne.s32.totalorder %s8614_s22, %s8141_s18  ;;  %p8150_p9 = scmp.lt.s32.totalorder %s8141_s18, %s8141_s18 }
  0x4e   : > { %p8144_p2 = pnand %p8142_p0, %p8626_p8  ;;  %p8151_p4 = por %p8150_p9, %p8149_p7 }
  0x50   : > { %p8145_p5 = pneg %p8144_p2 }
  0x52   : > { %p8152_p10 = pnand %p8151_p4, %p8145_p5 }
  0x54   : > { %8155 = shalt.err (!%p8152_p10)
}
  0x55   : > { %s13668_s5 = smov 256   ;;  %s13670_s7 = smov 16  }
  0x56   : > { %7849 = dma.hbm_to_vmem [thread:$0]  (!%p8610_p6), %s14196_s6, 12800, %s8614_s22, [#allocation10], %s13668_s5, %s13668_s5, %s13670_s7  }
  0x57   : > { %s14197_s10 = sld [smem:[#allocation347_spill]] }
  0x5d   : > { %s8156_s17 = scalar_lea.hbm %s14197_s10, 256 }
  0x5e   : > { %p8157_p11 = scmp.ne.s32.totalorder %s14197_s10, %s8156_s17  ;;  %p8163_p0 = scmp.lt.u32.totalorder %s8156_s17, %s14197_s10 }
  0x60   : > { %p8159_p12 = pnand %p8157_p11, %p8626_p8 }
  0x62   : > { %p8160_p13 = pneg %p8159_p12 }
  0x64   : > { %p8165_p2 = pnand %p8163_p0, %p8160_p13 }
  0x66   : > { %8168 = shalt.err (!%p8165_p2)
}
  0x67   : > { %s8169_s9 = scalar_lea.vmem %s443_s25, 256  ;;  %p8177_p4 = scmp.lt.s32.totalorder %s443_s25, %s443_s25 }
  0x68   : > { %p8170_p5 = scmp.ne.s32.totalorder %s443_s25, %s8169_s9  ;;  %p8178_p10 = scmp.lt.s32.totalorder %s8169_s9, %s8169_s9 }
  0x6a   : > { %p8172_p7 = pnand %p8170_p5, %p8626_p8  ;;  %p8179_p1 = por %p8178_p10, %p8177_p4 }
  0x6c   : > { %p8173_p9 = pneg %p8172_p7 }
  0x6e   : > { %p8180_p3 = pnand %p8179_p1, %p8173_p9 }
  0x70   : > { %8183 = shalt.err (!%p8180_p3)
}
  0x71   : > { %s14198_s22 = smov 128   ;;  %s8385_s27 = smov [#allocation8]  }
  0x72   : > { %7855 = dma.hbm_to_vmem [thread:$0]  (!%p8610_p6), %s14197_s10, 256, %s443_s25, [#allocation13], %s14198_s22, %s14198_s22, %s13672_s13  }
  0x73   : > { %s394_s28 = sshll.u32 %s8385_s27, 4  ;;  %s8386_s17 = smov [#allocation11]   ;;  %s395_s28 = int_to_ptr.vmem [resolvable:$true] %s394_s28 }
  0x74   : > { %s426_s24 = sshll.u32 %s8386_s17, 4  ;;  %s14199_s4 = sld [smem:[#allocation341_spill]]  ;;  %s427_s24 = int_to_ptr.vmem [resolvable:$true] %s426_s24 }
  0x7a   : > { %s8184_s9 = scalar_lea.hbm %s14199_s4, 256 }
  0x7b   : > { %p8185_p1 = scmp.ne.s32.totalorder %s14199_s4, %s8184_s9  ;;  %p8191_p12 = scmp.lt.u32.totalorder %s8184_s9, %s14199_s4 }
  0x7d   : > { %p8187_p3 = pnand %p8185_p1, %p8626_p8 }
  0x7f   : > { %p8188_p11 = pneg %p8187_p3 }
  0x81   : > { %p8193_p13 = pnand %p8191_p12, %p8188_p11 }
  0x83   : > { %8196 = shalt.err (!%p8193_p13)
}
  0x84   : > { %s8197_s25 = scalar_lea.vmem %s395_s28, 256  ;;  %p8205_p7 = scmp.lt.s32.totalorder %s395_s28, %s395_s28 }
  0x85   : > { %p8198_p0 = scmp.ne.s32.totalorder %s395_s28, %s8197_s25  ;;  %p8206_p9 = scmp.lt.s32.totalorder %s8197_s25, %s8197_s25 }
  0x87   : > { %p8200_p2 = pnand %p8198_p0, %p8626_p8  ;;  %p8207_p4 = por %p8206_p9, %p8205_p7 }
  0x89   : > { %p8201_p5 = pneg %p8200_p2 }
  0x8b   : > { %p8208_p10 = pnand %p8207_p4, %p8201_p5 }
  0x8d   : > { %8211 = shalt.err (!%p8208_p10)
}
  0x8e   : > { %7846 = dma.hbm_to_vmem [thread:$0]  (!%p8610_p6), %s14199_s4, 256, %s395_s28, [#allocation7], %s14198_s22, %s14198_s22, %s13672_s13  }
  0x8f   : > { %s14200_s8 = sld [smem:[#allocation345_spill]] }
  0x95   : > { %s8212_s27 = scalar_lea.hbm %s14200_s8, 38400 }
  0x96   : > { %p8213_p1 = scmp.ne.s32.totalorder %s14200_s8, %s8212_s27  ;;  %p8219_p12 = scmp.lt.u32.totalorder %s8212_s27, %s14200_s8 }
  0x98   : > { %p8215_p3 = pnand %p8213_p1, %p8626_p8 }
  0x9a   : > { %p8216_p11 = pneg %p8215_p3 }
  0x9c   : > { %p8221_p13 = pnand %p8219_p12, %p8216_p11 }
  0x9e   : > { %8224 = shalt.err (!%p8221_p13)
}
  0x9f   : > { %s8225_s26 = scalar_lea.vmem %s427_s24, 38400  ;;  %p8233_p7 = scmp.lt.s32.totalorder %s427_s24, %s427_s24 }
  0xa0   : > { %p8226_p0 = scmp.ne.s32.totalorder %s427_s24, %s8225_s26  ;;  %p8234_p9 = scmp.lt.s32.totalorder %s8225_s26, %s8225_s26 }
  0xa2   : > { %p8228_p2 = pnand %p8226_p0, %p8626_p8  ;;  %p8235_p4 = por %p8234_p9, %p8233_p7 }
  0xa4   : > { %p8229_p5 = pneg %p8228_p2 }
  0xa6   : > { %p8236_p10 = pnand %p8235_p4, %p8229_p5 }
  0xa8   : > { %8239 = shalt.err (!%p8236_p10)
}
  0xa9   : > { %s14201_s28 = smov 16   ;;  %s14202_s25 = smov 256  }
  0xaa   : > { %7852 = dma.hbm_to_vmem [thread:$0]  (!%p8610_p6), %s14200_s8, 38400, %s427_s24, [#allocation10], %s14202_s25, %s14202_s25, %s14201_s28  }
  0xab   : > { %s8387_s7 = smov [#allocation14]   ;;  %s14203_s12 = sld [smem:[#allocation349_spill]] }
  0xac   : > { %s458_s11 = sshll.u32 %s8387_s7, 4  ;;  %s459_s11 = int_to_ptr.vmem [resolvable:$true] %s458_s11 }
  0xb1   : > { %s8240_s14 = scalar_lea.hbm %s14203_s12, 256 }
  0xb2   : > { %p8241_p1 = scmp.ne.s32.totalorder %s14203_s12, %s8240_s14  ;;  %p8247_p12 = scmp.lt.u32.totalorder %s8240_s14, %s14203_s12 }
  0xb4   : > { %p8243_p3 = pnand %p8241_p1, %p8626_p8 }
  0xb6   : > { %p8244_p11 = pneg %p8243_p3 }
  0xb8   : > { %p8249_p13 = pnand %p8247_p12, %p8244_p11 }
  0xba   : > { %8252 = shalt.err (!%p8249_p13)
}
  0xbb   : > { %s8253_s24 = scalar_lea.vmem %s459_s11, 256  ;;  %p8261_p7 = scmp.lt.s32.totalorder %s459_s11, %s459_s11 }
  0xbc   : > { %p8254_p0 = scmp.ne.s32.totalorder %s459_s11, %s8253_s24  ;;  %p8262_p9 = scmp.lt.s32.totalorder %s8253_s24, %s8253_s24 }
  0xbe   : > { %p8256_p2 = pnand %p8254_p0, %p8626_p8  ;;  %p8263_p4 = por %p8262_p9, %p8261_p7 }
  0xc0   : > { %p8257_p5 = pneg %p8256_p2 }
  0xc2   : > { %p8264_p10 = pnand %p8263_p4, %p8257_p5 }
  0xc4   : > { %8267 = shalt.err (!%p8264_p10)
}
  0xc5   : > { %s14204_s1 = smov 8   ;;  %s7760_s23 = sadd.s32 4294967294, %s8376_s16  }
  0xc6   : > { %7858 = dma.hbm_to_vmem [thread:$0]  (!%p8610_p6), %s14203_s12, 256, %s459_s11, [#allocation13], %s14198_s22, %s14198_s22, %s14204_s1  }
  0xc7   : > { %s8763_s21 = sadd.s32 1, %s8376_s16   ;;  %s40_s27 = sadd.s32 1, %s8372_s15 }
  0xc8   : > { %14205 = sst [smem:[#allocation25_spill]] %s8763_s21  ;;  %s37_s7 = ssub.s32 %s8376_s16, %s8763_s21 }
  0xc9   : > { %p38_p8 = scmp.eq.s32.totalorder %s37_s7, 0  ;;  %p47_p1 = scmp.ne.s32.totalorder %s8372_s15, %s8368_s30 }
  0xca   : > { %p48_p3 = scmp.eq.s32.totalorder %s8376_s16, 0  ;;  %p53_p11 = scmp.ne.s32.totalorder %s8368_s30, %s8364_s29 }
  0xcb   : > { %s8774_s17 = scalar_select %p38_p8, %s8372_s15, %s40_s27  }
  0xcc   : > { %p8776_p12 = por %p48_p3, %p47_p1  ;;  %p14208_p13 = scmp.eq.s32.totalorder %s8594_s19, 0 }
  0xcd   : > { %14206 = sst [smem:[#allocation26_spill]] %s8774_s17  ;;  %p350_p0 = scmp.eq.s32.totalorder %s8594_s19, 1 }
  0xce   : > { %p8782_p6 = por %p14208_p13, %p53_p11  ;;  %p356_p2 = scmp.eq.s32.totalorder %s7760_s23, 1 }
  0xcf   : > { %p7873_p5 = scmp.lt.s32.totalorder %s8376_s16, 2  ;;  %s475_s11 = sand.u32 1, %s8372_s15  }
  0xd0   : > { %p8789_p7 = por %p350_p0, %p47_p1  ;;  %p8793_p9 = por %p356_p2, %p53_p11 }
  0xd1   : > { %s7769_s26 = sshll.u32 %s475_s11, 5  ;;  %s7794_s24 = sshll.u32 %s8376_s16, 9 }
  0xd2   : > { %s14210_s18 = scalar_select %p8789_p7, 1, 0 }
  0xd3   : > { %s14211_s9 = scalar_select %p8793_p9, 1, 0 }
  0xd4   : > { %s14213_s0 = sld [smem:[#allocation337_spill]]  ;;  %s479_s23 = scalar_lea.vmem [#allocation3], %s7769_s26 }
  0xd5   : > { %14212 = sst [smem:[#allocation27_spill]] %s14211_s9  ;;  %s486_s7 = sshll.u32 %s479_s23, 4  ;;  %s8803_s7 = int_to_ptr.vmem [resolvable:$true] %s486_s7 }
  0xd6   : > { %p8807_p4 = pnand %p7873_p5, %p8776_p12  ;;  %s8811_s4 = scalar_lea.sflag [#allocation4], %s475_s11 }
  0xd8   : > { %p8270_p8 = pneg %p8807_p4 }
  0xda   : > { %s8801_s5 = scalar_lea.hbm %s14213_s0, %s7794_s24  ;;  %s8273_s14 = scalar_lea.hbm %s14213_s0, 1024 }
  0xdb   : > { %s8268_s1 = scalar_lea.hbm %s8801_s5, 512  ;;  %p8274_p11 = scmp.lt.u32.totalorder %s8801_s5, %s14213_s0 }
  0xdc   : > { %p8269_p10 = scmp.ne.s32.totalorder %s8801_s5, %s8268_s1  ;;  %p8275_p12 = scmp.lt.u32.totalorder %s8273_s14, %s8268_s1 }
  0xdd   : > { %p8277_p0 = scmp.lt.u32.totalorder %s8268_s1, %s8801_s5 }
  0xde   : > { %p8271_p1 = pnand %p8270_p8, %p8269_p10  ;;  %p8276_p13 = por %p8275_p12, %p8274_p11 }
  0xe0   : > { %p8272_p3 = pneg %p8271_p1  ;;  %p8278_p2 = por %p8277_p0, %p8276_p13 }
  0xe2   : > { %p8279_p5 = pnand %p8278_p2, %p8272_p3 }
  0xe4   : > { %8282 = shalt.err (!%p8279_p5)
}
  0xe5   : > { %s8283_s11 = scalar_lea.vmem %s8803_s7, 512  ;;  %s8388_s26 = smov [#allocation3]  }
  0xe6   : > { %p8284_p10 = scmp.ne.s32.totalorder %s8803_s7, %s8283_s11  ;;  %s8288_s24 = sshll.u32 %s8388_s26, 4  ;;  %s8289_s24 = int_to_ptr.vmem [resolvable:$false] %s8288_s24 }
  0xe7   : > { %s8290_s13 = scalar_lea.vmem %s8289_s24, 1024  ;;  %p8291_p7 = scmp.lt.s32.totalorder %s8803_s7, %s8289_s24 }
  0xe8   : > { %p8286_p1 = pnand %p8284_p10, %p8270_p8  ;;  %p8292_p11 = scmp.lt.s32.totalorder %s8290_s13, %s8283_s11 }
  0xea   : > { %p8287_p9 = pneg %p8286_p1  ;;  %p8293_p12 = por %p8292_p11, %p8291_p7 }
  0xec   : > { %p8294_p13 = pnand %p8293_p12, %p8287_p9 }
  0xee   : > { %8297 = shalt.err (!%p8294_p13)
}
  0xef   : > { %7862 = dma.hbm_to_vmem [thread:$0]  (!%p8807_p4), %s8801_s5, 512, %s8803_s7, %s8811_s4, %s14202_s25, %s14202_s25, %s14201_s28  }
  0xf0   : > { %p14215_p8 = scmp.ne.s32.totalorder %s14192_s20, 0 }
  0xf2   : > { %498 = sbr.rel (%p14215_p8) target bundleno = 8551 (0x2167), region = 76 }
  0xf9   : > { %s8845_s1 = sand.u32 1, %s8368_s30  }
  0xfa   : > { %s13674_s14 = sshll.u32 %s8845_s1, 5  ;;  %s501_s23 = scalar_lea.sflag [#allocation4], %s8845_s1 }
  0xfb   : > { %s8851_s27 = scalar_lea.vmem [#allocation3], %s13674_s14 }
  0xfc   : > { %8343 = dma.done.wait (%p8782_p6), %s501_s23, 512  }
  0xfd   : > { %8345 = vsyncadd (%p8782_p6), %s501_s23, 4294966784  ;;  %p14216_p7 = scmp.eq.s32.totalorder %s8594_s19, 0 }
  0xff   : > { %8347 = dma.done.wait (%p14216_p7), [#allocation7], 512   ;;  %p14217_p9 = pmov %p14216_p7 }
 0x100   : > { %p14218_p4 = pmov %p14216_p7 }
 0x101   : > { %8349 = vsyncadd (%p14217_p9), [#allocation7], 4294966784 }
 0x102   : > { %8351 = dma.done.wait (%p14218_p4), [#allocation10], 51200   ;;  %p14219_p3 = pmov %p14218_p4 }
 0x104   : > { %8353 = vsyncadd (%p14219_p3), [#allocation10], 4294916096  ;;  %p14220_p0 = pmov %p14219_p3 }
 0x106   : > { %8355 = dma.done.wait (%p14220_p0), [#allocation13], 512   ;;  %p14221_p2 = pmov %p14220_p0 }
 0x107   : > { %v8389_v0 = vmov 0   ;;  %s14222_s3 = sld [smem:[#allocation340_spill]]  ;;  %s14223_s2 = sld [smem:[#allocation339_spill]]  ;;  %v793_v4 = vld [vmem:[#allocation9 + $0x20] sm:$0xff]  ;;  %v795_v6 = vld [vmem:[#allocation9 + $0x30] sm:$0xff]  ;;  %v756_v10 = vld [vmem:[#allocation9 + $0x8] sm:$0xff] }
 0x108   : > { %8357 = vsyncadd (%p14221_p2), [#allocation13], 4294966784  ;;  %8032 = vset.pattern.permute.xlu1 %v8389_v0  ;;  %8031 = vset.pattern.permute.xlu0 %v8389_v0  ;;  %s13685_s7 = smov 95   ;;  %v860_v7 = vld [vmem:[#allocation9 + $0x40] sm:$0xff]  ;;  %s13746_s24 = smov 96   ;;  %v862_v9 = vld [vmem:[#allocation9 + $0x50] sm:$0xff] }
 0x109   : > { %v755_v8 = vld [vmem:[#allocation9] sm:$0xff]  ;;  %s13683_s13 = smov 94   ;;  %v757_v12 = vld [vmem:[#allocation9 + $0x10] sm:$0xff]  ;;  %s8393_s23 = smov 97   ;;  %v758_v14 = vld [vmem:[#allocation9 + $0x18] sm:$0xff]  ;;  %v13679_v39 = vmov 0.0  }
 0x10a   : > { %v927_v11 = vld [vmem:[#allocation9 + $0x60] sm:$0xff]  ;;  %v929_v13 = vld [vmem:[#allocation9 + $0x70] sm:$0xff]  ;;  %v794_v16 = vld [vmem:[#allocation9 + $0x28] sm:$0xff]  ;;  %s13675_s4 = smov 98   ;;  %s13752_s20 = smov 110   ;;  %670 = vmatprep.mubr.f32.mxu0 %v13679_v39  ;;  %vm13760_vm0 = vcmask 130048   ;;  %7341 = vmatprep.mubr.f32.mxu1 %v13679_v39 }
 0x10b   : > { %v994_v15 = vld [vmem:[#allocation9 + $0x80] sm:$0xff]  ;;  %v996_v17 = vld [vmem:[#allocation9 + $0x90] sm:$0xff]  ;;  %v796_v18 = vld [vmem:[#allocation9 + $0x38] sm:$0xff]  ;;  %s13754_s28 = smov 111   ;;  %s13757_s25 = smov 112   ;;  %vm13851_vm1 = vcmask 777216  }
 0x10c   : > { %v1061_v19 = vld [vmem:[#allocation9 + $0xa0] sm:$0xff]  ;;  %v861_v20 = vld [vmem:[#allocation9 + $0x48] sm:$0xff]  ;;  %v1063_v21 = vld [vmem:[#allocation9 + $0xb0] sm:$0xff]  ;;  %s8399_s22 = smov 113   ;;  %s13677_s5 = smov 114   ;;  %vm876_vm2 = vcmask 785408  }
 0x10d   : > { %v692_v1 = vld [vmem:[%s14222_s3 + $0x8] sm:$0xff]  ;;  %v587_v2 = vld [vmem:[%s14223_s2] sm:$0xff]  ;;  %v863_v22 = vld [vmem:[#allocation9 + $0x58] sm:$0xff]  ;;  %s8401_s11 = smov 127   ;;  %s13765_s26 = smov 126   ;;  %vm943_vm3 = vcmask 793600  }
 0x10e   : > { %704 = vperm.xlu1 %8032, %v692_v1   ;;  %591 = vperm.xlu0 %8031, %v587_v2   ;;  %v588_v3 = vld [vmem:[%s14223_s2 + $0x8] sm:$0xff]  ;;  %v691_v5 = vld [vmem:[%s14222_s3] sm:$0xff]  ;;  %v1130_v25 = vld [vmem:[#allocation9 + $0xd0] sm:$0xff]  ;;  %s13750_s14 = smov 109   ;;  %vm13882_vm4 = vcmask 801792   ;;  %vm1077_vm5 = vcmask 900096  }
 0x10f   : > { %v1128_v23 = vld [vmem:[#allocation9 + $0xc0] sm:$0xff]  ;;  %v928_v24 = vld [vmem:[#allocation9 + $0x68] sm:$0xff]  ;;  %v930_v26 = vld [vmem:[#allocation9 + $0x78] sm:$0xff]  ;;  %vm13852_vm6 = vcmask 908288   ;;  %vm13848_vm7 = vcmask 916480   ;;  %vm1275_vm8 = vcmask 924672  }
 0x110   : > { %v1194_v27 = vld [vmem:[#allocation9 + $0xe0] sm:$0xff]  ;;  %v995_v28 = vld [vmem:[#allocation9 + $0x88] sm:$0xff]  ;;  %v584_v30 = vld [vmem:[%s8851_s27 + $0x18] sm:$0xff]  ;;  %vm13842_vm9 = vcmask 932864   ;;  %vm909_vm10 = vcmask 1031168   ;;  %vm842_vm11 = vcmask 1039360  }
 0x111   : > { %v582_v29 = vld [vmem:[%s8851_s27 + $0x8] sm:$0xff]  ;;  %v581_v32 = vld [vmem:[%s8851_s27] sm:$0xff]  ;;  %v583_v33 = vld [vmem:[%s8851_s27 + $0x10] sm:$0xff]  ;;  %vm1574_vm12 = vcmask 7168   ;;  %vm13849_vm13 = vcmask 15360   ;;  %vm13756_vm14 = vcmask 113664  }
 0x112   : > { %596 = vperm.xlu0 %8031, %v588_v3   ;;  %801 = vrot.lane.b32.xlu1 %v793_v4, %s13685_s7  ;;  %v7796_v31 = vpack.c.bf16 %v584_v30, %v582_v29  ;;  %v1196_v34 = vld [vmem:[#allocation9 + $0xf0] sm:$0xff]  ;;  %v997_v35 = vld [vmem:[#allocation9 + $0x98] sm:$0xff]  ;;  %v7798_v36 = vpack.c.bf16 %v583_v33, %v581_v32  ;;  %v1259_v37 = vld [vmem:[#allocation9 + $0x100] sm:$0xff]  ;;  %vm13759_vm15 = vcmask 121856   ;;  %s14329_s0 = smov 96   ;;  %s14348_s2 = smov 77  }
 0x113   : > { %v1062_v38 = vld [vmem:[#allocation9 + $0xa8] sm:$0xff]  ;;  %v585_v40 = vld [vmem:[#allocation6] sm:$0xff]  ;;  %v1261_v41 = vld [vmem:[#allocation9 + $0x110] sm:$0xff]  ;;  %s14352_s3 = smov 31   ;;  %s13802_s6 = smov 63  }
 0x114   : > { %7797 = vmatprep.subr.bf16.mxu0 %v7796_v31  ;;  %v1064_v42 = vld [vmem:[#allocation9 + $0xb8] sm:$0xff]  ;;  %v586_v43 = vld [vmem:[#allocation6 + $0x8] sm:$0xff]  ;;  %v1326_v44 = vld [vmem:[#allocation9 + $0x120] sm:$0xff]  ;;  %s13808_s8 = smov 32   ;;  %s14404_s12 = sld [smem:[#allocation344_spill]] }
 0x115   : > { %7799 = vmatpush1.bf16.msra.mxu0 %v7798_v36  ;;  %v1129_v45 = vld [vmem:[#allocation9 + $0xc8] sm:$0xff]  ;;  %v1328_v46 = vld [vmem:[#allocation9 + $0x130] sm:$0xff]  ;;  %v1131_v47 = vld [vmem:[#allocation9 + $0xd8] sm:$0xff]  ;;  %s14413_s10 = smov 126   ;;  %s13834_s15 = smov 66  }
 0x116   : > { %699 = vperm.xlu0 %8031, %v691_v5   ;;  %805 = vrot.lane.b32.xlu1 %v795_v6, %s13685_s7  ;;  %v1195_v48 = vld [vmem:[#allocation9 + $0xe8] sm:$0xff]  ;;  %v1197_v49 = vld [vmem:[#allocation9 + $0xf8] sm:$0xff]  ;;  %s13859_s17 = smov 122   ;;  %s14545_s30 = smov 90  }
 0x117   : > { %v1260_v50 = vld [vmem:[#allocation9 + $0x108] sm:$0xff]  ;;  %v1262_v51 = vld [vmem:[#allocation9 + $0x118] sm:$0xff]  ;;  %s14548_s21 = smov 88   ;;  %s8439_s16 = smov 4  }
 0x118   : > { %7781 = vmatmul.mubr.msk.f32.vlgmr.msra.gmra.mrb[0].mxu0 %vm13760_vm0, %v585_v40  ;;  %v1327_v52 = vld [vmem:[#allocation9 + $0x128] sm:$0xff]  ;;  %v1396_v30 = vld [vmem:[#allocation9 + $0x158] sm:$0xff]  ;;  %s13913_s9 = smov 26   ;;  %s8443_s29 = smov 36  }
 0x119   : > { %676 = vmatprep.mubr.f32.mxu0 %v13679_v39  ;;  %v1394_v29 = vld [vmem:[#allocation9 + $0x148] sm:$0xff]  ;;  %p15446_p5 = scmp.ne.s32.totalorder %s14210_s18, 0 }
 0x11a   : > { %868 = vrot.lane.b32.xlu1 %v860_v7, %s13746_s24  ;;  %763 = vrot.lane.b32.xlu0 %v755_v8, %s13683_s13 }
 0x11c   : > { %7782 = vmatmul.mubr.msk.f32.gmra.mrb[2].mxu0 %vm13760_vm0, %v586_v43 }
 0x11d   : > { %7438 = vmatprep.mubr.f32.mxu0 %v13679_v39 }
 0x11e   : > { %872 = vrot.lane.b32.xlu1 %v862_v9, %s13746_s24  ;;  %765 = vrot.lane.b32.xlu0 %v756_v10, %s13683_s13 }
 0x122   : > { %935 = vrot.lane.b32.xlu1 %v927_v11, %s8393_s23  ;;  %767 = vrot.lane.b32.xlu0 %v757_v12, %s13683_s13 }
 0x126   : > { %939 = vrot.lane.b32.xlu1 %v929_v13, %s8393_s23  ;;  %769 = vrot.lane.b32.xlu0 %v758_v14, %s13683_s13  ;;  %s13691_s13 = smov 2  }
 0x12a   : > { %1002 = vrot.lane.b32.xlu1 %v994_v15, %s13675_s4  ;;  %803 = vrot.lane.b32.xlu0 %v794_v16, %s13685_s7 }
 0x12e   : > { %1006 = vrot.lane.b32.xlu1 %v996_v17, %s13675_s4  ;;  %807 = vrot.lane.b32.xlu0 %v796_v18, %s13685_s7 }
 0x132   : > { %1069 = vrot.lane.b32.xlu1 %v1061_v19, %s13752_s20  ;;  %870 = vrot.lane.b32.xlu0 %v861_v20, %s13746_s24 }
 0x136   : > { %1073 = vrot.lane.b32.xlu1 %v1063_v21, %s13752_s20  ;;  %874 = vrot.lane.b32.xlu0 %v863_v22, %s13746_s24 }
 0x13a   : > { %1136 = vrot.lane.b32.xlu1 %v1128_v23, %s13754_s28  ;;  %937 = vrot.lane.b32.xlu0 %v928_v24, %s8393_s23  ;;  %v1329_v23 = vld [vmem:[#allocation9 + $0x138] sm:$0xff] }
 0x13e   : > { %1140 = vrot.lane.b32.xlu1 %v1130_v25, %s13754_s28  ;;  %941 = vrot.lane.b32.xlu0 %v930_v26, %s8393_s23  ;;  %s13763_s23 = smov 125   ;;  %v1393_v26 = vld [vmem:[#allocation9 + $0x140] sm:$0xff] }
 0x142   : > { %1202 = vrot.lane.b32.xlu1 %v1194_v27, %s13757_s25  ;;  %1004 = vrot.lane.b32.xlu0 %v995_v28, %s13675_s4  ;;  %v1395_v28 = vld [vmem:[#allocation9 + $0x150] sm:$0xff] }
 0x146   : > { %1206 = vrot.lane.b32.xlu1 %v1196_v34, %s13757_s25  ;;  %1008 = vrot.lane.b32.xlu0 %v997_v35, %s13675_s4  ;;  %s13748_s4 = smov 108  }
 0x14a   : > { %1267 = vrot.lane.b32.xlu1 %v1259_v37, %s8399_s22  ;;  %1071 = vrot.lane.b32.xlu0 %v1062_v38, %s13752_s20 }
 0x14e   : > { %1271 = vrot.lane.b32.xlu1 %v1261_v41, %s8399_s22  ;;  %1075 = vrot.lane.b32.xlu0 %v1064_v42, %s13752_s20 }
 0x152   : > { %1334 = vrot.lane.b32.xlu1 %v1326_v44, %s13677_s5  ;;  %1138 = vrot.lane.b32.xlu0 %v1129_v45, %s13754_s28 }
 0x156   : > { %1338 = vrot.lane.b32.xlu1 %v1328_v46, %s13677_s5  ;;  %1142 = vrot.lane.b32.xlu0 %v1131_v47, %s13754_s28 }
 0x15a   : > { %1204 = vrot.lane.b32.xlu0 %v1195_v48, %s13757_s25  ;;  %v1458_v48 = vld [vmem:[#allocation9 + $0x160] sm:$0xff] }
 0x15e   : > { %1208 = vrot.lane.b32.xlu0 %v1197_v49, %s13757_s25 }
 0x162   : > { %1269 = vrot.lane.b32.xlu0 %v1260_v50, %s8399_s22  ;;  %v1460_v50 = vld [vmem:[#allocation9 + $0x170] sm:$0xff] }
 0x166   : > { %1273 = vrot.lane.b32.xlu0 %v1262_v51, %s8399_s22  ;;  %s13761_s22 = smov 124   ;;  %v1459_v51 = vld [vmem:[#allocation9 + $0x168] sm:$0xff] }
 0x16a   : > { %1336 = vrot.lane.b32.xlu0 %v1327_v52, %s13677_s5  ;;  %v1461_v52 = vld [vmem:[#allocation9 + $0x178] sm:$0xff] }
 0x18d   : > { %v8926_v53 = vpop.permute.xlu1 %704 }
 0x191   : > { %v8928_v54 = vpop.permute.xlu1 %801 }
 0x192   : > { %v818_v55 = vmul.f32 0.0, %v8928_v54 }
 0x194   : > { %830 = vrot.lane.b32.xlu1 %v818_v55, %s8401_s11  ;;  %v9043_v55 = vpop.permute.xlu0 %591 }
 0x195   : > { %v8932_v56 = vpop.permute.xlu1 %805 }
 0x196   : > { %v821_v57 = vmul.f32 0.0, %v8932_v56 }
 0x198   : > { %836 = vrot.lane.b32.xlu0 %v821_v57, %s8401_s11  ;;  %v9045_v57 = vpop.permute.xlu0 %596 }
 0x199   : > { %v8936_v58 = vpop.permute.xlu1 %868 }
 0x19a   : > { %v885_v59 = vmul.f32 0.0, %v8936_v58 }
 0x19c   : > { %897 = vrot.lane.b32.xlu1 %v885_v59, %s13765_s26  ;;  %v9047_v59 = vpop.permute.xlu0 %699 }
 0x19d   : > { %v8940_v60 = vpop.permute.xlu1 %872 }
 0x19e   : > { %14224 = vst [vmem:[#allocation28_spill] sm:$0xff] %v8940_v60  ;;  %v888_v61 = vmul.f32 0.0, %v8940_v60 }
 0x1a0   : > { %903 = vrot.lane.b32.xlu0 %v888_v61, %s13765_s26  ;;  %v9049_v61 = vpop.permute.xlu0 %763 }
 0x1a1   : > { %v8944_v62 = vpop.permute.xlu1 %935  ;;  %14242 = vst [vmem:[#allocation46_spill] sm:$0xff] %v9049_v61 }
 0x1a2   : > { %v952_v63 = vmul.f32 0.0, %v8944_v62 }
 0x1a4   : > { %964 = vrot.lane.b32.xlu1 %v952_v63, %s13763_s23  ;;  %v9051_v63 = vpop.permute.xlu0 %765 }
 0x1a5   : > { %v8948_v0 = vpop.permute.xlu1 %939  ;;  %14243 = vst [vmem:[#allocation47_spill] sm:$0xff] %v9051_v63 }
 0x1a6   : > { %14225 = vst [vmem:[#allocation29_spill] sm:$0xff] %v8948_v0  ;;  %v955_v1 = vmul.f32 0.0, %v8948_v0 }
 0x1a8   : > { %970 = vrot.lane.b32.xlu0 %v955_v1, %s13763_s23  ;;  %v9053_v1 = vpop.permute.xlu0 %767 }
 0x1a9   : > { %v8952_v2 = vpop.permute.xlu1 %1002  ;;  %14244 = vst [vmem:[#allocation48_spill] sm:$0xff] %v9053_v1 }
 0x1aa   : > { %v1019_v3 = vmul.f32 0.0, %v8952_v2 }
 0x1ac   : > { %1031 = vrot.lane.b32.xlu1 %v1019_v3, %s13761_s22  ;;  %v9055_v3 = vpop.permute.xlu0 %769 }
 0x1ad   : > { %v8956_v4 = vpop.permute.xlu1 %1006  ;;  %14245 = vst [vmem:[#allocation49_spill] sm:$0xff] %v9055_v3 }
 0x1ae   : > { %14226 = vst [vmem:[#allocation30_spill] sm:$0xff] %v8956_v4  ;;  %v1022_v5 = vmul.f32 0.0, %v8956_v4 }
 0x1b0   : > { %1037 = vrot.lane.b32.xlu0 %v1022_v5, %s13761_s22  ;;  %v9057_v5 = vpop.permute.xlu0 %803 }
 0x1b1   : > { %v8960_v6 = vpop.permute.xlu1 %1069 }
 0x1b2   : > { %v1086_v7 = vmul.f32 0.0, %v8960_v6 }
 0x1b4   : > { %1098 = vrot.lane.b32.xlu1 %v1086_v7, %s13757_s25  ;;  %v9059_v7 = vpop.permute.xlu0 %807 }
 0x1b5   : > { %v8964_v8 = vpop.permute.xlu1 %1073 }
 0x1b6   : > { %14227 = vst [vmem:[#allocation31_spill] sm:$0xff] %v8964_v8  ;;  %v1089_v9 = vmul.f32 0.0, %v8964_v8 }
 0x1b8   : > { %1104 = vrot.lane.b32.xlu0 %v1089_v9, %s13757_s25  ;;  %v9061_v9 = vpop.permute.xlu0 %870 }
 0x1b9   : > { %v8968_v10 = vpop.permute.xlu1 %1136 }
 0x1ba   : > { %v1153_v11 = vmul.f32 0.0, %v8968_v10 }
 0x1bc   : > { %1165 = vrot.lane.b32.xlu1 %v1153_v11, %s13754_s28  ;;  %v9063_v11 = vpop.permute.xlu0 %874 }
 0x1bd   : > { %v8972_v12 = vpop.permute.xlu1 %1140 }
 0x1be   : > { %14228 = vst [vmem:[#allocation32_spill] sm:$0xff] %v8972_v12  ;;  %v1156_v13 = vmul.f32 0.0, %v8972_v12 }
 0x1c0   : > { %1171 = vrot.lane.b32.xlu0 %v1156_v13, %s13754_s28  ;;  %v9065_v13 = vpop.permute.xlu0 %937 }
 0x1c1   : > { %v8976_v14 = vpop.permute.xlu1 %1202 }
 0x1c2   : > { %v1218_v15 = vmul.f32 0.0, %v8976_v14 }
 0x1c4   : > { %1230 = vrot.lane.b32.xlu1 %v1218_v15, %s13752_s20  ;;  %v9067_v15 = vpop.permute.xlu0 %941 }
 0x1c5   : > { %v8980_v16 = vpop.permute.xlu1 %1206  ;;  %14246 = vst [vmem:[#allocation50_spill] sm:$0xff] %v9067_v15 }
 0x1c6   : > { %14229 = vst [vmem:[#allocation33_spill] sm:$0xff] %v8980_v16  ;;  %v1221_v17 = vmul.f32 0.0, %v8980_v16 }
 0x1c8   : > { %1236 = vrot.lane.b32.xlu0 %v1221_v17, %s13752_s20  ;;  %v9069_v17 = vpop.permute.xlu0 %1004 }
 0x1c9   : > { %v8984_v18 = vpop.permute.xlu1 %1267 }
 0x1ca   : > { %v1284_v19 = vmul.f32 0.0, %v8984_v18 }
 0x1cc   : > { %1296 = vrot.lane.b32.xlu1 %v1284_v19, %s13750_s14  ;;  %v9071_v19 = vpop.permute.xlu0 %1008 }
 0x1cd   : > { %v8988_v20 = vpop.permute.xlu1 %1271  ;;  %14247 = vst [vmem:[#allocation51_spill] sm:$0xff] %v9071_v19 }
 0x1ce   : > { %14230 = vst [vmem:[#allocation34_spill] sm:$0xff] %v8988_v20  ;;  %v1287_v21 = vmul.f32 0.0, %v8988_v20 }
 0x1d0   : > { %1302 = vrot.lane.b32.xlu0 %v1287_v21, %s13750_s14 }
 0x1d1   : > { %v8992_v22 = vpop.permute.xlu1 %1334 }
 0x1d2   : > { %v1351_v24 = vmul.f32 0.0, %v8992_v22 }
 0x1d4   : > { %1363 = vrot.lane.b32.xlu1 %v1351_v24, %s13748_s4  ;;  %1340 = vrot.lane.b32.xlu0 %v1329_v23, %s13677_s5  ;;  %v9075_v23 = vpop.permute.xlu0 %1071  ;;  %s8407_s5 = smov 1  }
 0x1d5   : > { %v8997_v25 = vpop.permute.xlu1 %1338 }
 0x1d6   : > { %14231 = vst [vmem:[#allocation35_spill] sm:$0xff] %v8997_v25  ;;  %v1354_v27 = vmul.f32 0.0, %v8997_v25 }
 0x1d8   : > { %1401 = vrot.lane.b32.xlu1 %v1393_v26, %s13765_s26  ;;  %1369 = vrot.lane.b32.xlu0 %v1354_v27, %s13748_s4 }
 0x1dc   : > { %1405 = vrot.lane.b32.xlu1 %v1395_v28, %s13765_s26  ;;  %1403 = vrot.lane.b32.xlu0 %v1394_v29, %s13765_s26  ;;  %v1558_v28 = vld [vmem:[#allocation9 + $0x1a0] sm:$0xff]  ;;  %v9083_v29 = vpop.permute.xlu0 %1075 }
 0x1dd   : > { %14250 = vst [vmem:[#allocation54_spill] sm:$0xff] %v9083_v29 }
 0x1e0   : > { %1407 = vrot.lane.b32.xlu0 %v1396_v30, %s13765_s26 }
 0x1eb   : > { %v9005_v31 = vpop.f32.mrb[0].mxu0 }
 0x1ec   : > { %v9007_v32 = vpop.f32.mrb[1].mxu0 }
 0x1ef   : > { %v9009_v33 = vpop.f32.mrb[2].mxu0 }
 0x1f0   : > { %v9011_v34 = vpop.f32.mrb[3].mxu0 }
 0x206   : > { %v9013_v35 = vpop.permute.xlu1 %830 }
 0x207   : > { %14232 = vst [vmem:[#allocation36_spill] sm:$0xff] %v9013_v35 }
 0x20e   : > { %v9015_v36 = vpop.permute.xlu1 %897 }
 0x20f   : > { %14233 = vst [vmem:[#allocation37_spill] sm:$0xff] %v9015_v36 }
 0x216   : > { %v9017_v37 = vpop.permute.xlu1 %964 }
 0x217   : > { %14234 = vst [vmem:[#allocation38_spill] sm:$0xff] %v9017_v37  ;;  %v1627_v37 = vld [vmem:[#allocation9 + $0x1d0] sm:$0xff] }
 0x21e   : > { %v9019_v38 = vpop.permute.xlu1 %1031 }
 0x21f   : > { %14235 = vst [vmem:[#allocation39_spill] sm:$0xff] %v9019_v38 }
 0x226   : > { %v9021_v40 = vpop.permute.xlu1 %1098 }
 0x227   : > { %14236 = vst [vmem:[#allocation40_spill] sm:$0xff] %v9021_v40 }
 0x22e   : > { %v9023_v41 = vpop.permute.xlu1 %1165 }
 0x22f   : > { %14237 = vst [vmem:[#allocation41_spill] sm:$0xff] %v9023_v41 }
 0x236   : > { %v9025_v42 = vpop.permute.xlu1 %1230 }
 0x237   : > { %14238 = vst [vmem:[#allocation42_spill] sm:$0xff] %v9025_v42 }
 0x23e   : > { %v9027_v43 = vpop.permute.xlu1 %1296 }
 0x23f   : > { %14239 = vst [vmem:[#allocation43_spill] sm:$0xff] %v9027_v43 }
 0x246   : > { %v9029_v44 = vpop.permute.xlu1 %1363 }
 0x247   : > { %14240 = vst [vmem:[#allocation44_spill] sm:$0xff] %v9029_v44 }
 0x24a   : > { %v9031_v45 = vpop.permute.xlu1 %1401 }
 0x24b   : > { %v1417_v46 = vmul.f32 0.0, %v9031_v45 }
 0x24d   : > { %1429 = vrot.lane.b32.xlu1 %v1417_v46, %s13746_s24  ;;  %v1559_v46 = vld [vmem:[#allocation9 + $0x1a8] sm:$0xff] }
 0x24e   : > { %v9035_v47 = vpop.permute.xlu1 %1405 }
 0x24f   : > { %14241 = vst [vmem:[#allocation45_spill] sm:$0xff] %v9035_v47  ;;  %v1420_v49 = vmul.f32 0.0, %v9035_v47 }
 0x251   : > { %1466 = vrot.lane.b32.xlu1 %v1458_v48, %s8401_s11  ;;  %1435 = vrot.lane.b32.xlu0 %v1420_v49, %s13746_s24  ;;  %v1560_v48 = vld [vmem:[#allocation9 + $0x1b0] sm:$0xff]  ;;  %v9087_v49 = vpop.permute.xlu0 %1138 }
 0x255   : > { %1470 = vrot.lane.b32.xlu1 %v1460_v50, %s8401_s11  ;;  %1468 = vrot.lane.b32.xlu0 %v1459_v51, %s8401_s11  ;;  %v1561_v50 = vld [vmem:[#allocation9 + $0x1b8] sm:$0xff]  ;;  %v9089_v51 = vpop.permute.xlu0 %1142 }
 0x256   : > { %14251 = vst [vmem:[#allocation55_spill] sm:$0xff] %v9089_v51 }
 0x259   : > { %1472 = vrot.lane.b32.xlu0 %v1461_v52, %s8401_s11  ;;  %v9091_v52 = vpop.permute.xlu0 %1204 }
 0x2bf   : > { %v9073_v21 = vpop.permute.xlu1 %1429 }
 0x2c0   : > { %14248 = vst [vmem:[#allocation52_spill] sm:$0xff] %v9073_v21 }
 0x2c3   : > { %v9077_v24 = vpop.permute.xlu1 %1466 }
 0x2c4   : > { %v1482_v26 = vmul.f32 0.0, %v9077_v24 }
 0x2c6   : > { %1494 = vrot.lane.b32.xlu1 %v1482_v26, %s13685_s7  ;;  %v9093_v26 = vpop.permute.xlu0 %1208 }
 0x2c7   : > { %v9081_v27 = vpop.permute.xlu1 %1470  ;;  %14252 = vst [vmem:[#allocation56_spill] sm:$0xff] %v9093_v26 }
 0x2c8   : > { %14249 = vst [vmem:[#allocation53_spill] sm:$0xff] %v9081_v27  ;;  %v1485_v30 = vmul.f32 0.0, %v9081_v27 }
 0x2ca   : > { %1500 = vrot.lane.b32.xlu0 %v1485_v30, %s13685_s7  ;;  %1566 = vrot.lane.b32.xlu1 %v1558_v28, %s8407_s5  ;;  %v9095_v39 = vpop.permute.xlu0 %1269  ;;  %s13694_s7 = smov 92  }
 0x2ce   : > { %1568 = vrot.lane.b32.xlu0 %v1559_v46, %s8407_s5  ;;  %1570 = vrot.lane.b32.xlu1 %v1560_v48, %s8407_s5  ;;  %v9097_v21 = vpop.permute.xlu0 %1273 }
 0x2cf   : > { %14253 = vst [vmem:[#allocation57_spill] sm:$0xff] %v9097_v21 }
 0x2d2   : > { %1572 = vrot.lane.b32.xlu0 %v1561_v50, %s8407_s5  ;;  %v9099_v30 = vpop.permute.xlu0 %1336  ;;  %s13688_s5 = smov 93  }
 0x2d6   : > { %v9101_v28 = vpop.permute.xlu0 %836 }
 0x2d7   : > { %14254 = vst [vmem:[#allocation58_spill] sm:$0xff] %v9101_v28 }
 0x2da   : > { %v9103_v44 = vpop.permute.xlu0 %903 }
 0x2db   : > { %14255 = vst [vmem:[#allocation59_spill] sm:$0xff] %v9103_v44 }
 0x2de   : > { %v9105_v46 = vpop.permute.xlu0 %970 }
 0x2df   : > { %14256 = vst [vmem:[#allocation60_spill] sm:$0xff] %v9105_v46 }
 0x2e2   : > { %v9107_v48 = vpop.permute.xlu0 %1037 }
 0x2e3   : > { %14257 = vst [vmem:[#allocation61_spill] sm:$0xff] %v9107_v48 }
 0x2e6   : > { %v9109_v50 = vpop.permute.xlu0 %1104 }
 0x2e7   : > { %14258 = vst [vmem:[#allocation62_spill] sm:$0xff] %v9109_v50 }
 0x2ea   : > { %v9111_v43 = vpop.permute.xlu0 %1171 }
 0x2eb   : > { %14259 = vst [vmem:[#allocation63_spill] sm:$0xff] %v9111_v43 }
 0x2ee   : > { %v9113_v3 = vpop.permute.xlu0 %1236 }
 0x2ef   : > { %14260 = vst [vmem:[#allocation64_spill] sm:$0xff] %v9113_v3  ;;  %v1625_v3 = vld [vmem:[#allocation9 + $0x1c0] sm:$0xff] }
 0x2f2   : > { %v9115_v42 = vpop.permute.xlu0 %1302 }
 0x2f3   : > { %14261 = vst [vmem:[#allocation65_spill] sm:$0xff] %v9115_v42 }
 0x2f6   : > { %v9117_v1 = vpop.permute.xlu0 %1340 }
 0x2f7   : > { %14262 = vst [vmem:[#allocation66_spill] sm:$0xff] %v9117_v1 }
 0x2fa   : > { %v9119_v41 = vpop.permute.xlu0 %1369 }
 0x2fb   : > { %14263 = vst [vmem:[#allocation67_spill] sm:$0xff] %v9119_v41 }
 0x2fe   : > { %v9121_v40 = vpop.permute.xlu0 %1403 }
 0x302   : > { %v9123_v28 = vpop.permute.xlu0 %1407 }
 0x303   : > { %14264 = vst [vmem:[#allocation68_spill] sm:$0xff] %v9123_v28 }
 0x306   : > { %v9125_v44 = vpop.permute.xlu0 %1435 }
 0x307   : > { %14265 = vst [vmem:[#allocation69_spill] sm:$0xff] %v9125_v44  ;;  %v1626_v44 = vld [vmem:[#allocation9 + $0x1c8] sm:$0xff] }
 0x30a   : > { %v9127_v46 = vpop.permute.xlu0 %1468 }
 0x30e   : > { %v9129_v48 = vpop.permute.xlu0 %1472 }
 0x30f   : > { %14266 = vst [vmem:[#allocation70_spill] sm:$0xff] %v9129_v48 }
 0x33c   : > { %v9131_v50 = vpop.permute.xlu0 %1500 }
 0x33d   : > { %14267 = vst [vmem:[#allocation71_spill] sm:$0xff] %v9131_v50  ;;  %v1628_v50 = vld [vmem:[#allocation9 + $0x1d8] sm:$0xff] }
 0x340   : > { %v9133_v43 = vpop.permute.xlu0 %1568 }
 0x341   : > { %v1585_v42 = vmul.f32 0.0, %v9133_v43 }
 0x343   : > { %1599 = vrot.lane.b32.xlu1 %v1585_v42, %s13688_s5 }
 0x344   : > { %v9137_v41 = vpop.permute.xlu0 %1572 }
 0x345   : > { %14268 = vst [vmem:[#allocation72_spill] sm:$0xff] %v9137_v41  ;;  %v1588_v38 = vmul.f32 0.0, %v9137_v41 }
 0x347   : > { %1605 = vrot.lane.b32.xlu0 %v1588_v38, %s13688_s5  ;;  %1633 = vrot.lane.b32.xlu1 %v1625_v3, %s13691_s13  ;;  %v1692_v3 = vld [vmem:[#allocation9 + $0x1e0] sm:$0xff]  ;;  %s8411_s5 = smov 14  }
 0x34b   : > { %1635 = vrot.lane.b32.xlu0 %v1626_v44, %s13691_s13  ;;  %1637 = vrot.lane.b32.xlu1 %v1627_v37, %s13691_s13  ;;  %v1693_v37 = vld [vmem:[#allocation9 + $0x1e8] sm:$0xff]  ;;  %v1694_v44 = vld [vmem:[#allocation9 + $0x1f0] sm:$0xff] }
 0x34f   : > { %1639 = vrot.lane.b32.xlu0 %v1628_v50, %s13691_s13  ;;  %v1695_v50 = vld [vmem:[#allocation9 + $0x1f8] sm:$0xff]  ;;  %s13698_s13 = smov 80  }
 0x3b9   : > { %v9145_v42 = vpop.permute.xlu0 %1605 }
 0x3ba   : > { %14269 = vst [vmem:[#allocation73_spill] sm:$0xff] %v9145_v42 }
 0x3bd   : > { %v9147_v36 = vpop.permute.xlu0 %1635 }
 0x3be   : > { %v1652_v35 = vmul.f32 0.0, %v9147_v36 }
 0x3c0   : > { %1666 = vrot.lane.b32.xlu1 %v1652_v35, %s13694_s7 }
 0x3c1   : > { %v9151_v38 = vpop.permute.xlu0 %1639 }
 0x3c2   : > { %14270 = vst [vmem:[#allocation74_spill] sm:$0xff] %v9151_v38  ;;  %v1655_v61 = vmul.f32 0.0, %v9151_v38 }
 0x3c4   : > { %1672 = vrot.lane.b32.xlu0 %v1655_v61, %s13694_s7  ;;  %1700 = vrot.lane.b32.xlu1 %v1692_v3, %s8411_s5  ;;  %v1759_v61 = vld [vmem:[#allocation9 + $0x200] sm:$0xff]  ;;  %s13701_s7 = smov 15  }
 0x3c8   : > { %1702 = vrot.lane.b32.xlu0 %v1693_v37, %s8411_s5  ;;  %1704 = vrot.lane.b32.xlu1 %v1694_v44, %s8411_s5  ;;  %v1760_v37 = vld [vmem:[#allocation9 + $0x208] sm:$0xff]  ;;  %v1761_v44 = vld [vmem:[#allocation9 + $0x210] sm:$0xff] }
 0x3cc   : > { %1706 = vrot.lane.b32.xlu0 %v1695_v50, %s8411_s5  ;;  %v1762_v50 = vld [vmem:[#allocation9 + $0x218] sm:$0xff]  ;;  %s13704_s5 = smov 79  }
 0x436   : > { %v9155_v42 = vpop.permute.xlu0 %1672 }
 0x437   : > { %14271 = vst [vmem:[#allocation75_spill] sm:$0xff] %v9155_v42 }
 0x43a   : > { %v9157_v63 = vpop.permute.xlu0 %1702 }
 0x43b   : > { %v1719_v35 = vmul.f32 0.0, %v9157_v63 }
 0x43d   : > { %1733 = vrot.lane.b32.xlu1 %v1719_v35, %s13698_s13 }
 0x43e   : > { %v9161_v38 = vpop.permute.xlu0 %1706 }
 0x43f   : > { %14272 = vst [vmem:[#allocation76_spill] sm:$0xff] %v9161_v38  ;;  %v1722_v3 = vmul.f32 0.0, %v9161_v38 }
 0x441   : > { %1739 = vrot.lane.b32.xlu0 %v1722_v3, %s13698_s13  ;;  %1767 = vrot.lane.b32.xlu1 %v1759_v61, %s13701_s7  ;;  %v1826_v61 = vld [vmem:[#allocation9 + $0x220] sm:$0xff]  ;;  %s13707_s13 = smov 16  }
 0x445   : > { %1769 = vrot.lane.b32.xlu0 %v1760_v37, %s13701_s7  ;;  %1771 = vrot.lane.b32.xlu1 %v1761_v44, %s13701_s7  ;;  %v1827_v37 = vld [vmem:[#allocation9 + $0x228] sm:$0xff]  ;;  %v1828_v44 = vld [vmem:[#allocation9 + $0x230] sm:$0xff] }
 0x449   : > { %1773 = vrot.lane.b32.xlu0 %v1762_v50, %s13701_s7  ;;  %v1829_v50 = vld [vmem:[#allocation9 + $0x238] sm:$0xff]  ;;  %s13710_s7 = smov 78  }
 0x4b3   : > { %v9169_v35 = vpop.permute.xlu0 %1739 }
 0x4b4   : > { %14273 = vst [vmem:[#allocation77_spill] sm:$0xff] %v9169_v35 }
 0x4b7   : > { %v9171_v42 = vpop.permute.xlu0 %1769 }
 0x4b8   : > { %v1786_v38 = vmul.f32 0.0, %v9171_v42 }
 0x4ba   : > { %1800 = vrot.lane.b32.xlu1 %v1786_v38, %s13704_s5 }
 0x4bb   : > { %v9175_v3 = vpop.permute.xlu0 %1773 }
 0x4bc   : > { %14274 = vst [vmem:[#allocation78_spill] sm:$0xff] %v9175_v3  ;;  %v1789_v41 = vmul.f32 0.0, %v9175_v3 }
 0x4be   : > { %1806 = vrot.lane.b32.xlu0 %v1789_v41, %s13704_s5  ;;  %1834 = vrot.lane.b32.xlu1 %v1826_v61, %s13707_s13  ;;  %v1892_v61 = vld [vmem:[#allocation9 + $0x240] sm:$0xff]  ;;  %s8417_s5 = smov 17  }
 0x4c2   : > { %1836 = vrot.lane.b32.xlu0 %v1827_v37, %s13707_s13  ;;  %1838 = vrot.lane.b32.xlu1 %v1828_v44, %s13707_s13  ;;  %v1893_v37 = vld [vmem:[#allocation9 + $0x248] sm:$0xff]  ;;  %v1894_v44 = vld [vmem:[#allocation9 + $0x250] sm:$0xff] }
 0x4c6   : > { %1840 = vrot.lane.b32.xlu0 %v1829_v50, %s13707_s13  ;;  %v1895_v50 = vld [vmem:[#allocation9 + $0x258] sm:$0xff]  ;;  %s13769_s13 = smov 77  }
 0x530   : > { %v9183_v38 = vpop.permute.xlu0 %1806 }
 0x531   : > { %14275 = vst [vmem:[#allocation79_spill] sm:$0xff] %v9183_v38 }
 0x534   : > { %v9185_v35 = vpop.permute.xlu0 %1836 }
 0x535   : > { %v1852_v3 = vmul.f32 0.0, %v9185_v35 }
 0x537   : > { %1866 = vrot.lane.b32.xlu1 %v1852_v3, %s13710_s7 }
 0x538   : > { %v9189_v41 = vpop.permute.xlu0 %1840 }
 0x539   : > { %14276 = vst [vmem:[#allocation80_spill] sm:$0xff] %v9189_v41  ;;  %v1855_v27 = vmul.f32 0.0, %v9189_v41 }
 0x53b   : > { %1872 = vrot.lane.b32.xlu0 %v1855_v27, %s13710_s7  ;;  %1900 = vrot.lane.b32.xlu1 %v1892_v61, %s8417_s5  ;;  %v1959_v27 = vld [vmem:[#allocation9 + $0x260] sm:$0xff]  ;;  %s13717_s7 = smov 18  }
 0x53f   : > { %1902 = vrot.lane.b32.xlu0 %v1893_v37, %s8417_s5  ;;  %1904 = vrot.lane.b32.xlu1 %v1894_v44, %s8417_s5  ;;  %v1961_v37 = vld [vmem:[#allocation9 + $0x270] sm:$0xff]  ;;  %v1960_v44 = vld [vmem:[#allocation9 + $0x268] sm:$0xff] }
 0x543   : > { %1906 = vrot.lane.b32.xlu0 %v1895_v50, %s8417_s5  ;;  %v1962_v50 = vld [vmem:[#allocation9 + $0x278] sm:$0xff]  ;;  %s13742_s5 = smov 76  }
 0x5ad   : > { %v9193_v38 = vpop.permute.xlu0 %1872 }
 0x5ae   : > { %14277 = vst [vmem:[#allocation81_spill] sm:$0xff] %v9193_v38  ;;  %v675_v38 = vadd.f32 %v9007_v32, %v9043_v55 }
 0x5b1   : > { %v9195_v48 = vpop.permute.xlu0 %1902 }
 0x5b2   : > { %v1919_v3 = vmul.f32 0.0, %v9195_v48 }
 0x5b4   : > { %1933 = vrot.lane.b32.xlu1 %v1919_v3, %s13769_s13  ;;  %v673_v3 = vadd.f32 %v9005_v31, %v9043_v55 }
 0x5b5   : > { %v9199_v41 = vpop.permute.xlu0 %1906 }
 0x5b6   : > { %14278 = vst [vmem:[#allocation82_spill] sm:$0xff] %v9199_v41  ;;  %v1922_v61 = vmul.f32 0.0, %v9199_v41  ;;  %v683_v41 = vadd.f32 %v675_v38, %v673_v3 }
 0x5b8   : > { %1967 = vrot.lane.b32.xlu1 %v1959_v27, %s13717_s7  ;;  %1939 = vrot.lane.b32.xlu0 %v1922_v61, %s13769_s13  ;;  %v679_v27 = vadd.f32 %v9009_v33, %v9045_v57  ;;  %v681_v61 = vadd.f32 %v9011_v34, %v9045_v57 }
 0x5bc   : > { %1971 = vrot.lane.b32.xlu1 %v1961_v37, %s13717_s7  ;;  %1969 = vrot.lane.b32.xlu0 %v1960_v44, %s13717_s7  ;;  %v686_v37 = vadd.f32 %v681_v61, %v679_v27  ;;  %v9215_v44 = vpop.permute.xlu1 %1494 }
 0x5bd   : > { %14279 = vst [vmem:[#allocation83_spill] sm:$0xff] %v9215_v44  ;;  %v2026_v44 = vld [vmem:[#allocation9 + $0x280] sm:$0xff] }
 0x5c0   : > { %1973 = vrot.lane.b32.xlu0 %v1962_v50, %s13717_s7  ;;  %v9217_v47 = vpop.permute.xlu1 %1566  ;;  %s13740_s7 = smov 30  }
 0x5c4   : > { %v9219_v50 = vpop.permute.xlu1 %1570 }
 0x5c5   : > { %14280 = vst [vmem:[#allocation84_spill] sm:$0xff] %v9219_v50 }
 0x5c8   : > { %v9221_v31 = vpop.permute.xlu1 %1599 }
 0x5c9   : > { %14281 = vst [vmem:[#allocation85_spill] sm:$0xff] %v9221_v31 }
 0x5cc   : > { %v9223_v28 = vpop.permute.xlu1 %1633 }
 0x5d0   : > { %v9225_v32 = vpop.permute.xlu1 %1637 }
 0x5d1   : > { %14282 = vst [vmem:[#allocation86_spill] sm:$0xff] %v9225_v32 }
 0x5d4   : > { %v9227_v33 = vpop.permute.xlu1 %1666 }
 0x5d5   : > { %14283 = vst [vmem:[#allocation87_spill] sm:$0xff] %v9227_v33  ;;  %v2028_v33 = vld [vmem:[#allocation9 + $0x290] sm:$0xff] }
 0x5d8   : > { %v9231_v34 = vpop.permute.xlu1 %1700 }
 0x5e0   : > { %684 = vadd.xlane.f32.xlu1 %v683_v41 }
 0x5e4   : > { %687 = vadd.xlane.f32.xlu1 %v686_v37  ;;  %v9236_v37 = vpop.permute.xlu1 %1704 }
 0x5e5   : > { %14285 = vst [vmem:[#allocation89_spill] sm:$0xff] %v9236_v37 }
 0x5e8   : > { %v9242_v50 = vpop.permute.xlu1 %1733 }
 0x5e9   : > { %14287 = vst [vmem:[#allocation91_spill] sm:$0xff] %v9242_v50 }
 0x5ec   : > { %v9246_v25 = vpop.permute.xlu1 %1767 }
 0x5f0   : > { %v9251_v37 = vpop.permute.xlu1 %1771 }
 0x5f1   : > { %14288 = vst [vmem:[#allocation92_spill] sm:$0xff] %v9251_v37 }
 0x62a   : > { %v9229_v55 = vpop.permute.xlu0 %1939 }
 0x62b   : > { %14284 = vst [vmem:[#allocation88_spill] sm:$0xff] %v9229_v55  ;;  %v2027_v55 = vld [vmem:[#allocation9 + $0x288] sm:$0xff] }
 0x62e   : > { %v9233_v57 = vpop.permute.xlu0 %1969 }
 0x62f   : > { %v1986_v41 = vmul.f32 0.0, %v9233_v57 }
 0x631   : > { %2000 = vrot.lane.b32.xlu1 %v1986_v41, %s13742_s5  ;;  %v2029_v41 = vld [vmem:[#allocation9 + $0x298] sm:$0xff] }
 0x632   : > { %v9239_v31 = vpop.permute.xlu0 %1973 }
 0x633   : > { %14286 = vst [vmem:[#allocation90_spill] sm:$0xff] %v9239_v31  ;;  %v1989_v32 = vmul.f32 0.0, %v9239_v31  ;;  %v9253_v31 = vpop.permute.xlu1 %1800 }
 0x634   : > { %14289 = vst [vmem:[#allocation93_spill] sm:$0xff] %v9253_v31 }
 0x635   : > { %2006 = vrot.lane.b32.xlu0 %v1989_v32, %s13742_s5  ;;  %2034 = vrot.lane.b32.xlu1 %v2026_v44, %s13740_s7  ;;  %s13744_s5 = smov 31  }
 0x637   : > { %v9255_v50 = vpop.permute.xlu1 %1834 }
 0x639   : > { %2036 = vrot.lane.b32.xlu0 %v2027_v55, %s13740_s7  ;;  %2038 = vrot.lane.b32.xlu1 %v2028_v33, %s13740_s7 }
 0x63b   : > { %v9257_v32 = vpop.permute.xlu1 %1838 }
 0x63c   : > { %14290 = vst [vmem:[#allocation94_spill] sm:$0xff] %v9257_v32 }
 0x63d   : > { %2040 = vrot.lane.b32.xlu0 %v2029_v41, %s13740_s7  ;;  %s13767_s7 = smov 64  }
 0x63f   : > { %v9259_v44 = vpop.permute.xlu1 %1866 }
 0x640   : > { %14291 = vst [vmem:[#allocation95_spill] sm:$0xff] %v9259_v44 }
 0x643   : > { %v9261_v1 = vpop.permute.xlu1 %1900 }
 0x647   : > { %v9263_v20 = vpop.permute.xlu1 %1904 }
 0x648   : > { %14292 = vst [vmem:[#allocation96_spill] sm:$0xff] %v9263_v20 }
 0x64b   : > { %v9265_v55 = vpop.permute.xlu1 %1933 }
 0x64c   : > { %14293 = vst [vmem:[#allocation97_spill] sm:$0xff] %v9265_v55 }
 0x64f   : > { %v9267_v33 = vpop.permute.xlu1 %1967 }
 0x653   : > { %v9269_v21 = vpop.permute.xlu1 %1971 }
 0x654   : > { %14294 = vst [vmem:[#allocation98_spill] sm:$0xff] %v9269_v21 }
 0x66d   : > { %v685_v41 = vpop.xlane.xlu1 %684 }
 0x66e   : > { %v689_v37 = vmul.f32 0.00390625, %v685_v41 }
 0x670   : > { %v693_v16 = vsub.f32 %v673_v3, %v689_v37  ;;  %v694_v31 = vsub.f32 %v675_v38, %v689_v37 }
 0x671   : > { %v688_v26 = vpop.xlane.xlu1 %687 }
 0x672   : > { %v707_v12 = vmul.f32 %v9047_v59, %v693_v16  ;;  %v708_v32 = vmul.f32 %v9047_v59, %v694_v31  ;;  %v690_v44 = vmul.f32 0.00390625, %v688_v26 }
 0x674   : > { %v711_v51 = vadd.f32 %v707_v12, %v673_v3  ;;  %v712_v8 = vadd.f32 %v708_v32, %v675_v38  ;;  %v695_v29 = vsub.f32 %v679_v27, %v690_v44  ;;  %v696_v20 = vsub.f32 %v681_v61, %v690_v44 }
 0x676   : > { %v715_v4 = vsub.f32 0.0, %v711_v51  ;;  %v716_v55 = vsub.f32 0.0, %v712_v8  ;;  %v709_v19 = vmul.f32 %v8926_v53, %v695_v29  ;;  %v710_v21 = vmul.f32 %v8926_v53, %v696_v20 }
 0x678   : > { %v719_v0 = vmul.f32 1.442695, %v715_v4  ;;  %v721_v41 = vmul.f32 1.442695, %v716_v55  ;;  %v713_v15 = vadd.f32 %v709_v19, %v679_v27  ;;  %v714_v37 = vadd.f32 %v710_v21, %v681_v61 }
 0x67a   : > { %8048 = vpow2.f32 %v719_v0  ;;  %v717_v60 = vsub.f32 0.0, %v713_v15  ;;  %v718_v16 = vsub.f32 0.0, %v714_v37 }
 0x67b   : > { %8050 = vpow2.f32 %v721_v41 }
 0x67c   : > { %v723_v59 = vmul.f32 1.442695, %v717_v60  ;;  %v725_v26 = vmul.f32 1.442695, %v718_v16 }
 0x67e   : > { %8052 = vpow2.f32 %v723_v59 }
 0x67f   : > { %8054 = vpow2.f32 %v725_v26  ;;  %v2094_v26 = vld [vmem:[#allocation9 + $0x2a8] sm:$0xff] }
 0x684   : > { %v8049_v12 = vpop.eup %8048 }
 0x685   : > { %v8051_v38 = vpop.eup %8050  ;;  %v727_v3 = vadd.f32 1.0, %v8049_v12  ;;  %v2095_v12 = vld [vmem:[#allocation9 + $0x2b0] sm:$0xff] }
 0x686   : > { %v728_v31 = vadd.f32 1.0, %v8051_v38  ;;  %v810_v38 = vsel %vm13851_vm1, %v8928_v54, %v9057_v5 }
 0x687   : > { %8056 = vrcp.f32 %v727_v3 }
 0x688   : > { %v8053_v32 = vpop.eup %8052  ;;  %8058 = vrcp.f32 %v728_v31 }
 0x689   : > { %v8055_v29 = vpop.eup %8054  ;;  %v729_v53 = vadd.f32 1.0, %v8053_v32  ;;  %v877_v32 = vsel %vm876_vm2, %v8936_v58, %v9061_v9 }
 0x68a   : > { %v730_v4 = vadd.f32 1.0, %v8055_v29 }
 0x68b   : > { %8060 = vrcp.f32 %v729_v53 }
 0x68c   : > { %8062 = vrcp.f32 %v730_v4 }
 0x691   : > { %v8057_v0 = vpop.eup %8056 }
 0x692   : > { %v8059_v20 = vpop.eup %8058  ;;  %v9275_v60 = vmul.f32 %v8057_v0, %v711_v51 }
 0x693   : > { %v9279_v61 = vmul.f32 %v8059_v20, %v712_v8 }
 0x694   : > { %v819_v31 = vmul.f32 %v810_v38, %v9275_v60  ;;  %v886_v54 = vmul.f32 %v877_v32, %v9275_v60  ;;  %v1642_v38 = vsel %vm13849_vm13, %v9223_v28, %v9147_v36  ;;  %v1784_v32 = vmul.f32 %v9246_v25, %v9275_v60 }
 0x695   : > { %v8061_v19 = vpop.eup %8060  ;;  %v820_v3 = vmul.f32 %v9057_v5, %v9279_v61  ;;  %v887_v29 = vmul.f32 %v9061_v9, %v9279_v61  ;;  %v944_v5 = vsel %vm943_vm3, %v8944_v62, %v9065_v13  ;;  %v954_v53 = vmul.f32 %v9065_v13, %v9279_v61 }
 0x696   : > { %v8063_v21 = vpop.eup %8062  ;;  %v9277_v27 = vmul.f32 %v8061_v19, %v713_v15  ;;  %v2093_v15 = vld [vmem:[#allocation9 + $0x2a0] sm:$0xff]  ;;  %v953_v58 = vmul.f32 %v944_v5, %v9275_v60  ;;  %v1011_v9 = vsel %vm13882_vm4, %v8952_v2, %v9069_v17  ;;  %v1021_v4 = vmul.f32 %v9069_v17, %v9279_v61 }
 0x697   : > { %v9281_v44 = vmul.f32 %v8063_v21, %v714_v37  ;;  %v1020_v62 = vmul.f32 %v1011_v9, %v9275_v60  ;;  %v1078_v13 = vsel %vm1077_vm5, %v8960_v6, %v9075_v23  ;;  %v1088_v0 = vmul.f32 %v9075_v23, %v9279_v61 }
 0x698   : > { %v7806_v55 = vpack.c.bf16 %v9277_v27, %v9275_v60  ;;  %v1087_v2 = vmul.f32 %v1078_v13, %v9275_v60  ;;  %v1145_v17 = vsel %vm13852_vm6, %v8968_v10, %v9087_v49  ;;  %v1155_v20 = vmul.f32 %v9087_v49, %v9279_v61 }
 0x699   : > { %v7804_v41 = vpack.c.bf16 %v9281_v44, %v9279_v61  ;;  %v1154_v6 = vmul.f32 %v1145_v17, %v9275_v60  ;;  %v1210_v23 = vsel %vm13848_vm7, %v8976_v14, %v9091_v52  ;;  %v1220_v19 = vmul.f32 %v9091_v52, %v9279_v61  ;;  %v14307_v17 = vld [vmem:[#allocation29_spill] sm:$0xff] }
 0x69a   : > { %v1219_v10 = vmul.f32 %v1210_v23, %v9275_v60  ;;  %v1276_v49 = vsel %vm1275_vm8, %v8984_v18, %v9095_v39  ;;  %v1286_v21 = vmul.f32 %v9095_v39, %v9279_v61  ;;  %v1343_v52 = vsel %vm13842_vm9, %v8992_v22, %v9099_v30  ;;  %v14308_v23 = vld [vmem:[#allocation51_spill] sm:$0xff] }
 0x69b   : > { %7805 = vmatprep.subr.bf16.mxu0 %v7804_v41  ;;  %v1285_v14 = vmul.f32 %v1276_v49, %v9275_v60  ;;  %v1352_v18 = vmul.f32 %v1343_v52, %v9275_v60  ;;  %v1409_v39 = vsel %vm909_vm10, %v9031_v45, %v9121_v40  ;;  %v1419_v41 = vmul.f32 %v9121_v40, %v9279_v61  ;;  %v1523_v45 = vld [vmem:[#allocation9 + $0x180] sm:$0xff] }
 0x69c   : > { %7807 = vmatpush1.bf16.msra.mxu0 %v7806_v55  ;;  %v1353_v55 = vmul.f32 %v9099_v30, %v9279_v61  ;;  %v1418_v22 = vmul.f32 %v1409_v39, %v9275_v60  ;;  %v1474_v30 = vsel %vm842_vm11, %v9077_v24, %v9127_v46  ;;  %v1527_v40 = vmul.f32 %v1523_v45, %v9275_v60  ;;  %v14314_v39 = vld [vmem:[#allocation55_spill] sm:$0xff]  ;;  %v14318_v45 = vld [vmem:[#allocation33_spill] sm:$0xff] }
 0x69d   : > { %v1575_v24 = vsel %vm1574_vm12, %v9217_v47, %v9133_v43  ;;  %v1651_v43 = vmul.f32 %v1642_v38, %v9279_v61  ;;  %v1024_v49 = vmul.f32 %v14308_v23, %v9281_v44 }
 0x6a7   : > { %v9287_v16 = vpop.permute.xlu0 %2006 }
 0x6a8   : > { %14295 = vst [vmem:[#allocation99_spill] sm:$0xff] %v9287_v16 }
 0x6ab   : > { %v9289_v59 = vpop.permute.xlu0 %2036 }
 0x6ac   : > { %v2053_v51 = vmul.f32 0.0, %v9289_v59 }
 0x6ae   : > { %2067 = vrot.lane.b32.xlu1 %v2053_v51, %s13767_s7  ;;  %v1484_v51 = vmul.f32 %v9127_v46, %v9279_v61  ;;  %v1583_v46 = vmul.f32 %v9217_v47, %v9275_v60  ;;  %v1709_v47 = vsel %vm13756_vm14, %v9231_v34, %v9157_v63  ;;  %v1842_v63 = vsel %vm13760_vm0, %v9255_v50, %v9185_v35 }
 0x6af   : > { %v9293_v8 = vpop.permute.xlu0 %2040  ;;  %v1718_v36 = vmul.f32 %v1709_v47, %v9279_v61  ;;  %vm1908_vm14 = vcmask 138240   ;;  %v1917_v35 = vmul.f32 %v9261_v1, %v9275_v60  ;;  %vm13846_vm0 = vcmask 244736   ;;  %v14324_v47 = vld [vmem:[#allocation66_spill] sm:$0xff] }
 0x6b0   : > { %v2056_v37 = vmul.f32 0.0, %v9293_v8 }
 0x6b2   : > { %2073 = vrot.lane.b32.xlu0 %v2056_v37, %s13767_s7  ;;  %2101 = vrot.lane.b32.xlu1 %v2093_v15, %s13744_s5  ;;  %v1483_v15 = vmul.f32 %v1474_v30, %v9275_v60  ;;  %v1524_v37 = vld [vmem:[#allocation9 + $0x188] sm:$0xff] }
 0x6b6   : > { %2103 = vrot.lane.b32.xlu0 %v2094_v26, %s13744_s5  ;;  %2105 = vrot.lane.b32.xlu1 %v2095_v12, %s13744_s5  ;;  %s14296_s5 = smov 95   ;;  %v1528_v26 = vmul.f32 %v1524_v37, %v9279_v61  ;;  %v1584_v12 = vmul.f32 %v1575_v24, %v9279_v61  ;;  %v14320_v24 = vld [vmem:[#allocation57_spill] sm:$0xff] }
 0x6ba   : > { %834 = vrot.lane.b32.xlu1 %v820_v3, %s8401_s11  ;;  %832 = vrot.lane.b32.xlu0 %v819_v31, %s8401_s11  ;;  %v1650_v3 = vmul.f32 %v9223_v28, %v9275_v60  ;;  %v1717_v31 = vmul.f32 %v9231_v34, %v9275_v60  ;;  %v1776_v28 = vsel %vm13759_vm15, %v9246_v25, %v9171_v42  ;;  %v9430_v42 = vpop.permute.xlu1 %2000  ;;  %vm13839_vm15 = vcmask 146432  }
 0x6bb   : > { %v1850_v34 = vmul.f32 %v9255_v50, %v9275_v60  ;;  %14302 = vst [vmem:[#allocation100_spill] sm:$0xff] %v9430_v42  ;;  %v1909_v25 = vsel %vm1908_vm14, %v9261_v1, %v9195_v48  ;;  %v1976_v50 = vsel %vm13839_vm15, %v9267_v33, %v9233_v57  ;;  %v811_v57 = vsel %vm13851_vm1, %v8932_v56, %v9059_v7  ;;  %v14306_v56 = vld [vmem:[#allocation50_spill] sm:$0xff] }
 0x6bc   : > { %v1918_v5 = vmul.f32 %v1909_v25, %v9279_v61  ;;  %v1985_v48 = vmul.f32 %v1976_v50, %v9279_v61  ;;  %v14330_v50 = vld [vmem:[#allocation70_spill] sm:$0xff] }
 0x6be   : > { %901 = vrot.lane.b32.xlu1 %v887_v29, %s13765_s26  ;;  %899 = vrot.lane.b32.xlu0 %v886_v54, %s13765_s26  ;;  %v1785_v29 = vmul.f32 %v1776_v28, %v9279_v61  ;;  %v1851_v54 = vmul.f32 %v1842_v63, %v9279_v61  ;;  %v14327_v63 = vld [vmem:[#allocation68_spill] sm:$0xff] }
 0x6c2   : > { %968 = vrot.lane.b32.xlu1 %v954_v53, %s13763_s23  ;;  %966 = vrot.lane.b32.xlu0 %v953_v58, %s13763_s23  ;;  %v2035_v53 = vpop.permute.xlu1 %2034  ;;  %v1984_v58 = vmul.f32 %v9267_v33, %v9275_v60  ;;  %v822_v33 = vmul.f32 %v811_v57, %v9277_v27  ;;  %v1526_v57 = vld [vmem:[#allocation9 + $0x198] sm:$0xff] }
 0x6c3   : > { %v2043_v1 = vsel %vm13846_vm0, %v2035_v53, %v9289_v59  ;;  %v2051_v9 = vmul.f32 %v2035_v53, %v9275_v60  ;;  %v823_v59 = vmul.f32 %v9059_v7, %v9281_v44  ;;  %v945_v7 = vsel %vm943_vm3, %v14307_v17, %v14306_v56  ;;  %v14331_v53 = vld [vmem:[#allocation53_spill] sm:$0xff] }
 0x6c4   : > { %vm14339_vm3 = vcmask 113664  }
 0x6c6   : > { %1035 = vrot.lane.b32.xlu1 %v1021_v4, %s13761_s22  ;;  %1033 = vrot.lane.b32.xlu0 %v1020_v62, %s13761_s22  ;;  %s14304_s22 = smov 76   ;;  %v2052_v4 = vmul.f32 %v2043_v1, %v9279_v61  ;;  %v14305_v62 = vld [vmem:[#allocation28_spill] sm:$0xff] }
 0x6c7   : > { %v878_v13 = vsel %vm876_vm2, %v14305_v62, %v9063_v11 }
 0x6ca   : > { %1102 = vrot.lane.b32.xlu1 %v1088_v0, %s13757_s25  ;;  %1100 = vrot.lane.b32.xlu0 %v1087_v2, %s13757_s25  ;;  %s14303_s25 = smov 78   ;;  %v889_v0 = vmul.f32 %v878_v13, %v9277_v27  ;;  %v890_v2 = vmul.f32 %v9063_v11, %v9281_v44  ;;  %v1530_v13 = vmul.f32 %v1526_v57, %v9281_v44 }
 0x6ce   : > { %1169 = vrot.lane.b32.xlu1 %v1155_v20, %s13754_s28  ;;  %1167 = vrot.lane.b32.xlu0 %v1154_v6, %s13754_s28  ;;  %s14301_s28 = smov 79   ;;  %v956_v20 = vmul.f32 %v945_v7, %v9277_v27  ;;  %v957_v6 = vmul.f32 %v14306_v56, %v9281_v44  ;;  %v14334_v56 = vld [vmem:[#allocation84_spill] sm:$0xff] }
 0x6d2   : > { %1234 = vrot.lane.b32.xlu1 %v1220_v19, %s13752_s20  ;;  %1232 = vrot.lane.b32.xlu0 %v1219_v10, %s13752_s20  ;;  %s14300_s20 = smov 80   ;;  %v14309_v19 = vld [vmem:[#allocation30_spill] sm:$0xff] }
 0x6d3   : > { %v1012_v11 = vsel %vm13882_vm4, %v14309_v19, %v14308_v23  ;;  %v14335_v23 = vld [vmem:[#allocation74_spill] sm:$0xff] }
 0x6d4   : > { %v1023_v10 = vmul.f32 %v1012_v11, %v9277_v27  ;;  %v14336_v19 = vld [vmem:[#allocation86_spill] sm:$0xff] }
 0x6d5   : > { %v1643_v11 = vsel %vm13849_vm13, %v14336_v19, %v14335_v23  ;;  %vm1874_vm13 = vcmask 637952  }
 0x6d6   : > { %1300 = vrot.lane.b32.xlu1 %v1286_v21, %s13750_s14  ;;  %1298 = vrot.lane.b32.xlu0 %v1285_v14, %s13750_s14  ;;  %s14299_s14 = smov 92   ;;  %v14311_v21 = vld [vmem:[#allocation54_spill] sm:$0xff]  ;;  %v14312_v14 = vld [vmem:[#allocation31_spill] sm:$0xff] }
 0x6d7   : > { %v1079_v52 = vsel %vm1077_vm5, %v14312_v14, %v14311_v21  ;;  %v1653_v14 = vmul.f32 %v14336_v19, %v9277_v27 }
 0x6da   : > { %1367 = vrot.lane.b32.xlu1 %v1353_v55, %s13748_s4  ;;  %1365 = vrot.lane.b32.xlu0 %v1352_v18, %s13748_s4  ;;  %s14298_s4 = smov 93   ;;  %v1090_v55 = vmul.f32 %v1079_v52, %v9277_v27  ;;  %v1091_v18 = vmul.f32 %v14311_v21, %v9281_v44  ;;  %v1654_v21 = vmul.f32 %v1643_v11, %v9281_v44  ;;  %v14337_v52 = vld [vmem:[#allocation76_spill] sm:$0xff] }
 0x6de   : > { %1433 = vrot.lane.b32.xlu1 %v1419_v41, %s13746_s24  ;;  %1431 = vrot.lane.b32.xlu0 %v1418_v22, %s13746_s24  ;;  %s14297_s24 = smov 94   ;;  %v14315_v41 = vld [vmem:[#allocation32_spill] sm:$0xff] }
 0x6df   : > { %v1146_v22 = vsel %vm13852_vm6, %v14315_v41, %v14314_v39 }
 0x6e0   : > { %v1157_v30 = vmul.f32 %v1146_v22, %v9277_v27 }
 0x6e2   : > { %1498 = vrot.lane.b32.xlu1 %v1484_v51, %s14296_s5  ;;  %1496 = vrot.lane.b32.xlu0 %v1483_v15, %s14296_s5  ;;  %v1158_v51 = vmul.f32 %v14314_v39, %v9281_v44  ;;  %v14317_v15 = vld [vmem:[#allocation56_spill] sm:$0xff] }
 0x6e3   : > { %v1211_v37 = vsel %vm13848_vm7, %v14318_v45, %v14317_v15 }
 0x6e6   : > { %1535 = vrot.lane.b32.xlu1 %v1527_v40, %s14297_s24  ;;  %1537 = vrot.lane.b32.xlu0 %v1528_v26, %s14297_s24  ;;  %v1222_v40 = vmul.f32 %v1211_v37, %v9277_v27  ;;  %v1223_v26 = vmul.f32 %v14317_v15, %v9281_v44  ;;  %v14341_v15 = vld [vmem:[#allocation92_spill] sm:$0xff] }
 0x6ea   : > { %1595 = vrot.lane.b32.xlu1 %v1583_v46, %s14298_s4  ;;  %1597 = vrot.lane.b32.xlu0 %v1584_v12, %s14298_s4  ;;  %v14321_v46 = vld [vmem:[#allocation34_spill] sm:$0xff] }
 0x6eb   : > { %v1277_v12 = vsel %vm1275_vm8, %v14321_v46, %v14320_v24  ;;  %vm14342_vm8 = vcmask 121856   ;;  %v14344_v46 = vld [vmem:[#allocation94_spill] sm:$0xff] }
 0x6ee   : > { %1662 = vrot.lane.b32.xlu1 %v1650_v3, %s14299_s14  ;;  %1664 = vrot.lane.b32.xlu0 %v1651_v43, %s14299_s14  ;;  %v1288_v3 = vmul.f32 %v1277_v12, %v9277_v27  ;;  %v1289_v43 = vmul.f32 %v14320_v24, %v9281_v44  ;;  %v14343_v24 = vld [vmem:[#allocation80_spill] sm:$0xff] }
 0x6f2   : > { %1729 = vrot.lane.b32.xlu1 %v1717_v31, %s14300_s20  ;;  %1731 = vrot.lane.b32.xlu0 %v1718_v36, %s14300_s20  ;;  %v14325_v31 = vld [vmem:[#allocation35_spill] sm:$0xff] }
 0x6f3   : > { %v1344_v36 = vsel %vm13842_vm9, %v14325_v31, %v14324_v47  ;;  %v1853_v31 = vmul.f32 %v14344_v46, %v9277_v27  ;;  %vm1043_vm9 = vcmask 1014784  }
 0x6f6   : > { %1796 = vrot.lane.b32.xlu1 %v1784_v32, %s14301_s28  ;;  %1798 = vrot.lane.b32.xlu0 %v1785_v29, %s14301_s28  ;;  %v1355_v32 = vmul.f32 %v1344_v36, %v9277_v27  ;;  %v1356_v29 = vmul.f32 %v14324_v47, %v9281_v44  ;;  %v14346_v36 = vld [vmem:[#allocation82_spill] sm:$0xff] }
 0x6fa   : > { %1862 = vrot.lane.b32.xlu1 %v1850_v34, %s14303_s25  ;;  %1864 = vrot.lane.b32.xlu0 %v1851_v54, %s14303_s25  ;;  %v14328_v34 = vld [vmem:[#allocation45_spill] sm:$0xff] }
 0x6fb   : > { %v1410_v54 = vsel %vm909_vm10, %v14328_v34, %v14327_v63 }
 0x6fe   : > { %1929 = vrot.lane.b32.xlu1 %v1917_v35, %s13769_s13  ;;  %1931 = vrot.lane.b32.xlu0 %v1918_v5, %s13769_s13  ;;  %s14323_s13 = smov 109   ;;  %v1421_v35 = vmul.f32 %v1410_v54, %v9277_v27  ;;  %v1422_v5 = vmul.f32 %v14327_v63, %v9281_v44 }
 0x702   : > { %1996 = vrot.lane.b32.xlu1 %v1984_v58, %s14304_s22  ;;  %1998 = vrot.lane.b32.xlu0 %v1985_v48, %s14304_s22  ;;  %v1475_v58 = vsel %vm842_vm11, %v14331_v53, %v14330_v50 }
 0x703   : > { %v1486_v1 = vmul.f32 %v1475_v58, %v9277_v27 }
 0x706   : > { %2063 = vrot.lane.b32.xlu1 %v2051_v9, %s13767_s7  ;;  %2065 = vrot.lane.b32.xlu0 %v2052_v4, %s13767_s7  ;;  %s14319_s7 = smov 110   ;;  %v1487_v9 = vmul.f32 %v14330_v50, %v9281_v44  ;;  %v1525_v4 = vld [vmem:[#allocation9 + $0x190] sm:$0xff] }
 0x707   : > { %v1529_v62 = vmul.f32 %v1525_v4, %v9277_v27  ;;  %v14350_v50 = vld [vmem:[#allocation98_spill] sm:$0xff] }
 0x70a   : > { %838 = vrot.lane.b32.xlu1 %v822_v33, %s8401_s11  ;;  %840 = vrot.lane.b32.xlu0 %v823_v59, %s8401_s11  ;;  %s14310_s11 = smov 124   ;;  %v2039_v33 = vpop.permute.xlu1 %2038 }
 0x70b   : > { %v2044_v4 = vsel %vm13846_vm0, %v2039_v33, %v9293_v8  ;;  %v2054_v57 = vmul.f32 %v2039_v33, %v9277_v27  ;;  %vm14140_vm0 = vcmask 752640  }
 0x70e   : > { %905 = vrot.lane.b32.xlu1 %v889_v0, %s13765_s26  ;;  %907 = vrot.lane.b32.xlu0 %v890_v2, %s13765_s26  ;;  %s14316_s26 = smov 111   ;;  %v14333_v2 = vld [vmem:[#allocation72_spill] sm:$0xff] }
 0x70f   : > { %v1576_v17 = vsel %vm1574_vm12, %v14334_v56, %v14333_v2  ;;  %vm14345_vm12 = vcmask 130048  }
 0x710   : > { %v1843_v12 = vsel %vm14345_vm12, %v14344_v46, %v14343_v24  ;;  %vm2310_vm12 = vcmask 277504  }
 0x711   : > { %v1854_v47 = vmul.f32 %v1843_v12, %v9281_v44 }
 0x712   : > { %972 = vrot.lane.b32.xlu1 %v956_v20, %s13763_s23  ;;  %974 = vrot.lane.b32.xlu0 %v957_v6, %s13763_s23  ;;  %s14313_s23 = smov 112   ;;  %v1587_v20 = vmul.f32 %v1576_v17, %v9281_v44  ;;  %v1586_v6 = vmul.f32 %v14334_v56, %v9277_v27  ;;  %v2096_v56 = vld [vmem:[#allocation9 + $0x2b8] sm:$0xff] }
 0x716   : > { %1039 = vrot.lane.b32.xlu1 %v1023_v10, %s14310_s11  ;;  %1041 = vrot.lane.b32.xlu0 %v1024_v49, %s14310_s11 }
 0x71a   : > { %1106 = vrot.lane.b32.xlu1 %v1090_v55, %s14313_s23  ;;  %1108 = vrot.lane.b32.xlu0 %v1091_v18, %s14313_s23  ;;  %v14338_v55 = vld [vmem:[#allocation89_spill] sm:$0xff] }
 0x71b   : > { %v1710_v18 = vsel %vm14339_vm3, %v14338_v55, %v14337_v52  ;;  %v1720_v22 = vmul.f32 %v14338_v55, %v9277_v27  ;;  %vm13845_vm3 = vcmask 261120  }
 0x71c   : > { %v1721_v41 = vmul.f32 %v1710_v18, %v9281_v44 }
 0x71e   : > { %1173 = vrot.lane.b32.xlu1 %v1157_v30, %s14316_s26  ;;  %1175 = vrot.lane.b32.xlu0 %v1158_v51, %s14316_s26  ;;  %v14340_v51 = vld [vmem:[#allocation78_spill] sm:$0xff] }
 0x71f   : > { %v1777_v45 = vsel %vm14342_vm8, %v14341_v15, %v14340_v51  ;;  %vm2243_vm8 = vcmask 269312  }
 0x720   : > { %v9556_v0 = vpop.permute.xlu1 %2067 }
 0x721   : > { %14332 = vst [vmem:[#allocation50_spill] sm:$0xff] %v9556_v0 }
 0x722   : > { %1238 = vrot.lane.b32.xlu1 %v1222_v40, %s14319_s7  ;;  %1240 = vrot.lane.b32.xlu0 %v1223_v26, %s14319_s7  ;;  %s14326_s7 = smov 108   ;;  %v1788_v40 = vmul.f32 %v1777_v45, %v9281_v44  ;;  %v1787_v26 = vmul.f32 %v14341_v15, %v9277_v27 }
 0x724   : > { %v9515_v38 = vpop.permute.xlu0 %2073  ;;  %v2102_v10 = vpop.permute.xlu1 %2101 }
 0x725   : > { %14322 = vst [vmem:[#allocation28_spill] sm:$0xff] %v9515_v38  ;;  %v2118_v8 = vmul.f32 %v2102_v10, %v9275_v60 }
 0x726   : > { %1304 = vrot.lane.b32.xlu1 %v1288_v3, %s14323_s13  ;;  %1306 = vrot.lane.b32.xlu0 %v1289_v43, %s14323_s13 }
 0x728   : > { %v9525_v28 = vpop.permute.xlu0 %2103  ;;  %v9588_v30 = vpop.permute.xlu1 %2105 }
 0x729   : > { %v2120_v23 = vmul.f32 0.0, %v9525_v28  ;;  %v2121_v11 = vmul.f32 %v9588_v30, %v9277_v27 }
 0x72a   : > { %1371 = vrot.lane.b32.xlu1 %v1355_v32, %s14326_s7  ;;  %1373 = vrot.lane.b32.xlu0 %v1356_v29, %s14326_s7  ;;  %v14347_v32 = vld [vmem:[#allocation96_spill] sm:$0xff] }
 0x72b   : > { %v1910_v29 = vsel %vm1908_vm14, %v14347_v32, %v14346_v36  ;;  %v1920_v54 = vmul.f32 %v14347_v32, %v9277_v27  ;;  %vm13844_vm14 = vcmask 252928  }
 0x72c   : > { %v9535_v25 = vpop.permute.xlu0 %832  ;;  %v9605_v3 = vpop.permute.xlu1 %834  ;;  %v1921_v34 = vmul.f32 %v1910_v29, %v9281_v44 }
 0x72e   : > { %1437 = vrot.lane.b32.xlu1 %v1421_v35, %s14329_s0  ;;  %1439 = vrot.lane.b32.xlu0 %v1422_v5, %s14329_s0  ;;  %v14349_v5 = vld [vmem:[#allocation90_spill] sm:$0xff] }
 0x72f   : > { %v1977_v53 = vsel %vm13839_vm15, %v14350_v50, %v14349_v5  ;;  %vm13847_vm15 = vcmask 1022976  }
 0x730   : > { %v9545_v48 = vpop.permute.xlu0 %899  ;;  %v9622_v35 = vpop.permute.xlu1 %901 }
 0x732   : > { %1502 = vrot.lane.b32.xlu1 %v1486_v1, %s14296_s5  ;;  %1504 = vrot.lane.b32.xlu0 %v1487_v9, %s14296_s5  ;;  %v1988_v1 = vmul.f32 %v1977_v53, %v9281_v44  ;;  %v1987_v9 = vmul.f32 %v14350_v50, %v9277_v27 }
 0x734   : > { %v9552_v59 = vpop.permute.xlu0 %966 }
 0x736   : > { %1539 = vrot.lane.b32.xlu1 %v1529_v62, %s14297_s24  ;;  %1541 = vrot.lane.b32.xlu0 %v1530_v13, %s14297_s24  ;;  %v2055_v62 = vmul.f32 %v2044_v4, %v9281_v44  ;;  %v9640_v13 = vpop.permute.xlu1 %968 }
 0x738   : > { %v9563_v7 = vpop.permute.xlu0 %1033 }
 0x73a   : > { %1603 = vrot.lane.b32.xlu1 %v1587_v20, %s14298_s4  ;;  %1601 = vrot.lane.b32.xlu0 %v1586_v6, %s14298_s4  ;;  %v2110_v20 = vsel %vm13844_vm14, %v2102_v10, %v9525_v28  ;;  %v9651_v33 = vpop.permute.xlu1 %1035 }
 0x73b   : > { %v2119_v6 = vmul.f32 %v2110_v20, %v9279_v61 }
 0x73c   : > { %v9573_v49 = vpop.permute.xlu0 %1100 }
 0x73e   : > { %1670 = vrot.lane.b32.xlu1 %v1654_v21, %s14299_s14  ;;  %1668 = vrot.lane.b32.xlu0 %v1653_v14, %s14299_s14  ;;  %v9663_v10 = vpop.permute.xlu1 %1102 }
 0x740   : > { %v9583_v39 = vpop.permute.xlu0 %1167 }
 0x742   : > { %1737 = vrot.lane.b32.xlu1 %v1721_v41, %s14300_s20  ;;  %1735 = vrot.lane.b32.xlu0 %v1720_v22, %s14300_s20  ;;  %v9670_v52 = vpop.permute.xlu1 %1169 }
 0x744   : > { %v9595_v37 = vpop.permute.xlu0 %1232 }
 0x746   : > { %1804 = vrot.lane.b32.xlu1 %v1788_v40, %s14301_s28  ;;  %1802 = vrot.lane.b32.xlu0 %v1787_v26, %s14301_s28  ;;  %v9674_v55 = vpop.permute.xlu1 %1234 }
 0x748   : > { %v9607_v43 = vpop.permute.xlu0 %1298 }
 0x74a   : > { %1870 = vrot.lane.b32.xlu1 %v1854_v47, %s14303_s25  ;;  %1868 = vrot.lane.b32.xlu0 %v1853_v31, %s14303_s25  ;;  %s14351_s25 = smov 64   ;;  %v9680_v22 = vpop.permute.xlu1 %1300 }
 0x74c   : > { %v9617_v63 = vpop.permute.xlu0 %1365 }
 0x74e   : > { %1937 = vrot.lane.b32.xlu1 %v1921_v34, %s14348_s2  ;;  %1935 = vrot.lane.b32.xlu0 %v1920_v54, %s14348_s2  ;;  %v9684_v15 = vpop.permute.xlu1 %1367 }
 0x750   : > { %v9629_v58 = vpop.permute.xlu0 %1431 }
 0x752   : > { %2004 = vrot.lane.b32.xlu1 %v1988_v1, %s14304_s22  ;;  %2002 = vrot.lane.b32.xlu0 %v1987_v9, %s14304_s22  ;;  %v9690_v26 = vpop.permute.xlu1 %1433 }
 0x754   : > { %v9642_v2 = vpop.permute.xlu0 %1496 }
 0x756   : > { %2069 = vrot.lane.b32.xlu0 %v2054_v57, %s14351_s25  ;;  %2071 = vrot.lane.b32.xlu1 %v2055_v62, %s14351_s25  ;;  %v9694_v46 = vpop.permute.xlu1 %1498 }
 0x758   : > { %v9647_v17 = vpop.permute.xlu0 %1537 }
 0x75a   : > { %2107 = vrot.lane.b32.xlu0 %v2096_v56, %s14352_s3  ;;  %2130 = vrot.lane.b32.xlu1 %v2118_v8, %s13802_s6  ;;  %v9700_v31 = vpop.permute.xlu1 %1535 }
 0x75c   : > { %v9657_v19 = vpop.permute.xlu0 %1597 }
 0x75e   : > { %2134 = vrot.lane.b32.xlu1 %v2120_v23, %s13802_s6  ;;  %2132 = vrot.lane.b32.xlu0 %v2119_v6, %s13802_s6  ;;  %v9704_v32 = vpop.permute.xlu1 %1595 }
 0x760   : > { %v9665_v21 = vpop.permute.xlu0 %1664 }
 0x762   : > { %2136 = vrot.lane.b32.xlu0 %v2121_v11, %s13802_s6  ;;  %v9710_v54 = vpop.permute.xlu1 %1662 }
 0x764   : > { %v9668_v14 = vpop.permute.xlu0 %1731 }
 0x765   : > { %14353 = vst [vmem:[#allocation29_spill] sm:$0xff] %v9668_v14 }
 0x766   : > { %v9714_v50 = vpop.permute.xlu1 %1729 }
 0x767   : > { %14359 = vst [vmem:[#allocation32_spill] sm:$0xff] %v9714_v50 }
 0x768   : > { %v9672_v28 = vpop.permute.xlu0 %1798 }
 0x769   : > { %14354 = vst [vmem:[#allocation51_spill] sm:$0xff] %v9672_v28 }
 0x76a   : > { %v9720_v9 = vpop.permute.xlu1 %1796 }
 0x76b   : > { %14361 = vst [vmem:[#allocation33_spill] sm:$0xff] %v9720_v9 }
 0x76c   : > { %v9676_v18 = vpop.permute.xlu0 %1864 }
 0x76d   : > { %14355 = vst [vmem:[#allocation30_spill] sm:$0xff] %v9676_v18 }
 0x76e   : > { %v9724_v57 = vpop.permute.xlu1 %1862 }
 0x76f   : > { %14363 = vst [vmem:[#allocation34_spill] sm:$0xff] %v9724_v57 }
 0x770   : > { %v9678_v41 = vpop.permute.xlu0 %1931 }
 0x771   : > { %14356 = vst [vmem:[#allocation54_spill] sm:$0xff] %v9678_v41 }
 0x772   : > { %v9730_v8 = vpop.permute.xlu1 %1929 }
 0x773   : > { %14366 = vst [vmem:[#allocation68_spill] sm:$0xff] %v9730_v8 }
 0x774   : > { %v9682_v51 = vpop.permute.xlu0 %1998 }
 0x775   : > { %14357 = vst [vmem:[#allocation31_spill] sm:$0xff] %v9682_v51 }
 0x776   : > { %v9734_v6 = vpop.permute.xlu1 %1996 }
 0x777   : > { %14368 = vst [vmem:[#allocation70_spill] sm:$0xff] %v9734_v6 }
 0x778   : > { %v9686_v45 = vpop.permute.xlu0 %2065 }
 0x779   : > { %14358 = vst [vmem:[#allocation55_spill] sm:$0xff] %v9686_v45 }
 0x77a   : > { %v9740_v38 = vpop.permute.xlu1 %2063 }
 0x77b   : > { %14371 = vst [vmem:[#allocation84_spill] sm:$0xff] %v9740_v38 }
 0x77c   : > { %v9688_v40 = vpop.permute.xlu0 %840 }
 0x77e   : > { %v9744_v45 = vpop.permute.xlu1 %838 }
 0x780   : > { %v9692_v24 = vpop.permute.xlu0 %907 }
 0x782   : > { %v9750_v42 = vpop.permute.xlu1 %905 }
 0x784   : > { %v9696_v12 = vpop.permute.xlu0 %974 }
 0x786   : > { %v9754_v41 = vpop.permute.xlu1 %972 }
 0x788   : > { %v9698_v47 = vpop.permute.xlu0 %1041 }
 0x78c   : > { %v9702_v36 = vpop.permute.xlu0 %1108 }
 0x790   : > { %v9706_v29 = vpop.permute.xlu0 %1175 }
 0x794   : > { %v9708_v34 = vpop.permute.xlu0 %1240 }
 0x798   : > { %v9712_v5 = vpop.permute.xlu0 %1306 }
 0x79c   : > { %v9716_v53 = vpop.permute.xlu0 %1373 }
 0x7a0   : > { %v9718_v1 = vpop.permute.xlu0 %1439 }
 0x7a1   : > { %14360 = vst [vmem:[#allocation56_spill] sm:$0xff] %v9718_v1 }
 0x7a4   : > { %v9722_v4 = vpop.permute.xlu0 %1504 }
 0x7a5   : > { %14362 = vst [vmem:[#allocation57_spill] sm:$0xff] %v9722_v4 }
 0x7a8   : > { %v9726_v62 = vpop.permute.xlu0 %1541 }
 0x7a9   : > { %14364 = vst [vmem:[#allocation66_spill] sm:$0xff] %v9726_v62 }
 0x7ac   : > { %v9728_v56 = vpop.permute.xlu0 %1601 }
 0x7ad   : > { %14365 = vst [vmem:[#allocation35_spill] sm:$0xff] %v9728_v56 }
 0x7b0   : > { %v9732_v20 = vpop.permute.xlu0 %1668 }
 0x7b1   : > { %14367 = vst [vmem:[#allocation45_spill] sm:$0xff] %v9732_v20  ;;  %v2162_v20 = vld [vmem:[#allocation9 + $0x2d0] sm:$0xff] }
 0x7b4   : > { %v9736_v23 = vpop.permute.xlu0 %1735 }
 0x7b5   : > { %14369 = vst [vmem:[#allocation53_spill] sm:$0xff] %v9736_v23 }
 0x7b8   : > { %v9738_v11 = vpop.permute.xlu0 %1802 }
 0x7b9   : > { %14370 = vst [vmem:[#allocation72_spill] sm:$0xff] %v9738_v11 }
 0x7bc   : > { %v9742_v16 = vpop.permute.xlu0 %1868 }
 0x7bd   : > { %14372 = vst [vmem:[#allocation74_spill] sm:$0xff] %v9742_v16  ;;  %v2160_v16 = vld [vmem:[#allocation9 + $0x2c0] sm:$0xff] }
 0x7c0   : > { %v9746_v0 = vpop.permute.xlu0 %1935 }
 0x7c1   : > { %14373 = vst [vmem:[#allocation86_spill] sm:$0xff] %v9746_v0  ;;  %v2161_v0 = vld [vmem:[#allocation9 + $0x2c8] sm:$0xff] }
 0x7c4   : > { %v9748_v51 = vpop.permute.xlu0 %2002 }
 0x7c5   : > { %14374 = vst [vmem:[#allocation76_spill] sm:$0xff] %v9748_v51  ;;  %v9761_v51 = vpop.permute.xlu1 %1039 }
 0x7c8   : > { %v9752_v8 = vpop.permute.xlu0 %2069 }
 0x7c9   : > { %14375 = vst [vmem:[#allocation89_spill] sm:$0xff] %v9752_v8  ;;  %v2163_v8 = vld [vmem:[#allocation9 + $0x2d8] sm:$0xff] }
 0x7cc   : > { %v2108_v6 = vpop.permute.xlu0 %2107 }
 0x7cd   : > { %v2111_v11 = vsel %vm13844_vm14, %v9588_v30, %v2108_v6  ;;  %v2123_v23 = vmul.f32 0.0, %v2108_v6  ;;  %v9766_v30 = vpop.permute.xlu1 %1106  ;;  %vm1308_vm14 = vcmask 891904  }
 0x7ce   : > { %v2122_v38 = vmul.f32 %v2111_v11, %v9281_v44 }
 0x7cf   : > { %2140 = vrot.lane.b32.xlu0 %v2123_v23, %s13802_s6 }
 0x7d0   : > { %2138 = vrot.lane.b32.xlu1 %v2122_v38, %s13802_s6  ;;  %v9799_v50 = vpop.permute.xlu0 %2132  ;;  %s13816_s6 = smov 62  }
 0x7d1   : > { %v9769_v6 = vpop.permute.xlu1 %1173  ;;  %14386 = vst [vmem:[#allocation103_spill] sm:$0xff] %v9799_v50 }
 0x7d3   : > { %2170 = vrot.lane.b32.xlu0 %v2161_v0, %s13808_s8 }
 0x7d4   : > { %2168 = vrot.lane.b32.xlu1 %v2160_v16, %s13808_s8 }
 0x7d5   : > { %v9771_v38 = vpop.permute.xlu1 %1238 }
 0x7d7   : > { %2174 = vrot.lane.b32.xlu0 %v2163_v8, %s13808_s8 }
 0x7d8   : > { %2172 = vrot.lane.b32.xlu1 %v2162_v20, %s13808_s8  ;;  %s8427_s8 = smov 33  }
 0x7d9   : > { %v9773_v23 = vpop.permute.xlu1 %1304 }
 0x7dd   : > { %v9775_v11 = vpop.permute.xlu1 %1371 }
 0x7e1   : > { %v9777_v56 = vpop.permute.xlu1 %1437 }
 0x7e5   : > { %v9779_v0 = vpop.permute.xlu1 %1502 }
 0x7e6   : > { %14376 = vst [vmem:[#allocation78_spill] sm:$0xff] %v9779_v0  ;;  %v2294_v0 = vld [vmem:[#allocation9 + $0x300] sm:$0xff] }
 0x7e9   : > { %v9781_v16 = vpop.permute.xlu1 %1539 }
 0x7ea   : > { %14377 = vst [vmem:[#allocation92_spill] sm:$0xff] %v9781_v16  ;;  %v9803_v16 = vpop.permute.xlu0 %2136 }
 0x7eb   : > { %14388 = vst [vmem:[#allocation105_spill] sm:$0xff] %v9803_v16 }
 0x7ed   : > { %v9783_v57 = vpop.permute.xlu1 %1603 }
 0x7ee   : > { %14378 = vst [vmem:[#allocation80_spill] sm:$0xff] %v9783_v57 }
 0x7f1   : > { %v9785_v8 = vpop.permute.xlu1 %1670 }
 0x7f2   : > { %14379 = vst [vmem:[#allocation94_spill] sm:$0xff] %v9785_v8 }
 0x7f5   : > { %v9787_v18 = vpop.permute.xlu1 %1737 }
 0x7f6   : > { %14380 = vst [vmem:[#allocation82_spill] sm:$0xff] %v9787_v18 }
 0x7f9   : > { %v9789_v20 = vpop.permute.xlu1 %1804 }
 0x7fa   : > { %14381 = vst [vmem:[#allocation96_spill] sm:$0xff] %v9789_v20 }
 0x7fd   : > { %v9791_v62 = vpop.permute.xlu1 %1870 }
 0x7fe   : > { %14382 = vst [vmem:[#allocation90_spill] sm:$0xff] %v9791_v62 }
 0x801   : > { %v9793_v9 = vpop.permute.xlu1 %1937 }
 0x802   : > { %14383 = vst [vmem:[#allocation98_spill] sm:$0xff] %v9793_v9 }
 0x805   : > { %v9795_v28 = vpop.permute.xlu1 %2004 }
 0x806   : > { %14384 = vst [vmem:[#allocation101_spill] sm:$0xff] %v9795_v28 }
 0x809   : > { %v9797_v4 = vpop.permute.xlu1 %2071 }
 0x80a   : > { %14385 = vst [vmem:[#allocation102_spill] sm:$0xff] %v9797_v4 }
 0x80d   : > { %v9801_v1 = vpop.permute.xlu1 %2130 }
 0x80e   : > { %14387 = vst [vmem:[#allocation104_spill] sm:$0xff] %v9801_v1 }
 0x811   : > { %v9805_v57 = vpop.permute.xlu1 %2134 }
 0x812   : > { %14389 = vst [vmem:[#allocation106_spill] sm:$0xff] %v9805_v57 }
 0x841   : > { %v9807_v8 = vpop.permute.xlu0 %2140 }
 0x842   : > { %14390 = vst [vmem:[#allocation107_spill] sm:$0xff] %v9807_v8  ;;  %v9809_v18 = vpop.permute.xlu1 %2138 }
 0x843   : > { %14391 = vst [vmem:[#allocation108_spill] sm:$0xff] %v9809_v18 }
 0x845   : > { %v2171_v62 = vpop.permute.xlu0 %2170 }
 0x846   : > { %v2169_v20 = vpop.permute.xlu1 %2168  ;;  %v2187_v57 = vmul.f32 0.0, %v2171_v62 }
 0x847   : > { %v2177_v9 = vsel %vm13845_vm3, %v2169_v20, %v2171_v62  ;;  %v2185_v28 = vmul.f32 %v2169_v20, %v9275_v60  ;;  %v2230_v62 = vld [vmem:[#allocation9 + $0x2f8] sm:$0xff] }
 0x848   : > { %v2186_v4 = vmul.f32 %v2177_v9, %v9279_v61  ;;  %v2228_v9 = vld [vmem:[#allocation9 + $0x2e8] sm:$0xff] }
 0x849   : > { %2197 = vrot.lane.b32.xlu1 %v2185_v28, %s13816_s6  ;;  %v2175_v1 = vpop.permute.xlu0 %2174  ;;  %v2227_v28 = vld [vmem:[#allocation9 + $0x2e0] sm:$0xff] }
 0x84a   : > { %2199 = vrot.lane.b32.xlu0 %v2186_v4, %s13816_s6  ;;  %v2173_v16 = vpop.permute.xlu1 %2172  ;;  %v2190_v50 = vmul.f32 0.0, %v2175_v1  ;;  %v2229_v4 = vld [vmem:[#allocation9 + $0x2f0] sm:$0xff] }
 0x84b   : > { %v2188_v8 = vmul.f32 %v2173_v16, %v9277_v27  ;;  %v2178_v18 = vsel %vm13845_vm3, %v2173_v16, %v2175_v1  ;;  %vm13850_vm3 = vcmask 883712  }
 0x84c   : > { %v2189_v20 = vmul.f32 %v2178_v18, %v9281_v44 }
 0x84d   : > { %2201 = vrot.lane.b32.xlu1 %v2187_v57, %s13816_s6 }
 0x84e   : > { %2203 = vrot.lane.b32.xlu0 %v2188_v8, %s13816_s6 }
 0x851   : > { %2205 = vrot.lane.b32.xlu1 %v2189_v20, %s13816_s6 }
 0x852   : > { %2207 = vrot.lane.b32.xlu0 %v2190_v50, %s13816_s6  ;;  %s13820_s6 = smov 34  }
 0x855   : > { %2235 = vrot.lane.b32.xlu1 %v2227_v28, %s8427_s8 }
 0x856   : > { %2237 = vrot.lane.b32.xlu0 %v2228_v9, %s8427_s8 }
 0x859   : > { %2239 = vrot.lane.b32.xlu1 %v2229_v4, %s8427_s8 }
 0x85a   : > { %2241 = vrot.lane.b32.xlu0 %v2230_v62, %s8427_s8  ;;  %s8428_s8 = smov 61  }
 0x8bb   : > { %v9823_v16 = vpop.permute.xlu1 %2197 }
 0x8bc   : > { %14392 = vst [vmem:[#allocation109_spill] sm:$0xff] %v9823_v16  ;;  %v9825_v57 = vpop.permute.xlu0 %2199 }
 0x8bd   : > { %14393 = vst [vmem:[#allocation110_spill] sm:$0xff] %v9825_v57 }
 0x8bf   : > { %v9827_v8 = vpop.permute.xlu1 %2201 }
 0x8c0   : > { %14394 = vst [vmem:[#allocation111_spill] sm:$0xff] %v9827_v8  ;;  %v9829_v18 = vpop.permute.xlu0 %2203 }
 0x8c1   : > { %14395 = vst [vmem:[#allocation112_spill] sm:$0xff] %v9829_v18 }
 0x8c3   : > { %v9831_v1 = vpop.permute.xlu1 %2205 }
 0x8c4   : > { %14396 = vst [vmem:[#allocation113_spill] sm:$0xff] %v9831_v1  ;;  %v9833_v50 = vpop.permute.xlu0 %2207 }
 0x8c5   : > { %14397 = vst [vmem:[#allocation114_spill] sm:$0xff] %v9833_v50 }
 0x8c7   : > { %v2236_v20 = vpop.permute.xlu1 %2235 }
 0x8c8   : > { %v2252_v28 = vmul.f32 %v2236_v20, %v9275_v60  ;;  %v2238_v9 = vpop.permute.xlu0 %2237 }
 0x8c9   : > { %v2244_v14 = vsel %vm2243_vm8, %v2236_v20, %v2238_v9  ;;  %v2254_v16 = vmul.f32 0.0, %v2238_v9  ;;  %v2295_v20 = vld [vmem:[#allocation9 + $0x308] sm:$0xff] }
 0x8ca   : > { %v2253_v4 = vmul.f32 %v2244_v14, %v9279_v61  ;;  %2264 = vrot.lane.b32.xlu1 %v2252_v28, %s8428_s8  ;;  %v2296_v14 = vld [vmem:[#allocation9 + $0x310] sm:$0xff]  ;;  %v2297_v28 = vld [vmem:[#allocation9 + $0x318] sm:$0xff] }
 0x8cb   : > { %v2240_v62 = vpop.permute.xlu1 %2239 }
 0x8cc   : > { %v2242_v57 = vpop.permute.xlu0 %2241  ;;  %2266 = vrot.lane.b32.xlu0 %v2253_v4, %s8428_s8  ;;  %v2255_v18 = vmul.f32 %v2240_v62, %v9277_v27 }
 0x8cd   : > { %v2245_v8 = vsel %vm2243_vm8, %v2240_v62, %v2242_v57  ;;  %v2257_v50 = vmul.f32 0.0, %v2242_v57  ;;  %vm771_vm8 = vcmask 769024  }
 0x8ce   : > { %2268 = vrot.lane.b32.xlu1 %v2254_v16, %s8428_s8  ;;  %v2256_v1 = vmul.f32 %v2245_v8, %v9281_v44 }
 0x8d0   : > { %2270 = vrot.lane.b32.xlu0 %v2255_v18, %s8428_s8 }
 0x8d2   : > { %2272 = vrot.lane.b32.xlu1 %v2256_v1, %s8428_s8 }
 0x8d4   : > { %2274 = vrot.lane.b32.xlu0 %v2257_v50, %s8428_s8  ;;  %s13831_s8 = smov 60  }
 0x8d6   : > { %2302 = vrot.lane.b32.xlu1 %v2294_v0, %s13820_s6 }
 0x8d8   : > { %2304 = vrot.lane.b32.xlu0 %v2295_v20, %s13820_s6 }
 0x8da   : > { %2306 = vrot.lane.b32.xlu1 %v2296_v14, %s13820_s6 }
 0x8dc   : > { %2308 = vrot.lane.b32.xlu0 %v2297_v28, %s13820_s6  ;;  %s14405_s6 = smov 62  }
 0x93c   : > { %v9843_v16 = vpop.permute.xlu1 %2264 }
 0x93d   : > { %14398 = vst [vmem:[#allocation115_spill] sm:$0xff] %v9843_v16 }
 0x93e   : > { %v9845_v8 = vpop.permute.xlu0 %2266 }
 0x93f   : > { %14399 = vst [vmem:[#allocation116_spill] sm:$0xff] %v9845_v8  ;;  %v14429_v8 = vld [vmem:[#allocation39_spill] sm:$0xff] }
 0x940   : > { %v9847_v57 = vpop.permute.xlu1 %2268 }
 0x941   : > { %14400 = vst [vmem:[#allocation117_spill] sm:$0xff] %v9847_v57 }
 0x942   : > { %v9849_v18 = vpop.permute.xlu0 %2270 }
 0x943   : > { %14401 = vst [vmem:[#allocation118_spill] sm:$0xff] %v9849_v18 }
 0x944   : > { %v9851_v1 = vpop.permute.xlu1 %2272 }
 0x945   : > { %14402 = vst [vmem:[#allocation119_spill] sm:$0xff] %v9851_v1 }
 0x946   : > { %v9853_v50 = vpop.permute.xlu0 %2274 }
 0x947   : > { %14403 = vst [vmem:[#allocation120_spill] sm:$0xff] %v9853_v50 }
 0x948   : > { %v2303_v0 = vpop.permute.xlu1 %2302 }
 0x949   : > { %v2319_v9 = vmul.f32 %v2303_v0, %v9275_v60 }
 0x94a   : > { %v2305_v4 = vpop.permute.xlu0 %2304 }
 0x94b   : > { %v2311_v62 = vsel %vm2310_vm12, %v2303_v0, %v2305_v4  ;;  %v2321_v20 = vmul.f32 0.0, %v2305_v4  ;;  %2331 = vrot.lane.b32.xlu1 %v2319_v9, %s13831_s8  ;;  %v2360_v9 = vld [vmem:[%s14404_s12] sm:$0xff]  ;;  %v2361_v4 = vld [vmem:[%s14404_s12 + $0x8] sm:$0xff]  ;;  %s8436_s12 = smov 100  }
 0x94c   : > { %v2320_v14 = vmul.f32 %v2311_v62, %v9279_v61  ;;  %v2307_v28 = vpop.permute.xlu1 %2306  ;;  %v2420_v62 = vld [vmem:[#allocation11] sm:$0xff] }
 0x94d   : > { %v2322_v1 = vmul.f32 %v2307_v28, %v9277_v27 }
 0x94e   : > { %v2309_v57 = vpop.permute.xlu0 %2308  ;;  %2333 = vrot.lane.b32.xlu0 %v2320_v14, %s13831_s8  ;;  %v2459_v14 = vld [vmem:[#allocation11 + $0x30] sm:$0xff] }
 0x94f   : > { %v2312_v18 = vsel %vm2310_vm12, %v2307_v28, %v2309_v57  ;;  %2335 = vrot.lane.b32.xlu1 %v2321_v20, %s13831_s8  ;;  %v2324_v0 = vmul.f32 0.0, %v2309_v57  ;;  %v2423_v57 = vld [vmem:[#allocation11 + $0x18] sm:$0xff]  ;;  %v2458_v20 = vld [vmem:[#allocation11 + $0x28] sm:$0xff] }
 0x950   : > { %v2323_v50 = vmul.f32 %v2312_v18, %v9281_v44  ;;  %v2421_v18 = vld [vmem:[#allocation11 + $0x8] sm:$0xff]  ;;  %v2460_v28 = vld [vmem:[#allocation11 + $0x38] sm:$0xff] }
 0x952   : > { %2337 = vrot.lane.b32.xlu0 %v2322_v1, %s13831_s8  ;;  %v2422_v1 = vld [vmem:[#allocation11 + $0x10] sm:$0xff] }
 0x953   : > { %2339 = vrot.lane.b32.xlu1 %v2323_v50, %s13831_s8  ;;  %v2457_v50 = vld [vmem:[#allocation11 + $0x20] sm:$0xff] }
 0x956   : > { %2341 = vrot.lane.b32.xlu0 %v2324_v0, %s13831_s8 }
 0x957   : > { %2364 = vperm.xlu1 %8032, %v2360_v9  }
 0x95a   : > { %2369 = vperm.xlu0 %8031, %v2361_v4  }
 0x95b   : > { %2428 = vrot.lane.b32.xlu1 %v2420_v62, %s13831_s8 }
 0x95e   : > { %2430 = vrot.lane.b32.xlu0 %v2421_v18, %s13831_s8 }
 0x95f   : > { %2432 = vrot.lane.b32.xlu1 %v2422_v1, %s13831_s8 }
 0x962   : > { %2434 = vrot.lane.b32.xlu0 %v2423_v57, %s13831_s8  ;;  %s13855_s8 = smov 68  }
 0x963   : > { %2465 = vrot.lane.b32.xlu1 %v2457_v50, %s14405_s6 }
 0x966   : > { %2467 = vrot.lane.b32.xlu0 %v2458_v20, %s14405_s6 }
 0x967   : > { %2469 = vrot.lane.b32.xlu1 %v2459_v14, %s14405_s6  ;;  %v2522_v14 = vld [vmem:[#allocation11 + $0x40] sm:$0xff] }
 0x96a   : > { %2471 = vrot.lane.b32.xlu0 %v2460_v28, %s14405_s6 }
 0x9bd   : > { %v9881_v0 = vpop.permute.xlu1 %2331 }
 0x9be   : > { %14406 = vst [vmem:[#allocation121_spill] sm:$0xff] %v9881_v0  ;;  %v14427_v0 = vld [vmem:[#allocation37_spill] sm:$0xff] }
 0x9bf   : > { %v910_v16 = vsel %vm909_vm10, %v14427_v0, %v9545_v48 }
 0x9c1   : > { %v9883_v9 = vpop.permute.xlu1 %2335 }
 0x9c2   : > { %14407 = vst [vmem:[#allocation122_spill] sm:$0xff] %v9883_v9 }
 0x9c5   : > { %v9885_v4 = vpop.permute.xlu1 %2339 }
 0x9c6   : > { %14408 = vst [vmem:[#allocation123_spill] sm:$0xff] %v9885_v4  ;;  %v2523_v4 = vld [vmem:[#allocation11 + $0x48] sm:$0xff] }
 0x9d6   : > { %v9887_v62 = vpop.permute.xlu1 %2364 }
 0x9d7   : > { %14409 = vst [vmem:[#allocation124_spill] sm:$0xff] %v9887_v62  ;;  %v2524_v62 = vld [vmem:[#allocation11 + $0x50] sm:$0xff] }
 0x9da   : > { %v9889_v18 = vpop.permute.xlu1 %2428 }
 0x9db   : > { %14410 = vst [vmem:[#allocation125_spill] sm:$0xff] %v9889_v18 }
 0x9de   : > { %v9891_v1 = vpop.permute.xlu1 %2432 }
 0x9df   : > { %14411 = vst [vmem:[#allocation126_spill] sm:$0xff] %v9891_v1  ;;  %v2525_v1 = vld [vmem:[#allocation11 + $0x58] sm:$0xff] }
 0x9e2   : > { %v9893_v57 = vpop.permute.xlu1 %2465 }
 0x9e3   : > { %14412 = vst [vmem:[#allocation127_spill] sm:$0xff] %v9893_v57  ;;  %v2481_v50 = vmul.f32 0.0, %v9893_v57 }
 0x9e5   : > { %2493 = vrot.lane.b32.xlu1 %v2481_v50, %s14413_s10 }
 0x9e6   : > { %v9897_v20 = vpop.permute.xlu1 %2469 }
 0x9e7   : > { %14414 = vst [vmem:[#allocation128_spill] sm:$0xff] %v9897_v20  ;;  %v2484_v28 = vmul.f32 0.0, %v9897_v20 }
 0x9e9   : > { %2530 = vrot.lane.b32.xlu1 %v2522_v14, %s14351_s25  ;;  %2499 = vrot.lane.b32.xlu0 %v2484_v28, %s14413_s10  ;;  %v2587_v28 = vld [vmem:[#allocation11 + $0x60] sm:$0xff] }
 0x9ed   : > { %2534 = vrot.lane.b32.xlu1 %v2524_v62, %s14351_s25  ;;  %2532 = vrot.lane.b32.xlu0 %v2523_v4, %s14351_s25  ;;  %v2589_v4 = vld [vmem:[#allocation11 + $0x70] sm:$0xff]  ;;  %v2588_v62 = vld [vmem:[#allocation11 + $0x68] sm:$0xff] }
 0x9f1   : > { %2536 = vrot.lane.b32.xlu0 %v2525_v1, %s14351_s25  ;;  %v2590_v1 = vld [vmem:[#allocation11 + $0x78] sm:$0xff] }
 0xa57   : > { %v9905_v18 = vpop.permute.xlu1 %2493 }
 0xa58   : > { %14415 = vst [vmem:[#allocation129_spill] sm:$0xff] %v9905_v18 }
 0xa5b   : > { %v9907_v50 = vpop.permute.xlu1 %2530 }
 0xa5c   : > { %14416 = vst [vmem:[#allocation130_spill] sm:$0xff] %v9907_v50  ;;  %v2546_v57 = vmul.f32 0.0, %v9907_v50 }
 0xa5e   : > { %2558 = vrot.lane.b32.xlu1 %v2546_v57, %s14310_s11 }
 0xa5f   : > { %v9911_v14 = vpop.permute.xlu1 %2534 }
 0xa60   : > { %14417 = vst [vmem:[#allocation131_spill] sm:$0xff] %v9911_v14  ;;  %v2549_v20 = vmul.f32 0.0, %v9911_v14 }
 0xa62   : > { %2595 = vrot.lane.b32.xlu1 %v2587_v28, %s13834_s15  ;;  %2564 = vrot.lane.b32.xlu0 %v2549_v20, %s14310_s11  ;;  %v2654_v20 = vld [vmem:[#allocation11 + $0x80] sm:$0xff] }
 0xa66   : > { %2599 = vrot.lane.b32.xlu1 %v2589_v4, %s13834_s15  ;;  %2597 = vrot.lane.b32.xlu0 %v2588_v62, %s13834_s15  ;;  %v2656_v4 = vld [vmem:[#allocation11 + $0x90] sm:$0xff]  ;;  %v2655_v62 = vld [vmem:[#allocation11 + $0x88] sm:$0xff] }
 0xa6a   : > { %2601 = vrot.lane.b32.xlu0 %v2590_v1, %s13834_s15  ;;  %v2657_v1 = vld [vmem:[#allocation11 + $0x98] sm:$0xff]  ;;  %s13857_s15 = smov 120  }
 0xad0   : > { %v9919_v57 = vpop.permute.xlu1 %2558 }
 0xad1   : > { %14418 = vst [vmem:[#allocation132_spill] sm:$0xff] %v9919_v57 }
 0xad4   : > { %v9921_v18 = vpop.permute.xlu1 %2595 }
 0xad5   : > { %14419 = vst [vmem:[#allocation133_spill] sm:$0xff] %v9921_v18  ;;  %v2612_v14 = vmul.f32 0.0, %v9921_v18 }
 0xad7   : > { %2624 = vrot.lane.b32.xlu1 %v2612_v14, %s13859_s17 }
 0xad8   : > { %v9925_v28 = vpop.permute.xlu1 %2599 }
 0xad9   : > { %14420 = vst [vmem:[#allocation134_spill] sm:$0xff] %v9925_v28  ;;  %v2615_v50 = vmul.f32 0.0, %v9925_v28 }
 0xadb   : > { %2662 = vrot.lane.b32.xlu1 %v2654_v20, %s13855_s8  ;;  %2630 = vrot.lane.b32.xlu0 %v2615_v50, %s13859_s17  ;;  %v2721_v50 = vld [vmem:[#allocation11 + $0xa0] sm:$0xff]  ;;  %s13865_s17 = smov 90  }
 0xadf   : > { %2666 = vrot.lane.b32.xlu1 %v2656_v4, %s13855_s8  ;;  %2664 = vrot.lane.b32.xlu0 %v2655_v62, %s13855_s8  ;;  %v2723_v4 = vld [vmem:[#allocation11 + $0xb0] sm:$0xff]  ;;  %v2722_v62 = vld [vmem:[#allocation11 + $0xa8] sm:$0xff] }
 0xae3   : > { %2668 = vrot.lane.b32.xlu0 %v2657_v1, %s13855_s8  ;;  %v2724_v1 = vld [vmem:[#allocation11 + $0xb8] sm:$0xff]  ;;  %s14522_s8 = smov 34  }
 0xb49   : > { %v9933_v14 = vpop.permute.xlu1 %2624 }
 0xb4a   : > { %14421 = vst [vmem:[#allocation135_spill] sm:$0xff] %v9933_v14  ;;  %v14425_v14 = vld [vmem:[#allocation46_spill] sm:$0xff] }
 0xb4d   : > { %v9935_v57 = vpop.permute.xlu1 %2662 }
 0xb4e   : > { %14422 = vst [vmem:[#allocation136_spill] sm:$0xff] %v9935_v57  ;;  %v2679_v28 = vmul.f32 0.0, %v9935_v57 }
 0xb50   : > { %2691 = vrot.lane.b32.xlu1 %v2679_v28, %s13857_s15  ;;  %v14424_v28 = vld [vmem:[#allocation47_spill] sm:$0xff] }
 0xb51   : > { %v9939_v20 = vpop.permute.xlu1 %2666  ;;  %v772_v57 = vsel %vm771_vm8, %v14425_v14, %v14424_v28 }
 0xb52   : > { %14423 = vst [vmem:[#allocation137_spill] sm:$0xff] %v9939_v20  ;;  %v2682_v18 = vmul.f32 0.0, %v9939_v20  ;;  %v14426_v20 = vld [vmem:[#allocation36_spill] sm:$0xff] }
 0xb54   : > { %2729 = vrot.lane.b32.xlu1 %v2721_v50, %s14299_s14  ;;  %2697 = vrot.lane.b32.xlu0 %v2682_v18, %s13857_s15  ;;  %v843_v50 = vsel %vm842_vm11, %v14426_v20, %v9535_v25  ;;  %v782_v18 = vmul.f32 %v14424_v28, %v9279_v61  ;;  %v911_v20 = vsel %vm909_vm10, %v9545_v48, %v9622_v35  ;;  %s14525_s15 = smov 98  }
 0xb55   : > { %v1044_v48 = vsel %vm1043_vm9, %v14429_v8, %v9563_v7 }
 0xb56   : > { %v855_v9 = vadd.f32 %v9605_v3, %v782_v18 }
 0xb58   : > { %2733 = vrot.lane.b32.xlu1 %v2723_v4, %s14299_s14  ;;  %2731 = vrot.lane.b32.xlu0 %v2722_v62, %s14299_s14  ;;  %v844_v4 = vsel %vm842_vm11, %v9535_v25, %v9605_v3  ;;  %v780_v62 = vmul.f32 0.0, %v14425_v14  ;;  %v922_v25 = vadd.f32 %v9622_v35, %v855_v9  ;;  %v14428_v14 = vld [vmem:[#allocation38_spill] sm:$0xff]  ;;  %v978_v3 = vsel %vm13847_vm15, %v9552_v59, %v9640_v13 }
 0xb59   : > { %v1045_v35 = vsel %vm1043_vm9, %v9563_v7, %v9651_v33 }
 0xb5a   : > { %v853_v61 = vadd.f32 %v843_v50, %v780_v62  ;;  %v989_v0 = vadd.f32 %v9640_v13, %v922_v25  ;;  %v14430_v62 = vld [vmem:[#allocation40_spill] sm:$0xff]  ;;  %v1112_v13 = vsel %vm13848_vm7, %v9573_v49, %v9663_v10 }
 0xb5b   : > { %v14432_v25 = vld [vmem:[#allocation48_spill] sm:$0xff] }
 0xb5c   : > { %2735 = vrot.lane.b32.xlu0 %v2724_v1, %s14299_s14  ;;  %v781_v1 = vmul.f32 %v772_v57, %v9275_v60  ;;  %v977_v60 = vsel %vm13847_vm15, %v14428_v14, %v9552_v59  ;;  %v920_v57 = vadd.f32 %v910_v16, %v853_v61  ;;  %v1111_v59 = vsel %vm13848_vm7, %v14430_v62, %v9573_v49  ;;  %v14433_v49 = vld [vmem:[#allocation42_spill] sm:$0xff] }
 0xb5d   : > { %v783_v14 = vmul.f32 0.0, %v14432_v25 }
 0xb5e   : > { %v854_v28 = vadd.f32 %v844_v4, %v781_v1  ;;  %v987_v9 = vadd.f32 %v977_v60, %v920_v57  ;;  %v1056_v4 = vadd.f32 %v9651_v33, %v989_v0  ;;  %v1178_v33 = vsel %vm13852_vm6, %v9583_v39, %v9670_v52 }
 0xb60   : > { %v921_v18 = vadd.f32 %v911_v20, %v854_v28  ;;  %v1054_v16 = vadd.f32 %v1044_v48, %v987_v9  ;;  %v1123_v8 = vadd.f32 %v9663_v10, %v1056_v4  ;;  %v14431_v20 = vld [vmem:[#allocation41_spill] sm:$0xff]  ;;  %v1243_v10 = vsel %vm1077_vm5, %v9595_v37, %v9674_v55  ;;  %v14436_v9 = vld [vmem:[#allocation43_spill] sm:$0xff] }
 0xb61   : > { %v1177_v7 = vsel %vm13852_vm6, %v14431_v20, %v9583_v39  ;;  %v14434_v39 = vld [vmem:[#allocation58_spill] sm:$0xff]  ;;  %v14435_v48 = vld [vmem:[#allocation49_spill] sm:$0xff]  ;;  %v846_v20 = vsel %vm842_vm11, %v9744_v45, %v9688_v40 }
 0xb62   : > { %v988_v50 = vadd.f32 %v978_v3, %v921_v18  ;;  %v1121_v61 = vadd.f32 %v1111_v59, %v1054_v16  ;;  %v1189_v60 = vadd.f32 %v9670_v52, %v1123_v8  ;;  %v1242_v3 = vsel %vm1077_vm5, %v14433_v49, %v9595_v37  ;;  %v14440_v49 = vld [vmem:[#allocation52_spill] sm:$0xff] }
 0xb63   : > { %v845_v0 = vsel %vm842_vm11, %v14434_v39, %v9744_v45  ;;  %v1310_v37 = vsel %vm1308_vm14, %v9607_v43, %v9680_v22  ;;  %v785_v59 = vmul.f32 %v14435_v48, %v9281_v44  ;;  %v14439_v44 = vld [vmem:[#allocation60_spill] sm:$0xff]  ;;  %vm13867_vm11 = vcmask 760832  }
 0xb64   : > { %v1055_v1 = vadd.f32 %v1045_v35, %v988_v50  ;;  %v1187_v57 = vadd.f32 %v1177_v7, %v1121_v61  ;;  %v773_v35 = vsel %vm771_vm8, %v14432_v25, %v14435_v48  ;;  %v1254_v52 = vadd.f32 %v9674_v55, %v1189_v60  ;;  %v14438_v55 = vld [vmem:[#allocation44_spill] sm:$0xff] }
 0xb65   : > { %v1309_v50 = vsel %vm1308_vm14, %v14436_v9, %v9607_v43  ;;  %v1376_v8 = vsel %vm13850_vm3, %v14438_v55, %v9617_v63  ;;  %v856_v43 = vadd.f32 %v845_v0, %v783_v14  ;;  %v784_v61 = vmul.f32 %v773_v35, %v9277_v27  ;;  %v14442_v35 = vld [vmem:[#allocation62_spill] sm:$0xff]  ;;  %v14443_v9 = vld [vmem:[#allocation83_spill] sm:$0xff] }
 0xb66   : > { %v1122_v28 = vadd.f32 %v1112_v13, %v1055_v1  ;;  %v1252_v4 = vadd.f32 %v1242_v3, %v1187_v57  ;;  %v14437_v13 = vld [vmem:[#allocation59_spill] sm:$0xff]  ;;  %v1321_v1 = vadd.f32 %v9680_v22, %v1254_v52  ;;  %v1377_v22 = vsel %vm13850_vm3, %v9617_v63, %v9684_v15 }
 0xb67   : > { %v912_v16 = vsel %vm909_vm10, %v14437_v13, %v9750_v42  ;;  %v913_v60 = vsel %vm909_vm10, %v9750_v42, %v9692_v24  ;;  %v1441_v27 = vsel %vm876_vm2, %v14440_v49, %v9629_v58  ;;  %v857_v3 = vadd.f32 %v846_v20, %v784_v61  ;;  %v14445_v20 = vld [vmem:[#allocation64_spill] sm:$0xff] }
 0xb68   : > { %v1188_v18 = vadd.f32 %v1178_v33, %v1122_v28  ;;  %v1319_v7 = vadd.f32 %v1309_v50, %v1252_v4  ;;  %v979_v28 = vsel %vm13847_vm15, %v14439_v44, %v9754_v41  ;;  %v1388_v25 = vadd.f32 %v9684_v15, %v1321_v1 }
 0xb69   : > { %v923_v45 = vadd.f32 %v912_v16, %v856_v43  ;;  %v1442_v63 = vsel %vm876_vm2, %v9629_v58, %v9690_v26  ;;  %v858_v15 = vadd.f32 %v9688_v40, %v785_v59  ;;  %v980_v42 = vsel %vm13847_vm15, %v9754_v41, %v9696_v12 }
 0xb6a   : > { %v1253_v62 = vadd.f32 %v1243_v10, %v1188_v18  ;;  %v1386_v14 = vadd.f32 %v1376_v8, %v1319_v7  ;;  %v14441_v10 = vld [vmem:[#allocation61_spill] sm:$0xff]  ;;  %v1453_v0 = vadd.f32 %v9690_v26, %v1388_v25  ;;  %v924_v48 = vadd.f32 %v913_v60, %v857_v3 }
 0xb6b   : > { %v1046_v57 = vsel %vm1043_vm9, %v14441_v10, %v9761_v51  ;;  %v990_v18 = vadd.f32 %v979_v28, %v923_v45  ;;  %v1113_v52 = vsel %vm13848_vm7, %v14442_v35, %v9766_v30  ;;  %v1506_v58 = vsel %vm13851_vm1, %v14443_v9, %v9642_v2  ;;  %v14452_v35 = vld [vmem:[#allocation71_spill] sm:$0xff] }
 0xb6c   : > { %v1320_v33 = vadd.f32 %v1310_v37, %v1253_v62  ;;  %v925_v40 = vadd.f32 %v9692_v24, %v858_v15  ;;  %v1047_v41 = vsel %vm1043_vm9, %v9761_v51, %v9698_v47  ;;  %v1451_v37 = vadd.f32 %v1441_v27, %v1386_v14  ;;  %v14444_v62 = vld [vmem:[#allocation63_spill] sm:$0xff]  ;;  %v14448_v27 = vld [vmem:[#allocation85_spill] sm:$0xff] }
 0xb6d   : > { %v1057_v50 = vadd.f32 %v1046_v57, %v990_v18  ;;  %vm1741_vm15 = vcmask 654336   ;;  %v991_v26 = vadd.f32 %v980_v42, %v924_v48  ;;  %v1179_v59 = vsel %vm13852_vm6, %v14444_v62, %v9769_v6  ;;  %v14447_v14 = vld [vmem:[#allocation67_spill] sm:$0xff]  ;;  %v14451_v48 = vld [vmem:[#allocation78_spill] sm:$0xff]  ;;  %v14456_v62 = vld [vmem:[#allocation32_spill] sm:$0xff] }
 0xb6e   : > { %v1387_v39 = vadd.f32 %v1377_v22, %v1320_v33  ;;  %v1507_v13 = vsel %vm13851_vm1, %v9642_v2, %v9694_v46  ;;  %v992_v16 = vadd.f32 %v9696_v12, %v925_v40  ;;  %v1114_v24 = vsel %vm13848_vm7, %v9766_v30, %v9702_v36  ;;  %v14450_v42 = vld [vmem:[#allocation87_spill] sm:$0xff] }
 0xb6f   : > { %v1124_v51 = vadd.f32 %v1113_v52, %v1057_v50  ;;  %v1516_v1 = vadd.f32 %v1506_v58, %v1451_v37  ;;  %v1518_v55 = vadd.f32 %v9694_v46, %v1453_v0  ;;  %v1058_v8 = vadd.f32 %v1047_v41, %v991_v26  ;;  %v14446_v46 = vld [vmem:[#allocation65_spill] sm:$0xff]  ;;  %v14453_v9 = vld [vmem:[#allocation91_spill] sm:$0xff]  ;;  %v14455_v41 = vld [vmem:[#allocation56_spill] sm:$0xff] }
 0xb70   : > { %v1452_v4 = vadd.f32 %v1442_v63, %v1387_v39  ;;  %v1244_v43 = vsel %vm1077_vm5, %v14445_v20, %v9771_v38  ;;  %v1543_v7 = vsel %vm771_vm8, %v9700_v31, %v9647_v17  ;;  %v1059_v2 = vadd.f32 %v9698_v47, %v992_v16  ;;  %v14449_v63 = vld [vmem:[#allocation69_spill] sm:$0xff] }
 0xb71   : > { %v1180_v12 = vsel %vm13852_vm6, %v9769_v6, %v9706_v29  ;;  %v1190_v30 = vadd.f32 %v1179_v59, %v1124_v51  ;;  %vm13853_vm7 = vcmask 646144   ;;  %v1125_v61 = vadd.f32 %v1114_v24, %v1058_v8  ;;  %v14454_v58 = vld [vmem:[#allocation29_spill] sm:$0xff] }
 0xb72   : > { %v1517_v33 = vadd.f32 %v1507_v13, %v1452_v4  ;;  %v1311_v44 = vsel %vm1308_vm14, %v14446_v46, %v9773_v23  ;;  %v1553_v28 = vadd.f32 %v9647_v17, %v1518_v55  ;;  %v1126_v22 = vadd.f32 %v9702_v36, %v1059_v2  ;;  %v14457_v16 = vld [vmem:[#allocation57_spill] sm:$0xff]  ;;  %v14461_v2 = vld [vmem:[#allocation66_spill] sm:$0xff]  ;;  %v14463_v46 = vld [vmem:[#allocation95_spill] sm:$0xff] }
 0xb73   : > { %v1245_v47 = vsel %vm1077_vm5, %v9771_v38, %v9708_v34  ;;  %v1255_v25 = vadd.f32 %v1244_v43, %v1190_v30  ;;  %v1551_v6 = vadd.f32 %v9700_v31, %v1516_v1  ;;  %v1191_v45 = vadd.f32 %v1180_v12, %v1125_v61  ;;  %v14458_v8 = vld [vmem:[#allocation93_spill] sm:$0xff]  ;;  %v14462_v12 = vld [vmem:[#allocation92_spill] sm:$0xff] }
 0xb74   : > { %v1552_v60 = vadd.f32 %v1543_v7, %v1517_v33  ;;  %v1378_v49 = vsel %vm13850_vm3, %v14447_v14, %v9775_v11  ;;  %v1609_v17 = vsel %vm13867_vm11, %v9657_v19, %v14448_v27  ;;  %v1192_v3 = vadd.f32 %v9706_v29, %v1126_v22  ;;  %v14460_v43 = vld [vmem:[#allocation33_spill] sm:$0xff]  ;;  %v14467_v14 = vld [vmem:[#allocation35_spill] sm:$0xff] }
 0xb75   : > { %v1312_v36 = vsel %vm1308_vm14, %v9773_v23, %v9712_v5  ;;  %v1322_v38 = vadd.f32 %v1311_v44, %v1255_v25  ;;  %v1608_v31 = vsel %vm13867_vm11, %v9704_v32, %v9657_v19  ;;  %v1618_v10 = vadd.f32 %v9704_v32, %v1551_v6  ;;  %v14464_v44 = vld [vmem:[#allocation30_spill] sm:$0xff] }
 0xb76   : > { %v1256_v57 = vadd.f32 %v1245_v47, %v1191_v45  ;;  %v1443_v15 = vsel %vm876_vm2, %v14449_v63, %v9777_v56  ;;  %v1676_v29 = vsel %vm14140_vm0, %v9665_v21, %v14450_v42  ;;  %v1257_v18 = vadd.f32 %v9708_v34, %v1192_v3  ;;  %v14465_v47 = vld [vmem:[#allocation34_spill] sm:$0xff]  ;;  %v14466_v45 = vld [vmem:[#allocation80_spill] sm:$0xff] }
 0xb77   : > { %v1379_v23 = vsel %vm13850_vm3, %v9775_v11, %v9716_v53  ;;  %v1389_v39 = vadd.f32 %v1378_v49, %v1322_v38  ;;  %v1620_v0 = vadd.f32 %v1609_v17, %v1553_v28  ;;  %v1675_v19 = vsel %vm14140_vm0, %v9710_v54, %v9665_v21  ;;  %v14469_v63 = vld [vmem:[#allocation94_spill] sm:$0xff] }
 0xb78   : > { %vm1941_vm5 = vcmask 629760   ;;  %v1323_v32 = vadd.f32 %v1312_v36, %v1256_v57  ;;  %v1508_v52 = vsel %vm13851_vm1, %v14452_v35, %v14451_v48  ;;  %v1743_v34 = vsel %vm1741_vm15, %v14454_v58, %v14453_v9  ;;  %v14468_v36 = vld [vmem:[#allocation73_spill] sm:$0xff]  ;;  %v14474_v9 = vld [vmem:[#allocation82_spill] sm:$0xff] }
 0xb79   : > { %v1324_v40 = vadd.f32 %v9712_v5, %v1257_v18  ;;  %v1444_v11 = vsel %vm876_vm2, %v9777_v56, %v14455_v41  ;;  %v1454_v50 = vadd.f32 %v1443_v15, %v1389_v39  ;;  %v1619_v37 = vadd.f32 %v1608_v31, %v1552_v60  ;;  %v14470_v15 = vld [vmem:[#allocation45_spill] sm:$0xff]  ;;  %v14471_v39 = vld [vmem:[#allocation75_spill] sm:$0xff] }
 0xb7a   : > { %v1687_v4 = vadd.f32 %v1676_v29, %v1620_v0  ;;  %v1685_v21 = vadd.f32 %v9710_v54, %v1618_v10  ;;  %vm13854_vm3 = vcmask 621568   ;;  %v1390_v26 = vadd.f32 %v1379_v23, %v1323_v32  ;;  %v14459_v54 = vld [vmem:[#allocation51_spill] sm:$0xff]  ;;  %v14473_v32 = vld [vmem:[#allocation54_spill] sm:$0xff] }
 0xb7b   : > { %v1742_v59 = vsel %vm1741_vm15, %v14456_v62, %v14454_v58  ;;  %v1391_v13 = vadd.f32 %v9716_v53, %v1324_v40  ;;  %v1509_v5 = vsel %vm13851_vm1, %v14451_v48, %v14457_v16  ;;  %v1519_v24 = vadd.f32 %v1508_v52, %v1454_v50  ;;  %v14475_v58 = vld [vmem:[#allocation53_spill] sm:$0xff]  ;;  %v14476_v40 = vld [vmem:[#allocation68_spill] sm:$0xff] }
 0xb7c   : > { %v1686_v51 = vadd.f32 %v1675_v19, %v1619_v37  ;;  %v1754_v56 = vadd.f32 %v1743_v34, %v1687_v4  ;;  %v1752_v1 = vadd.f32 %v14456_v62, %v1685_v21  ;;  %v1455_v55 = vadd.f32 %v1444_v11, %v1390_v26  ;;  %v14472_v19 = vld [vmem:[#allocation97_spill] sm:$0xff]  ;;  %v14478_v21 = vld [vmem:[#allocation100_spill] sm:$0xff]  ;;  %v14479_v26 = vld [vmem:[#allocation31_spill] sm:$0xff] }
 0xb7d   : > { %v1810_v20 = vsel %vm13853_vm7, %v14459_v54, %v14458_v8  ;;  %v1809_v7 = vsel %vm13853_vm7, %v14460_v43, %v14459_v54  ;;  %v1456_v53 = vadd.f32 %v14455_v41, %v1391_v13  ;;  %v1544_v30 = vsel %vm771_vm8, %v14462_v12, %v14461_v2  ;;  %v14477_v37 = vld [vmem:[#allocation77_spill] sm:$0xff]  ;;  %v14483_v8 = vld [vmem:[#allocation79_spill] sm:$0xff] }
 0xb7e   : > { %v1753_v33 = vadd.f32 %v1742_v59, %v1686_v51  ;;  %v1819_v61 = vadd.f32 %v14460_v43, %v1752_v1  ;;  %v1876_v28 = vsel %vm1874_vm13, %v14464_v44, %v14463_v46  ;;  %v1520_v22 = vadd.f32 %v1509_v5, %v1455_v55  ;;  %v14481_v5 = vld [vmem:[#allocation72_spill] sm:$0xff] }
 0xb7f   : > { %v1875_v25 = vsel %vm1874_vm13, %v14465_v47, %v14464_v44  ;;  %vm2075_vm1 = vcmask 523264   ;;  %v1521_v6 = vadd.f32 %v14457_v16, %v1456_v53  ;;  %v1554_v60 = vadd.f32 %v14462_v12, %v1519_v24  ;;  %v14480_v16 = vld [vmem:[#allocation96_spill] sm:$0xff]  ;;  %v14484_v53 = vld [vmem:[#allocation90_spill] sm:$0xff]  ;;  %v14487_v44 = vld [vmem:[#allocation81_spill] sm:$0xff] }
 0xb80   : > { %v1610_v49 = vsel %vm13867_vm11, %v14467_v14, %v14466_v45  ;;  %v1821_v27 = vadd.f32 %v1810_v20, %v1754_v56  ;;  %v1820_v17 = vadd.f32 %v1809_v7, %v1753_v33  ;;  %v1555_v3 = vadd.f32 %v1544_v30, %v1520_v22  ;;  %v14482_v56 = vld [vmem:[#allocation70_spill] sm:$0xff]  ;;  %v2334_v22 = vpop.permute.xlu0 %2333 }
 0xb81   : > { %v1611_v38 = vsel %vm13867_vm11, %v14466_v45, %v14468_v36  ;;  %v1885_v31 = vadd.f32 %v14465_v47, %v1819_v61  ;;  %v1556_v10 = vadd.f32 %v14461_v2, %v1521_v6  ;;  %v1621_v57 = vadd.f32 %v14467_v14, %v1554_v60  ;;  %v14485_v2 = vld [vmem:[#allocation74_spill] sm:$0xff] }
 0xb82   : > { %v1677_v42 = vsel %vm14140_vm0, %v14470_v15, %v14469_v63  ;;  %v1887_v29 = vadd.f32 %v1876_v28, %v1821_v27  ;;  %v1886_v18 = vadd.f32 %v1875_v25, %v1820_v17  ;;  %v1622_v23 = vadd.f32 %v1610_v49, %v1555_v3  ;;  %v14488_v60 = vld [vmem:[#allocation98_spill] sm:$0xff]  ;;  %v14491_v27 = vld [vmem:[#allocation55_spill] sm:$0xff]  ;;  %v14492_v3 = vld [vmem:[#allocation84_spill] sm:$0xff] }
 0xb83   : > { %v1678_v0 = vsel %vm14140_vm0, %v14469_v63, %v14471_v39  ;;  %vm13862_vm6 = vcmask 515072   ;;  %v1943_v48 = vsel %vm1941_vm5, %v14473_v32, %v14472_v19  ;;  %v1623_v35 = vadd.f32 %v1611_v38, %v1556_v10  ;;  %v14489_v45 = vld [vmem:[#allocation86_spill] sm:$0xff] }
 0xb84   : > { %v1688_v52 = vadd.f32 %v14470_v15, %v1621_v57  ;;  %v1744_v34 = vsel %vm1741_vm15, %v14475_v58, %v14474_v9  ;;  %v1942_v41 = vsel %vm1941_vm5, %v14476_v40, %v14473_v32  ;;  %v1952_v11 = vadd.f32 %v14476_v40, %v1885_v31  ;;  %v14490_v49 = vld [vmem:[#allocation50_spill] sm:$0xff]  ;;  %v14493_v31 = vld [vmem:[#allocation88_spill] sm:$0xff] }
 0xb85   : > { %v1689_v50 = vadd.f32 %v1677_v42, %v1622_v23  ;;  %v1745_v4 = vsel %vm1741_vm15, %v14474_v9, %v14477_v37  ;;  %v2010_v62 = vsel %vm13854_vm3, %v14479_v26, %v14478_v21  ;;  %v1690_v59 = vadd.f32 %v1678_v0, %v1623_v35  ;;  %v14494_v42 = vld [vmem:[#allocation101_spill] sm:$0xff]  ;;  %v14496_v0 = vld [vmem:[#allocation99_spill] sm:$0xff]  ;;  %v14498_v9 = vld [vmem:[#allocation104_spill] sm:$0xff]  ;;  %v2338_v37 = vpop.permute.xlu0 %2337 }
 0xb86   : > { %v1755_v13 = vadd.f32 %v14475_v58, %v1688_v52  ;;  %v1811_v24 = vsel %vm13853_vm7, %v14481_v5, %v14480_v16  ;;  %v1954_v51 = vadd.f32 %v1943_v48, %v1887_v29  ;;  %v2009_v1 = vsel %vm13854_vm3, %v14482_v56, %v14479_v26  ;;  %v14495_v29 = vld [vmem:[#allocation76_spill] sm:$0xff]  ;;  %v14497_v52 = vld [vmem:[#allocation103_spill] sm:$0xff]  ;;  %v14501_v26 = vld [vmem:[#allocation102_spill] sm:$0xff] }
 0xb87   : > { %v1756_v55 = vadd.f32 %v1744_v34, %v1689_v50  ;;  %v1812_v54 = vsel %vm13853_vm7, %v14480_v16, %v14483_v8  ;;  %v1953_v20 = vadd.f32 %v1942_v41, %v1886_v18  ;;  %v1757_v43 = vadd.f32 %v1745_v4, %v1690_v59  ;;  %v14499_v34 = vld [vmem:[#allocation106_spill] sm:$0xff]  ;;  %v14500_v21 = vld [vmem:[#allocation28_spill] sm:$0xff] }
 0xb88   : > { %v1822_v7 = vadd.f32 %v14481_v5, %v1755_v13  ;;  %v1877_v12 = vsel %vm1874_vm13, %v14485_v2, %v14484_v53  ;;  %v2021_v33 = vadd.f32 %v2010_v62, %v1954_v51  ;;  %v2019_v61 = vadd.f32 %v14482_v56, %v1952_v11  ;;  %v14502_v59 = vld [vmem:[#allocation110_spill] sm:$0xff]  ;;  %v14503_v13 = vld [vmem:[#allocation109_spill] sm:$0xff]  ;;  %v14504_v5 = vld [vmem:[#allocation111_spill] sm:$0xff] }
 0xb89   : > { %v1823_v46 = vadd.f32 %v1811_v24, %v1756_v55  ;;  %v1878_v28 = vsel %vm1874_vm13, %v14484_v53, %v14487_v44  ;;  %v2020_v47 = vadd.f32 %v2009_v1, %v1953_v20  ;;  %v1824_v25 = vadd.f32 %v1812_v54, %v1757_v43  ;;  %v2786_v56 = vld [vmem:[#allocation11 + $0xc0] sm:$0xff]  ;;  %v14505_v54 = vld [vmem:[#allocation89_spill] sm:$0xff]  ;;  %v14506_v43 = vld [vmem:[#allocation107_spill] sm:$0xff] }
 0xb8a   : > { %v1888_v6 = vadd.f32 %v14485_v2, %v1822_v7  ;;  %v1944_v14 = vsel %vm1941_vm5, %v14489_v45, %v14488_v60  ;;  %v2077_v17 = vsel %vm2075_vm1, %v14491_v27, %v14490_v49  ;;  %v2076_v36 = vsel %vm2075_vm1, %v14492_v3, %v14491_v27  ;;  %v14507_v7 = vld [vmem:[#allocation108_spill] sm:$0xff]  ;;  %v14514_v27 = vld [vmem:[#allocation122_spill] sm:$0xff] }
 0xb8b   : > { %v1889_v38 = vadd.f32 %v1877_v12, %v1823_v46  ;;  %v1945_v10 = vsel %vm1941_vm5, %v14488_v60, %v14493_v31  ;;  %v2086_v57 = vadd.f32 %v14492_v3, %v2019_v61  ;;  %v1890_v63 = vadd.f32 %v1878_v28, %v1824_v25  ;;  %v14508_v2 = vld [vmem:[#allocation116_spill] sm:$0xff]  ;;  %v14509_v12 = vld [vmem:[#allocation115_spill] sm:$0xff]  ;;  %v14510_v61 = vld [vmem:[#allocation117_spill] sm:$0xff] }
 0xb8c   : > { %v1955_v15 = vadd.f32 %v14489_v45, %v1888_v6  ;;  %v2011_v18 = vsel %vm13854_vm3, %v14495_v29, %v14494_v42  ;;  %v2012_v19 = vsel %vm13854_vm3, %v14494_v42, %v14496_v0  ;;  %vm2209_vm13 = vcmask 506880   ;;  %v14511_v6 = vld [vmem:[#allocation114_spill] sm:$0xff]  ;;  %v14512_v60 = vld [vmem:[#allocation113_spill] sm:$0xff]  ;;  %v14517_v0 = vld [vmem:[#allocation119_spill] sm:$0xff] }
 0xb8d   : > { %v1956_v39 = vadd.f32 %v1944_v14, %v1889_v38  ;;  %v2088_v48 = vadd.f32 %v2077_v17, %v2021_v33  ;;  %v1957_v35 = vadd.f32 %v1945_v10, %v1890_v63  ;;  %v2143_v58 = vsel %vm13862_vm6, %v14498_v9, %v14497_v52  ;;  %v14513_v14 = vld [vmem:[#allocation121_spill] sm:$0xff]  ;;  %v2788_v3 = vld [vmem:[#allocation11 + $0xd0] sm:$0xff] }
 0xb8e   : > { %v2144_v40 = vsel %vm13862_vm6, %v14497_v52, %v14499_v34  ;;  %v2087_v41 = vadd.f32 %v2076_v36, %v2020_v47  ;;  %v2022_v11 = vadd.f32 %v14495_v29, %v1955_v15  ;;  %vm2276_vm7 = vcmask 498688   ;;  %v2787_v36 = vld [vmem:[#allocation11 + $0xc8] sm:$0xff]  ;;  %v14519_v34 = vld [vmem:[#allocation123_spill] sm:$0xff] }
 0xb8f   : > { %v2023_v50 = vadd.f32 %v2011_v18, %v1956_v39  ;;  %v2024_v4 = vadd.f32 %v2012_v19, %v1957_v35  ;;  %v2079_v62 = vsel %vm2075_vm1, %v14501_v26, %v14500_v21  ;;  %v2210_v16 = vsel %vm2209_vm13, %v14503_v13, %v14502_v59  ;;  %v14515_v38 = vld [vmem:[#allocation105_spill] sm:$0xff]  ;;  %v14516_v39 = vld [vmem:[#allocation120_spill] sm:$0xff] }
 0xb90   : > { %v2211_v24 = vsel %vm2209_vm13, %v14502_v59, %v14504_v5  ;;  %v2154_v1 = vadd.f32 %v2143_v58, %v2087_v41  ;;  %v2155_v55 = vadd.f32 %v2144_v40, %v2088_v48  ;;  %vm2343_vm3 = vcmask 490496  }
 0xb91   : > { %v2078_v20 = vsel %vm2075_vm1, %v14505_v54, %v14501_v26  ;;  %v2146_v53 = vsel %vm13862_vm6, %v14507_v7, %v14506_v43  ;;  %v2277_v33 = vsel %vm2276_vm7, %v14509_v12, %v14508_v2  ;;  %v2278_v46 = vsel %vm2276_vm7, %v14508_v2, %v14510_v61  ;;  %v2789_v2 = vld [vmem:[#allocation11 + $0xd8] sm:$0xff] }
 0xb92   : > { %v2091_v44 = vadd.f32 %v2079_v62, %v2024_v4  ;;  %v2221_v28 = vadd.f32 %v2210_v16, %v2154_v1  ;;  %v2222_v47 = vadd.f32 %v2211_v24, %v2155_v55  ;;  %v2153_v25 = vadd.f32 %v14498_v9, %v2086_v57  ;;  %v2342_v57 = vpop.permute.xlu0 %2341  ;;  %v14518_v9 = vld [vmem:[#allocation112_spill] sm:$0xff]  ;;  %v14521_v62 = vld [vmem:[#allocation118_spill] sm:$0xff] }
 0xb93   : > { %v2213_v45 = vsel %vm2209_vm13, %v14512_v60, %v14511_v6  ;;  %v2344_v49 = vsel %vm2343_vm3, %v14513_v14, %v2334_v22  ;;  %v2345_v17 = vsel %vm2343_vm3, %v2334_v22, %v14514_v27  ;;  %v2145_v31 = vsel %vm13862_vm6, %v14515_v38, %v14507_v7 }
 0xb94   : > { %v2158_v10 = vadd.f32 %v2146_v53, %v2091_v44  ;;  %v2288_v63 = vadd.f32 %v2277_v33, %v2221_v28  ;;  %v2289_v15 = vadd.f32 %v2278_v46, %v2222_v47  ;;  %v2089_v42 = vadd.f32 %v14505_v54, %v2022_v11  ;;  %v2851_v46 = vld [vmem:[#allocation11 + $0xe0] sm:$0xff]  ;;  %v2853_v28 = vld [vmem:[#allocation11 + $0xf0] sm:$0xff]  ;;  %v2852_v47 = vld [vmem:[#allocation11 + $0xe8] sm:$0xff] }
 0xb95   : > { %v2090_v29 = vadd.f32 %v2078_v20, %v2023_v50  ;;  %v2220_v18 = vadd.f32 %v14503_v13, %v2153_v25  ;;  %v2280_v19 = vsel %vm2276_vm7, %v14517_v0, %v14516_v39  ;;  %v2212_v58 = vsel %vm2209_vm13, %v14518_v9, %v14512_v60  ;;  %v14520_v50 = vld [vmem:[#allocation124_spill] sm:$0xff]  ;;  %v2854_v25 = vld [vmem:[#allocation11 + $0xf8] sm:$0xff]  ;;  %v2984_v39 = vld [vmem:[#allocation11 + $0x130] sm:$0xff] }
 0xb96   : > { %v2225_v22 = vadd.f32 %v2213_v45, %v2158_v10  ;;  %v2356_v48 = vadd.f32 %v2345_v17, %v2289_v15  ;;  %v2156_v35 = vadd.f32 %v14515_v38, %v2089_v42  ;;  %v2347_v40 = vsel %vm2343_vm3, %v14519_v34, %v2342_v57  ;;  %v2370_v13 = vpop.permute.xlu0 %2369  ;;  %v2918_v38 = vld [vmem:[#allocation11 + $0x110] sm:$0xff]  ;;  %v2919_v10 = vld [vmem:[#allocation11 + $0x118] sm:$0xff] }
 0xb97   : > { %v2157_v52 = vadd.f32 %v2145_v31, %v2090_v29  ;;  %v2287_v41 = vadd.f32 %v14509_v12, %v2220_v18  ;;  %v2279_v59 = vsel %vm2276_vm7, %v14521_v62, %v14517_v0  ;;  %v2917_v31 = vld [vmem:[#allocation11 + $0x108] sm:$0xff]  ;;  %v2982_v29 = vld [vmem:[#allocation11 + $0x120] sm:$0xff]  ;;  %vm2603_vm7 = vcmask 539648  }
 0xb98   : > { %v2292_v11 = vadd.f32 %v2280_v19, %v2225_v22  ;;  %v2374_v21 = vadd.f32 %v14520_v50, %v2356_v48  ;;  %v2223_v26 = vadd.f32 %v14518_v9, %v2156_v35  ;;  %v2983_v0 = vld [vmem:[#allocation11 + $0x128] sm:$0xff]  ;;  %v2985_v22 = vld [vmem:[#allocation11 + $0x138] sm:$0xff]  ;;  %vm13990_vm6 = vcmask 556032  }
 0xb99   : > { %v2224_v16 = vadd.f32 %v2212_v58, %v2157_v52  ;;  %v2354_v5 = vadd.f32 %v14513_v14, %v2287_v41  ;;  %vm2998_vm11 = vcmask 818176  }
 0xb9a   : > { %v2359_v24 = vadd.f32 %v2347_v40, %v2292_v11  ;;  %v2290_v1 = vadd.f32 %v14521_v62, %v2223_v26  ;;  %v10355_v19 = vpop.permute.xlu0 %2430 }
 0xb9b   : > { %v2291_v55 = vadd.f32 %v2279_v59, %v2224_v16  ;;  %14527 = vst [vmem:[#allocation38_spill] sm:$0xff] %v10355_v19 }
 0xb9c   : > { %v2377_v54 = vadd.f32 %v2370_v13, %v2359_v24  ;;  %v2357_v20 = vadd.f32 %v2338_v37, %v2290_v1 }
 0xb9e   : > { %v2375_v7 = vadd.f32 %v2370_v13, %v2357_v20 }
 0xbc2   : > { %v10204_v30 = vpop.permute.xlu1 %2691 }
 0xbc3   : > { %14486 = vst [vmem:[#allocation47_spill] sm:$0xff] %v10204_v30 }
 0xbc6   : > { %v10228_v23 = vpop.permute.xlu1 %2729 }
 0xbc7   : > { %v2745_v32 = vmul.f32 0.0, %v10228_v23 }
 0xbc9   : > { %2757 = vrot.lane.b32.xlu1 %v2745_v32, %s14329_s0  ;;  %v2355_v32 = vadd.f32 %v2344_v49, %v2288_v63 }
 0xbca   : > { %v10251_v51 = vpop.permute.xlu1 %2733 }
 0xbcb   : > { %v2748_v8 = vmul.f32 0.0, %v10251_v51  ;;  %v2373_v4 = vadd.f32 %v14520_v50, %v2355_v32  ;;  %v10357_v32 = vpop.permute.xlu0 %2434 }
 0xbcc   : > { %14528 = vst [vmem:[#allocation39_spill] sm:$0xff] %v10357_v32 }
 0xbcd   : > { %2794 = vrot.lane.b32.xlu1 %v2786_v56, %s14297_s24  ;;  %2763 = vrot.lane.b32.xlu0 %v2748_v8, %s14329_s0  ;;  %v2346_v56 = vsel %vm2343_vm3, %v2338_v37, %v14519_v34  ;;  %v2372_v8 = vadd.f32 %v14520_v50, %v2354_v5 }
 0xbce   : > { %v2358_v43 = vadd.f32 %v2346_v56, %v2291_v55 }
 0xbcf   : > { %v2468_v48 = vpop.permute.xlu0 %2467 }
 0xbd0   : > { %v2376_v53 = vadd.f32 %v2370_v13, %v2358_v43  ;;  %v3049_v43 = vld [vmem:[#allocation11 + $0x140] sm:$0xff] }
 0xbd1   : > { %2798 = vrot.lane.b32.xlu1 %v2788_v3, %s14297_s24  ;;  %2796 = vrot.lane.b32.xlu0 %v2787_v36, %s14297_s24  ;;  %v2916_v3 = vld [vmem:[#allocation11 + $0x100] sm:$0xff] }
 0xbd3   : > { %v10359_v35 = vpop.permute.xlu0 %2471 }
 0xbd5   : > { %2388 = vrot.lane.b32.xlu1 %v2374_v21, %s14522_s8  ;;  %2386 = vrot.lane.b32.xlu0 %v2373_v4, %s14522_s8 }
 0xbd7   : > { %v10361_v52 = vpop.permute.xlu0 %2499 }
 0xbd8   : > { %14529 = vst [vmem:[#allocation40_spill] sm:$0xff] %v10361_v52 }
 0xbd9   : > { %2384 = vrot.lane.b32.xlu1 %v2372_v8, %s14522_s8  ;;  %2394 = vrot.lane.b32.xlu0 %v2377_v54, %s14522_s8 }
 0xbdb   : > { %v2533_v9 = vpop.permute.xlu0 %2532 }
 0xbdd   : > { %2392 = vrot.lane.b32.xlu1 %v2376_v53, %s14522_s8  ;;  %2390 = vrot.lane.b32.xlu0 %v2375_v7, %s14522_s8 }
 0xbdf   : > { %v10363_v58 = vpop.permute.xlu0 %2536 }
 0xbe1   : > { %2800 = vrot.lane.b32.xlu0 %v2789_v2, %s14297_s24  ;;  %v3051_v2 = vld [vmem:[#allocation11 + $0x150] sm:$0xff] }
 0xbe3   : > { %v10365_v34 = vpop.permute.xlu0 %2564 }
 0xbe4   : > { %14530 = vst [vmem:[#allocation41_spill] sm:$0xff] %v10365_v34  ;;  %v6329_v34 = vld [vmem:[#allocation11 + $0x7b0] sm:$0xff] }
 0xbe7   : > { %v2598_v40 = vpop.permute.xlu0 %2597 }
 0xbeb   : > { %v10367_v41 = vpop.permute.xlu0 %2601 }
 0xbef   : > { %v10369_v11 = vpop.permute.xlu0 %2630 }
 0xbf0   : > { %14531 = vst [vmem:[#allocation48_spill] sm:$0xff] %v10369_v11 }
 0xbf3   : > { %v2665_v50 = vpop.permute.xlu0 %2664 }
 0xbf7   : > { %v10371_v4 = vpop.permute.xlu0 %2668 }
 0xbfb   : > { %v10373_v21 = vpop.permute.xlu0 %2697 }
 0xbfc   : > { %14532 = vst [vmem:[#allocation42_spill] sm:$0xff] %v10373_v21 }
 0xbff   : > { %v2732_v26 = vpop.permute.xlu0 %2731 }
 0xc03   : > { %v10375_v62 = vpop.permute.xlu0 %2735 }
 0xc3b   : > { %v10311_v12 = vpop.permute.xlu1 %2757 }
 0xc3c   : > { %14523 = vst [vmem:[#allocation46_spill] sm:$0xff] %v10311_v12 }
 0xc3f   : > { %v10313_v33 = vpop.permute.xlu1 %2794  ;;  %v10377_v59 = vpop.permute.xlu0 %2763 }
 0xc40   : > { %v2810_v37 = vmul.f32 0.0, %v10313_v33  ;;  %14533 = vst [vmem:[#allocation58_spill] sm:$0xff] %v10377_v59 }
 0xc42   : > { %2822 = vrot.lane.b32.xlu1 %v2810_v37, %s14297_s24  ;;  %v3050_v37 = vld [vmem:[#allocation11 + $0x148] sm:$0xff] }
 0xc43   : > { %v10317_v61 = vpop.permute.xlu1 %2798  ;;  %v2797_v13 = vpop.permute.xlu0 %2796 }
 0xc44   : > { %v2813_v44 = vmul.f32 0.0, %v10317_v61 }
 0xc46   : > { %2859 = vrot.lane.b32.xlu1 %v2851_v46, %s14329_s0  ;;  %2828 = vrot.lane.b32.xlu0 %v2813_v44, %s14297_s24 }
 0xc47   : > { %v10325_v6 = vpop.permute.xlu1 %2388  ;;  %v2387_v16 = vpop.permute.xlu0 %2386 }
 0xc48   : > { %v10400_v46 = vsel %vm2310_vm12, %v2387_v16, %v10325_v6  ;;  %v14538_v6 = vld [vmem:[#allocation130_spill] sm:$0xff] }
 0xc4a   : > { %2863 = vrot.lane.b32.xlu1 %v2853_v28, %s14329_s0  ;;  %2861 = vrot.lane.b32.xlu0 %v2852_v47, %s14329_s0  ;;  %v14537_v28 = vld [vmem:[#allocation127_spill] sm:$0xff] }
 0xc4b   : > { %v10327_v60 = vpop.permute.xlu1 %2384  ;;  %v10379_v5 = vpop.permute.xlu0 %2394  ;;  %v2473_v47 = vsel %vm2209_vm13, %v14537_v28, %v2468_v48 }
 0xc4c   : > { %v10404_v44 = vsel %vm2310_vm12, %v10327_v60, %v2387_v16  ;;  %v2538_v60 = vsel %vm2075_vm1, %v14538_v6, %v2533_v9  ;;  %v2747_v16 = vmul.f32 %v2732_v26, %v10400_v46 }
 0xc4d   : > { %14536 = vst [vmem:[#allocation59_spill] sm:$0xff] %v10404_v44 }
 0xc4e   : > { %2865 = vrot.lane.b32.xlu0 %v2854_v25, %s14329_s0  ;;  %v2483_v25 = vmul.f32 %v2468_v48, %v10400_v46  ;;  %v2681_v48 = vmul.f32 %v2665_v50, %v10400_v46 }
 0xc4f   : > { %v10329_v45 = vpop.permute.xlu1 %2392  ;;  %v10381_v24 = vpop.permute.xlu0 %2390 }
 0xc50   : > { %v10476_v6 = vsel %vm2310_vm12, %v10329_v45, %v10379_v5 }
 0xc51   : > { %14547 = vst [vmem:[#allocation61_spill] sm:$0xff] %v10476_v6 }
 0xc53   : > { %v10385_v1 = vpop.permute.xlu0 %2800 }
 0xcb4   : > { %v10331_v14 = vpop.permute.xlu1 %2822 }
 0xcb5   : > { %14524 = vst [vmem:[#allocation36_spill] sm:$0xff] %v10331_v14 }
 0xcb8   : > { %v10333_v49 = vpop.permute.xlu1 %2859  ;;  %v10389_v8 = vpop.permute.xlu0 %2828 }
 0xcb9   : > { %v2875_v27 = vmul.f32 0.0, %v10333_v49  ;;  %14535 = vst [vmem:[#allocation43_spill] sm:$0xff] %v10389_v8 }
 0xcbb   : > { %2887 = vrot.lane.b32.xlu1 %v2875_v27, %s14299_s14  ;;  %v2482_v27 = vmul.f32 %v2473_v47, %v10404_v44 }
 0xcbc   : > { %v10337_v17 = vpop.permute.xlu1 %2863  ;;  %v2862_v53 = vpop.permute.xlu0 %2861 }
 0xcbd   : > { %v2878_v36 = vmul.f32 0.0, %v10337_v17  ;;  %v2877_v28 = vmul.f32 %v2862_v53, %v10400_v46 }
 0xcbf   : > { %2924 = vrot.lane.b32.xlu1 %v2916_v3, %s14525_s15  ;;  %2893 = vrot.lane.b32.xlu0 %v2878_v36, %s14299_s14  ;;  %v2548_v36 = vmul.f32 %v2533_v9, %v10400_v46 }
 0xcc0   : > { %v10412_v3 = vpop.permute.xlu0 %2865 }
 0xcc3   : > { %2928 = vrot.lane.b32.xlu1 %v2918_v38, %s14525_s15  ;;  %2926 = vrot.lane.b32.xlu0 %v2917_v31, %s14525_s15  ;;  %v2547_v38 = vmul.f32 %v2538_v60, %v10404_v44 }
 0xcc7   : > { %2930 = vrot.lane.b32.xlu0 %v2919_v10, %s14525_s15  ;;  %v14540_v10 = vld [vmem:[#allocation133_spill] sm:$0xff] }
 0xd2d   : > { %v10345_v63 = vpop.permute.xlu1 %2887 }
 0xd2e   : > { %14526 = vst [vmem:[#allocation37_spill] sm:$0xff] %v10345_v63 }
 0xd31   : > { %v10347_v15 = vpop.permute.xlu1 %2924  ;;  %v10420_v31 = vpop.permute.xlu0 %2893 }
 0xd32   : > { %v2940_v57 = vmul.f32 0.0, %v10347_v15  ;;  %14539 = vst [vmem:[#allocation44_spill] sm:$0xff] %v10420_v31 }
 0xd34   : > { %2952 = vrot.lane.b32.xlu1 %v2940_v57, %s13865_s17  ;;  %v2604_v57 = vsel %vm2603_vm7, %v14540_v10, %v2598_v40  ;;  %v2551_v10 = vmul.f32 %v10363_v58, %v10476_v6 }
 0xd35   : > { %v10351_v42 = vpop.permute.xlu1 %2928 }
 0xd36   : > { %v2943_v18 = vmul.f32 0.0, %v10351_v42 }
 0xd38   : > { %2990 = vrot.lane.b32.xlu1 %v2982_v29, %s8436_s12  ;;  %2958 = vrot.lane.b32.xlu0 %v2943_v18, %s13865_s17  ;;  %v2614_v29 = vmul.f32 %v2598_v40, %v10400_v46  ;;  %v2613_v18 = vmul.f32 %v2604_v57, %v10404_v44  ;;  %s14543_s17 = smov 120   ;;  %v2737_v40 = vsel %vm14140_vm0, %v10228_v23, %v2732_v26  ;;  %v14551_v57 = vld [vmem:[#allocation134_spill] sm:$0xff] }
 0xd39   : > { %v2867_v23 = vsel %vm876_vm2, %v10333_v49, %v2862_v53 }
 0xd3a   : > { %v2876_v26 = vmul.f32 %v2867_v23, %v10404_v44 }
 0xd3c   : > { %2994 = vrot.lane.b32.xlu1 %v2984_v39, %s8436_s12  ;;  %2992 = vrot.lane.b32.xlu0 %v2983_v0, %s8436_s12  ;;  %v2927_v39 = vpop.permute.xlu0 %2926  ;;  %v14542_v0 = vld [vmem:[#allocation136_spill] sm:$0xff] }
 0xd3d   : > { %v2942_v49 = vmul.f32 %v2927_v39, %v10400_v46 }
 0xd40   : > { %2996 = vrot.lane.b32.xlu0 %v2985_v22, %s8436_s12  ;;  %s13863_s12 = smov 88   ;;  %v2671_v22 = vsel %vm13990_vm6, %v14542_v0, %v2665_v50  ;;  %v2802_v50 = vsel %vm771_vm8, %v10313_v33, %v2797_v13  ;;  %v2932_v33 = vsel %vm13882_vm4, %v10347_v15, %v2927_v39  ;;  %v14552_v39 = vld [vmem:[#allocation137_spill] sm:$0xff] }
 0xd41   : > { %v2680_v9 = vmul.f32 %v2671_v22, %v10404_v44  ;;  %v2941_v47 = vmul.f32 %v2932_v33, %v10404_v44  ;;  %v2684_v22 = vmul.f32 %v10371_v4, %v10476_v6 }
 0xda6   : > { %v10383_v56 = vpop.permute.xlu1 %2952 }
 0xda7   : > { %14534 = vst [vmem:[#allocation49_spill] sm:$0xff] %v10383_v56 }
 0xdaa   : > { %v10387_v55 = vpop.permute.xlu1 %2990 }
 0xdab   : > { %v3007_v54 = vmul.f32 0.0, %v10387_v55 }
 0xdad   : > { %3019 = vrot.lane.b32.xlu1 %v3007_v54, %s13863_s12  ;;  %v2746_v54 = vmul.f32 %v2737_v40, %v10404_v44  ;;  %v2803_v40 = vsel %vm771_vm8, %v10317_v61, %v10385_v1  ;;  %v2880_v61 = vmul.f32 %v10412_v3, %v10476_v6 }
 0xdae   : > { %v10393_v20 = vpop.permute.xlu1 %2994 }
 0xdaf   : > { %v3010_v7 = vmul.f32 0.0, %v10393_v20 }
 0xdb1   : > { %3057 = vrot.lane.b32.xlu1 %v3049_v43, %s14310_s11  ;;  %3025 = vrot.lane.b32.xlu0 %v3010_v7, %s13863_s12  ;;  %s14541_s12 = smov 122   ;;  %v10440_v43 = vpop.permute.xlu0 %2930  ;;  %v2812_v7 = vmul.f32 %v2797_v13, %v10400_v46 }
 0xdb5   : > { %3061 = vrot.lane.b32.xlu1 %v3051_v2, %s14310_s11  ;;  %3059 = vrot.lane.b32.xlu0 %v3050_v37, %s14310_s11  ;;  %v2811_v2 = vmul.f32 %v2802_v50, %v10404_v44  ;;  %v10448_v37 = vpop.permute.xlu0 %2958 }
 0xdb6   : > { %14544 = vst [vmem:[#allocation60_spill] sm:$0xff] %v10448_v37 }
 0xdb9   : > { %2497 = vrot.lane.b32.xlu1 %v2483_v25, %s14413_s10  ;;  %2495 = vrot.lane.b32.xlu0 %v2482_v27, %s14413_s10  ;;  %v2993_v13 = vpop.permute.xlu0 %2992  ;;  %v10471_v27 = vsel %vm2310_vm12, %v10381_v24, %v10329_v45  ;;  %v14550_v45 = vld [vmem:[#allocation131_spill] sm:$0xff] }
 0xdba   : > { %v2999_v25 = vsel %vm2998_vm11, %v10387_v55, %v2993_v13  ;;  %v3009_v15 = vmul.f32 %v2993_v13, %v10400_v46  ;;  %14546 = vst [vmem:[#allocation52_spill] sm:$0xff] %v10471_v27  ;;  %v14549_v55 = vld [vmem:[#allocation128_spill] sm:$0xff]  ;;  %v2539_v5 = vsel %vm2075_vm1, %v14550_v45, %v10363_v58  ;;  %v2672_v58 = vsel %vm13990_vm6, %v14552_v39, %v10371_v4 }
 0xdbb   : > { %v3008_v53 = vmul.f32 %v2999_v25, %v10404_v44  ;;  %v2474_v60 = vsel %vm2209_vm13, %v14549_v55, %v10359_v35  ;;  %v2550_v24 = vmul.f32 %v2539_v5, %v10471_v27  ;;  %v2683_v0 = vmul.f32 %v2672_v58, %v10471_v27 }
 0xdbc   : > { %v2814_v4 = vmul.f32 %v2803_v40, %v10471_v27 }
 0xdbd   : > { %2562 = vrot.lane.b32.xlu1 %v2548_v36, %s14310_s11  ;;  %2560 = vrot.lane.b32.xlu0 %v2547_v38, %s14310_s11  ;;  %v2485_v36 = vmul.f32 %v2474_v60, %v10471_v27  ;;  %v2486_v38 = vmul.f32 %v10359_v35, %v10476_v6  ;;  %v2605_v35 = vsel %vm2603_vm7, %v14551_v57, %v10367_v41  ;;  %v2997_v50 = vpop.permute.xlu0 %2996 }
 0xdc1   : > { %2628 = vrot.lane.b32.xlu1 %v2614_v29, %s14541_s12  ;;  %2626 = vrot.lane.b32.xlu0 %v2613_v18, %s14541_s12  ;;  %v2616_v29 = vmul.f32 %v2605_v35, %v10471_v27  ;;  %v2617_v18 = vmul.f32 %v10367_v41, %v10476_v6  ;;  %v2738_v41 = vsel %vm14140_vm0, %v10251_v51, %v10375_v62 }
 0xdc2   : > { %v2868_v51 = vsel %vm876_vm2, %v10337_v17, %v10412_v3 }
 0xdc5   : > { %2695 = vrot.lane.b32.xlu1 %v2681_v48, %s14543_s17  ;;  %2693 = vrot.lane.b32.xlu0 %v2680_v9, %s14543_s17  ;;  %v2749_v48 = vmul.f32 %v2738_v41, %v10471_v27  ;;  %v2750_v9 = vmul.f32 %v10375_v62, %v10476_v6  ;;  %v2879_v62 = vmul.f32 %v2868_v51, %v10471_v27  ;;  %v3114_v51 = vld [vmem:[#allocation11 + $0x160] sm:$0xff] }
 0xdc9   : > { %2761 = vrot.lane.b32.xlu1 %v2747_v16, %s14329_s0  ;;  %2759 = vrot.lane.b32.xlu0 %v2746_v54, %s14329_s0  ;;  %v2815_v16 = vmul.f32 %v10385_v1, %v10476_v6  ;;  %v2933_v54 = vsel %vm13882_vm4, %v10351_v42, %v10440_v43  ;;  %v2945_v1 = vmul.f32 %v10440_v43, %v10476_v6 }
 0xdca   : > { %v2944_v17 = vmul.f32 %v2933_v54, %v10471_v27  ;;  %v3012_v42 = vmul.f32 %v2997_v50, %v10476_v6  ;;  %v3116_v54 = vld [vmem:[#allocation11 + $0x170] sm:$0xff] }
 0xdcd   : > { %2826 = vrot.lane.b32.xlu1 %v2812_v7, %s14297_s24  ;;  %2824 = vrot.lane.b32.xlu0 %v2811_v2, %s14297_s24  ;;  %v3000_v7 = vsel %vm2998_vm11, %v10393_v20, %v2997_v50  ;;  %v3052_v2 = vld [vmem:[#allocation11 + $0x158] sm:$0xff]  ;;  %vm14609_vm11 = vcmask 15360  }
 0xdce   : > { %v3011_v3 = vmul.f32 %v3000_v7, %v10471_v27  ;;  %vm14610_vm4 = vmmov %vm14609_vm11 }
 0xdd1   : > { %2891 = vrot.lane.b32.xlu1 %v2877_v28, %s14299_s14  ;;  %2889 = vrot.lane.b32.xlu0 %v2876_v26, %s14299_s14 }
 0xdd5   : > { %2956 = vrot.lane.b32.xlu1 %v2942_v49, %s14545_s30  ;;  %2954 = vrot.lane.b32.xlu0 %v2941_v47, %s14545_s30 }
 0xdd9   : > { %3023 = vrot.lane.b32.xlu1 %v3009_v15, %s14548_s21  ;;  %3021 = vrot.lane.b32.xlu0 %v3008_v53, %s14548_s21 }
 0xddd   : > { %2501 = vrot.lane.b32.xlu1 %v2485_v36, %s14413_s10  ;;  %2503 = vrot.lane.b32.xlu0 %v2486_v38, %s14413_s10 }
 0xde1   : > { %2566 = vrot.lane.b32.xlu1 %v2550_v24, %s14310_s11  ;;  %2568 = vrot.lane.b32.xlu0 %v2551_v10, %s14310_s11 }
 0xde5   : > { %2632 = vrot.lane.b32.xlu1 %v2616_v29, %s14541_s12  ;;  %2634 = vrot.lane.b32.xlu0 %v2617_v18, %s14541_s12 }
 0xde9   : > { %2699 = vrot.lane.b32.xlu1 %v2683_v0, %s14543_s17  ;;  %2701 = vrot.lane.b32.xlu0 %v2684_v22, %s14543_s17 }
 0xded   : > { %2765 = vrot.lane.b32.xlu1 %v2749_v48, %s14329_s0  ;;  %2767 = vrot.lane.b32.xlu0 %v2750_v9, %s14329_s0 }
 0xdf1   : > { %2830 = vrot.lane.b32.xlu1 %v2814_v4, %s14297_s24  ;;  %2832 = vrot.lane.b32.xlu0 %v2815_v16, %s14297_s24  ;;  %v3115_v16 = vld [vmem:[#allocation11 + $0x168] sm:$0xff]  ;;  %s14598_s24 = smov 2  }
 0xdf5   : > { %2895 = vrot.lane.b32.xlu1 %v2879_v62, %s14299_s14  ;;  %2897 = vrot.lane.b32.xlu0 %v2880_v61, %s14299_s14  ;;  %v3117_v61 = vld [vmem:[#allocation11 + $0x178] sm:$0xff] }
 0xdf9   : > { %2960 = vrot.lane.b32.xlu1 %v2944_v17, %s14545_s30  ;;  %2962 = vrot.lane.b32.xlu0 %v2945_v1, %s14545_s30 }
 0xdfd   : > { %3029 = vrot.lane.b32.xlu0 %v3012_v42, %s14548_s21  ;;  %3027 = vrot.lane.b32.xlu1 %v3011_v3, %s14548_s21  ;;  %s14597_s21 = smov 60  }
 0xe01   : > { %3063 = vrot.lane.b32.xlu0 %v3052_v2, %s14310_s11 }
 0xe1f   : > { %v10551_v23 = vpop.permute.xlu1 %3019 }
 0xe20   : > { %14553 = vst [vmem:[#allocation62_spill] sm:$0xff] %v10551_v23 }
 0xe23   : > { %v10553_v43 = vpop.permute.xlu0 %3025  ;;  %v3058_v20 = vpop.permute.xlu1 %3057 }
 0xe24   : > { %14554 = vst [vmem:[#allocation83_spill] sm:$0xff] %v10553_v43  ;;  %v3073_v26 = vmul.f32 0.0, %v3058_v20 }
 0xe26   : > { %3085 = vrot.lane.b32.xlu1 %v3073_v26, %s14351_s25 }
 0xe27   : > { %v3060_v28 = vpop.permute.xlu0 %3059  ;;  %v3062_v49 = vpop.permute.xlu1 %3061 }
 0xe28   : > { %v3065_v33 = vsel %vm1043_vm9, %v3058_v20, %v3060_v28  ;;  %v3075_v13 = vmul.f32 %v3060_v28, %v10400_v46  ;;  %v3076_v25 = vmul.f32 0.0, %v3062_v49 }
 0xe29   : > { %v3074_v47 = vmul.f32 %v3065_v33, %v10404_v44 }
 0xe2a   : > { %3089 = vrot.lane.b32.xlu1 %v3075_v13, %s14351_s25 }
 0xe2b   : > { %v10560_v53 = vpop.permute.xlu0 %2495  ;;  %3087 = vrot.lane.b32.xlu0 %v3074_v47, %s14351_s25  ;;  %v10600_v40 = vpop.permute.xlu1 %2497 }
 0xe2c   : > { %14555 = vst [vmem:[#allocation63_spill] sm:$0xff] %v10560_v53  ;;  %14573 = vst [vmem:[#allocation92_spill] sm:$0xff] %v10600_v40 }
 0xe2f   : > { %v10563_v15 = vpop.permute.xlu0 %2560  ;;  %3091 = vrot.lane.b32.xlu0 %v3076_v25, %s14351_s25  ;;  %v10606_v62 = vpop.permute.xlu1 %2562 }
 0xe30   : > { %14556 = vst [vmem:[#allocation64_spill] sm:$0xff] %v10563_v15  ;;  %14574 = vst [vmem:[#allocation95_spill] sm:$0xff] %v10606_v62 }
 0xe33   : > { %v10566_v55 = vpop.permute.xlu0 %2626  ;;  %v10611_v50 = vpop.permute.xlu1 %2628 }
 0xe34   : > { %14557 = vst [vmem:[#allocation65_spill] sm:$0xff] %v10566_v55  ;;  %14575 = vst [vmem:[#allocation30_spill] sm:$0xff] %v10611_v50 }
 0xe37   : > { %v10568_v60 = vpop.permute.xlu0 %2693  ;;  %v10613_v17 = vpop.permute.xlu1 %2695 }
 0xe38   : > { %14558 = vst [vmem:[#allocation67_spill] sm:$0xff] %v10568_v60  ;;  %14576 = vst [vmem:[#allocation34_spill] sm:$0xff] %v10613_v17 }
 0xe3b   : > { %v10570_v36 = vpop.permute.xlu0 %2759  ;;  %v10615_v1 = vpop.permute.xlu1 %2761 }
 0xe3c   : > { %14559 = vst [vmem:[#allocation85_spill] sm:$0xff] %v10570_v36  ;;  %14577 = vst [vmem:[#allocation80_spill] sm:$0xff] %v10615_v1 }
 0xe3f   : > { %v10572_v38 = vpop.permute.xlu0 %2824  ;;  %v10617_v7 = vpop.permute.xlu1 %2826 }
 0xe40   : > { %14560 = vst [vmem:[#allocation69_spill] sm:$0xff] %v10572_v38  ;;  %14578 = vst [vmem:[#allocation35_spill] sm:$0xff] %v10617_v7 }
 0xe43   : > { %v10574_v45 = vpop.permute.xlu0 %2889  ;;  %v10619_v3 = vpop.permute.xlu1 %2891 }
 0xe44   : > { %14561 = vst [vmem:[#allocation87_spill] sm:$0xff] %v10574_v45  ;;  %14579 = vst [vmem:[#allocation73_spill] sm:$0xff] %v10619_v3 }
 0xe47   : > { %v10576_v5 = vpop.permute.xlu0 %2954  ;;  %v10621_v42 = vpop.permute.xlu1 %2956 }
 0xe48   : > { %14562 = vst [vmem:[#allocation78_spill] sm:$0xff] %v10576_v5  ;;  %14580 = vst [vmem:[#allocation94_spill] sm:$0xff] %v10621_v42 }
 0xe4b   : > { %v10578_v24 = vpop.permute.xlu0 %3021  ;;  %v10623_v2 = vpop.permute.xlu1 %3023 }
 0xe4c   : > { %14563 = vst [vmem:[#allocation71_spill] sm:$0xff] %v10578_v24  ;;  %14581 = vst [vmem:[#allocation45_spill] sm:$0xff] %v10623_v2 }
 0xe4f   : > { %v10580_v10 = vpop.permute.xlu0 %2503  ;;  %v10625_v20 = vpop.permute.xlu1 %2501 }
 0xe50   : > { %14564 = vst [vmem:[#allocation91_spill] sm:$0xff] %v10580_v10  ;;  %14582 = vst [vmem:[#allocation75_spill] sm:$0xff] %v10625_v20 }
 0xe53   : > { %v10582_v57 = vpop.permute.xlu0 %2568  ;;  %v10627_v26 = vpop.permute.xlu1 %2566 }
 0xe54   : > { %14565 = vst [vmem:[#allocation29_spill] sm:$0xff] %v10582_v57  ;;  %14583 = vst [vmem:[#allocation97_spill] sm:$0xff] %v10627_v26 }
 0xe57   : > { %v10584_v35 = vpop.permute.xlu0 %2634  ;;  %v10629_v28 = vpop.permute.xlu1 %2632 }
 0xe58   : > { %14566 = vst [vmem:[#allocation56_spill] sm:$0xff] %v10584_v35  ;;  %14584 = vst [vmem:[#allocation54_spill] sm:$0xff] %v10629_v28 }
 0xe5b   : > { %v10586_v29 = vpop.permute.xlu0 %2701  ;;  %v10631_v33 = vpop.permute.xlu1 %2699 }
 0xe5c   : > { %14567 = vst [vmem:[#allocation32_spill] sm:$0xff] %v10586_v29  ;;  %14585 = vst [vmem:[#allocation82_spill] sm:$0xff] %v10631_v33 }
 0xe5f   : > { %v10588_v18 = vpop.permute.xlu0 %2767  ;;  %v10633_v13 = vpop.permute.xlu1 %2765 }
 0xe60   : > { %14568 = vst [vmem:[#allocation57_spill] sm:$0xff] %v10588_v18  ;;  %14586 = vst [vmem:[#allocation53_spill] sm:$0xff] %v10633_v13 }
 0xe63   : > { %v10590_v39 = vpop.permute.xlu0 %2832  ;;  %v10635_v47 = vpop.permute.xlu1 %2830 }
 0xe64   : > { %14569 = vst [vmem:[#allocation93_spill] sm:$0xff] %v10590_v39  ;;  %14587 = vst [vmem:[#allocation68_spill] sm:$0xff] %v10635_v47 }
 0xe67   : > { %v10592_v58 = vpop.permute.xlu0 %2897 }
 0xe68   : > { %14570 = vst [vmem:[#allocation51_spill] sm:$0xff] %v10592_v58  ;;  %v6000_v58 = vld [vmem:[#allocation11 + $0x710] sm:$0xff] }
 0xe6b   : > { %v10594_v0 = vpop.permute.xlu0 %2962 }
 0xe6c   : > { %14571 = vst [vmem:[#allocation33_spill] sm:$0xff] %v10594_v0 }
 0xe6f   : > { %v10596_v22 = vpop.permute.xlu0 %3029 }
 0xe70   : > { %14572 = vst [vmem:[#allocation66_spill] sm:$0xff] %v10596_v22 }
 0xe73   : > { %v3064_v41 = vpop.permute.xlu0 %3063 }
 0xe74   : > { %v3066_v48 = vsel %vm1043_vm9, %v3062_v49, %v3064_v41  ;;  %v3078_v9 = vmul.f32 %v3064_v41, %v10476_v6  ;;  %v10637_v49 = vpop.permute.xlu1 %2895 }
 0xe75   : > { %v3077_v4 = vmul.f32 %v3066_v48, %v10471_v27  ;;  %14588 = vst [vmem:[#allocation77_spill] sm:$0xff] %v10637_v49  ;;  %v6001_v49 = vld [vmem:[#allocation11 + $0x718] sm:$0xff] }
 0xe76   : > { %3095 = vrot.lane.b32.xlu0 %v3078_v9, %s14351_s25 }
 0xe77   : > { %3093 = vrot.lane.b32.xlu1 %v3077_v4, %s14351_s25 }
 0xe78   : > { %v10639_v25 = vpop.permute.xlu1 %2960 }
 0xe79   : > { %14589 = vst [vmem:[#allocation100_spill] sm:$0xff] %v10639_v25  ;;  %v3280_v25 = vld [vmem:[#allocation11 + $0x1c0] sm:$0xff] }
 0xe7a   : > { %3124 = vrot.lane.b32.xlu0 %v3115_v16, %s14413_s10 }
 0xe7b   : > { %3122 = vrot.lane.b32.xlu1 %v3114_v51, %s14413_s10 }
 0xe7c   : > { %v10641_v41 = vpop.permute.xlu1 %3027 }
 0xe7d   : > { %14590 = vst [vmem:[#allocation31_spill] sm:$0xff] %v10641_v41 }
 0xe7e   : > { %3128 = vrot.lane.b32.xlu0 %v3117_v61, %s14413_s10 }
 0xe7f   : > { %3126 = vrot.lane.b32.xlu1 %v3116_v54, %s14413_s10 }
 0xe98   : > { %v10645_v9 = vpop.permute.xlu1 %3085 }
 0xe99   : > { %14592 = vst [vmem:[#allocation72_spill] sm:$0xff] %v10645_v9 }
 0xe9c   : > { %v10649_v16 = vpop.permute.xlu1 %3089 }
 0xe9d   : > { %v10643_v48 = vpop.permute.xlu0 %3087  ;;  %14594 = vst [vmem:[#allocation79_spill] sm:$0xff] %v10649_v16 }
 0xe9e   : > { %14591 = vst [vmem:[#allocation96_spill] sm:$0xff] %v10643_v48  ;;  %v3181_v48 = vld [vmem:[#allocation11 + $0x190] sm:$0xff] }
 0xea1   : > { %v10647_v4 = vpop.permute.xlu0 %3091 }
 0xea2   : > { %14593 = vst [vmem:[#allocation70_spill] sm:$0xff] %v10647_v4 }
 0xee8   : > { %v10651_v51 = vpop.permute.xlu0 %3095 }
 0xee9   : > { %14595 = vst [vmem:[#allocation90_spill] sm:$0xff] %v10651_v51  ;;  %v10653_v61 = vpop.permute.xlu1 %3093 }
 0xeea   : > { %14596 = vst [vmem:[#allocation74_spill] sm:$0xff] %v10653_v61 }
 0xeec   : > { %v3125_v54 = vpop.permute.xlu0 %3124 }
 0xeed   : > { %v3123_v22 = vpop.permute.xlu1 %3122  ;;  %v3140_v4 = vmul.f32 %v3125_v54, %v10400_v46 }
 0xeee   : > { %v3130_v43 = vsel %vm909_vm10, %v3123_v22, %v3125_v54  ;;  %v3138_v0 = vmul.f32 0.0, %v3123_v22 }
 0xeef   : > { %v3139_v37 = vmul.f32 %v3130_v43, %v10404_v44  ;;  %v3179_v43 = vld [vmem:[#allocation11 + $0x180] sm:$0xff] }
 0xef0   : > { %v3129_v41 = vpop.permute.xlu0 %3128  ;;  %3150 = vrot.lane.b32.xlu1 %v3138_v0, %s14405_s6  ;;  %v3180_v0 = vld [vmem:[#allocation11 + $0x188] sm:$0xff] }
 0xef1   : > { %3152 = vrot.lane.b32.xlu0 %v3139_v37, %s14405_s6  ;;  %v3127_v9 = vpop.permute.xlu1 %3126  ;;  %v3143_v22 = vmul.f32 %v3129_v41, %v10476_v6  ;;  %v3183_v37 = vmul.f32 %v3179_v43, %v10404_v44  ;;  %v3184_v54 = vmul.f32 %v3180_v0, %v10400_v46 }
 0xef2   : > { %v3141_v16 = vmul.f32 0.0, %v3127_v9  ;;  %v3131_v51 = vsel %vm909_vm10, %v3127_v9, %v3129_v41  ;;  %v3182_v9 = vld [vmem:[#allocation11 + $0x198] sm:$0xff] }
 0xef3   : > { %v3142_v61 = vmul.f32 %v3131_v51, %v10471_v27  ;;  %v3186_v41 = vmul.f32 %v3182_v9, %v10476_v6  ;;  %v3215_v51 = vld [vmem:[#allocation11 + $0x1a8] sm:$0xff] }
 0xef4   : > { %3154 = vrot.lane.b32.xlu1 %v3140_v4, %s14405_s6  ;;  %v3185_v4 = vmul.f32 %v3181_v48, %v10471_v27 }
 0xef5   : > { %3156 = vrot.lane.b32.xlu0 %v3141_v16, %s14405_s6  ;;  %v3214_v16 = vld [vmem:[#allocation11 + $0x1a0] sm:$0xff] }
 0xef8   : > { %3158 = vrot.lane.b32.xlu1 %v3142_v61, %s14405_s6  ;;  %v3216_v61 = vld [vmem:[#allocation11 + $0x1b0] sm:$0xff] }
 0xef9   : > { %3160 = vrot.lane.b32.xlu0 %v3143_v22, %s14405_s6  ;;  %v3217_v22 = vld [vmem:[#allocation11 + $0x1b8] sm:$0xff] }
 0xefc   : > { %3191 = vrot.lane.b32.xlu1 %v3183_v37, %s14597_s21 }
 0xefd   : > { %3193 = vrot.lane.b32.xlu0 %v3184_v54, %s14597_s21 }
 0xf00   : > { %3195 = vrot.lane.b32.xlu1 %v3185_v4, %s14597_s21 }
 0xf01   : > { %3197 = vrot.lane.b32.xlu0 %v3186_v41, %s14597_s21 }
 0xf04   : > { %3222 = vrot.lane.b32.xlu1 %v3214_v16, %s14598_s24 }
 0xf05   : > { %3224 = vrot.lane.b32.xlu0 %v3215_v51, %s14598_s24 }
 0xf08   : > { %3226 = vrot.lane.b32.xlu1 %v3216_v61, %s14598_s24 }
 0xf09   : > { %3228 = vrot.lane.b32.xlu0 %v3217_v22, %s14598_s24  ;;  %s8438_s24 = smov 58  }
 0xf62   : > { %v10679_v43 = vpop.permute.xlu1 %3150 }
 0xf63   : > { %14599 = vst [vmem:[#allocation81_spill] sm:$0xff] %v10679_v43  ;;  %v10681_v48 = vpop.permute.xlu0 %3152 }
 0xf64   : > { %14600 = vst [vmem:[#allocation98_spill] sm:$0xff] %v10681_v48 }
 0xf66   : > { %v10683_v0 = vpop.permute.xlu1 %3154 }
 0xf67   : > { %14601 = vst [vmem:[#allocation86_spill] sm:$0xff] %v10683_v0  ;;  %v10685_v37 = vpop.permute.xlu0 %3156 }
 0xf68   : > { %14602 = vst [vmem:[#allocation50_spill] sm:$0xff] %v10685_v37 }
 0xf6a   : > { %v10687_v54 = vpop.permute.xlu1 %3158 }
 0xf6b   : > { %14603 = vst [vmem:[#allocation55_spill] sm:$0xff] %v10687_v54  ;;  %v10689_v9 = vpop.permute.xlu0 %3160 }
 0xf6c   : > { %14604 = vst [vmem:[#allocation84_spill] sm:$0xff] %v10689_v9 }
 0xf6e   : > { %v10691_v4 = vpop.permute.xlu1 %3191 }
 0xf6f   : > { %14605 = vst [vmem:[#allocation88_spill] sm:$0xff] %v10691_v4  ;;  %v10693_v41 = vpop.permute.xlu0 %3193 }
 0xf70   : > { %14606 = vst [vmem:[#allocation101_spill] sm:$0xff] %v10693_v41 }
 0xf72   : > { %v10695_v16 = vpop.permute.xlu1 %3195 }
 0xf73   : > { %14607 = vst [vmem:[#allocation76_spill] sm:$0xff] %v10695_v16  ;;  %v10697_v51 = vpop.permute.xlu0 %3197 }
 0xf74   : > { %14608 = vst [vmem:[#allocation99_spill] sm:$0xff] %v10697_v51 }
 0xf76   : > { %v3223_v61 = vpop.permute.xlu1 %3222 }
 0xf77   : > { %v3238_v22 = vmul.f32 %v3223_v61, %v10404_v44  ;;  %v3225_v43 = vpop.permute.xlu0 %3224 }
 0xf78   : > { %v3230_v0 = vsel %vm14609_vm11, %v3223_v61, %v3225_v43  ;;  %v3240_v9 = vmul.f32 0.0, %v3225_v43  ;;  %v3281_v61 = vld [vmem:[#allocation11 + $0x1c8] sm:$0xff]  ;;  %v3283_v43 = vld [vmem:[#allocation11 + $0x1d8] sm:$0xff]  ;;  %vm13899_vm11 = vcmask 228352  }
 0xf79   : > { %v3239_v37 = vmul.f32 %v3230_v0, %v10400_v46  ;;  %3250 = vrot.lane.b32.xlu1 %v3238_v22, %s8438_s24  ;;  %v3282_v0 = vld [vmem:[#allocation11 + $0x1d0] sm:$0xff] }
 0xf7a   : > { %v3227_v54 = vpop.permute.xlu1 %3226 }
 0xf7b   : > { %v3229_v48 = vpop.permute.xlu0 %3228  ;;  %3252 = vrot.lane.b32.xlu0 %v3239_v37, %s8438_s24  ;;  %v3241_v16 = vmul.f32 %v3227_v54, %v10471_v27 }
 0xf7c   : > { %v3231_v4 = vsel %vm14610_vm4, %v3227_v54, %v3229_v48  ;;  %v3243_v41 = vmul.f32 0.0, %v3229_v48  ;;  %vm3296_vm4 = vcmask 31744  }
 0xf7d   : > { %3254 = vrot.lane.b32.xlu1 %v3240_v9, %s8438_s24  ;;  %v3242_v51 = vmul.f32 %v3231_v4, %v10476_v6 }
 0xf7f   : > { %3256 = vrot.lane.b32.xlu0 %v3241_v16, %s8438_s24 }
 0xf81   : > { %3258 = vrot.lane.b32.xlu1 %v3242_v51, %s8438_s24 }
 0xf83   : > { %3260 = vrot.lane.b32.xlu0 %v3243_v41, %s8438_s24  ;;  %s8440_s24 = smov 56  }
 0xf85   : > { %3288 = vrot.lane.b32.xlu1 %v3280_v25, %s8439_s16 }
 0xf87   : > { %3290 = vrot.lane.b32.xlu0 %v3281_v61, %s8439_s16 }
 0xf89   : > { %3292 = vrot.lane.b32.xlu1 %v3282_v0, %s8439_s16 }
 0xf8b   : > { %3294 = vrot.lane.b32.xlu0 %v3283_v43, %s8439_s16  ;;  %s13896_s16 = smov 28  }
 0xfeb   : > { %v10705_v37 = vpop.permute.xlu1 %3250 }
 0xfec   : > { %14611 = vst [vmem:[#allocation103_spill] sm:$0xff] %v10705_v37 }
 0xfed   : > { %v10707_v22 = vpop.permute.xlu0 %3252 }
 0xfee   : > { %14612 = vst [vmem:[#allocation104_spill] sm:$0xff] %v10707_v22  ;;  %v3347_v22 = vld [vmem:[#allocation11 + $0x1e0] sm:$0xff] }
 0xfef   : > { %v10709_v54 = vpop.permute.xlu1 %3254 }
 0xff0   : > { %14613 = vst [vmem:[#allocation106_spill] sm:$0xff] %v10709_v54 }
 0xff1   : > { %v10711_v9 = vpop.permute.xlu0 %3256 }
 0xff2   : > { %14614 = vst [vmem:[#allocation28_spill] sm:$0xff] %v10711_v9 }
 0xff3   : > { %v10713_v48 = vpop.permute.xlu1 %3258 }
 0xff4   : > { %14615 = vst [vmem:[#allocation102_spill] sm:$0xff] %v10713_v48 }
 0xff5   : > { %v10715_v4 = vpop.permute.xlu0 %3260 }
 0xff6   : > { %14616 = vst [vmem:[#allocation110_spill] sm:$0xff] %v10715_v4 }
 0xff7   : > { %v3289_v41 = vpop.permute.xlu1 %3288 }
 0xff8   : > { %v3305_v25 = vmul.f32 %v3289_v41, %v10404_v44 }
 0xff9   : > { %v3291_v16 = vpop.permute.xlu0 %3290 }
 0xffa   : > { %v3297_v51 = vsel %vm3296_vm4, %v3289_v41, %v3291_v16  ;;  %3317 = vrot.lane.b32.xlu1 %v3305_v25, %s8440_s24  ;;  %v3307_v0 = vmul.f32 0.0, %v3291_v16  ;;  %v3348_v41 = vld [vmem:[#allocation11 + $0x1e8] sm:$0xff]  ;;  %v3349_v25 = vld [vmem:[#allocation11 + $0x1f0] sm:$0xff]  ;;  %v3350_v16 = vld [vmem:[#allocation11 + $0x1f8] sm:$0xff] }
 0xffb   : > { %v3306_v61 = vmul.f32 %v3297_v51, %v10400_v46  ;;  %v3293_v43 = vpop.permute.xlu1 %3292 }
 0xffc   : > { %v3308_v9 = vmul.f32 %v3293_v43, %v10471_v27 }
 0xffd   : > { %v3295_v37 = vpop.permute.xlu0 %3294  ;;  %3319 = vrot.lane.b32.xlu0 %v3306_v61, %s8440_s24 }
 0xffe   : > { %v3298_v54 = vsel %vm3296_vm4, %v3293_v43, %v3295_v37  ;;  %3321 = vrot.lane.b32.xlu1 %v3307_v0, %s8440_s24  ;;  %v3310_v48 = vmul.f32 0.0, %v3295_v37  ;;  %vm14631_vm4 = vcmask 244736  }
 0xfff   : > { %v3309_v4 = vmul.f32 %v3298_v54, %v10476_v6 }
0x1001   : > { %3323 = vrot.lane.b32.xlu0 %v3308_v9, %s8440_s24 }
0x1002   : > { %3325 = vrot.lane.b32.xlu1 %v3309_v4, %s8440_s24 }
0x1005   : > { %3327 = vrot.lane.b32.xlu0 %v3310_v48, %s8440_s24  ;;  %s14623_s24 = smov 32  }
0x1006   : > { %3355 = vrot.lane.b32.xlu1 %v3347_v22, %s13896_s16 }
0x1009   : > { %3357 = vrot.lane.b32.xlu0 %v3348_v41, %s13896_s16 }
0x100a   : > { %3359 = vrot.lane.b32.xlu1 %v3349_v25, %s13896_s16 }
0x100d   : > { %3361 = vrot.lane.b32.xlu0 %v3350_v16, %s13896_s16  ;;  %s14624_s16 = smov 30  }
0x106c   : > { %v10725_v51 = vpop.permute.xlu1 %3317 }
0x106d   : > { %14617 = vst [vmem:[#allocation109_spill] sm:$0xff] %v10725_v51 }
0x106f   : > { %v10727_v54 = vpop.permute.xlu0 %3319 }
0x1070   : > { %14618 = vst [vmem:[#allocation111_spill] sm:$0xff] %v10727_v54  ;;  %v10729_v37 = vpop.permute.xlu1 %3321  ;;  %v3676_v54 = vld [vmem:[#allocation11 + $0x280] sm:$0xff] }
0x1071   : > { %14619 = vst [vmem:[#allocation89_spill] sm:$0xff] %v10729_v37 }
0x1073   : > { %v10731_v9 = vpop.permute.xlu0 %3323 }
0x1074   : > { %14620 = vst [vmem:[#allocation107_spill] sm:$0xff] %v10731_v9  ;;  %v10733_v48 = vpop.permute.xlu1 %3325 }
0x1075   : > { %14621 = vst [vmem:[#allocation108_spill] sm:$0xff] %v10733_v48 }
0x1077   : > { %v10735_v22 = vpop.permute.xlu0 %3327 }
0x1078   : > { %14622 = vst [vmem:[#allocation116_spill] sm:$0xff] %v10735_v22  ;;  %v3356_v4 = vpop.permute.xlu1 %3355 }
0x1079   : > { %v3372_v61 = vmul.f32 %v3356_v4, %v10404_v44 }
0x107b   : > { %v3358_v0 = vpop.permute.xlu0 %3357  ;;  %3384 = vrot.lane.b32.xlu1 %v3372_v61, %s14623_s24  ;;  %v3414_v61 = vld [vmem:[#allocation11 + $0x208] sm:$0xff] }
0x107c   : > { %v3364_v43 = vsel %vm13899_vm11, %v3356_v4, %v3358_v0  ;;  %v3374_v41 = vmul.f32 0.0, %v3358_v0  ;;  %v3360_v16 = vpop.permute.xlu1 %3359  ;;  %v3413_v4 = vld [vmem:[#allocation11 + $0x200] sm:$0xff]  ;;  %v3415_v0 = vld [vmem:[#allocation11 + $0x210] sm:$0xff] }
0x107d   : > { %v3373_v25 = vmul.f32 %v3364_v43, %v10400_v46  ;;  %v3375_v9 = vmul.f32 %v3360_v16, %v10471_v27  ;;  %v3416_v43 = vld [vmem:[#allocation11 + $0x218] sm:$0xff] }
0x107f   : > { %v3362_v37 = vpop.permute.xlu0 %3361  ;;  %3388 = vrot.lane.b32.xlu1 %v3374_v41, %s14623_s24  ;;  %3386 = vrot.lane.b32.xlu0 %v3373_v25, %s14623_s24 }
0x1080   : > { %v3365_v22 = vsel %vm13899_vm11, %v3360_v16, %v3362_v37  ;;  %v3377_v51 = vmul.f32 0.0, %v3362_v37  ;;  %vm14632_vm11 = vmmov %vm14631_vm4 }
0x1081   : > { %v3376_v48 = vmul.f32 %v3365_v22, %v10476_v6 }
0x1083   : > { %3390 = vrot.lane.b32.xlu0 %v3375_v9, %s14623_s24  ;;  %3392 = vrot.lane.b32.xlu1 %v3376_v48, %s14623_s24 }
0x1087   : > { %3394 = vrot.lane.b32.xlu0 %v3377_v51, %s14623_s24  ;;  %3421 = vrot.lane.b32.xlu1 %v3413_v4, %s14624_s16 }
0x108b   : > { %3423 = vrot.lane.b32.xlu0 %v3414_v61, %s14624_s16  ;;  %3425 = vrot.lane.b32.xlu1 %v3415_v0, %s14624_s16 }
0x108f   : > { %3427 = vrot.lane.b32.xlu0 %v3416_v43, %s14624_s16 }
0x10ed   : > { %v10753_v22 = vpop.permute.xlu1 %3384 }
0x10ee   : > { %14625 = vst [vmem:[#allocation115_spill] sm:$0xff] %v10753_v22 }
0x10f1   : > { %v10755_v37 = vpop.permute.xlu0 %3386  ;;  %v10757_v9 = vpop.permute.xlu1 %3388 }
0x10f2   : > { %14626 = vst [vmem:[#allocation117_spill] sm:$0xff] %v10755_v37  ;;  %14627 = vst [vmem:[#allocation114_spill] sm:$0xff] %v10757_v9 }
0x10f5   : > { %v10759_v48 = vpop.permute.xlu0 %3390  ;;  %v10761_v51 = vpop.permute.xlu1 %3392 }
0x10f6   : > { %14628 = vst [vmem:[#allocation113_spill] sm:$0xff] %v10759_v48  ;;  %14629 = vst [vmem:[#allocation121_spill] sm:$0xff] %v10761_v51 }
0x10f9   : > { %v10763_v41 = vpop.permute.xlu0 %3394  ;;  %v3422_v25 = vpop.permute.xlu1 %3421 }
0x10fa   : > { %14630 = vst [vmem:[#allocation122_spill] sm:$0xff] %v10763_v41  ;;  %v3437_v16 = vmul.f32 %v3422_v25, %v10404_v44 }
0x10fc   : > { %3449 = vrot.lane.b32.xlu1 %v3437_v16, %s14624_s16  ;;  %v3479_v16 = vld [vmem:[#allocation11 + $0x228] sm:$0xff] }
0x10fd   : > { %v3424_v4 = vpop.permute.xlu0 %3423  ;;  %v3426_v22 = vpop.permute.xlu1 %3425 }
0x10fe   : > { %v3429_v61 = vsel %vm14631_vm4, %v3422_v25, %v3424_v4  ;;  %v3439_v0 = vmul.f32 0.0, %v3424_v4  ;;  %v3440_v41 = vmul.f32 %v3426_v22, %v10471_v27  ;;  %v3478_v25 = vld [vmem:[#allocation11 + $0x220] sm:$0xff]  ;;  %v3480_v4 = vld [vmem:[#allocation11 + $0x230] sm:$0xff] }
0x10ff   : > { %v3438_v43 = vmul.f32 %v3429_v61, %v10400_v46  ;;  %v3481_v61 = vld [vmem:[#allocation11 + $0x238] sm:$0xff] }
0x1100   : > { %3453 = vrot.lane.b32.xlu1 %v3439_v0, %s14624_s16 }
0x1101   : > { %v3428_v9 = vpop.permute.xlu0 %3427  ;;  %3451 = vrot.lane.b32.xlu0 %v3438_v43, %s14624_s16 }
0x1102   : > { %v3430_v48 = vsel %vm14632_vm11, %v3426_v22, %v3428_v9  ;;  %v3442_v37 = vmul.f32 0.0, %v3428_v9  ;;  %vm14640_vm11 = vcmask 261120  }
0x1103   : > { %v3441_v51 = vmul.f32 %v3430_v48, %v10476_v6  ;;  %vm14641_vm4 = vmmov %vm14640_vm11 }
0x1105   : > { %3455 = vrot.lane.b32.xlu0 %v3440_v41, %s14624_s16  ;;  %3457 = vrot.lane.b32.xlu1 %v3441_v51, %s14624_s16 }
0x1109   : > { %3459 = vrot.lane.b32.xlu0 %v3442_v37, %s14624_s16  ;;  %3486 = vrot.lane.b32.xlu1 %v3478_v25, %s14623_s24  ;;  %s14639_s16 = smov 28  }
0x110d   : > { %3488 = vrot.lane.b32.xlu0 %v3479_v16, %s14623_s24  ;;  %3490 = vrot.lane.b32.xlu1 %v3480_v4, %s14623_s24 }
0x1111   : > { %3492 = vrot.lane.b32.xlu0 %v3481_v61, %s14623_s24 }
0x116e   : > { %v10781_v22 = vpop.permute.xlu1 %3449 }
0x116f   : > { %14633 = vst [vmem:[#allocation105_spill] sm:$0xff] %v10781_v22 }
0x1172   : > { %v10783_v9 = vpop.permute.xlu1 %3453 }
0x1173   : > { %14634 = vst [vmem:[#allocation120_spill] sm:$0xff] %v10783_v9  ;;  %v10785_v48 = vpop.permute.xlu0 %3451 }
0x1174   : > { %14635 = vst [vmem:[#allocation119_spill] sm:$0xff] %v10785_v48 }
0x1177   : > { %v10787_v51 = vpop.permute.xlu0 %3455  ;;  %v10789_v37 = vpop.permute.xlu1 %3457 }
0x1178   : > { %14636 = vst [vmem:[#allocation112_spill] sm:$0xff] %v10787_v51  ;;  %14637 = vst [vmem:[#allocation123_spill] sm:$0xff] %v10789_v37 }
0x117b   : > { %v10791_v41 = vpop.permute.xlu0 %3459  ;;  %v3487_v0 = vpop.permute.xlu1 %3486 }
0x117c   : > { %14638 = vst [vmem:[#allocation124_spill] sm:$0xff] %v10791_v41  ;;  %v3502_v43 = vmul.f32 %v3487_v0, %v10404_v44 }
0x117e   : > { %3514 = vrot.lane.b32.xlu1 %v3502_v43, %s14639_s16  ;;  %v3544_v43 = vld [vmem:[#allocation11 + $0x248] sm:$0xff] }
0x117f   : > { %v3489_v25 = vpop.permute.xlu0 %3488  ;;  %v3491_v9 = vpop.permute.xlu1 %3490 }
0x1180   : > { %v3494_v16 = vsel %vm14640_vm11, %v3487_v0, %v3489_v25  ;;  %v3504_v4 = vmul.f32 0.0, %v3489_v25  ;;  %v3505_v41 = vmul.f32 %v3491_v9, %v10471_v27  ;;  %v3543_v0 = vld [vmem:[#allocation11 + $0x240] sm:$0xff]  ;;  %v3545_v25 = vld [vmem:[#allocation11 + $0x250] sm:$0xff]  ;;  %vm3625_vm11 = vcmask 293888  }
0x1181   : > { %v3503_v61 = vmul.f32 %v3494_v16, %v10400_v46  ;;  %v3546_v16 = vld [vmem:[#allocation11 + $0x258] sm:$0xff] }
0x1182   : > { %3518 = vrot.lane.b32.xlu1 %v3504_v4, %s14639_s16 }
0x1183   : > { %v3493_v22 = vpop.permute.xlu0 %3492  ;;  %3516 = vrot.lane.b32.xlu0 %v3503_v61, %s14639_s16 }
0x1184   : > { %v3495_v51 = vsel %vm14641_vm4, %v3491_v9, %v3493_v22  ;;  %v3507_v48 = vmul.f32 0.0, %v3493_v22  ;;  %vm3989_vm4 = vcmask 842752  }
0x1185   : > { %v3506_v37 = vmul.f32 %v3495_v51, %v10476_v6 }
0x1187   : > { %3520 = vrot.lane.b32.xlu0 %v3505_v41, %s14639_s16  ;;  %3522 = vrot.lane.b32.xlu1 %v3506_v37, %s14639_s16 }
0x118b   : > { %3524 = vrot.lane.b32.xlu0 %v3507_v48, %s14639_s16  ;;  %3551 = vrot.lane.b32.xlu1 %v3543_v0, %s14522_s8 }
0x118f   : > { %3553 = vrot.lane.b32.xlu0 %v3544_v43, %s14522_s8  ;;  %3555 = vrot.lane.b32.xlu1 %v3545_v25, %s14522_s8 }
0x1193   : > { %3557 = vrot.lane.b32.xlu0 %v3546_v16, %s14522_s8 }
0x11f0   : > { %v10809_v9 = vpop.permute.xlu1 %3514 }
0x11f1   : > { %14642 = vst [vmem:[#allocation118_spill] sm:$0xff] %v10809_v9 }
0x11f4   : > { %v10811_v22 = vpop.permute.xlu1 %3518 }
0x11f5   : > { %14643 = vst [vmem:[#allocation127_spill] sm:$0xff] %v10811_v22  ;;  %v10813_v51 = vpop.permute.xlu0 %3516 }
0x11f6   : > { %14644 = vst [vmem:[#allocation130_spill] sm:$0xff] %v10813_v51 }
0x11f9   : > { %v10815_v37 = vpop.permute.xlu0 %3520  ;;  %v10817_v48 = vpop.permute.xlu1 %3522 }
0x11fa   : > { %14645 = vst [vmem:[#allocation133_spill] sm:$0xff] %v10815_v37  ;;  %14646 = vst [vmem:[#allocation136_spill] sm:$0xff] %v10817_v48 }
0x11fd   : > { %v10819_v41 = vpop.permute.xlu0 %3524  ;;  %v3552_v4 = vpop.permute.xlu1 %3551 }
0x11fe   : > { %14647 = vst [vmem:[#allocation128_spill] sm:$0xff] %v10819_v41  ;;  %v3567_v61 = vmul.f32 %v3552_v4, %v10404_v44 }
0x1200   : > { %3579 = vrot.lane.b32.xlu1 %v3567_v61, %s13913_s9  ;;  %v3610_v61 = vld [vmem:[#allocation11 + $0x268] sm:$0xff] }
0x1201   : > { %v3554_v0 = vpop.permute.xlu0 %3553  ;;  %v3556_v22 = vpop.permute.xlu1 %3555 }
0x1202   : > { %v3559_v43 = vsel %vm2310_vm12, %v3552_v4, %v3554_v0  ;;  %v3569_v25 = vmul.f32 0.0, %v3554_v0  ;;  %v3570_v48 = vmul.f32 %v3556_v22, %v10471_v27  ;;  %v3609_v4 = vld [vmem:[#allocation11 + $0x260] sm:$0xff]  ;;  %v3611_v0 = vld [vmem:[#allocation11 + $0x270] sm:$0xff] }
0x1203   : > { %v3568_v16 = vmul.f32 %v3559_v43, %v10400_v46  ;;  %v3612_v43 = vld [vmem:[#allocation11 + $0x278] sm:$0xff] }
0x1204   : > { %3583 = vrot.lane.b32.xlu1 %v3569_v25, %s13913_s9 }
0x1205   : > { %v3558_v37 = vpop.permute.xlu0 %3557  ;;  %3581 = vrot.lane.b32.xlu0 %v3568_v16, %s13913_s9 }
0x1206   : > { %v3560_v41 = vsel %vm2310_vm12, %v3556_v22, %v3558_v37  ;;  %v3572_v51 = vmul.f32 0.0, %v3558_v37 }
0x1207   : > { %v3571_v9 = vmul.f32 %v3560_v41, %v10476_v6 }
0x1209   : > { %3585 = vrot.lane.b32.xlu0 %v3570_v48, %s13913_s9  ;;  %3587 = vrot.lane.b32.xlu1 %v3571_v9, %s13913_s9 }
0x120d   : > { %3589 = vrot.lane.b32.xlu0 %v3572_v51, %s13913_s9  ;;  %3617 = vrot.lane.b32.xlu1 %v3609_v4, %s8443_s29  ;;  %s8444_s9 = smov 24  }
0x1211   : > { %3619 = vrot.lane.b32.xlu0 %v3610_v61, %s8443_s29  ;;  %3621 = vrot.lane.b32.xlu1 %v3611_v0, %s8443_s29 }
0x1215   : > { %3623 = vrot.lane.b32.xlu0 %v3612_v43, %s8443_s29  ;;  %s14670_s29 = smov 66  }
0x1272   : > { %v10833_v25 = vpop.permute.xlu1 %3579 }
0x1273   : > { %14648 = vst [vmem:[#allocation131_spill] sm:$0xff] %v10833_v25 }
0x1276   : > { %v10835_v22 = vpop.permute.xlu1 %3583 }
0x1277   : > { %14649 = vst [vmem:[#allocation134_spill] sm:$0xff] %v10835_v22  ;;  %v10837_v37 = vpop.permute.xlu0 %3581 }
0x1278   : > { %14650 = vst [vmem:[#allocation137_spill] sm:$0xff] %v10837_v37 }
0x127b   : > { %v10839_v48 = vpop.permute.xlu0 %3585  ;;  %v10841_v9 = vpop.permute.xlu1 %3587 }
0x127c   : > { %14651 = vst [vmem:[#allocation138_spill] sm:$0xff] %v10839_v48  ;;  %14652 = vst [vmem:[#allocation139_spill] sm:$0xff] %v10841_v9 }
0x127f   : > { %v10843_v41 = vpop.permute.xlu0 %3589  ;;  %v3618_v51 = vpop.permute.xlu1 %3617 }
0x1280   : > { %14653 = vst [vmem:[#allocation140_spill] sm:$0xff] %v10843_v41  ;;  %v3634_v16 = vmul.f32 %v3618_v51, %v10404_v44 }
0x1282   : > { %3646 = vrot.lane.b32.xlu1 %v3634_v16, %s8444_s9  ;;  %v3678_v16 = vld [vmem:[#allocation11 + $0x290] sm:$0xff] }
0x1283   : > { %v3620_v4 = vpop.permute.xlu0 %3619  ;;  %v3622_v22 = vpop.permute.xlu1 %3621 }
0x1284   : > { %v3626_v61 = vsel %vm3625_vm11, %v3618_v51, %v3620_v4  ;;  %v3636_v0 = vmul.f32 0.0, %v3620_v4  ;;  %v3637_v9 = vmul.f32 %v3622_v22, %v10471_v27  ;;  %v3677_v51 = vld [vmem:[#allocation11 + $0x288] sm:$0xff]  ;;  %v3679_v4 = vld [vmem:[#allocation11 + $0x298] sm:$0xff] }
0x1285   : > { %v3635_v43 = vmul.f32 %v3626_v61, %v10400_v46  ;;  %v3713_v61 = vld [vmem:[#allocation11 + $0x2a0] sm:$0xff] }
0x1286   : > { %3650 = vrot.lane.b32.xlu1 %v3636_v0, %s8444_s9 }
0x1287   : > { %v3624_v25 = vpop.permute.xlu0 %3623  ;;  %3648 = vrot.lane.b32.xlu0 %v3635_v43, %s8444_s9 }
0x1288   : > { %v3627_v48 = vsel %vm3625_vm11, %v3622_v22, %v3624_v25  ;;  %v3639_v37 = vmul.f32 0.0, %v3624_v25  ;;  %v3714_v22 = vld [vmem:[#allocation11 + $0x2a8] sm:$0xff]  ;;  %v3715_v25 = vld [vmem:[#allocation11 + $0x2b0] sm:$0xff]  ;;  %vm4056_vm11 = vcmask 867328  }
0x1289   : > { %v3638_v41 = vmul.f32 %v3627_v48, %v10476_v6 }
0x128b   : > { %3652 = vrot.lane.b32.xlu0 %v3637_v9, %s8444_s9  ;;  %3654 = vrot.lane.b32.xlu1 %v3638_v41, %s8444_s9 }
0x128f   : > { %3656 = vrot.lane.b32.xlu0 %v3639_v37, %s8444_s9  ;;  %3684 = vrot.lane.b32.xlu1 %v3676_v54, %s14597_s21  ;;  %v3716_v37 = vld [vmem:[#allocation11 + $0x2b8] sm:$0xff]  ;;  %s14677_s9 = smov 68  }
0x1293   : > { %3686 = vrot.lane.b32.xlu0 %v3677_v51, %s14597_s21  ;;  %3688 = vrot.lane.b32.xlu1 %v3678_v16, %s14597_s21 }
0x1297   : > { %3690 = vrot.lane.b32.xlu0 %v3679_v4, %s14597_s21  ;;  %3721 = vrot.lane.b32.xlu1 %v3713_v61, %s14405_s6 }
0x129b   : > { %3723 = vrot.lane.b32.xlu0 %v3714_v22, %s14405_s6  ;;  %3725 = vrot.lane.b32.xlu1 %v3715_v25, %s14405_s6 }
0x129f   : > { %3727 = vrot.lane.b32.xlu0 %v3716_v37, %s14405_s6  ;;  %s8447_s6 = smov 106  }
0x12f4   : > { %v10857_v54 = vpop.permute.xlu1 %3646 }
0x12f5   : > { %14654 = vst [vmem:[#allocation141_spill] sm:$0xff] %v10857_v54 }
0x12f8   : > { %v10859_v48 = vpop.permute.xlu1 %3650 }
0x12f9   : > { %14655 = vst [vmem:[#allocation142_spill] sm:$0xff] %v10859_v48  ;;  %v10861_v9 = vpop.permute.xlu0 %3648 }
0x12fa   : > { %14656 = vst [vmem:[#allocation143_spill] sm:$0xff] %v10861_v9 }
0x12fd   : > { %v10863_v41 = vpop.permute.xlu0 %3652  ;;  %v10865_v0 = vpop.permute.xlu1 %3654 }
0x12fe   : > { %14657 = vst [vmem:[#allocation144_spill] sm:$0xff] %v10863_v41  ;;  %14658 = vst [vmem:[#allocation145_spill] sm:$0xff] %v10865_v0 }
0x1301   : > { %v10867_v43 = vpop.permute.xlu0 %3656  ;;  %v10869_v51 = vpop.permute.xlu1 %3684 }
0x1302   : > { %14659 = vst [vmem:[#allocation146_spill] sm:$0xff] %v10867_v43  ;;  %14660 = vst [vmem:[#allocation147_spill] sm:$0xff] %v10869_v51 }
0x1305   : > { %v10871_v16 = vpop.permute.xlu0 %3686  ;;  %v10873_v4 = vpop.permute.xlu1 %3688 }
0x1306   : > { %14661 = vst [vmem:[#allocation148_spill] sm:$0xff] %v10871_v16  ;;  %14662 = vst [vmem:[#allocation149_spill] sm:$0xff] %v10873_v4 }
0x1309   : > { %v10875_v61 = vpop.permute.xlu0 %3690  ;;  %v3722_v22 = vpop.permute.xlu1 %3721 }
0x130a   : > { %14663 = vst [vmem:[#allocation150_spill] sm:$0xff] %v10875_v61  ;;  %v3737_v25 = vmul.f32 %v3722_v22, %v10404_v44 }
0x130c   : > { %3749 = vrot.lane.b32.xlu1 %v3737_v25, %s14413_s10 }
0x130d   : > { %v3724_v37 = vpop.permute.xlu0 %3723  ;;  %v3726_v43 = vpop.permute.xlu1 %3725 }
0x130e   : > { %v3729_v41 = vsel %vm2209_vm13, %v3722_v22, %v3724_v37  ;;  %v3739_v48 = vmul.f32 0.0, %v3724_v37  ;;  %v3740_v61 = vmul.f32 %v3726_v43, %v10471_v27  ;;  %v3778_v22 = vld [vmem:[#allocation11 + $0x2c0] sm:$0xff] }
0x130f   : > { %v3738_v0 = vmul.f32 %v3729_v41, %v10400_v46  ;;  %v3780_v41 = vld [vmem:[#allocation11 + $0x2d0] sm:$0xff] }
0x1310   : > { %3753 = vrot.lane.b32.xlu1 %v3739_v48, %s14413_s10  ;;  %v3779_v48 = vld [vmem:[#allocation11 + $0x2c8] sm:$0xff] }
0x1311   : > { %v3728_v54 = vpop.permute.xlu0 %3727  ;;  %3751 = vrot.lane.b32.xlu0 %v3738_v0, %s14413_s10  ;;  %v3781_v0 = vld [vmem:[#allocation11 + $0x2d8] sm:$0xff] }
0x1312   : > { %v3730_v4 = vsel %vm2209_vm13, %v3726_v43, %v3728_v54  ;;  %v3742_v51 = vmul.f32 0.0, %v3728_v54 }
0x1313   : > { %v3741_v9 = vmul.f32 %v3730_v4, %v10476_v6 }
0x1315   : > { %3755 = vrot.lane.b32.xlu0 %v3740_v61, %s14413_s10  ;;  %3757 = vrot.lane.b32.xlu1 %v3741_v9, %s14413_s10 }
0x1319   : > { %3759 = vrot.lane.b32.xlu0 %v3742_v51, %s14413_s10  ;;  %3786 = vrot.lane.b32.xlu1 %v3778_v22, %s14351_s25  ;;  %s8448_s10 = smov 82  }
0x131d   : > { %3788 = vrot.lane.b32.xlu0 %v3779_v48, %s14351_s25  ;;  %3790 = vrot.lane.b32.xlu1 %v3780_v41, %s14351_s25 }
0x1321   : > { %3792 = vrot.lane.b32.xlu0 %v3781_v0, %s14351_s25  ;;  %s8446_s25 = smov 85  }
0x137e   : > { %v10893_v43 = vpop.permute.xlu1 %3749 }
0x137f   : > { %14664 = vst [vmem:[#allocation151_spill] sm:$0xff] %v10893_v43 }
0x1382   : > { %v10895_v54 = vpop.permute.xlu1 %3753 }
0x1383   : > { %14665 = vst [vmem:[#allocation152_spill] sm:$0xff] %v10895_v54  ;;  %v10897_v4 = vpop.permute.xlu0 %3751 }
0x1384   : > { %14666 = vst [vmem:[#allocation153_spill] sm:$0xff] %v10897_v4 }
0x1387   : > { %v10899_v9 = vpop.permute.xlu0 %3755  ;;  %v10901_v51 = vpop.permute.xlu1 %3757 }
0x1388   : > { %14667 = vst [vmem:[#allocation154_spill] sm:$0xff] %v10899_v9  ;;  %14668 = vst [vmem:[#allocation155_spill] sm:$0xff] %v10901_v51 }
0x138b   : > { %v10903_v61 = vpop.permute.xlu0 %3759  ;;  %v3787_v25 = vpop.permute.xlu1 %3786 }
0x138c   : > { %14669 = vst [vmem:[#allocation156_spill] sm:$0xff] %v10903_v61  ;;  %v3802_v37 = vmul.f32 %v3787_v25, %v10404_v44 }
0x138e   : > { %3814 = vrot.lane.b32.xlu1 %v3802_v37, %s14310_s11  ;;  %v3844_v37 = vld [vmem:[#allocation11 + $0x2e8] sm:$0xff] }
0x138f   : > { %v3789_v22 = vpop.permute.xlu0 %3788  ;;  %v3791_v54 = vpop.permute.xlu1 %3790 }
0x1390   : > { %v3794_v48 = vsel %vm2075_vm1, %v3787_v25, %v3789_v22  ;;  %v3804_v41 = vmul.f32 0.0, %v3789_v22  ;;  %v3805_v61 = vmul.f32 %v3791_v54, %v10471_v27  ;;  %v3843_v25 = vld [vmem:[#allocation11 + $0x2e0] sm:$0xff]  ;;  %v3845_v22 = vld [vmem:[#allocation11 + $0x2f0] sm:$0xff] }
0x1391   : > { %v3803_v0 = vmul.f32 %v3794_v48, %v10400_v46  ;;  %v3846_v48 = vld [vmem:[#allocation11 + $0x2f8] sm:$0xff] }
0x1392   : > { %3818 = vrot.lane.b32.xlu1 %v3804_v41, %s14310_s11 }
0x1393   : > { %v3793_v43 = vpop.permute.xlu0 %3792  ;;  %3816 = vrot.lane.b32.xlu0 %v3803_v0, %s14310_s11 }
0x1394   : > { %v3795_v9 = vsel %vm2075_vm1, %v3791_v54, %v3793_v43  ;;  %v3807_v4 = vmul.f32 0.0, %v3793_v43 }
0x1395   : > { %v3806_v51 = vmul.f32 %v3795_v9, %v10476_v6 }
0x1397   : > { %3820 = vrot.lane.b32.xlu0 %v3805_v61, %s14310_s11  ;;  %3822 = vrot.lane.b32.xlu1 %v3806_v51, %s14310_s11 }
0x139b   : > { %3824 = vrot.lane.b32.xlu0 %v3807_v4, %s14310_s11  ;;  %3851 = vrot.lane.b32.xlu1 %v3843_v25, %s14670_s29  ;;  %s8445_s11 = smov 103  }
0x139f   : > { %3853 = vrot.lane.b32.xlu0 %v3844_v37, %s14670_s29  ;;  %3855 = vrot.lane.b32.xlu1 %v3845_v22, %s14670_s29 }
0x13a3   : > { %3857 = vrot.lane.b32.xlu0 %v3846_v48, %s14670_s29 }
0x1400   : > { %v10921_v54 = vpop.permute.xlu1 %3814 }
0x1401   : > { %14671 = vst [vmem:[#allocation157_spill] sm:$0xff] %v10921_v54 }
0x1404   : > { %v10923_v43 = vpop.permute.xlu1 %3818 }
0x1405   : > { %14672 = vst [vmem:[#allocation158_spill] sm:$0xff] %v10923_v43  ;;  %v10925_v9 = vpop.permute.xlu0 %3816 }
0x1406   : > { %14673 = vst [vmem:[#allocation159_spill] sm:$0xff] %v10925_v9 }
0x1409   : > { %v10927_v51 = vpop.permute.xlu0 %3820  ;;  %v10929_v4 = vpop.permute.xlu1 %3822 }
0x140a   : > { %14674 = vst [vmem:[#allocation160_spill] sm:$0xff] %v10927_v51  ;;  %14675 = vst [vmem:[#allocation161_spill] sm:$0xff] %v10929_v4 }
0x140d   : > { %v10931_v61 = vpop.permute.xlu0 %3824  ;;  %v3852_v41 = vpop.permute.xlu1 %3851 }
0x140e   : > { %14676 = vst [vmem:[#allocation162_spill] sm:$0xff] %v10931_v61  ;;  %v3867_v0 = vmul.f32 %v3852_v41, %v10404_v44 }
0x1410   : > { %3879 = vrot.lane.b32.xlu1 %v3867_v0, %s14541_s12  ;;  %v3909_v0 = vld [vmem:[#allocation11 + $0x308] sm:$0xff] }
0x1411   : > { %v3854_v25 = vpop.permute.xlu0 %3853  ;;  %v3856_v43 = vpop.permute.xlu1 %3855 }
0x1412   : > { %v3859_v37 = vsel %vm2603_vm7, %v3852_v41, %v3854_v25  ;;  %v3869_v22 = vmul.f32 0.0, %v3854_v25  ;;  %v3870_v61 = vmul.f32 %v3856_v43, %v10471_v27  ;;  %v3908_v41 = vld [vmem:[#allocation11 + $0x300] sm:$0xff]  ;;  %v3910_v25 = vld [vmem:[#allocation11 + $0x310] sm:$0xff] }
0x1413   : > { %v3868_v48 = vmul.f32 %v3859_v37, %v10400_v46  ;;  %v3911_v37 = vld [vmem:[#allocation11 + $0x318] sm:$0xff] }
0x1414   : > { %3883 = vrot.lane.b32.xlu1 %v3869_v22, %s14541_s12 }
0x1415   : > { %v3858_v54 = vpop.permute.xlu0 %3857  ;;  %3881 = vrot.lane.b32.xlu0 %v3868_v48, %s14541_s12 }
0x1416   : > { %v3860_v51 = vsel %vm2603_vm7, %v3856_v43, %v3858_v54  ;;  %v3872_v9 = vmul.f32 0.0, %v3858_v54 }
0x1417   : > { %v3871_v4 = vmul.f32 %v3860_v51, %v10476_v6 }
0x1419   : > { %3885 = vrot.lane.b32.xlu0 %v3870_v61, %s14541_s12  ;;  %3887 = vrot.lane.b32.xlu1 %v3871_v4, %s14541_s12 }
0x141d   : > { %3889 = vrot.lane.b32.xlu0 %v3872_v9, %s14541_s12  ;;  %3916 = vrot.lane.b32.xlu1 %v3908_v41, %s14677_s9 }
0x1421   : > { %3918 = vrot.lane.b32.xlu0 %v3909_v0, %s14677_s9  ;;  %3920 = vrot.lane.b32.xlu1 %v3910_v25, %s14677_s9 }
0x1425   : > { %3922 = vrot.lane.b32.xlu0 %v3911_v37, %s14677_s9 }
0x1482   : > { %v10949_v43 = vpop.permute.xlu1 %3879 }
0x1483   : > { %14678 = vst [vmem:[#allocation163_spill] sm:$0xff] %v10949_v43 }
0x1486   : > { %v10951_v54 = vpop.permute.xlu1 %3883 }
0x1487   : > { %14679 = vst [vmem:[#allocation164_spill] sm:$0xff] %v10951_v54  ;;  %v10953_v51 = vpop.permute.xlu0 %3881 }
0x1488   : > { %14680 = vst [vmem:[#allocation165_spill] sm:$0xff] %v10953_v51 }
0x148b   : > { %v10955_v4 = vpop.permute.xlu0 %3885  ;;  %v10957_v9 = vpop.permute.xlu1 %3887 }
0x148c   : > { %14681 = vst [vmem:[#allocation166_spill] sm:$0xff] %v10955_v4  ;;  %14682 = vst [vmem:[#allocation167_spill] sm:$0xff] %v10957_v9 }
0x148f   : > { %v10959_v61 = vpop.permute.xlu0 %3889  ;;  %v3917_v22 = vpop.permute.xlu1 %3916 }
0x1490   : > { %14683 = vst [vmem:[#allocation168_spill] sm:$0xff] %v10959_v61  ;;  %v3932_v48 = vmul.f32 %v3917_v22, %v10404_v44 }
0x1492   : > { %3944 = vrot.lane.b32.xlu1 %v3932_v48, %s14543_s17  ;;  %v3974_v48 = vld [vmem:[#allocation11 + $0x328] sm:$0xff] }
0x1493   : > { %v3919_v41 = vpop.permute.xlu0 %3918  ;;  %v3921_v54 = vpop.permute.xlu1 %3920 }
0x1494   : > { %v3924_v0 = vsel %vm13990_vm6, %v3917_v22, %v3919_v41  ;;  %v3934_v25 = vmul.f32 0.0, %v3919_v41  ;;  %v3935_v61 = vmul.f32 %v3921_v54, %v10471_v27  ;;  %v3973_v22 = vld [vmem:[#allocation11 + $0x320] sm:$0xff]  ;;  %v3975_v41 = vld [vmem:[#allocation11 + $0x330] sm:$0xff] }
0x1495   : > { %v3933_v37 = vmul.f32 %v3924_v0, %v10400_v46  ;;  %v3976_v0 = vld [vmem:[#allocation11 + $0x338] sm:$0xff] }
0x1496   : > { %3948 = vrot.lane.b32.xlu1 %v3934_v25, %s14543_s17 }
0x1497   : > { %v3923_v43 = vpop.permute.xlu0 %3922  ;;  %3946 = vrot.lane.b32.xlu0 %v3933_v37, %s14543_s17 }
0x1498   : > { %v3925_v4 = vsel %vm13990_vm6, %v3921_v54, %v3923_v43  ;;  %v3937_v51 = vmul.f32 0.0, %v3923_v43  ;;  %vm14082_vm6 = vcmask 334848  }
0x1499   : > { %v3936_v9 = vmul.f32 %v3925_v4, %v10476_v6 }
0x149b   : > { %3950 = vrot.lane.b32.xlu0 %v3935_v61, %s14543_s17  ;;  %3952 = vrot.lane.b32.xlu1 %v3936_v9, %s14543_s17 }
0x149f   : > { %3954 = vrot.lane.b32.xlu0 %v3937_v51, %s14543_s17  ;;  %3981 = vrot.lane.b32.xlu1 %v3973_v22, %s8445_s11  ;;  %s8453_s17 = smov 121  }
0x14a3   : > { %3983 = vrot.lane.b32.xlu0 %v3974_v48, %s8445_s11  ;;  %3985 = vrot.lane.b32.xlu1 %v3975_v41, %s8445_s11 }
0x14a7   : > { %3987 = vrot.lane.b32.xlu0 %v3976_v0, %s8445_s11  ;;  %s8454_s11 = smov 67  }
0x1504   : > { %v10973_v25 = vpop.permute.xlu1 %3944 }
0x1505   : > { %14684 = vst [vmem:[#allocation169_spill] sm:$0xff] %v10973_v25 }
0x1508   : > { %v10975_v54 = vpop.permute.xlu1 %3948 }
0x1509   : > { %14685 = vst [vmem:[#allocation170_spill] sm:$0xff] %v10975_v54  ;;  %v10977_v43 = vpop.permute.xlu0 %3946 }
0x150a   : > { %14686 = vst [vmem:[#allocation171_spill] sm:$0xff] %v10977_v43 }
0x150d   : > { %v10979_v4 = vpop.permute.xlu0 %3950  ;;  %v10981_v9 = vpop.permute.xlu1 %3952 }
0x150e   : > { %14687 = vst [vmem:[#allocation172_spill] sm:$0xff] %v10979_v4  ;;  %14688 = vst [vmem:[#allocation173_spill] sm:$0xff] %v10981_v9 }
0x1511   : > { %v10983_v61 = vpop.permute.xlu0 %3954  ;;  %v3982_v51 = vpop.permute.xlu1 %3981 }
0x1512   : > { %14689 = vst [vmem:[#allocation174_spill] sm:$0xff] %v10983_v61  ;;  %v3998_v37 = vmul.f32 0.0, %v3982_v51  ;;  %v4040_v61 = vld [vmem:[#allocation11 + $0x340] sm:$0xff] }
0x1514   : > { %4010 = vrot.lane.b32.xlu1 %v3998_v37, %s8446_s25  ;;  %v4041_v37 = vld [vmem:[#allocation11 + $0x348] sm:$0xff] }
0x1515   : > { %v3984_v22 = vpop.permute.xlu0 %3983  ;;  %v3986_v0 = vpop.permute.xlu1 %3985 }
0x1516   : > { %v3990_v48 = vsel %vm3989_vm4, %v3982_v51, %v3984_v22  ;;  %v4000_v41 = vmul.f32 %v3984_v22, %v10404_v44  ;;  %v4001_v43 = vmul.f32 0.0, %v3986_v0  ;;  %v4042_v51 = vld [vmem:[#allocation11 + $0x350] sm:$0xff]  ;;  %v4043_v22 = vld [vmem:[#allocation11 + $0x358] sm:$0xff] }
0x1517   : > { %v3999_v25 = vmul.f32 0.0, %v3990_v48 }
0x1518   : > { %4014 = vrot.lane.b32.xlu1 %v4000_v41, %s8446_s25 }
0x1519   : > { %v3988_v54 = vpop.permute.xlu0 %3987  ;;  %4012 = vrot.lane.b32.xlu0 %v3999_v25, %s8446_s25 }
0x151a   : > { %v3991_v4 = vsel %vm3989_vm4, %v3986_v0, %v3988_v54  ;;  %v4003_v9 = vmul.f32 %v3988_v54, %v10471_v27 }
0x151b   : > { %v4002_v16 = vmul.f32 0.0, %v3991_v4 }
0x151d   : > { %4016 = vrot.lane.b32.xlu0 %v4001_v43, %s8446_s25  ;;  %4018 = vrot.lane.b32.xlu1 %v4002_v16, %s8446_s25 }
0x1521   : > { %4020 = vrot.lane.b32.xlu0 %v4003_v9, %s8446_s25  ;;  %4048 = vrot.lane.b32.xlu1 %v4040_v61, %s8447_s6  ;;  %s8455_s25 = smov 23  }
0x1525   : > { %4050 = vrot.lane.b32.xlu0 %v4041_v37, %s8447_s6  ;;  %4052 = vrot.lane.b32.xlu1 %v4042_v51, %s8447_s6 }
0x1529   : > { %4054 = vrot.lane.b32.xlu0 %v4043_v22, %s8447_s6  ;;  %s8456_s6 = smov 37  }
0x1586   : > { %v10987_v48 = vpop.permute.xlu1 %4010 }
0x1587   : > { %14690 = vst [vmem:[#allocation175_spill] sm:$0xff] %v10987_v48 }
0x158a   : > { %v10989_v25 = vpop.permute.xlu1 %4014 }
0x158b   : > { %14691 = vst [vmem:[#allocation176_spill] sm:$0xff] %v10989_v25  ;;  %v10991_v41 = vpop.permute.xlu0 %4012 }
0x158c   : > { %14692 = vst [vmem:[#allocation177_spill] sm:$0xff] %v10991_v41 }
0x158f   : > { %v10993_v43 = vpop.permute.xlu0 %4016  ;;  %v10995_v16 = vpop.permute.xlu1 %4018 }
0x1590   : > { %14693 = vst [vmem:[#allocation178_spill] sm:$0xff] %v10993_v43  ;;  %14694 = vst [vmem:[#allocation179_spill] sm:$0xff] %v10995_v16 }
0x1593   : > { %v10997_v54 = vpop.permute.xlu0 %4020  ;;  %v4049_v4 = vpop.permute.xlu1 %4048 }
0x1594   : > { %14695 = vst [vmem:[#allocation180_spill] sm:$0xff] %v10997_v54  ;;  %v4065_v9 = vmul.f32 0.0, %v4049_v4  ;;  %v4107_v54 = vld [vmem:[#allocation11 + $0x360] sm:$0xff] }
0x1596   : > { %4077 = vrot.lane.b32.xlu1 %v4065_v9, %s8448_s10  ;;  %v4108_v9 = vld [vmem:[#allocation11 + $0x368] sm:$0xff] }
0x1597   : > { %v4051_v61 = vpop.permute.xlu0 %4050  ;;  %v4053_v51 = vpop.permute.xlu1 %4052 }
0x1598   : > { %v4057_v0 = vsel %vm4056_vm11, %v4049_v4, %v4051_v61  ;;  %v4067_v37 = vmul.f32 %v4051_v61, %v10404_v44  ;;  %v4068_v48 = vmul.f32 0.0, %v4053_v51  ;;  %v4109_v4 = vld [vmem:[#allocation11 + $0x370] sm:$0xff]  ;;  %v4110_v61 = vld [vmem:[#allocation11 + $0x378] sm:$0xff] }
0x1599   : > { %v4066_v22 = vmul.f32 0.0, %v4057_v0 }
0x159a   : > { %4081 = vrot.lane.b32.xlu1 %v4067_v37, %s8448_s10 }
0x159b   : > { %v4055_v25 = vpop.permute.xlu0 %4054  ;;  %4079 = vrot.lane.b32.xlu0 %v4066_v22, %s8448_s10 }
0x159c   : > { %v4058_v43 = vsel %vm4056_vm11, %v4053_v51, %v4055_v25  ;;  %v4070_v16 = vmul.f32 %v4055_v25, %v10471_v27  ;;  %vm4253_vm11 = vcmask 941056  }
0x159d   : > { %v4069_v41 = vmul.f32 0.0, %v4058_v43 }
0x159f   : > { %4083 = vrot.lane.b32.xlu0 %v4068_v48, %s8448_s10  ;;  %4085 = vrot.lane.b32.xlu1 %v4069_v41, %s8448_s10 }
0x15a3   : > { %4087 = vrot.lane.b32.xlu0 %v4070_v16, %s8448_s10  ;;  %4115 = vrot.lane.b32.xlu1 %v4107_v54, %s14323_s13  ;;  %s14734_s10 = smov 26  }
0x15a7   : > { %4117 = vrot.lane.b32.xlu0 %v4108_v9, %s14323_s13  ;;  %4119 = vrot.lane.b32.xlu1 %v4109_v4, %s14323_s13 }
0x15ab   : > { %4121 = vrot.lane.b32.xlu0 %v4110_v61, %s14323_s13  ;;  %s8449_s13 = smov 115  }
0x1608   : > { %v11005_v0 = vpop.permute.xlu1 %4077 }
0x1609   : > { %14696 = vst [vmem:[#allocation181_spill] sm:$0xff] %v11005_v0 }
0x160c   : > { %v11007_v43 = vpop.permute.xlu1 %4081 }
0x160d   : > { %14697 = vst [vmem:[#allocation182_spill] sm:$0xff] %v11007_v43  ;;  %v11009_v48 = vpop.permute.xlu0 %4079 }
0x160e   : > { %14698 = vst [vmem:[#allocation183_spill] sm:$0xff] %v11009_v48 }
0x1611   : > { %v11011_v41 = vpop.permute.xlu0 %4083  ;;  %v11013_v25 = vpop.permute.xlu1 %4085 }
0x1612   : > { %14699 = vst [vmem:[#allocation184_spill] sm:$0xff] %v11011_v41  ;;  %14700 = vst [vmem:[#allocation185_spill] sm:$0xff] %v11013_v25 }
0x1615   : > { %v11015_v16 = vpop.permute.xlu0 %4087  ;;  %v4116_v54 = vpop.permute.xlu1 %4115 }
0x1616   : > { %14701 = vst [vmem:[#allocation186_spill] sm:$0xff] %v11015_v16  ;;  %v4131_v37 = vmul.f32 0.0, %v4116_v54 }
0x1618   : > { %4143 = vrot.lane.b32.xlu1 %v4131_v37, %s14301_s28  ;;  %v4172_v37 = vld [vmem:[#allocation11 + $0x380] sm:$0xff] }
0x1619   : > { %v4118_v51 = vpop.permute.xlu0 %4117  ;;  %v4120_v4 = vpop.permute.xlu1 %4119 }
0x161a   : > { %v4123_v22 = vsel %vm1308_vm14, %v4116_v54, %v4118_v51  ;;  %v4133_v9 = vmul.f32 %v4118_v51, %v10404_v44  ;;  %v4134_v41 = vmul.f32 0.0, %v4120_v4  ;;  %v4173_v51 = vld [vmem:[#allocation11 + $0x388] sm:$0xff] }
0x161b   : > { %v4132_v61 = vmul.f32 0.0, %v4123_v22  ;;  %v4174_v22 = vld [vmem:[#allocation11 + $0x390] sm:$0xff] }
0x161c   : > { %4147 = vrot.lane.b32.xlu1 %v4133_v9, %s14301_s28  ;;  %v4175_v9 = vld [vmem:[#allocation11 + $0x398] sm:$0xff] }
0x161d   : > { %v4122_v43 = vpop.permute.xlu0 %4121  ;;  %4145 = vrot.lane.b32.xlu0 %v4132_v61, %s14301_s28 }
0x161e   : > { %v4124_v25 = vsel %vm1308_vm14, %v4120_v4, %v4122_v43  ;;  %v4136_v54 = vmul.f32 %v4122_v43, %v10471_v27  ;;  %vm14708_vm14 = vcmask 916480  }
0x161f   : > { %v4135_v16 = vmul.f32 0.0, %v4124_v25  ;;  %vm14709_vm4 = vmmov %vm14708_vm14 }
0x1621   : > { %4149 = vrot.lane.b32.xlu0 %v4134_v41, %s14301_s28  ;;  %4151 = vrot.lane.b32.xlu1 %v4135_v16, %s14301_s28 }
0x1625   : > { %4153 = vrot.lane.b32.xlu0 %v4136_v54, %s14301_s28  ;;  %4180 = vrot.lane.b32.xlu1 %v4172_v37, %s14313_s23  ;;  %s8450_s28 = smov 73  }
0x1629   : > { %4182 = vrot.lane.b32.xlu0 %v4173_v51, %s14313_s23  ;;  %4184 = vrot.lane.b32.xlu1 %v4174_v22, %s14313_s23 }
0x162d   : > { %4186 = vrot.lane.b32.xlu0 %v4175_v9, %s14313_s23  ;;  %s8451_s23 = smov 118  }
0x168a   : > { %v11031_v25 = vpop.permute.xlu1 %4143 }
0x168b   : > { %14702 = vst [vmem:[#allocation187_spill] sm:$0xff] %v11031_v25 }
0x168e   : > { %v11033_v41 = vpop.permute.xlu1 %4147 }
0x168f   : > { %14703 = vst [vmem:[#allocation188_spill] sm:$0xff] %v11033_v41  ;;  %v11035_v16 = vpop.permute.xlu0 %4145 }
0x1690   : > { %14704 = vst [vmem:[#allocation189_spill] sm:$0xff] %v11035_v16 }
0x1693   : > { %v11037_v43 = vpop.permute.xlu0 %4149  ;;  %v11039_v4 = vpop.permute.xlu1 %4151 }
0x1694   : > { %14705 = vst [vmem:[#allocation190_spill] sm:$0xff] %v11037_v43  ;;  %14706 = vst [vmem:[#allocation191_spill] sm:$0xff] %v11039_v4 }
0x1697   : > { %v11041_v61 = vpop.permute.xlu0 %4153  ;;  %v4181_v37 = vpop.permute.xlu1 %4180 }
0x1698   : > { %14707 = vst [vmem:[#allocation192_spill] sm:$0xff] %v11041_v61  ;;  %v4196_v54 = vmul.f32 0.0, %v4181_v37 }
0x169a   : > { %4208 = vrot.lane.b32.xlu1 %v4196_v54, %s14304_s22  ;;  %v4237_v54 = vld [vmem:[#allocation11 + $0x3a0] sm:$0xff] }
0x169b   : > { %v4183_v51 = vpop.permute.xlu0 %4182  ;;  %v4185_v25 = vpop.permute.xlu1 %4184 }
0x169c   : > { %v4188_v22 = vsel %vm14708_vm14, %v4181_v37, %v4183_v51  ;;  %v4198_v9 = vmul.f32 %v4183_v51, %v10404_v44  ;;  %v4199_v43 = vmul.f32 0.0, %v4185_v25  ;;  %v4238_v51 = vld [vmem:[#allocation11 + $0x3a8] sm:$0xff]  ;;  %vm4320_vm14 = vcmask 965632  }
0x169d   : > { %v4197_v0 = vmul.f32 0.0, %v4188_v22  ;;  %v4239_v22 = vld [vmem:[#allocation11 + $0x3b0] sm:$0xff] }
0x169e   : > { %4212 = vrot.lane.b32.xlu1 %v4198_v9, %s14304_s22 }
0x169f   : > { %v4187_v41 = vpop.permute.xlu0 %4186  ;;  %4210 = vrot.lane.b32.xlu0 %v4197_v0, %s14304_s22  ;;  %v4240_v0 = vld [vmem:[#allocation11 + $0x3b8] sm:$0xff] }
0x16a0   : > { %v4189_v4 = vsel %vm14709_vm4, %v4185_v25, %v4187_v41  ;;  %v4201_v37 = vmul.f32 %v4187_v41, %v10471_v27  ;;  %vm4387_vm4 = vcmask 990208  }
0x16a1   : > { %v4200_v61 = vmul.f32 0.0, %v4189_v4 }
0x16a3   : > { %4214 = vrot.lane.b32.xlu0 %v4199_v43, %s14304_s22  ;;  %4216 = vrot.lane.b32.xlu1 %v4200_v61, %s14304_s22 }
0x16a7   : > { %4218 = vrot.lane.b32.xlu0 %v4201_v37, %s14304_s22  ;;  %4245 = vrot.lane.b32.xlu1 %v4237_v54, %s8449_s13  ;;  %s8452_s22 = smov 70  }
0x16ab   : > { %4247 = vrot.lane.b32.xlu0 %v4238_v51, %s8449_s13  ;;  %4249 = vrot.lane.b32.xlu1 %v4239_v22, %s8449_s13 }
0x16af   : > { %4251 = vrot.lane.b32.xlu0 %v4240_v0, %s8449_s13  ;;  %s8457_s13 = smov 29  }
0x170c   : > { %v11053_v9 = vpop.permute.xlu1 %4208 }
0x170d   : > { %14710 = vst [vmem:[#allocation193_spill] sm:$0xff] %v11053_v9 }
0x1710   : > { %v11055_v25 = vpop.permute.xlu1 %4212 }
0x1711   : > { %14711 = vst [vmem:[#allocation194_spill] sm:$0xff] %v11055_v25  ;;  %v11057_v43 = vpop.permute.xlu0 %4210 }
0x1712   : > { %14712 = vst [vmem:[#allocation195_spill] sm:$0xff] %v11057_v43 }
0x1715   : > { %v11059_v4 = vpop.permute.xlu0 %4214  ;;  %v11061_v61 = vpop.permute.xlu1 %4216 }
0x1716   : > { %14713 = vst [vmem:[#allocation196_spill] sm:$0xff] %v11059_v4  ;;  %14714 = vst [vmem:[#allocation197_spill] sm:$0xff] %v11061_v61 }
0x1719   : > { %v11063_v41 = vpop.permute.xlu0 %4218  ;;  %v4246_v37 = vpop.permute.xlu1 %4245 }
0x171a   : > { %14715 = vst [vmem:[#allocation198_spill] sm:$0xff] %v11063_v41  ;;  %v4262_v54 = vmul.f32 0.0, %v4246_v37  ;;  %v4304_v41 = vld [vmem:[#allocation11 + $0x3c0] sm:$0xff] }
0x171c   : > { %4274 = vrot.lane.b32.xlu1 %v4262_v54, %s8450_s28  ;;  %v4305_v54 = vld [vmem:[#allocation11 + $0x3c8] sm:$0xff] }
0x171d   : > { %v4248_v51 = vpop.permute.xlu0 %4247  ;;  %v4250_v9 = vpop.permute.xlu1 %4249 }
0x171e   : > { %v4254_v22 = vsel %vm4253_vm11, %v4246_v37, %v4248_v51  ;;  %v4264_v0 = vmul.f32 %v4248_v51, %v10404_v44  ;;  %v4265_v43 = vmul.f32 0.0, %v4250_v9  ;;  %v4306_v37 = vld [vmem:[#allocation11 + $0x3d0] sm:$0xff]  ;;  %v4307_v51 = vld [vmem:[#allocation11 + $0x3d8] sm:$0xff] }
0x171f   : > { %v4263_v16 = vmul.f32 0.0, %v4254_v22 }
0x1720   : > { %4278 = vrot.lane.b32.xlu1 %v4264_v0, %s8450_s28 }
0x1721   : > { %v4252_v25 = vpop.permute.xlu0 %4251  ;;  %4276 = vrot.lane.b32.xlu0 %v4263_v16, %s8450_s28 }
0x1722   : > { %v4255_v4 = vsel %vm4253_vm11, %v4250_v9, %v4252_v25  ;;  %v4267_v61 = vmul.f32 %v4252_v25, %v10471_v27  ;;  %vm4454_vm11 = vcmask 187392  }
0x1723   : > { %v4266_v48 = vmul.f32 0.0, %v4255_v4 }
0x1725   : > { %4280 = vrot.lane.b32.xlu0 %v4265_v43, %s8450_s28  ;;  %4282 = vrot.lane.b32.xlu1 %v4266_v48, %s8450_s28 }
0x1729   : > { %4284 = vrot.lane.b32.xlu0 %v4267_v61, %s8450_s28  ;;  %4312 = vrot.lane.b32.xlu1 %v4304_v41, %s8451_s23  ;;  %s8462_s28 = smov 41  }
0x172d   : > { %4314 = vrot.lane.b32.xlu0 %v4305_v54, %s8451_s23  ;;  %4316 = vrot.lane.b32.xlu1 %v4306_v37, %s8451_s23 }
0x1731   : > { %4318 = vrot.lane.b32.xlu0 %v4307_v51, %s8451_s23  ;;  %s8463_s23 = smov 19  }
0x178e   : > { %v11067_v22 = vpop.permute.xlu1 %4274 }
0x178f   : > { %14716 = vst [vmem:[#allocation199_spill] sm:$0xff] %v11067_v22 }
0x1792   : > { %v11069_v16 = vpop.permute.xlu1 %4278 }
0x1793   : > { %14717 = vst [vmem:[#allocation200_spill] sm:$0xff] %v11069_v16  ;;  %v11071_v9 = vpop.permute.xlu0 %4276 }
0x1794   : > { %14718 = vst [vmem:[#allocation201_spill] sm:$0xff] %v11071_v9 }
0x1797   : > { %v11073_v43 = vpop.permute.xlu0 %4280  ;;  %v11075_v48 = vpop.permute.xlu1 %4282 }
0x1798   : > { %14719 = vst [vmem:[#allocation202_spill] sm:$0xff] %v11073_v43  ;;  %14720 = vst [vmem:[#allocation203_spill] sm:$0xff] %v11075_v48 }
0x179b   : > { %v11077_v25 = vpop.permute.xlu0 %4284  ;;  %v4313_v4 = vpop.permute.xlu1 %4312 }
0x179c   : > { %14721 = vst [vmem:[#allocation204_spill] sm:$0xff] %v11077_v25  ;;  %v4329_v61 = vmul.f32 0.0, %v4313_v4  ;;  %v4371_v25 = vld [vmem:[#allocation11 + $0x3e0] sm:$0xff] }
0x179e   : > { %4341 = vrot.lane.b32.xlu1 %v4329_v61, %s8452_s22  ;;  %v4372_v61 = vld [vmem:[#allocation11 + $0x3e8] sm:$0xff] }
0x179f   : > { %v4315_v41 = vpop.permute.xlu0 %4314  ;;  %v4317_v37 = vpop.permute.xlu1 %4316 }
0x17a0   : > { %v4321_v0 = vsel %vm4320_vm14, %v4313_v4, %v4315_v41  ;;  %v4331_v54 = vmul.f32 %v4315_v41, %v10404_v44  ;;  %v4332_v22 = vmul.f32 0.0, %v4317_v37  ;;  %v4373_v4 = vld [vmem:[#allocation11 + $0x3f0] sm:$0xff]  ;;  %v4374_v41 = vld [vmem:[#allocation11 + $0x3f8] sm:$0xff] }
0x17a1   : > { %v4330_v51 = vmul.f32 0.0, %v4321_v0 }
0x17a2   : > { %4345 = vrot.lane.b32.xlu1 %v4331_v54, %s8452_s22 }
0x17a3   : > { %v4319_v16 = vpop.permute.xlu0 %4318  ;;  %4343 = vrot.lane.b32.xlu0 %v4330_v51, %s8452_s22 }
0x17a4   : > { %v4322_v43 = vsel %vm4320_vm14, %v4317_v37, %v4319_v16  ;;  %v4334_v48 = vmul.f32 %v4319_v16, %v10471_v27  ;;  %vm3591_vm14 = vcmask 211968  }
0x17a5   : > { %v4333_v9 = vmul.f32 0.0, %v4322_v43 }
0x17a7   : > { %4347 = vrot.lane.b32.xlu0 %v4332_v22, %s8452_s22  ;;  %4349 = vrot.lane.b32.xlu1 %v4333_v9, %s8452_s22 }
0x17ab   : > { %4351 = vrot.lane.b32.xlu0 %v4334_v48, %s8452_s22  ;;  %4379 = vrot.lane.b32.xlu1 %v4371_v25, %s8453_s17  ;;  %s8464_s22 = smov 71  }
0x17af   : > { %4381 = vrot.lane.b32.xlu0 %v4372_v61, %s8453_s17  ;;  %4383 = vrot.lane.b32.xlu1 %v4373_v4, %s8453_s17 }
0x17b3   : > { %4385 = vrot.lane.b32.xlu0 %v4374_v41, %s8453_s17  ;;  %s8465_s17 = smov 74  }
0x1810   : > { %v11081_v0 = vpop.permute.xlu1 %4341 }
0x1811   : > { %14722 = vst [vmem:[#allocation205_spill] sm:$0xff] %v11081_v0 }
0x1814   : > { %v11083_v54 = vpop.permute.xlu1 %4345 }
0x1815   : > { %14723 = vst [vmem:[#allocation206_spill] sm:$0xff] %v11083_v54  ;;  %v11085_v37 = vpop.permute.xlu0 %4343 }
0x1816   : > { %14724 = vst [vmem:[#allocation207_spill] sm:$0xff] %v11085_v37 }
0x1819   : > { %v11087_v22 = vpop.permute.xlu0 %4347  ;;  %v11089_v9 = vpop.permute.xlu1 %4349 }
0x181a   : > { %14725 = vst [vmem:[#allocation208_spill] sm:$0xff] %v11087_v22  ;;  %14726 = vst [vmem:[#allocation209_spill] sm:$0xff] %v11089_v9 }
0x181d   : > { %v11091_v16 = vpop.permute.xlu0 %4351  ;;  %v4380_v43 = vpop.permute.xlu1 %4379 }
0x181e   : > { %14727 = vst [vmem:[#allocation210_spill] sm:$0xff] %v11091_v16  ;;  %v4396_v48 = vmul.f32 0.0, %v4380_v43  ;;  %v4438_v16 = vld [vmem:[#allocation11 + $0x400] sm:$0xff] }
0x1820   : > { %4408 = vrot.lane.b32.xlu1 %v4396_v48, %s8454_s11  ;;  %v4439_v48 = vld [vmem:[#allocation11 + $0x408] sm:$0xff] }
0x1821   : > { %v4382_v25 = vpop.permute.xlu0 %4381  ;;  %v4384_v4 = vpop.permute.xlu1 %4383 }
0x1822   : > { %v4388_v51 = vsel %vm4387_vm4, %v4380_v43, %v4382_v25  ;;  %v4398_v61 = vmul.f32 %v4382_v25, %v10404_v44  ;;  %v4399_v0 = vmul.f32 0.0, %v4384_v4  ;;  %v4440_v43 = vld [vmem:[#allocation11 + $0x410] sm:$0xff]  ;;  %v4441_v25 = vld [vmem:[#allocation11 + $0x418] sm:$0xff] }
0x1823   : > { %v4397_v41 = vmul.f32 0.0, %v4388_v51 }
0x1824   : > { %4412 = vrot.lane.b32.xlu1 %v4398_v61, %s8454_s11 }
0x1825   : > { %v4386_v54 = vpop.permute.xlu0 %4385  ;;  %4410 = vrot.lane.b32.xlu0 %v4397_v41, %s8454_s11 }
0x1826   : > { %v4389_v22 = vsel %vm4387_vm4, %v4384_v4, %v4386_v54  ;;  %v4401_v9 = vmul.f32 %v4386_v54, %v10471_v27  ;;  %vm4586_vm4 = vcmask 236544  }
0x1827   : > { %v4400_v37 = vmul.f32 0.0, %v4389_v22 }
0x1829   : > { %4414 = vrot.lane.b32.xlu0 %v4399_v0, %s8454_s11  ;;  %4416 = vrot.lane.b32.xlu1 %v4400_v37, %s8454_s11 }
0x182d   : > { %4418 = vrot.lane.b32.xlu0 %v4401_v9, %s8454_s11  ;;  %4446 = vrot.lane.b32.xlu1 %v4438_v16, %s8455_s25  ;;  %s8466_s11 = smov 83  }
0x1831   : > { %4448 = vrot.lane.b32.xlu0 %v4439_v48, %s8455_s25  ;;  %4450 = vrot.lane.b32.xlu1 %v4440_v43, %s8455_s25 }
0x1835   : > { %4452 = vrot.lane.b32.xlu0 %v4441_v25, %s8455_s25  ;;  %s8469_s25 = smov 119  }
0x1892   : > { %v11095_v51 = vpop.permute.xlu1 %4408 }
0x1893   : > { %14728 = vst [vmem:[#allocation211_spill] sm:$0xff] %v11095_v51 }
0x1896   : > { %v11097_v61 = vpop.permute.xlu1 %4412 }
0x1897   : > { %14729 = vst [vmem:[#allocation212_spill] sm:$0xff] %v11097_v61  ;;  %v11099_v4 = vpop.permute.xlu0 %4410 }
0x1898   : > { %14730 = vst [vmem:[#allocation213_spill] sm:$0xff] %v11099_v4 }
0x189b   : > { %v11101_v0 = vpop.permute.xlu0 %4414  ;;  %v11103_v37 = vpop.permute.xlu1 %4416 }
0x189c   : > { %14731 = vst [vmem:[#allocation214_spill] sm:$0xff] %v11101_v0  ;;  %14732 = vst [vmem:[#allocation215_spill] sm:$0xff] %v11103_v37 }
0x189f   : > { %v11105_v54 = vpop.permute.xlu0 %4418  ;;  %v4447_v22 = vpop.permute.xlu1 %4446 }
0x18a0   : > { %14733 = vst [vmem:[#allocation216_spill] sm:$0xff] %v11105_v54  ;;  %v4463_v9 = vmul.f32 0.0, %v4447_v22  ;;  %v4505_v54 = vld [vmem:[#allocation11 + $0x420] sm:$0xff] }
0x18a2   : > { %4475 = vrot.lane.b32.xlu1 %v4463_v9, %s8456_s6  ;;  %v4507_v9 = vld [vmem:[#allocation11 + $0x430] sm:$0xff] }
0x18a3   : > { %v4449_v16 = vpop.permute.xlu0 %4448  ;;  %v4451_v43 = vpop.permute.xlu1 %4450 }
0x18a4   : > { %v4455_v41 = vsel %vm4454_vm11, %v4447_v22, %v4449_v16  ;;  %v4465_v48 = vmul.f32 %v4449_v16, %v10400_v46  ;;  %v4466_v0 = vmul.f32 0.0, %v4451_v43  ;;  %v4506_v22 = vld [vmem:[#allocation11 + $0x428] sm:$0xff]  ;;  %v4508_v16 = vld [vmem:[#allocation11 + $0x438] sm:$0xff] }
0x18a5   : > { %v4464_v25 = vmul.f32 %v4455_v41, %v10404_v44 }
0x18a6   : > { %4479 = vrot.lane.b32.xlu1 %v4465_v48, %s8456_s6 }
0x18a7   : > { %v4453_v61 = vpop.permute.xlu0 %4452  ;;  %4477 = vrot.lane.b32.xlu0 %v4464_v25, %s8456_s6 }
0x18a8   : > { %v4456_v51 = vsel %vm4454_vm11, %v4451_v43, %v4453_v61  ;;  %v4468_v4 = vmul.f32 %v4453_v61, %v10476_v6  ;;  %vm14753_vm11 = vcmask 261120  }
0x18a9   : > { %v4467_v37 = vmul.f32 %v4456_v51, %v10471_v27 }
0x18ab   : > { %4481 = vrot.lane.b32.xlu0 %v4466_v0, %s8456_s6  ;;  %4483 = vrot.lane.b32.xlu1 %v4467_v37, %s8456_s6 }
0x18af   : > { %4485 = vrot.lane.b32.xlu0 %v4468_v4, %s8456_s6  ;;  %4513 = vrot.lane.b32.xlu1 %v4505_v54, %s14734_s10  ;;  %s14773_s6 = smov 125  }
0x18b3   : > { %4515 = vrot.lane.b32.xlu0 %v4506_v22, %s14734_s10  ;;  %4517 = vrot.lane.b32.xlu1 %v4507_v9, %s14734_s10 }
0x18b7   : > { %4519 = vrot.lane.b32.xlu0 %v4508_v16, %s14734_s10  ;;  %s8470_s10 = smov 3  }
0x1914   : > { %v11115_v41 = vpop.permute.xlu1 %4475 }
0x1915   : > { %14735 = vst [vmem:[#allocation217_spill] sm:$0xff] %v11115_v41 }
0x1918   : > { %v11117_v51 = vpop.permute.xlu1 %4479 }
0x1919   : > { %14736 = vst [vmem:[#allocation218_spill] sm:$0xff] %v11117_v51  ;;  %v11119_v0 = vpop.permute.xlu0 %4477 }
0x191a   : > { %14737 = vst [vmem:[#allocation219_spill] sm:$0xff] %v11119_v0 }
0x191d   : > { %v11121_v37 = vpop.permute.xlu0 %4481  ;;  %v11123_v61 = vpop.permute.xlu1 %4483 }
0x191e   : > { %14738 = vst [vmem:[#allocation220_spill] sm:$0xff] %v11121_v37  ;;  %14739 = vst [vmem:[#allocation221_spill] sm:$0xff] %v11123_v61 }
0x1921   : > { %v11125_v4 = vpop.permute.xlu0 %4485  ;;  %v4514_v54 = vpop.permute.xlu1 %4513 }
0x1922   : > { %14740 = vst [vmem:[#allocation222_spill] sm:$0xff] %v11125_v4  ;;  %v4529_v48 = vmul.f32 0.0, %v4514_v54 }
0x1924   : > { %4541 = vrot.lane.b32.xlu1 %v4529_v48, %s14522_s8 }
0x1925   : > { %v4516_v43 = vpop.permute.xlu0 %4515  ;;  %v4518_v9 = vpop.permute.xlu1 %4517 }
0x1926   : > { %v4521_v25 = vsel %vm3591_vm14, %v4514_v54, %v4516_v43  ;;  %v4531_v22 = vmul.f32 %v4516_v43, %v10400_v46  ;;  %v4532_v61 = vmul.f32 0.0, %v4518_v9  ;;  %v4570_v54 = vld [vmem:[#allocation11 + $0x440] sm:$0xff]  ;;  %v4571_v43 = vld [vmem:[#allocation11 + $0x448] sm:$0xff] }
0x1927   : > { %v4530_v16 = vmul.f32 %v4521_v25, %v10404_v44  ;;  %v4572_v25 = vld [vmem:[#allocation11 + $0x450] sm:$0xff] }
0x1928   : > { %4545 = vrot.lane.b32.xlu1 %v4531_v22, %s14522_s8  ;;  %v4573_v22 = vld [vmem:[#allocation11 + $0x458] sm:$0xff] }
0x1929   : > { %v4520_v37 = vpop.permute.xlu0 %4519  ;;  %4543 = vrot.lane.b32.xlu0 %v4530_v16, %s14522_s8 }
0x192a   : > { %v4522_v4 = vsel %vm3591_vm14, %v4518_v9, %v4520_v37  ;;  %v4534_v48 = vmul.f32 %v4520_v37, %v10476_v6 }
0x192b   : > { %v4533_v51 = vmul.f32 %v4522_v4, %v10471_v27 }
0x192d   : > { %4547 = vrot.lane.b32.xlu0 %v4532_v61, %s14522_s8  ;;  %4549 = vrot.lane.b32.xlu1 %v4533_v51, %s14522_s8 }
0x1931   : > { %4551 = vrot.lane.b32.xlu0 %v4534_v48, %s14522_s8  ;;  %4578 = vrot.lane.b32.xlu1 %v4570_v54, %s8457_s13  ;;  %s8459_s8 = smov 25  }
0x1935   : > { %4580 = vrot.lane.b32.xlu0 %v4571_v43, %s8457_s13  ;;  %4582 = vrot.lane.b32.xlu1 %v4572_v25, %s8457_s13 }
0x1939   : > { %4584 = vrot.lane.b32.xlu0 %v4573_v22, %s8457_s13  ;;  %s8472_s13 = smov 9  }
0x1996   : > { %v11139_v9 = vpop.permute.xlu1 %4541 }
0x1997   : > { %14741 = vst [vmem:[#allocation223_spill] sm:$0xff] %v11139_v9 }
0x199a   : > { %v11141_v4 = vpop.permute.xlu1 %4545 }
0x199b   : > { %14742 = vst [vmem:[#allocation224_spill] sm:$0xff] %v11141_v4  ;;  %v11143_v61 = vpop.permute.xlu0 %4543 }
0x199c   : > { %14743 = vst [vmem:[#allocation225_spill] sm:$0xff] %v11143_v61 }
0x199f   : > { %v11145_v51 = vpop.permute.xlu0 %4547  ;;  %v11147_v16 = vpop.permute.xlu1 %4549 }
0x19a0   : > { %14744 = vst [vmem:[#allocation226_spill] sm:$0xff] %v11145_v51  ;;  %14745 = vst [vmem:[#allocation227_spill] sm:$0xff] %v11147_v16 }
0x19a3   : > { %v11149_v37 = vpop.permute.xlu0 %4551  ;;  %v4579_v48 = vpop.permute.xlu1 %4578 }
0x19a4   : > { %14746 = vst [vmem:[#allocation228_spill] sm:$0xff] %v11149_v37  ;;  %v4595_v54 = vmul.f32 0.0, %v4579_v48 }
0x19a6   : > { %4607 = vrot.lane.b32.xlu1 %v4595_v54, %s14352_s3  ;;  %v4636_v54 = vld [vmem:[#allocation11 + $0x460] sm:$0xff] }
0x19a7   : > { %v4581_v43 = vpop.permute.xlu0 %4580  ;;  %v4583_v9 = vpop.permute.xlu1 %4582 }
0x19a8   : > { %v4587_v25 = vsel %vm4586_vm4, %v4579_v48, %v4581_v43  ;;  %v4597_v22 = vmul.f32 %v4581_v43, %v10400_v46  ;;  %v4598_v51 = vmul.f32 0.0, %v4583_v9  ;;  %v4637_v43 = vld [vmem:[#allocation11 + $0x468] sm:$0xff] }
0x19a9   : > { %v4596_v4 = vmul.f32 %v4587_v25, %v10404_v44  ;;  %v4638_v25 = vld [vmem:[#allocation11 + $0x470] sm:$0xff] }
0x19aa   : > { %4611 = vrot.lane.b32.xlu1 %v4597_v22, %s14352_s3 }
0x19ab   : > { %v4585_v61 = vpop.permute.xlu0 %4584  ;;  %4609 = vrot.lane.b32.xlu0 %v4596_v4, %s14352_s3 }
0x19ac   : > { %v4588_v16 = vsel %vm4586_vm4, %v4583_v9, %v4585_v61  ;;  %v4600_v48 = vmul.f32 %v4585_v61, %v10476_v6  ;;  %v4639_v9 = vld [vmem:[#allocation11 + $0x478] sm:$0xff]  ;;  %vm14754_vm4 = vmmov %vm14753_vm11 }
0x19ad   : > { %v4599_v37 = vmul.f32 %v4588_v16, %v10471_v27 }
0x19af   : > { %4613 = vrot.lane.b32.xlu0 %v4598_v51, %s14352_s3  ;;  %4615 = vrot.lane.b32.xlu1 %v4599_v37, %s14352_s3 }
0x19b3   : > { %4617 = vrot.lane.b32.xlu0 %v4600_v48, %s14352_s3  ;;  %4644 = vrot.lane.b32.xlu1 %v4636_v54, %s14623_s24  ;;  %s14036_s3 = smov 35  }
0x19b7   : > { %4646 = vrot.lane.b32.xlu0 %v4637_v43, %s14623_s24  ;;  %4648 = vrot.lane.b32.xlu1 %v4638_v25, %s14623_s24 }
0x19bb   : > { %4650 = vrot.lane.b32.xlu0 %v4639_v9, %s14623_s24  ;;  %s14043_s24 = smov 38  }
0x1a18   : > { %v11165_v4 = vpop.permute.xlu1 %4607 }
0x1a19   : > { %14747 = vst [vmem:[#allocation229_spill] sm:$0xff] %v11165_v4 }
0x1a1c   : > { %v11167_v51 = vpop.permute.xlu1 %4611 }
0x1a1d   : > { %14748 = vst [vmem:[#allocation230_spill] sm:$0xff] %v11167_v51  ;;  %v11169_v16 = vpop.permute.xlu0 %4609 }
0x1a1e   : > { %14749 = vst [vmem:[#allocation231_spill] sm:$0xff] %v11169_v16 }
0x1a21   : > { %v11171_v61 = vpop.permute.xlu0 %4613  ;;  %v11173_v37 = vpop.permute.xlu1 %4615 }
0x1a22   : > { %14750 = vst [vmem:[#allocation232_spill] sm:$0xff] %v11171_v61  ;;  %14751 = vst [vmem:[#allocation233_spill] sm:$0xff] %v11173_v37 }
0x1a25   : > { %v11175_v22 = vpop.permute.xlu0 %4617  ;;  %v4645_v54 = vpop.permute.xlu1 %4644 }
0x1a26   : > { %14752 = vst [vmem:[#allocation234_spill] sm:$0xff] %v11175_v22  ;;  %v4660_v48 = vmul.f32 0.0, %v4645_v54 }
0x1a28   : > { %4672 = vrot.lane.b32.xlu1 %v4660_v48, %s14639_s16 }
0x1a29   : > { %v4647_v43 = vpop.permute.xlu0 %4646  ;;  %v4649_v4 = vpop.permute.xlu1 %4648 }
0x1a2a   : > { %v4652_v25 = vsel %vm14753_vm11, %v4645_v54, %v4647_v43  ;;  %v4662_v9 = vmul.f32 %v4647_v43, %v10400_v46  ;;  %v4663_v61 = vmul.f32 0.0, %v4649_v4  ;;  %v4701_v54 = vld [vmem:[#allocation11 + $0x480] sm:$0xff]  ;;  %v4702_v43 = vld [vmem:[#allocation11 + $0x488] sm:$0xff]  ;;  %vm14042_vm11 = vcmask 285696  }
0x1a2b   : > { %v4661_v51 = vmul.f32 %v4652_v25, %v10404_v44  ;;  %v4703_v25 = vld [vmem:[#allocation11 + $0x490] sm:$0xff] }
0x1a2c   : > { %4676 = vrot.lane.b32.xlu1 %v4662_v9, %s14639_s16 }
0x1a2d   : > { %v4651_v16 = vpop.permute.xlu0 %4650  ;;  %4674 = vrot.lane.b32.xlu0 %v4661_v51, %s14639_s16 }
0x1a2e   : > { %v4653_v22 = vsel %vm14754_vm4, %v4649_v4, %v4651_v16  ;;  %v4665_v48 = vmul.f32 %v4651_v16, %v10476_v6  ;;  %v4704_v4 = vld [vmem:[#allocation11 + $0x498] sm:$0xff]  ;;  %vm14078_vm4 = vcmask 310272  }
0x1a2f   : > { %v4664_v37 = vmul.f32 %v4653_v22, %v10471_v27 }
0x1a31   : > { %4678 = vrot.lane.b32.xlu0 %v4663_v61, %s14639_s16  ;;  %4680 = vrot.lane.b32.xlu1 %v4664_v37, %s14639_s16 }
0x1a35   : > { %4682 = vrot.lane.b32.xlu0 %v4665_v48, %s14639_s16  ;;  %4709 = vrot.lane.b32.xlu1 %v4701_v54, %s14036_s3  ;;  %s8461_s16 = smov 22  }
0x1a39   : > { %4711 = vrot.lane.b32.xlu0 %v4702_v43, %s14036_s3  ;;  %4713 = vrot.lane.b32.xlu1 %v4703_v25, %s14036_s3 }
0x1a3d   : > { %4715 = vrot.lane.b32.xlu0 %v4704_v4, %s14036_s3  ;;  %s8485_s3 = smov 10  }
0x1a9a   : > { %v11193_v51 = vpop.permute.xlu1 %4672 }
0x1a9b   : > { %14755 = vst [vmem:[#allocation235_spill] sm:$0xff] %v11193_v51 }
0x1a9e   : > { %v11195_v61 = vpop.permute.xlu1 %4676 }
0x1a9f   : > { %14756 = vst [vmem:[#allocation236_spill] sm:$0xff] %v11195_v61  ;;  %v11197_v37 = vpop.permute.xlu0 %4674 }
0x1aa0   : > { %14757 = vst [vmem:[#allocation237_spill] sm:$0xff] %v11197_v37 }
0x1aa3   : > { %v11199_v16 = vpop.permute.xlu0 %4678  ;;  %v11201_v22 = vpop.permute.xlu1 %4680 }
0x1aa4   : > { %14758 = vst [vmem:[#allocation238_spill] sm:$0xff] %v11199_v16  ;;  %14759 = vst [vmem:[#allocation239_spill] sm:$0xff] %v11201_v22 }
0x1aa7   : > { %v11203_v9 = vpop.permute.xlu0 %4682  ;;  %v4710_v54 = vpop.permute.xlu1 %4709 }
0x1aa8   : > { %14760 = vst [vmem:[#allocation240_spill] sm:$0xff] %v11203_v9  ;;  %v4726_v48 = vmul.f32 0.0, %v4710_v54 }
0x1aaa   : > { %4738 = vrot.lane.b32.xlu1 %v4726_v48, %s8459_s8 }
0x1aab   : > { %v4712_v43 = vpop.permute.xlu0 %4711  ;;  %v4714_v61 = vpop.permute.xlu1 %4713 }
0x1aac   : > { %v4718_v25 = vsel %vm14042_vm11, %v4710_v54, %v4712_v43  ;;  %v4728_v4 = vmul.f32 %v4712_v43, %v10400_v46  ;;  %v4729_v9 = vmul.f32 0.0, %v4714_v61  ;;  %v4768_v54 = vld [vmem:[#allocation11 + $0x4a0] sm:$0xff]  ;;  %v4769_v43 = vld [vmem:[#allocation11 + $0x4a8] sm:$0xff] }
0x1aad   : > { %v4727_v51 = vmul.f32 %v4718_v25, %v10404_v44  ;;  %v4770_v25 = vld [vmem:[#allocation11 + $0x4b0] sm:$0xff] }
0x1aae   : > { %4742 = vrot.lane.b32.xlu1 %v4728_v4, %s8459_s8 }
0x1aaf   : > { %v4716_v16 = vpop.permute.xlu0 %4715  ;;  %4740 = vrot.lane.b32.xlu0 %v4727_v51, %s8459_s8  ;;  %v4771_v51 = vld [vmem:[#allocation11 + $0x4b8] sm:$0xff] }
0x1ab0   : > { %v4719_v22 = vsel %vm14042_vm11, %v4714_v61, %v4716_v16  ;;  %v4731_v48 = vmul.f32 %v4716_v16, %v10476_v6  ;;  %vm4918_vm11 = vcmask 580608  }
0x1ab1   : > { %v4730_v37 = vmul.f32 %v4719_v22, %v10471_v27 }
0x1ab3   : > { %4744 = vrot.lane.b32.xlu0 %v4729_v9, %s8459_s8  ;;  %4746 = vrot.lane.b32.xlu1 %v4730_v37, %s8459_s8 }
0x1ab7   : > { %4748 = vrot.lane.b32.xlu0 %v4731_v48, %s8459_s8  ;;  %4776 = vrot.lane.b32.xlu1 %v4768_v54, %s14043_s24 }
0x1abb   : > { %4778 = vrot.lane.b32.xlu0 %v4769_v43, %s14043_s24  ;;  %4780 = vrot.lane.b32.xlu1 %v4770_v25, %s14043_s24 }
0x1abf   : > { %4782 = vrot.lane.b32.xlu0 %v4771_v51, %s14043_s24  ;;  %s8486_s24 = smov 13  }
0x1b1c   : > { %v11221_v61 = vpop.permute.xlu1 %4738 }
0x1b1d   : > { %14761 = vst [vmem:[#allocation241_spill] sm:$0xff] %v11221_v61 }
0x1b20   : > { %v11223_v37 = vpop.permute.xlu1 %4742 }
0x1b21   : > { %14762 = vst [vmem:[#allocation242_spill] sm:$0xff] %v11223_v37  ;;  %v11225_v22 = vpop.permute.xlu0 %4740 }
0x1b22   : > { %14763 = vst [vmem:[#allocation243_spill] sm:$0xff] %v11225_v22 }
0x1b25   : > { %v11227_v16 = vpop.permute.xlu0 %4744  ;;  %v11229_v9 = vpop.permute.xlu1 %4746 }
0x1b26   : > { %14764 = vst [vmem:[#allocation244_spill] sm:$0xff] %v11227_v16  ;;  %14765 = vst [vmem:[#allocation245_spill] sm:$0xff] %v11229_v9 }
0x1b29   : > { %v11231_v4 = vpop.permute.xlu0 %4748  ;;  %v4777_v54 = vpop.permute.xlu1 %4776 }
0x1b2a   : > { %14766 = vst [vmem:[#allocation246_spill] sm:$0xff] %v11231_v4  ;;  %v4793_v48 = vmul.f32 0.0, %v4777_v54 }
0x1b2c   : > { %4805 = vrot.lane.b32.xlu1 %v4793_v48, %s8461_s16 }
0x1b2d   : > { %v4779_v43 = vpop.permute.xlu0 %4778  ;;  %v4781_v37 = vpop.permute.xlu1 %4780 }
0x1b2e   : > { %v4785_v25 = vsel %vm14078_vm4, %v4777_v54, %v4779_v43  ;;  %v4795_v51 = vmul.f32 %v4779_v43, %v10400_v46  ;;  %v4796_v4 = vmul.f32 0.0, %v4781_v37  ;;  %v4835_v54 = vld [vmem:[#allocation11 + $0x4c0] sm:$0xff]  ;;  %v4836_v43 = vld [vmem:[#allocation11 + $0x4c8] sm:$0xff] }
0x1b2f   : > { %v4794_v61 = vmul.f32 %v4785_v25, %v10404_v44  ;;  %v4837_v25 = vld [vmem:[#allocation11 + $0x4d0] sm:$0xff] }
0x1b30   : > { %4809 = vrot.lane.b32.xlu1 %v4795_v51, %s8461_s16 }
0x1b31   : > { %v4783_v16 = vpop.permute.xlu0 %4782  ;;  %4807 = vrot.lane.b32.xlu0 %v4794_v61, %s8461_s16  ;;  %v4838_v61 = vld [vmem:[#allocation11 + $0x4d8] sm:$0xff] }
0x1b32   : > { %v4786_v9 = vsel %vm14078_vm4, %v4781_v37, %v4783_v16  ;;  %v4798_v48 = vmul.f32 %v4783_v16, %v10476_v6  ;;  %vm5382_vm4 = vcmask 973824  }
0x1b33   : > { %v4797_v22 = vmul.f32 %v4786_v9, %v10471_v27 }
0x1b35   : > { %4811 = vrot.lane.b32.xlu0 %v4796_v4, %s8461_s16  ;;  %4813 = vrot.lane.b32.xlu1 %v4797_v22, %s8461_s16 }
0x1b39   : > { %4815 = vrot.lane.b32.xlu0 %v4798_v48, %s8461_s16  ;;  %4843 = vrot.lane.b32.xlu1 %v4835_v54, %s8462_s28 }
0x1b3d   : > { %4845 = vrot.lane.b32.xlu0 %v4836_v43, %s8462_s28  ;;  %4847 = vrot.lane.b32.xlu1 %v4837_v25, %s8462_s28 }
0x1b41   : > { %4849 = vrot.lane.b32.xlu0 %v4838_v61, %s8462_s28 }
0x1b9e   : > { %v11249_v37 = vpop.permute.xlu1 %4805 }
0x1b9f   : > { %14767 = vst [vmem:[#allocation247_spill] sm:$0xff] %v11249_v37 }
0x1ba2   : > { %v11251_v22 = vpop.permute.xlu1 %4809 }
0x1ba3   : > { %14768 = vst [vmem:[#allocation248_spill] sm:$0xff] %v11251_v22  ;;  %v11253_v9 = vpop.permute.xlu0 %4807 }
0x1ba4   : > { %14769 = vst [vmem:[#allocation249_spill] sm:$0xff] %v11253_v9 }
0x1ba7   : > { %v11255_v16 = vpop.permute.xlu0 %4811  ;;  %v11257_v4 = vpop.permute.xlu1 %4813 }
0x1ba8   : > { %14770 = vst [vmem:[#allocation250_spill] sm:$0xff] %v11255_v16  ;;  %14771 = vst [vmem:[#allocation251_spill] sm:$0xff] %v11257_v4 }
0x1bab   : > { %v11259_v51 = vpop.permute.xlu0 %4815  ;;  %v4844_v54 = vpop.permute.xlu1 %4843 }
0x1bac   : > { %14772 = vst [vmem:[#allocation252_spill] sm:$0xff] %v11259_v51  ;;  %v4860_v48 = vmul.f32 0.0, %v4844_v54 }
0x1bae   : > { %4872 = vrot.lane.b32.xlu1 %v4860_v48, %s8463_s23 }
0x1baf   : > { %v4846_v43 = vpop.permute.xlu0 %4845  ;;  %v4848_v22 = vpop.permute.xlu1 %4847 }
0x1bb0   : > { %v4852_v25 = vsel %vm14082_vm6, %v4844_v54, %v4846_v43  ;;  %v4862_v61 = vmul.f32 %v4846_v43, %v10400_v46  ;;  %v4863_v51 = vmul.f32 0.0, %v4848_v22  ;;  %v4902_v54 = vld [vmem:[#allocation11 + $0x4e0] sm:$0xff]  ;;  %v4903_v43 = vld [vmem:[#allocation11 + $0x4e8] sm:$0xff] }
0x1bb1   : > { %v4861_v37 = vmul.f32 %v4852_v25, %v10404_v44  ;;  %v4904_v25 = vld [vmem:[#allocation11 + $0x4f0] sm:$0xff] }
0x1bb2   : > { %4876 = vrot.lane.b32.xlu1 %v4862_v61, %s8463_s23  ;;  %v4969_v61 = vld [vmem:[#allocation11 + $0x500] sm:$0xff] }
0x1bb3   : > { %v4850_v16 = vpop.permute.xlu0 %4849  ;;  %4874 = vrot.lane.b32.xlu0 %v4861_v37, %s8463_s23  ;;  %v4905_v37 = vld [vmem:[#allocation11 + $0x4f8] sm:$0xff] }
0x1bb4   : > { %v4853_v4 = vsel %vm14082_vm6, %v4848_v22, %v4850_v16  ;;  %v4865_v48 = vmul.f32 %v4850_v16, %v10476_v6  ;;  %v4970_v22 = vld [vmem:[#allocation11 + $0x508] sm:$0xff]  ;;  %vm2636_vm6 = vcmask 998400  }
0x1bb5   : > { %v4864_v9 = vmul.f32 %v4853_v4, %v10471_v27  ;;  %v4971_v4 = vld [vmem:[#allocation11 + $0x510] sm:$0xff]  ;;  %v5036_v16 = vld [vmem:[#allocation11 + $0x528] sm:$0xff] }
0x1bb7   : > { %4878 = vrot.lane.b32.xlu0 %v4863_v51, %s8463_s23  ;;  %4880 = vrot.lane.b32.xlu1 %v4864_v9, %s8463_s23  ;;  %v4972_v9 = vld [vmem:[#allocation11 + $0x518] sm:$0xff]  ;;  %v5035_v51 = vld [vmem:[#allocation11 + $0x520] sm:$0xff] }
0x1bbb   : > { %4882 = vrot.lane.b32.xlu0 %v4865_v48, %s8463_s23  ;;  %4910 = vrot.lane.b32.xlu1 %v4902_v54, %s8464_s22  ;;  %v5037_v54 = vld [vmem:[#allocation11 + $0x530] sm:$0xff]  ;;  %v5038_v48 = vld [vmem:[#allocation11 + $0x538] sm:$0xff] }
0x1bbf   : > { %4912 = vrot.lane.b32.xlu0 %v4903_v43, %s8464_s22  ;;  %4914 = vrot.lane.b32.xlu1 %v4904_v25, %s8464_s22  ;;  %v5100_v43 = vld [vmem:[#allocation11 + $0x540] sm:$0xff]  ;;  %v5101_v25 = vld [vmem:[#allocation11 + $0x548] sm:$0xff] }
0x1bc3   : > { %4916 = vrot.lane.b32.xlu0 %v4905_v37, %s8464_s22  ;;  %4977 = vrot.lane.b32.xlu1 %v4969_v61, %s8465_s17  ;;  %v5102_v37 = vld [vmem:[#allocation11 + $0x550] sm:$0xff]  ;;  %v5103_v61 = vld [vmem:[#allocation11 + $0x558] sm:$0xff]  ;;  %s8473_s22 = smov 39  }
0x1bc7   : > { %4979 = vrot.lane.b32.xlu0 %v4970_v22, %s8465_s17  ;;  %4981 = vrot.lane.b32.xlu1 %v4971_v4, %s8465_s17  ;;  %v5165_v22 = vld [vmem:[#allocation11 + $0x560] sm:$0xff]  ;;  %v5166_v4 = vld [vmem:[#allocation11 + $0x568] sm:$0xff] }
0x1bcb   : > { %4983 = vrot.lane.b32.xlu0 %v4972_v9, %s8465_s17  ;;  %5043 = vrot.lane.b32.xlu1 %v5035_v51, %s14348_s2  ;;  %v5167_v9 = vld [vmem:[#allocation11 + $0x570] sm:$0xff]  ;;  %v5168_v51 = vld [vmem:[#allocation11 + $0x578] sm:$0xff]  ;;  %s8474_s17 = smov 42  }
0x1bcf   : > { %5045 = vrot.lane.b32.xlu0 %v5036_v16, %s14348_s2  ;;  %5047 = vrot.lane.b32.xlu1 %v5037_v54, %s14348_s2  ;;  %v5232_v16 = vld [vmem:[#allocation11 + $0x580] sm:$0xff]  ;;  %v5233_v54 = vld [vmem:[#allocation11 + $0x588] sm:$0xff] }
0x1bd3   : > { %5049 = vrot.lane.b32.xlu0 %v5038_v48, %s14348_s2  ;;  %5108 = vrot.lane.b32.xlu1 %v5100_v43, %s14300_s20  ;;  %s8467_s2 = smov 86   ;;  %v5234_v48 = vld [vmem:[#allocation11 + $0x590] sm:$0xff]  ;;  %v5235_v43 = vld [vmem:[#allocation11 + $0x598] sm:$0xff] }
0x1bd7   : > { %5110 = vrot.lane.b32.xlu0 %v5101_v25, %s14300_s20  ;;  %5112 = vrot.lane.b32.xlu1 %v5102_v37, %s14300_s20  ;;  %v5299_v25 = vld [vmem:[#allocation11 + $0x5a0] sm:$0xff]  ;;  %v5300_v37 = vld [vmem:[#allocation11 + $0x5a8] sm:$0xff] }
0x1bdb   : > { %5114 = vrot.lane.b32.xlu0 %v5103_v61, %s14300_s20  ;;  %5173 = vrot.lane.b32.xlu1 %v5165_v22, %s8466_s11  ;;  %s8468_s20 = smov 89   ;;  %v5301_v61 = vld [vmem:[#allocation11 + $0x5b0] sm:$0xff]  ;;  %v5302_v22 = vld [vmem:[#allocation11 + $0x5b8] sm:$0xff] }
0x1bdf   : > { %5175 = vrot.lane.b32.xlu0 %v5166_v4, %s8466_s11  ;;  %5177 = vrot.lane.b32.xlu1 %v5167_v9, %s8466_s11  ;;  %v5366_v4 = vld [vmem:[#allocation11 + $0x5c0] sm:$0xff]  ;;  %v5367_v9 = vld [vmem:[#allocation11 + $0x5c8] sm:$0xff] }
0x1be3   : > { %5179 = vrot.lane.b32.xlu0 %v5168_v51, %s8466_s11  ;;  %5240 = vrot.lane.b32.xlu1 %v5232_v16, %s8467_s2  ;;  %v5368_v51 = vld [vmem:[#allocation11 + $0x5d0] sm:$0xff]  ;;  %v5369_v16 = vld [vmem:[#allocation11 + $0x5d8] sm:$0xff] }
0x1be7   : > { %5242 = vrot.lane.b32.xlu0 %v5233_v54, %s8467_s2  ;;  %5244 = vrot.lane.b32.xlu1 %v5234_v48, %s8467_s2  ;;  %v5433_v54 = vld [vmem:[#allocation11 + $0x5e0] sm:$0xff]  ;;  %v5434_v48 = vld [vmem:[#allocation11 + $0x5e8] sm:$0xff] }
0x1beb   : > { %5246 = vrot.lane.b32.xlu0 %v5235_v43, %s8467_s2  ;;  %5307 = vrot.lane.b32.xlu1 %v5299_v25, %s8468_s20  ;;  %v5435_v43 = vld [vmem:[#allocation11 + $0x5f0] sm:$0xff]  ;;  %v5436_v25 = vld [vmem:[#allocation11 + $0x5f8] sm:$0xff] }
0x1bef   : > { %5309 = vrot.lane.b32.xlu0 %v5300_v37, %s8468_s20  ;;  %5311 = vrot.lane.b32.xlu1 %v5301_v61, %s8468_s20  ;;  %v5498_v37 = vld [vmem:[#allocation11 + $0x600] sm:$0xff]  ;;  %v5499_v61 = vld [vmem:[#allocation11 + $0x608] sm:$0xff] }
0x1bf3   : > { %5313 = vrot.lane.b32.xlu0 %v5302_v22, %s8468_s20  ;;  %5374 = vrot.lane.b32.xlu1 %v5366_v4, %s8469_s25  ;;  %v5500_v22 = vld [vmem:[#allocation11 + $0x610] sm:$0xff]  ;;  %v5501_v4 = vld [vmem:[#allocation11 + $0x618] sm:$0xff] }
0x1bf7   : > { %5376 = vrot.lane.b32.xlu0 %v5367_v9, %s8469_s25  ;;  %5378 = vrot.lane.b32.xlu1 %v5368_v51, %s8469_s25  ;;  %v5598_v9 = vld [vmem:[#allocation11 + $0x640] sm:$0xff]  ;;  %v5599_v51 = vld [vmem:[#allocation11 + $0x648] sm:$0xff] }
0x1bfb   : > { %5380 = vrot.lane.b32.xlu0 %v5369_v16, %s8469_s25  ;;  %5441 = vrot.lane.b32.xlu1 %v5433_v54, %s14541_s12  ;;  %v5600_v16 = vld [vmem:[#allocation11 + $0x650] sm:$0xff]  ;;  %v5601_v54 = vld [vmem:[#allocation11 + $0x658] sm:$0xff]  ;;  %s8475_s25 = smov 45  }
0x1bff   : > { %5443 = vrot.lane.b32.xlu0 %v5434_v48, %s14541_s12  ;;  %5445 = vrot.lane.b32.xlu1 %v5435_v43, %s14541_s12  ;;  %v5665_v48 = vld [vmem:[#allocation11 + $0x660] sm:$0xff]  ;;  %v5666_v43 = vld [vmem:[#allocation11 + $0x668] sm:$0xff] }
0x1c03   : > { %5447 = vrot.lane.b32.xlu0 %v5436_v25, %s14541_s12  ;;  %5506 = vrot.lane.b32.xlu1 %v5498_v37, %s14773_s6  ;;  %s8471_s12 = smov 6   ;;  %v5667_v25 = vld [vmem:[#allocation11 + $0x670] sm:$0xff]  ;;  %v5668_v37 = vld [vmem:[#allocation11 + $0x678] sm:$0xff] }
0x1c07   : > { %5508 = vrot.lane.b32.xlu0 %v5499_v61, %s14773_s6  ;;  %5510 = vrot.lane.b32.xlu1 %v5500_v22, %s14773_s6  ;;  %v5732_v61 = vld [vmem:[#allocation11 + $0x680] sm:$0xff]  ;;  %v5733_v22 = vld [vmem:[#allocation11 + $0x688] sm:$0xff] }
0x1c0b   : > { %5512 = vrot.lane.b32.xlu0 %v5501_v4, %s14773_s6  ;;  %5606 = vrot.lane.b32.xlu1 %v5598_v9, %s8470_s10  ;;  %v5734_v4 = vld [vmem:[#allocation11 + $0x690] sm:$0xff]  ;;  %s8476_s6 = smov 48  }
0x1c0f   : > { %5608 = vrot.lane.b32.xlu0 %v5599_v51, %s8470_s10  ;;  %5610 = vrot.lane.b32.xlu1 %v5600_v16, %s8470_s10  ;;  %v5735_v51 = vld [vmem:[#allocation11 + $0x698] sm:$0xff]  ;;  %v5799_v16 = vld [vmem:[#allocation11 + $0x6a0] sm:$0xff] }
0x1c13   : > { %5612 = vrot.lane.b32.xlu0 %v5601_v54, %s8470_s10  ;;  %5673 = vrot.lane.b32.xlu1 %v5665_v48, %s8471_s12  ;;  %v5800_v48 = vld [vmem:[#allocation11 + $0x6a8] sm:$0xff] }
0x1c17   : > { %5675 = vrot.lane.b32.xlu0 %v5666_v43, %s8471_s12  ;;  %5677 = vrot.lane.b32.xlu1 %v5667_v25, %s8471_s12  ;;  %v5801_v43 = vld [vmem:[#allocation11 + $0x6b0] sm:$0xff] }
0x1c1b   : > { %5679 = vrot.lane.b32.xlu0 %v5668_v37, %s8471_s12  ;;  %5740 = vrot.lane.b32.xlu1 %v5732_v61, %s8472_s13  ;;  %v5802_v37 = vld [vmem:[#allocation11 + $0x6b8] sm:$0xff]  ;;  %v5866_v61 = vld [vmem:[#allocation11 + $0x6c0] sm:$0xff] }
0x1c1f   : > { %5742 = vrot.lane.b32.xlu0 %v5733_v22, %s8472_s13  ;;  %5744 = vrot.lane.b32.xlu1 %v5734_v4, %s8472_s13 }
0x1c20   : > { %v11312_v9 = vpop.permute.xlu1 %4872 }
0x1c21   : > { %14774 = vst [vmem:[#allocation253_spill] sm:$0xff] %v11312_v9  ;;  %v5868_v9 = vld [vmem:[#allocation11 + $0x6d0] sm:$0xff] }
0x1c23   : > { %5746 = vrot.lane.b32.xlu0 %v5735_v51, %s8472_s13  ;;  %5807 = vrot.lane.b32.xlu1 %v5799_v16, %s8473_s22  ;;  %v5867_v51 = vld [vmem:[#allocation11 + $0x6c8] sm:$0xff] }
0x1c24   : > { %v11315_v54 = vpop.permute.xlu1 %4876 }
0x1c25   : > { %14775 = vst [vmem:[#allocation254_spill] sm:$0xff] %v11315_v54  ;;  %v11317_v25 = vpop.permute.xlu0 %4874 }
0x1c26   : > { %14776 = vst [vmem:[#allocation255_spill] sm:$0xff] %v11317_v25  ;;  %v5869_v25 = vld [vmem:[#allocation11 + $0x6d8] sm:$0xff] }
0x1c27   : > { %5809 = vrot.lane.b32.xlu0 %v5800_v48, %s8473_s22  ;;  %5811 = vrot.lane.b32.xlu1 %v5801_v43, %s8473_s22  ;;  %v5932_v48 = vld [vmem:[#allocation11 + $0x6e0] sm:$0xff] }
0x1c29   : > { %v11319_v22 = vpop.permute.xlu0 %4878  ;;  %v11321_v4 = vpop.permute.xlu1 %4880 }
0x1c2a   : > { %14777 = vst [vmem:[#allocation256_spill] sm:$0xff] %v11319_v22  ;;  %14778 = vst [vmem:[#allocation257_spill] sm:$0xff] %v11321_v4  ;;  %v5934_v22 = vld [vmem:[#allocation11 + $0x6f0] sm:$0xff] }
0x1c2b   : > { %5813 = vrot.lane.b32.xlu0 %v5802_v37, %s8473_s22  ;;  %5874 = vrot.lane.b32.xlu1 %v5866_v61, %s8474_s17  ;;  %v5933_v37 = vld [vmem:[#allocation11 + $0x6e8] sm:$0xff]  ;;  %s8477_s22 = smov 51  }
0x1c2d   : > { %v11323_v16 = vpop.permute.xlu0 %4882  ;;  %v11325_v54 = vpop.permute.xlu1 %4910 }
0x1c2e   : > { %14779 = vst [vmem:[#allocation258_spill] sm:$0xff] %v11323_v16  ;;  %v5935_v16 = vld [vmem:[#allocation11 + $0x6f8] sm:$0xff] }
0x1c2f   : > { %5876 = vrot.lane.b32.xlu0 %v5867_v51, %s8474_s17  ;;  %5878 = vrot.lane.b32.xlu1 %v5868_v9, %s8474_s17  ;;  %v5998_v51 = vld [vmem:[#allocation11 + $0x700] sm:$0xff] }
0x1c31   : > { %v11327_v43 = vpop.permute.xlu0 %4912  ;;  %v11329_v41 = vpop.permute.xlu1 %4914 }
0x1c33   : > { %5880 = vrot.lane.b32.xlu0 %v5869_v25, %s8474_s17  ;;  %5940 = vrot.lane.b32.xlu1 %v5932_v48, %s8475_s25  ;;  %v5999_v25 = vld [vmem:[#allocation11 + $0x708] sm:$0xff]  ;;  %s8478_s17 = smov 54  }
0x1c35   : > { %v11331_v61 = vpop.permute.xlu0 %4916  ;;  %v11333_v4 = vpop.permute.xlu1 %4977 }
0x1c37   : > { %5942 = vrot.lane.b32.xlu0 %v5933_v37, %s8475_s25  ;;  %5944 = vrot.lane.b32.xlu1 %v5934_v22, %s8475_s25  ;;  %v6065_v37 = vld [vmem:[#allocation11 + $0x720] sm:$0xff] }
0x1c39   : > { %v11335_v9 = vpop.permute.xlu0 %4979  ;;  %v11337_v0 = vpop.permute.xlu1 %4981 }
0x1c3b   : > { %5946 = vrot.lane.b32.xlu0 %v5935_v16, %s8475_s25  ;;  %6006 = vrot.lane.b32.xlu1 %v5998_v51, %s8476_s6  ;;  %v6066_v16 = vld [vmem:[#allocation11 + $0x728] sm:$0xff]  ;;  %v6067_v51 = vld [vmem:[#allocation11 + $0x730] sm:$0xff]  ;;  %s8479_s25 = smov 57  }
0x1c3d   : > { %v11339_v48 = vpop.permute.xlu0 %4983  ;;  %v11341_v31 = vpop.permute.xlu1 %5043 }
0x1c3f   : > { %6008 = vrot.lane.b32.xlu0 %v5999_v25, %s8476_s6  ;;  %6010 = vrot.lane.b32.xlu1 %v6000_v58, %s8476_s6  ;;  %v6068_v58 = vld [vmem:[#allocation11 + $0x738] sm:$0xff]  ;;  %v6130_v25 = vld [vmem:[#allocation11 + $0x740] sm:$0xff] }
0x1c41   : > { %v11343_v22 = vpop.permute.xlu0 %5045  ;;  %v11345_v2 = vpop.permute.xlu1 %5047 }
0x1c43   : > { %6012 = vrot.lane.b32.xlu0 %v6001_v49, %s8476_s6  ;;  %6073 = vrot.lane.b32.xlu1 %v6065_v37, %s8477_s22  ;;  %v6131_v49 = vld [vmem:[#allocation11 + $0x748] sm:$0xff]  ;;  %v6132_v37 = vld [vmem:[#allocation11 + $0x750] sm:$0xff]  ;;  %s8480_s6 = smov 87  }
0x1c45   : > { %v11348_v23 = vpop.permute.xlu0 %5049  ;;  %v11350_v24 = vpop.permute.xlu1 %5108 }
0x1c47   : > { %6075 = vrot.lane.b32.xlu0 %v6066_v16, %s8477_s22  ;;  %6077 = vrot.lane.b32.xlu1 %v6067_v51, %s8477_s22  ;;  %v6133_v16 = vld [vmem:[#allocation11 + $0x758] sm:$0xff]  ;;  %v6195_v51 = vld [vmem:[#allocation11 + $0x760] sm:$0xff] }
0x1c49   : > { %v11354_v39 = vpop.permute.xlu0 %5110  ;;  %v11356_v8 = vpop.permute.xlu1 %5112 }
0x1c4b   : > { %6079 = vrot.lane.b32.xlu0 %v6068_v58, %s8477_s22  ;;  %6138 = vrot.lane.b32.xlu1 %v6130_v25, %s8478_s17  ;;  %v6196_v58 = vld [vmem:[#allocation11 + $0x768] sm:$0xff]  ;;  %v6197_v25 = vld [vmem:[#allocation11 + $0x770] sm:$0xff] }
0x1c4d   : > { %v11360_v47 = vpop.permute.xlu0 %5114  ;;  %v11362_v18 = vpop.permute.xlu1 %5173 }
0x1c4f   : > { %6140 = vrot.lane.b32.xlu0 %v6131_v49, %s8478_s17  ;;  %6142 = vrot.lane.b32.xlu1 %v6132_v37, %s8478_s17  ;;  %v6198_v49 = vld [vmem:[#allocation11 + $0x778] sm:$0xff]  ;;  %v6260_v37 = vld [vmem:[#allocation11 + $0x780] sm:$0xff] }
0x1c51   : > { %v11366_v59 = vpop.permute.xlu0 %5175  ;;  %v11368_v13 = vpop.permute.xlu1 %5177 }
0x1c53   : > { %6144 = vrot.lane.b32.xlu0 %v6133_v16, %s8478_s17  ;;  %6203 = vrot.lane.b32.xlu1 %v6195_v51, %s8479_s25  ;;  %v6261_v16 = vld [vmem:[#allocation11 + $0x788] sm:$0xff]  ;;  %v6262_v51 = vld [vmem:[#allocation11 + $0x790] sm:$0xff] }
0x1c55   : > { %v11372_v29 = vpop.permute.xlu0 %5179  ;;  %v11374_v21 = vpop.permute.xlu1 %5240 }
0x1c57   : > { %6205 = vrot.lane.b32.xlu0 %v6196_v58, %s8479_s25  ;;  %6207 = vrot.lane.b32.xlu1 %v6197_v25, %s8479_s25  ;;  %v6263_v58 = vld [vmem:[#allocation11 + $0x798] sm:$0xff]  ;;  %v6327_v25 = vld [vmem:[#allocation11 + $0x7a0] sm:$0xff] }
0x1c59   : > { %v11378_v33 = vpop.permute.xlu0 %5242  ;;  %v11380_v35 = vpop.permute.xlu1 %5244 }
0x1c5b   : > { %6209 = vrot.lane.b32.xlu0 %v6198_v49, %s8479_s25  ;;  %6268 = vrot.lane.b32.xlu1 %v6260_v37, %s8480_s6  ;;  %v6328_v49 = vld [vmem:[#allocation11 + $0x7a8] sm:$0xff] }
0x1c5d   : > { %v11383_v11 = vpop.permute.xlu0 %5246  ;;  %v11385_v28 = vpop.permute.xlu1 %5307 }
0x1c5f   : > { %6270 = vrot.lane.b32.xlu0 %v6261_v16, %s8480_s6  ;;  %6272 = vrot.lane.b32.xlu1 %v6262_v51, %s8480_s6  ;;  %v6330_v16 = vld [vmem:[#allocation11 + $0x7b8] sm:$0xff]  ;;  %v6392_v51 = vld [vmem:[#allocation11 + $0x7c0] sm:$0xff] }
0x1c61   : > { %v11387_v42 = vpop.permute.xlu0 %5309  ;;  %v11389_v57 = vpop.permute.xlu1 %5311 }
0x1c63   : > { %6274 = vrot.lane.b32.xlu0 %v6263_v58, %s8480_s6  ;;  %6335 = vrot.lane.b32.xlu1 %v6327_v25, %s14545_s30  ;;  %v6393_v58 = vld [vmem:[#allocation11 + $0x7c8] sm:$0xff]  ;;  %v6394_v25 = vld [vmem:[#allocation11 + $0x7d0] sm:$0xff]  ;;  %s8484_s6 = smov 7  }
0x1c65   : > { %v11392_v37 = vpop.permute.xlu0 %5313  ;;  %v11394_v26 = vpop.permute.xlu1 %5374 }
0x1c67   : > { %6337 = vrot.lane.b32.xlu0 %v6328_v49, %s14545_s30  ;;  %6339 = vrot.lane.b32.xlu1 %v6329_v34, %s14545_s30  ;;  %v6395_v34 = vld [vmem:[#allocation11 + $0x7d8] sm:$0xff]  ;;  %v6457_v49 = vld [vmem:[#allocation11 + $0x7e0] sm:$0xff] }
0x1c69   : > { %v11398_v56 = vpop.permute.xlu0 %5376  ;;  %v11400_v5 = vpop.permute.xlu1 %5378 }
0x1c6b   : > { %6341 = vrot.lane.b32.xlu0 %v6330_v16, %s14545_s30  ;;  %6400 = vrot.lane.b32.xlu1 %v6392_v51, %s14298_s4  ;;  %v6458_v16 = vld [vmem:[#allocation11 + $0x7e8] sm:$0xff]  ;;  %v6459_v51 = vld [vmem:[#allocation11 + $0x7f0] sm:$0xff]  ;;  %s8481_s30 = smov 99  }
0x1c6d   : > { %v11404_v10 = vpop.permute.xlu0 %5380  ;;  %v11406_v52 = vpop.permute.xlu1 %5441 }
0x1c6f   : > { %6402 = vrot.lane.b32.xlu0 %v6393_v58, %s14298_s4  ;;  %6404 = vrot.lane.b32.xlu1 %v6394_v25, %s14298_s4  ;;  %v6460_v58 = vld [vmem:[#allocation11 + $0x7f8] sm:$0xff]  ;;  %v6522_v25 = vld [vmem:[#allocation11 + $0x800] sm:$0xff] }
0x1c71   : > { %v11410_v20 = vpop.permute.xlu0 %5443  ;;  %v11412_v3 = vpop.permute.xlu1 %5445 }
0x1c73   : > { %6406 = vrot.lane.b32.xlu0 %v6395_v34, %s14298_s4  ;;  %6465 = vrot.lane.b32.xlu1 %v6457_v49, %s14329_s0  ;;  %v6523_v34 = vld [vmem:[#allocation11 + $0x808] sm:$0xff]  ;;  %v6524_v49 = vld [vmem:[#allocation11 + $0x810] sm:$0xff]  ;;  %s8483_s4 = smov 105  }
0x1c75   : > { %v11416_v63 = vpop.permute.xlu0 %5447  ;;  %v11418_v45 = vpop.permute.xlu1 %5506 }
0x1c77   : > { %6467 = vrot.lane.b32.xlu0 %v6458_v16, %s14329_s0  ;;  %6469 = vrot.lane.b32.xlu1 %v6459_v51, %s14329_s0  ;;  %v6525_v16 = vld [vmem:[#allocation11 + $0x818] sm:$0xff]  ;;  %v6587_v51 = vld [vmem:[#allocation11 + $0x820] sm:$0xff] }
0x1c79   : > { %v11422_v7 = vpop.permute.xlu0 %5508  ;;  %v11424_v14 = vpop.permute.xlu1 %5510 }
0x1c7b   : > { %6471 = vrot.lane.b32.xlu0 %v6460_v58, %s14329_s0  ;;  %6530 = vrot.lane.b32.xlu1 %v6522_v25, %s8481_s30  ;;  %s8482_s0 = smov 102   ;;  %v6588_v58 = vld [vmem:[#allocation11 + $0x828] sm:$0xff]  ;;  %v6589_v25 = vld [vmem:[#allocation11 + $0x830] sm:$0xff] }
0x1c7d   : > { %v11428_v38 = vpop.permute.xlu0 %5512  ;;  %v11430_v32 = vpop.permute.xlu1 %5606 }
0x1c7f   : > { %6532 = vrot.lane.b32.xlu0 %v6523_v34, %s8481_s30  ;;  %6534 = vrot.lane.b32.xlu1 %v6524_v49, %s8481_s30  ;;  %v6590_v34 = vld [vmem:[#allocation11 + $0x838] sm:$0xff]  ;;  %v6652_v49 = vld [vmem:[#allocation11 + $0x840] sm:$0xff] }
0x1c81   : > { %v11434_v1 = vpop.permute.xlu0 %5608  ;;  %v11436_v12 = vpop.permute.xlu1 %5610 }
0x1c83   : > { %6536 = vrot.lane.b32.xlu0 %v6525_v16, %s8481_s30  ;;  %6595 = vrot.lane.b32.xlu1 %v6587_v51, %s8482_s0  ;;  %v6653_v16 = vld [vmem:[#allocation11 + $0x848] sm:$0xff]  ;;  %v6654_v51 = vld [vmem:[#allocation11 + $0x850] sm:$0xff] }
0x1c85   : > { %v11440_v36 = vpop.permute.xlu0 %5612  ;;  %v11442_v17 = vpop.permute.xlu1 %5673 }
0x1c87   : > { %6597 = vrot.lane.b32.xlu0 %v6588_v58, %s8482_s0  ;;  %6599 = vrot.lane.b32.xlu1 %v6589_v25, %s8482_s0  ;;  %v6655_v58 = vld [vmem:[#allocation11 + $0x858] sm:$0xff]  ;;  %v6717_v25 = vld [vmem:[#allocation11 + $0x860] sm:$0xff] }
0x1c89   : > { %v11446_v30 = vpop.permute.xlu0 %5675  ;;  %v11448_v60 = vpop.permute.xlu1 %5677 }
0x1c8b   : > { %6601 = vrot.lane.b32.xlu0 %v6590_v34, %s8482_s0  ;;  %6660 = vrot.lane.b32.xlu1 %v6652_v49, %s8483_s4  ;;  %v6718_v34 = vld [vmem:[#allocation11 + $0x868] sm:$0xff]  ;;  %v6719_v49 = vld [vmem:[#allocation11 + $0x870] sm:$0xff] }
0x1c8d   : > { %v11452_v50 = vpop.permute.xlu0 %5679  ;;  %v11454_v55 = vpop.permute.xlu1 %5740 }
0x1c8e   : > { %14780 = vst [vmem:[#allocation259_spill] sm:$0xff] %v11454_v55 }
0x1c8f   : > { %6662 = vrot.lane.b32.xlu0 %v6653_v16, %s8483_s4  ;;  %6664 = vrot.lane.b32.xlu1 %v6654_v51, %s8483_s4  ;;  %v6720_v16 = vld [vmem:[#allocation11 + $0x878] sm:$0xff]  ;;  %v6784_v51 = vld [vmem:[#allocation11 + $0x880] sm:$0xff] }
0x1c91   : > { %v11458_v62 = vpop.permute.xlu0 %5742  ;;  %v11460_v15 = vpop.permute.xlu1 %5744 }
0x1c92   : > { %14781 = vst [vmem:[#allocation260_spill] sm:$0xff] %v11458_v62  ;;  %14782 = vst [vmem:[#allocation261_spill] sm:$0xff] %v11460_v15  ;;  %v6786_v15 = vld [vmem:[#allocation11 + $0x890] sm:$0xff] }
0x1c93   : > { %6666 = vrot.lane.b32.xlu0 %v6655_v58, %s8483_s4  ;;  %6725 = vrot.lane.b32.xlu1 %v6717_v25, %s8484_s6  ;;  %v6785_v58 = vld [vmem:[#allocation11 + $0x888] sm:$0xff] }
0x1c95   : > { %v11463_v40 = vpop.permute.xlu0 %5746  ;;  %v11465_v53 = vpop.permute.xlu1 %5807 }
0x1c96   : > { %14783 = vst [vmem:[#allocation262_spill] sm:$0xff] %v11463_v40  ;;  %14784 = vst [vmem:[#allocation263_spill] sm:$0xff] %v11465_v53  ;;  %v6787_v53 = vld [vmem:[#allocation11 + $0x898] sm:$0xff] }
0x1c97   : > { %6727 = vrot.lane.b32.xlu0 %v6718_v34, %s8484_s6  ;;  %6729 = vrot.lane.b32.xlu1 %v6719_v49, %s8484_s6  ;;  %v6851_v34 = vld [vmem:[#allocation11 + $0x8a0] sm:$0xff] }
0x1c99   : > { %v11467_v19 = vpop.permute.xlu0 %5809  ;;  %v11469_v55 = vpop.permute.xlu1 %5811 }
0x1c9a   : > { %14785 = vst [vmem:[#allocation264_spill] sm:$0xff] %v11467_v19  ;;  %14786 = vst [vmem:[#allocation265_spill] sm:$0xff] %v11469_v55 }
0x1c9b   : > { %6731 = vrot.lane.b32.xlu0 %v6720_v16, %s8484_s6  ;;  %6792 = vrot.lane.b32.xlu1 %v6784_v51, %s8485_s3  ;;  %v6852_v16 = vld [vmem:[#allocation11 + $0x8a8] sm:$0xff]  ;;  %v6853_v51 = vld [vmem:[#allocation11 + $0x8b0] sm:$0xff]  ;;  %s14799_s6 = smov 114  }
0x1c9d   : > { %v11471_v25 = vpop.permute.xlu0 %5813  ;;  %v11473_v62 = vpop.permute.xlu1 %5874 }
0x1c9e   : > { %14787 = vst [vmem:[#allocation266_spill] sm:$0xff] %v11473_v62 }
0x1c9f   : > { %6794 = vrot.lane.b32.xlu0 %v6785_v58, %s8485_s3  ;;  %6796 = vrot.lane.b32.xlu1 %v6786_v15, %s8485_s3  ;;  %v4919_v58 = vsel %vm4918_vm11, %v11325_v54, %v11327_v43  ;;  %v6854_v15 = vld [vmem:[#allocation11 + $0x8b8] sm:$0xff] }
0x1ca1   : > { %v11475_v49 = vpop.permute.xlu0 %5876  ;;  %v11477_v40 = vpop.permute.xlu1 %5878 }
0x1ca2   : > { %14788 = vst [vmem:[#allocation267_spill] sm:$0xff] %v11475_v49  ;;  %14789 = vst [vmem:[#allocation268_spill] sm:$0xff] %v11477_v40  ;;  %v4928_v49 = vmul.f32 %v4919_v58, %v10404_v44  ;;  %v4927_v58 = vmul.f32 0.0, %v11325_v54  ;;  %v6920_v54 = vld [vmem:[#allocation11 + $0x8d0] sm:$0xff] }
0x1ca3   : > { %6798 = vrot.lane.b32.xlu0 %v6787_v53, %s8485_s3  ;;  %6859 = vrot.lane.b32.xlu1 %v6851_v34, %s8486_s24  ;;  %v4920_v53 = vsel %vm4918_vm11, %v11329_v41, %v11331_v61  ;;  %s8487_s3 = smov 117   ;;  %v4929_v34 = vmul.f32 %v11327_v43, %v10400_v46  ;;  %v6918_v43 = vld [vmem:[#allocation11 + $0x8c0] sm:$0xff]  ;;  %vm4985_vm11 = vcmask 605184  }
0x1ca5   : > { %v11479_v55 = vpop.permute.xlu0 %5880  ;;  %v11481_v19 = vpop.permute.xlu1 %5940 }
0x1ca6   : > { %14790 = vst [vmem:[#allocation269_spill] sm:$0xff] %v11481_v19  ;;  %v4931_v19 = vmul.f32 %v4920_v53, %v10471_v27 }
0x1ca7   : > { %6861 = vrot.lane.b32.xlu0 %v6852_v16, %s8486_s24  ;;  %6863 = vrot.lane.b32.xlu1 %v6853_v51, %s8486_s24 }
0x1ca9   : > { %v11486_v62 = vpop.permute.xlu0 %5942  ;;  %v11488_v40 = vpop.permute.xlu1 %5944 }
0x1caa   : > { %14791 = vst [vmem:[#allocation270_spill] sm:$0xff] %v11486_v62  ;;  %14792 = vst [vmem:[#allocation271_spill] sm:$0xff] %v11488_v40  ;;  %v4932_v40 = vmul.f32 %v11331_v61, %v10476_v6 }
0x1cab   : > { %6865 = vrot.lane.b32.xlu0 %v6854_v15, %s8486_s24  ;;  %4941 = vrot.lane.b32.xlu1 %v4928_v49, %s8487_s3  ;;  %v4930_v49 = vmul.f32 0.0, %v11329_v41  ;;  %s14795_s24 = smov 16   ;;  %v6921_v41 = vld [vmem:[#allocation11 + $0x8d8] sm:$0xff] }
0x1cad   : > { %v11495_v16 = vpop.permute.xlu0 %5946  ;;  %v11497_v51 = vpop.permute.xlu1 %6006 }
0x1cae   : > { %14793 = vst [vmem:[#allocation272_spill] sm:$0xff] %v11495_v16 }
0x1caf   : > { %4943 = vrot.lane.b32.xlu0 %v4929_v34, %s8487_s3  ;;  %4947 = vrot.lane.b32.xlu1 %v4931_v19, %s8487_s3  ;;  %v6919_v19 = vld [vmem:[#allocation11 + $0x8c8] sm:$0xff] }
0x1cb1   : > { %v11502_v62 = vpop.permute.xlu0 %6008  ;;  %v11504_v15 = vpop.permute.xlu1 %6010 }
0x1cb3   : > { %4949 = vrot.lane.b32.xlu0 %v4932_v40, %s8487_s3  ;;  %4939 = vrot.lane.b32.xlu1 %v4927_v58, %s8487_s3  ;;  %v4986_v40 = vsel %vm4985_vm11, %v11333_v4, %v11335_v9 }
0x1cb4   : > { %v4995_v58 = vmul.f32 %v4986_v40, %v10404_v44  ;;  %v4994_v40 = vmul.f32 0.0, %v11333_v4  ;;  %v6985_v4 = vld [vmem:[#allocation11 + $0x8e8] sm:$0xff] }
0x1cb5   : > { %v11507_v53 = vpop.permute.xlu0 %6012  ;;  %v11509_v16 = vpop.permute.xlu1 %6073 }
0x1cb6   : > { %14794 = vst [vmem:[#allocation273_spill] sm:$0xff] %v11509_v16 }
0x1cb7   : > { %4945 = vrot.lane.b32.xlu0 %v4930_v49, %s8487_s3  ;;  %6926 = vrot.lane.b32.xlu1 %v6918_v43, %s14795_s24  ;;  %v4987_v43 = vsel %vm4985_vm11, %v11337_v0, %v11339_v48  ;;  %vm14101_vm11 = vcmask 728064  }
0x1cb9   : > { %v11512_v61 = vpop.permute.xlu0 %6075  ;;  %v11514_v34 = vpop.permute.xlu1 %6077 }
0x1cba   : > { %14796 = vst [vmem:[#allocation274_spill] sm:$0xff] %v11512_v61  ;;  %14797 = vst [vmem:[#allocation275_spill] sm:$0xff] %v11514_v34  ;;  %v4996_v34 = vmul.f32 %v11335_v9, %v10400_v46  ;;  %v6984_v9 = vld [vmem:[#allocation11 + $0x8e0] sm:$0xff] }
0x1cbb   : > { %6928 = vrot.lane.b32.xlu0 %v6919_v19, %s14795_s24  ;;  %6930 = vrot.lane.b32.xlu1 %v6920_v54, %s14795_s24  ;;  %v4998_v19 = vmul.f32 %v4987_v43, %v10471_v27  ;;  %v4997_v43 = vmul.f32 0.0, %v11337_v0  ;;  %v6987_v0 = vld [vmem:[#allocation11 + $0x8f8] sm:$0xff] }
0x1cbd   : > { %v11521_v16 = vpop.permute.xlu0 %6079  ;;  %v11523_v49 = vpop.permute.xlu1 %6138 }
0x1cbe   : > { %14798 = vst [vmem:[#allocation276_spill] sm:$0xff] %v11523_v49 }
0x1cbf   : > { %6932 = vrot.lane.b32.xlu0 %v6921_v41, %s14795_s24  ;;  %5008 = vrot.lane.b32.xlu1 %v4995_v58, %s14799_s6  ;;  %v4999_v41 = vmul.f32 %v11339_v48, %v10476_v6  ;;  %v6986_v48 = vld [vmem:[#allocation11 + $0x8f0] sm:$0xff] }
0x1cc1   : > { %v11532_v54 = vpop.permute.xlu0 %6140  ;;  %v11534_v61 = vpop.permute.xlu1 %6142 }
0x1cc2   : > { %14800 = vst [vmem:[#allocation277_spill] sm:$0xff] %v11534_v61 }
0x1cc3   : > { %5010 = vrot.lane.b32.xlu0 %v4996_v34, %s14799_s6  ;;  %5014 = vrot.lane.b32.xlu1 %v4998_v19, %s14799_s6 }
0x1cc5   : > { %v11541_v49 = vpop.permute.xlu0 %6144  ;;  %v11543_v58 = vpop.permute.xlu1 %6203 }
0x1cc6   : > { %14801 = vst [vmem:[#allocation278_spill] sm:$0xff] %v11543_v58 }
0x1cc7   : > { %5016 = vrot.lane.b32.xlu0 %v4999_v41, %s14799_s6  ;;  %5006 = vrot.lane.b32.xlu1 %v4994_v40, %s14799_s6  ;;  %v5051_v40 = vsel %vm1941_vm5, %v11341_v31, %v11343_v22 }
0x1cc8   : > { %v5060_v41 = vmul.f32 %v5051_v40, %v10404_v44 }
0x1cc9   : > { %v11548_v61 = vpop.permute.xlu0 %6205  ;;  %v11550_v34 = vpop.permute.xlu1 %6207 }
0x1cca   : > { %14802 = vst [vmem:[#allocation279_spill] sm:$0xff] %v11550_v34  ;;  %v5052_v34 = vsel %vm1941_vm5, %v11345_v2, %v11348_v23  ;;  %vm14095_vm5 = vcmask 703488  }
0x1ccb   : > { %5012 = vrot.lane.b32.xlu0 %v4997_v43, %s14799_s6  ;;  %6992 = vrot.lane.b32.xlu1 %v6984_v9, %s8463_s23 }
0x1ccd   : > { %v11554_v19 = vpop.permute.xlu0 %6209  ;;  %v11556_v58 = vpop.permute.xlu1 %6268 }
0x1cce   : > { %14803 = vst [vmem:[#allocation280_spill] sm:$0xff] %v11556_v58 }
0x1ccf   : > { %6994 = vrot.lane.b32.xlu0 %v6985_v4, %s8463_s23  ;;  %6996 = vrot.lane.b32.xlu1 %v6986_v48, %s8463_s23  ;;  %v5061_v4 = vmul.f32 %v11343_v22, %v10400_v46  ;;  %v5063_v48 = vmul.f32 %v5052_v34, %v10471_v27  ;;  %v7049_v22 = vld [vmem:[#allocation11 + $0x900] sm:$0xff]  ;;  %v5062_v34 = vmul.f32 0.0, %v11345_v2  ;;  %v7052_v2 = vld [vmem:[#allocation11 + $0x918] sm:$0xff] }
0x1cd1   : > { %v11564_v43 = vpop.permute.xlu0 %6270  ;;  %v11566_v9 = vpop.permute.xlu1 %6272 }
0x1cd2   : > { %14804 = vst [vmem:[#allocation281_spill] sm:$0xff] %v11564_v43  ;;  %14805 = vst [vmem:[#allocation282_spill] sm:$0xff] %v11566_v9  ;;  %v5059_v9 = vmul.f32 0.0, %v11341_v31  ;;  %v7050_v31 = vld [vmem:[#allocation11 + $0x908] sm:$0xff] }
0x1cd3   : > { %6998 = vrot.lane.b32.xlu0 %v6987_v0, %s8463_s23  ;;  %5073 = vrot.lane.b32.xlu1 %v5060_v41, %s14316_s26  ;;  %v5064_v0 = vmul.f32 %v11348_v23, %v10476_v6  ;;  %v7051_v23 = vld [vmem:[#allocation11 + $0x910] sm:$0xff]  ;;  %s8490_s23 = smov 12  }
0x1cd5   : > { %v11576_v58 = vpop.permute.xlu0 %6274  ;;  %v11578_v40 = vpop.permute.xlu1 %6335 }
0x1cd6   : > { %14806 = vst [vmem:[#allocation283_spill] sm:$0xff] %v11578_v40 }
0x1cd7   : > { %5075 = vrot.lane.b32.xlu0 %v5061_v4, %s14316_s26  ;;  %5079 = vrot.lane.b32.xlu1 %v5063_v48, %s14316_s26 }
0x1cd9   : > { %v11585_v43 = vpop.permute.xlu0 %6337  ;;  %v11587_v41 = vpop.permute.xlu1 %6339 }
0x1cda   : > { %14807 = vst [vmem:[#allocation284_spill] sm:$0xff] %v11587_v41 }
0x1cdb   : > { %5081 = vrot.lane.b32.xlu0 %v5064_v0, %s14316_s26  ;;  %5071 = vrot.lane.b32.xlu1 %v5059_v9, %s14316_s26  ;;  %v5116_v9 = vsel %vm1741_vm15, %v11350_v24, %v11354_v39 }
0x1cdc   : > { %v5125_v0 = vmul.f32 %v5116_v9, %v10404_v44 }
0x1cdd   : > { %v11592_v40 = vpop.permute.xlu0 %6341  ;;  %v11594_v4 = vpop.permute.xlu1 %6400 }
0x1cde   : > { %14808 = vst [vmem:[#allocation285_spill] sm:$0xff] %v11594_v4  ;;  %v5117_v4 = vsel %vm1741_vm15, %v11356_v8, %v11360_v47  ;;  %vm14086_vm15 = vcmask 678912  }
0x1cdf   : > { %5077 = vrot.lane.b32.xlu0 %v5062_v34, %s14316_s26  ;;  %7057 = vrot.lane.b32.xlu1 %v7049_v22, %s8461_s16  ;;  %s8488_s26 = smov 69  }
0x1ce1   : > { %v11598_v48 = vpop.permute.xlu0 %6402  ;;  %v11600_v41 = vpop.permute.xlu1 %6404 }
0x1ce2   : > { %14809 = vst [vmem:[#allocation286_spill] sm:$0xff] %v11600_v41 }
0x1ce3   : > { %7059 = vrot.lane.b32.xlu0 %v7050_v31, %s8461_s16  ;;  %7061 = vrot.lane.b32.xlu1 %v7051_v23, %s8461_s16  ;;  %v5126_v31 = vmul.f32 %v11354_v39, %v10400_v46  ;;  %v5128_v23 = vmul.f32 %v5117_v4, %v10471_v27  ;;  %v7114_v39 = vld [vmem:[#allocation11 + $0x920] sm:$0xff]  ;;  %v5127_v4 = vmul.f32 0.0, %v11356_v8  ;;  %v7117_v8 = vld [vmem:[#allocation11 + $0x938] sm:$0xff] }
0x1ce5   : > { %v11608_v34 = vpop.permute.xlu0 %6406  ;;  %v11610_v22 = vpop.permute.xlu1 %6465 }
0x1ce6   : > { %14810 = vst [vmem:[#allocation287_spill] sm:$0xff] %v11608_v34  ;;  %14811 = vst [vmem:[#allocation288_spill] sm:$0xff] %v11610_v22  ;;  %v5124_v22 = vmul.f32 0.0, %v11350_v24  ;;  %v7115_v24 = vld [vmem:[#allocation11 + $0x928] sm:$0xff] }
0x1ce7   : > { %7063 = vrot.lane.b32.xlu0 %v7052_v2, %s8461_s16  ;;  %5138 = vrot.lane.b32.xlu1 %v5125_v0, %s14326_s7  ;;  %v5129_v2 = vmul.f32 %v11360_v47, %v10476_v6  ;;  %v7116_v47 = vld [vmem:[#allocation11 + $0x930] sm:$0xff]  ;;  %s14903_s16 = smov 15  }
0x1ce9   : > { %v11620_v41 = vpop.permute.xlu0 %6467  ;;  %v11622_v9 = vpop.permute.xlu1 %6469 }
0x1cea   : > { %14812 = vst [vmem:[#allocation289_spill] sm:$0xff] %v11622_v9 }
0x1ceb   : > { %5140 = vrot.lane.b32.xlu0 %v5126_v31, %s14326_s7  ;;  %5144 = vrot.lane.b32.xlu1 %v5128_v23, %s14326_s7 }
0x1ced   : > { %v11629_v34 = vpop.permute.xlu0 %6471  ;;  %v11631_v0 = vpop.permute.xlu1 %6530 }
0x1cee   : > { %14813 = vst [vmem:[#allocation290_spill] sm:$0xff] %v11631_v0 }
0x1cef   : > { %5146 = vrot.lane.b32.xlu0 %v5129_v2, %s14326_s7  ;;  %5136 = vrot.lane.b32.xlu1 %v5124_v22, %s14326_s7  ;;  %v5182_v22 = vsel %vm14086_vm15, %v11362_v18, %v11366_v59 }
0x1cf0   : > { %v5191_v2 = vmul.f32 %v5182_v22, %v10404_v44 }
0x1cf1   : > { %v11636_v9 = vpop.permute.xlu0 %6532  ;;  %v11638_v31 = vpop.permute.xlu1 %6534 }
0x1cf2   : > { %14814 = vst [vmem:[#allocation291_spill] sm:$0xff] %v11638_v31  ;;  %v5183_v31 = vsel %vm14086_vm15, %v11368_v13, %v11372_v29 }
0x1cf3   : > { %5142 = vrot.lane.b32.xlu0 %v5127_v4, %s14326_s7  ;;  %7122 = vrot.lane.b32.xlu1 %v7114_v39, %s8459_s8  ;;  %s14835_s7 = smov 63  }
0x1cf5   : > { %v11642_v23 = vpop.permute.xlu0 %6536  ;;  %v11644_v0 = vpop.permute.xlu1 %6595 }
0x1cf6   : > { %14815 = vst [vmem:[#allocation292_spill] sm:$0xff] %v11644_v0 }
0x1cf7   : > { %7124 = vrot.lane.b32.xlu0 %v7115_v24, %s8459_s8  ;;  %7126 = vrot.lane.b32.xlu1 %v7116_v47, %s8459_s8  ;;  %v5192_v24 = vmul.f32 %v11366_v59, %v10400_v46  ;;  %v5194_v47 = vmul.f32 %v5183_v31, %v10471_v27  ;;  %v5249_v59 = vsel %vm14095_vm5, %v11374_v21, %v11378_v33  ;;  %v5193_v31 = vmul.f32 0.0, %v11368_v13 }
0x1cf9   : > { %v11652_v4 = vpop.permute.xlu0 %6597  ;;  %v11654_v39 = vpop.permute.xlu1 %6599 }
0x1cfa   : > { %14816 = vst [vmem:[#allocation293_spill] sm:$0xff] %v11652_v4  ;;  %14817 = vst [vmem:[#allocation294_spill] sm:$0xff] %v11654_v39  ;;  %v5190_v39 = vmul.f32 0.0, %v11362_v18 }
0x1cfb   : > { %7128 = vrot.lane.b32.xlu0 %v7117_v8, %s8459_s8  ;;  %5204 = vrot.lane.b32.xlu1 %v5191_v2, %s8483_s4  ;;  %v5195_v8 = vmul.f32 %v11372_v29, %v10476_v6  ;;  %v5250_v29 = vsel %vm14095_vm5, %v11380_v35, %v11383_v11  ;;  %vm14131_vm5 = vcmask 72704   ;;  %s14879_s8 = smov 18  }
0x1cfd   : > { %v11664_v0 = vpop.permute.xlu0 %6601  ;;  %v11666_v22 = vpop.permute.xlu1 %6660 }
0x1cff   : > { %5206 = vrot.lane.b32.xlu0 %v5192_v24, %s8483_s4  ;;  %5210 = vrot.lane.b32.xlu1 %v5194_v47, %s8483_s4  ;;  %v5258_v24 = vmul.f32 %v5249_v59, %v10404_v44 }
0x1d01   : > { %v11673_v2 = vpop.permute.xlu0 %6662  ;;  %v11675_v4 = vpop.permute.xlu1 %6664 }
0x1d02   : > { %14818 = vst [vmem:[#allocation295_spill] sm:$0xff] %v11675_v4 }
0x1d03   : > { %5212 = vrot.lane.b32.xlu0 %v5195_v8, %s8483_s4  ;;  %5202 = vrot.lane.b32.xlu1 %v5190_v39, %s8483_s4  ;;  %v5259_v8 = vmul.f32 %v11378_v33, %v10400_v46  ;;  %v5261_v39 = vmul.f32 %v5250_v29, %v10471_v27  ;;  %v5316_v33 = vsel %vm14101_vm11, %v11385_v28, %v11387_v42  ;;  %v5260_v29 = vmul.f32 0.0, %v11380_v35 }
0x1d05   : > { %v11684_v18 = vpop.permute.xlu0 %6666  ;;  %v11686_v47 = vpop.permute.xlu1 %6725 }
0x1d06   : > { %14819 = vst [vmem:[#allocation296_spill] sm:$0xff] %v11686_v47  ;;  %v5257_v47 = vmul.f32 0.0, %v11374_v21 }
0x1d07   : > { %5208 = vrot.lane.b32.xlu0 %v5193_v31, %s8483_s4  ;;  %5271 = vrot.lane.b32.xlu1 %v5258_v24, %s8482_s0  ;;  %v5262_v31 = vmul.f32 %v11383_v11, %v10476_v6  ;;  %v5317_v11 = vsel %vm14101_vm11, %v11389_v57, %v11392_v37  ;;  %vm5815_vm11 = vcmask 318464  }
0x1d09   : > { %v11696_v13 = vpop.permute.xlu0 %6727  ;;  %v11698_v59 = vpop.permute.xlu1 %6729 }
0x1d0b   : > { %5273 = vrot.lane.b32.xlu0 %v5259_v8, %s8482_s0  ;;  %5277 = vrot.lane.b32.xlu1 %v5261_v39, %s8482_s0  ;;  %v5325_v8 = vmul.f32 %v5316_v33, %v10404_v44 }
0x1d0d   : > { %v11705_v24 = vpop.permute.xlu0 %6731  ;;  %v11707_v4 = vpop.permute.xlu1 %6792 }
0x1d0f   : > { %5279 = vrot.lane.b32.xlu0 %v5262_v31, %s8482_s0  ;;  %5269 = vrot.lane.b32.xlu1 %v5257_v47, %s8482_s0  ;;  %v5326_v31 = vmul.f32 %v11387_v42, %v10400_v46  ;;  %v5328_v47 = vmul.f32 %v5317_v11, %v10471_v27  ;;  %v5383_v42 = vsel %vm5382_vm4, %v11394_v26, %v11398_v56  ;;  %v5327_v11 = vmul.f32 0.0, %v11389_v57 }
0x1d11   : > { %v11716_v21 = vpop.permute.xlu0 %6794  ;;  %v11718_v39 = vpop.permute.xlu1 %6796 }
0x1d12   : > { %14820 = vst [vmem:[#allocation297_spill] sm:$0xff] %v11716_v21  ;;  %14821 = vst [vmem:[#allocation298_spill] sm:$0xff] %v11718_v39  ;;  %v5324_v39 = vmul.f32 0.0, %v11385_v28 }
0x1d13   : > { %5275 = vrot.lane.b32.xlu0 %v5260_v29, %s8482_s0  ;;  %5338 = vrot.lane.b32.xlu1 %v5325_v8, %s8481_s30  ;;  %v5329_v29 = vmul.f32 %v11392_v37, %v10476_v6  ;;  %v5384_v37 = vsel %vm5382_vm4, %v11400_v5, %v11404_v10  ;;  %vm14831_vm4 = vcmask 1022976  }
0x1d14   : > { %vm14834_vm15 = vmmov %vm14831_vm4 }
0x1d15   : > { %v11728_v35 = vpop.permute.xlu0 %6798  ;;  %v11730_v33 = vpop.permute.xlu1 %6859 }
0x1d17   : > { %5340 = vrot.lane.b32.xlu0 %v5326_v31, %s8481_s30  ;;  %5344 = vrot.lane.b32.xlu1 %v5328_v47, %s8481_s30  ;;  %v5392_v31 = vmul.f32 %v5383_v42, %v10404_v44  ;;  %v5391_v42 = vmul.f32 0.0, %v11394_v26 }
0x1d19   : > { %v11737_v8 = vpop.permute.xlu0 %6861  ;;  %v11739_v21 = vpop.permute.xlu1 %6863 }
0x1d1a   : > { %14822 = vst [vmem:[#allocation299_spill] sm:$0xff] %v11737_v8  ;;  %14823 = vst [vmem:[#allocation300_spill] sm:$0xff] %v11739_v21  ;;  %v5459_v8 = vmul.f32 %v11410_v20, %v10400_v46 }
0x1d1b   : > { %5346 = vrot.lane.b32.xlu0 %v5329_v29, %s8481_s30  ;;  %5336 = vrot.lane.b32.xlu1 %v5324_v39, %s8481_s30  ;;  %v5393_v29 = vmul.f32 %v11398_v56, %v10400_v46  ;;  %v5395_v39 = vmul.f32 %v5384_v37, %v10471_v27  ;;  %v5449_v56 = vsel %vm2636_vm6, %v11406_v52, %v11410_v20  ;;  %v5394_v37 = vmul.f32 0.0, %v11400_v5 }
0x1d1c   : > { %v5514_v20 = vsel %vm14831_vm4, %v11418_v45, %v11422_v7  ;;  %vm14128_vm4 = vcmask 48128  }
0x1d1d   : > { %v11747_v47 = vpop.permute.xlu0 %6865  ;;  %v11749_v28 = vpop.permute.xlu1 %4941 }
0x1d1e   : > { %14824 = vst [vmem:[#allocation301_spill] sm:$0xff] %v11747_v47  ;;  %v5396_v47 = vmul.f32 %v11404_v10, %v10476_v6  ;;  %v5450_v10 = vsel %vm2636_vm6, %v11412_v3, %v11416_v63 }
0x1d1f   : > { %5342 = vrot.lane.b32.xlu0 %v5327_v11, %s8481_s30  ;;  %5405 = vrot.lane.b32.xlu1 %v5392_v31, %s8488_s26  ;;  %s15432_s30 = sld [smem:[#allocation348_spill]] }
0x1d21   : > { %v11757_v21 = vpop.permute.xlu0 %4943  ;;  %v11759_v57 = vpop.permute.xlu1 %4947 }
0x1d23   : > { %5407 = vrot.lane.b32.xlu0 %v5393_v29, %s8488_s26  ;;  %5411 = vrot.lane.b32.xlu1 %v5395_v39, %s8488_s26  ;;  %v5458_v29 = vmul.f32 %v5449_v56, %v10404_v44  ;;  %v5457_v56 = vmul.f32 0.0, %v11406_v52 }
0x1d25   : > { %v11764_v11 = vpop.permute.xlu0 %4949  ;;  %v11766_v31 = vpop.permute.xlu1 %4939  ;;  %s15433_s0 = smov %s15432_s30 }
0x1d27   : > { %5413 = vrot.lane.b32.xlu0 %v5396_v47, %s8488_s26  ;;  %5403 = vrot.lane.b32.xlu1 %v5391_v42, %s8488_s26  ;;  %v5461_v47 = vmul.f32 %v5450_v10, %v10471_v27  ;;  %v5523_v10 = vmul.f32 %v5514_v20, %v10404_v44 }
0x1d29   : > { %v11773_v39 = vpop.permute.xlu0 %4945  ;;  %v11775_v26 = vpop.permute.xlu1 %6926 }
0x1d2a   : > { %14825 = vst [vmem:[#allocation302_spill] sm:$0xff] %v11773_v39  ;;  %14826 = vst [vmem:[#allocation303_spill] sm:$0xff] %v11775_v26  ;;  %v14934_v39 = vld [vmem:[#allocation56_spill] sm:$0xff] }
0x1d2b   : > { %5409 = vrot.lane.b32.xlu0 %v5394_v37, %s8488_s26  ;;  %5471 = vrot.lane.b32.xlu1 %v5458_v29, %s14670_s29  ;;  %v5462_v37 = vmul.f32 %v11416_v63, %v10476_v6  ;;  %v5515_v63 = vsel %vm14834_vm15, %v11424_v14, %v11428_v38  ;;  %vm14107_vm15 = vcmask 23552  }
0x1d2d   : > { %v11784_v42 = vpop.permute.xlu0 %6928  ;;  %v11786_v5 = vpop.permute.xlu1 %6930 }
0x1d2e   : > { %14827 = vst [vmem:[#allocation304_spill] sm:$0xff] %v11784_v42  ;;  %14828 = vst [vmem:[#allocation305_spill] sm:$0xff] %v11786_v5  ;;  %v5565_v42 = vld [vmem:[#allocation11 + $0x630] sm:$0xff] }
0x1d2f   : > { %5473 = vrot.lane.b32.xlu0 %v5459_v8, %s14670_s29  ;;  %5477 = vrot.lane.b32.xlu1 %v5461_v47, %s14670_s29  ;;  %v5460_v8 = vmul.f32 0.0, %v11412_v3 }
0x1d31   : > { %v11793_v26 = vpop.permute.xlu0 %6932  ;;  %v11795_v29 = vpop.permute.xlu1 %5008 }
0x1d32   : > { %14829 = vst [vmem:[#allocation306_spill] sm:$0xff] %v11793_v26  ;;  %14830 = vst [vmem:[#allocation307_spill] sm:$0xff] %v11795_v29  ;;  %v5522_v26 = vmul.f32 0.0, %v11418_v45  ;;  %v14915_v29 = vld [vmem:[#allocation35_spill] sm:$0xff] }
0x1d33   : > { %5479 = vrot.lane.b32.xlu0 %v5462_v37, %s14670_s29  ;;  %5469 = vrot.lane.b32.xlu1 %v5457_v56, %s14670_s29  ;;  %v5524_v37 = vmul.f32 %v11422_v7, %v10400_v46  ;;  %v5526_v56 = vmul.f32 %v5515_v63, %v10471_v27  ;;  %v5563_v7 = vld [vmem:[#allocation11 + $0x620] sm:$0xff]  ;;  %v5525_v63 = vmul.f32 0.0, %v11424_v14  ;;  %v5569_v14 = vmul.f32 %v5565_v42, %v10471_v27 }
0x1d34   : > { %v5567_v45 = vmul.f32 %v5563_v7, %v10404_v44  ;;  %v5623_v7 = vmul.f32 %v11430_v32, %v10404_v44 }
0x1d35   : > { %v11804_v52 = vpop.permute.xlu0 %5010  ;;  %v11806_v47 = vpop.permute.xlu1 %5014 }
0x1d36   : > { %14832 = vst [vmem:[#allocation308_spill] sm:$0xff] %v11804_v52  ;;  %14833 = vst [vmem:[#allocation309_spill] sm:$0xff] %v11806_v47 }
0x1d37   : > { %5475 = vrot.lane.b32.xlu0 %v5460_v8, %s14670_s29  ;;  %5536 = vrot.lane.b32.xlu1 %v5523_v10, %s14835_s7  ;;  %v5527_v8 = vmul.f32 %v11428_v38, %v10476_v6  ;;  %s8489_s29 = smov 21  }
0x1d39   : > { %v11816_v3 = vpop.permute.xlu0 %5016  ;;  %v11818_v20 = vpop.permute.xlu1 %5006 }
0x1d3a   : > { %14836 = vst [vmem:[#allocation310_spill] sm:$0xff] %v11816_v3  ;;  %14837 = vst [vmem:[#allocation311_spill] sm:$0xff] %v11818_v20  ;;  %v14912_v3 = vld [vmem:[#allocation39_spill] sm:$0xff] }
0x1d3b   : > { %5538 = vrot.lane.b32.xlu0 %v5524_v37, %s14835_s7  ;;  %5542 = vrot.lane.b32.xlu1 %v5526_v56, %s14835_s7  ;;  %v5564_v56 = vld [vmem:[#allocation11 + $0x628] sm:$0xff] }
0x1d3d   : > { %v11825_v5 = vpop.permute.xlu0 %5012  ;;  %v11827_v10 = vpop.permute.xlu1 %6992 }
0x1d3e   : > { %14838 = vst [vmem:[#allocation312_spill] sm:$0xff] %v11825_v5  ;;  %14839 = vst [vmem:[#allocation313_spill] sm:$0xff] %v11827_v10 }
0x1d3f   : > { %5544 = vrot.lane.b32.xlu0 %v5527_v8, %s14835_s7  ;;  %5534 = vrot.lane.b32.xlu1 %v5522_v26, %s14835_s7  ;;  %v5568_v26 = vmul.f32 %v5564_v56, %v10400_v46  ;;  %v5566_v8 = vld [vmem:[#allocation11 + $0x638] sm:$0xff]  ;;  %v5615_v56 = vsel %vm14107_vm15, %v11430_v32, %v11434_v1  ;;  %v5626_v32 = vmul.f32 %v11436_v12, %v10471_v27 }
0x1d40   : > { %v5624_v42 = vmul.f32 %v5615_v56, %v10400_v46  ;;  %v5628_v56 = vmul.f32 0.0, %v11440_v36 }
0x1d41   : > { %v11832_v20 = vpop.permute.xlu0 %6994  ;;  %v11834_v37 = vpop.permute.xlu1 %6996 }
0x1d42   : > { %14840 = vst [vmem:[#allocation314_spill] sm:$0xff] %v11832_v20  ;;  %14841 = vst [vmem:[#allocation315_spill] sm:$0xff] %v11834_v37  ;;  %v5570_v37 = vmul.f32 %v5566_v8, %v10476_v6  ;;  %v5616_v8 = vsel %vm14107_vm15, %v11436_v12, %v11440_v36  ;;  %v5682_v12 = vsel %vm14128_vm4, %v11442_v17, %v11446_v30  ;;  %vm5882_vm15 = vcmask 343040  }
0x1d43   : > { %5540 = vrot.lane.b32.xlu0 %v5525_v63, %s14835_s7  ;;  %5575 = vrot.lane.b32.xlu1 %v5567_v45, %s14597_s21  ;;  %s15434_s7 = sld [smem:[#allocation342_spill]] }
0x1d45   : > { %v11839_v38 = vpop.permute.xlu0 %6998  ;;  %v11841_v10 = vpop.permute.xlu1 %5073 }
0x1d46   : > { %14842 = vst [vmem:[#allocation316_spill] sm:$0xff] %v11839_v38  ;;  %14843 = vst [vmem:[#allocation317_spill] sm:$0xff] %v11841_v10  ;;  %v14895_v10 = vld [vmem:[#allocation30_spill] sm:$0xff] }
0x1d47   : > { %5577 = vrot.lane.b32.xlu0 %v5568_v26, %s14597_s21  ;;  %5579 = vrot.lane.b32.xlu1 %v5569_v14, %s14597_s21  ;;  %v5625_v26 = vmul.f32 0.0, %v11434_v1 }
0x1d49   : > { %v11849_v63 = vpop.permute.xlu0 %5075  ;;  %v11851_v45 = vpop.permute.xlu1 %5079 }
0x1d4a   : > { %14844 = vst [vmem:[#allocation318_spill] sm:$0xff] %v11849_v63  ;;  %14845 = vst [vmem:[#allocation319_spill] sm:$0xff] %v11851_v45  ;;  %v14891_v45 = vld [vmem:[#allocation132_spill] sm:$0xff]  ;;  %v14896_v63 = vld [vmem:[#allocation269_spill] sm:$0xff] }
0x1d4b   : > { %5581 = vrot.lane.b32.xlu0 %v5570_v37, %s14597_s21  ;;  %5635 = vrot.lane.b32.xlu1 %v5623_v7, %s8479_s25  ;;  %v5627_v37 = vmul.f32 %v5616_v8, %v10476_v6  ;;  %v5691_v8 = vmul.f32 %v5682_v12, %v10400_v46  ;;  %v5695_v12 = vmul.f32 0.0, %v11452_v50 }
0x1d4d   : > { %v11861_v14 = vpop.permute.xlu0 %5081  ;;  %v11863_v38 = vpop.permute.xlu1 %5071 }
0x1d4e   : > { %14846 = vst [vmem:[#allocation320_spill] sm:$0xff] %v11861_v14  ;;  %14847 = vst [vmem:[#allocation321_spill] sm:$0xff] %v11863_v38  ;;  %v14890_v38 = vld [vmem:[#allocation64_spill] sm:$0xff]  ;;  %v14892_v14 = vld [vmem:[#allocation95_spill] sm:$0xff] }
0x1d4f   : > { %5637 = vrot.lane.b32.xlu0 %v5624_v42, %s8479_s25  ;;  %5639 = vrot.lane.b32.xlu1 %v5625_v26, %s8479_s25  ;;  %v5690_v42 = vmul.f32 %v11442_v17, %v10404_v44  ;;  %v5693_v17 = vmul.f32 %v11448_v60, %v10471_v27 }
0x1d51   : > { %v11873_v7 = vpop.permute.xlu0 %5077  ;;  %v11875_v1 = vpop.permute.xlu1 %7057 }
0x1d52   : > { %14848 = vst [vmem:[#allocation322_spill] sm:$0xff] %v11873_v7  ;;  %14849 = vst [vmem:[#allocation323_spill] sm:$0xff] %v11875_v1 }
0x1d53   : > { %5641 = vrot.lane.b32.xlu0 %v5626_v32, %s8479_s25  ;;  %5643 = vrot.lane.b32.xlu1 %v5627_v37, %s8479_s25  ;;  %v5692_v32 = vmul.f32 0.0, %v11446_v30 }
0x1d55   : > { %v11882_v26 = vpop.permute.xlu0 %7059  ;;  %v11884_v20 = vpop.permute.xlu1 %7061 }
0x1d56   : > { %14850 = vst [vmem:[#allocation324_spill] sm:$0xff] %v11882_v26  ;;  %14851 = vst [vmem:[#allocation325_spill] sm:$0xff] %v11884_v20  ;;  %v5683_v20 = vsel %vm14128_vm4, %v11448_v60, %v11452_v50  ;;  %v14859_v60 = vld [vmem:[#allocation260_spill] sm:$0xff]  ;;  %vm6014_vm4 = vcmask 392192  }
0x1d57   : > { %5645 = vrot.lane.b32.xlu0 %v5628_v56, %s8479_s25  ;;  %5702 = vrot.lane.b32.xlu1 %v5690_v42, %s8478_s17  ;;  %v5694_v56 = vmul.f32 %v5683_v20, %v10476_v6 }
0x1d59   : > { %v11893_v36 = vpop.permute.xlu0 %7063  ;;  %v11895_v37 = vpop.permute.xlu1 %5138 }
0x1d5a   : > { %14852 = vst [vmem:[#allocation326_spill] sm:$0xff] %v11893_v36  ;;  %14853 = vst [vmem:[#allocation327_spill] sm:$0xff] %v11895_v37 }
0x1d5b   : > { %5704 = vrot.lane.b32.xlu0 %v5691_v8, %s8478_s17  ;;  %5706 = vrot.lane.b32.xlu1 %v5692_v32, %s8478_s17  ;;  %v14856_v8 = vld [vmem:[#allocation259_spill] sm:$0xff] }
0x1d5c   : > { %v5757_v36 = vmul.f32 %v14856_v8, %v10404_v44  ;;  %v5749_v20 = vsel %vm14131_vm5, %v14856_v8, %v14859_v60 }
0x1d5d   : > { %v11905_v42 = vpop.permute.xlu0 %5140  ;;  %v11907_v30 = vpop.permute.xlu1 %5144 }
0x1d5e   : > { %14854 = vst [vmem:[#allocation328_spill] sm:$0xff] %v11905_v42  ;;  %14855 = vst [vmem:[#allocation329_spill] sm:$0xff] %v11907_v30  ;;  %v14862_v30 = vld [vmem:[#allocation262_spill] sm:$0xff] }
0x1d5f   : > { %5708 = vrot.lane.b32.xlu0 %v5693_v17, %s8478_s17  ;;  %5710 = vrot.lane.b32.xlu1 %v5694_v56, %s8478_s17  ;;  %v5758_v17 = vmul.f32 %v5749_v20, %v10400_v46  ;;  %v5759_v56 = vmul.f32 0.0, %v14859_v60  ;;  %v5762_v20 = vmul.f32 0.0, %v14862_v30 }
0x1d61   : > { %v11914_v32 = vpop.permute.xlu0 %5146  ;;  %v11916_v26 = vpop.permute.xlu1 %5136 }
0x1d62   : > { %14857 = vst [vmem:[#allocation259_spill] sm:$0xff] %v11914_v32  ;;  %14858 = vst [vmem:[#allocation330_spill] sm:$0xff] %v11916_v26  ;;  %v14863_v32 = vld [vmem:[#allocation261_spill] sm:$0xff] }
0x1d63   : > { %5712 = vrot.lane.b32.xlu0 %v5695_v12, %s8478_s17  ;;  %5769 = vrot.lane.b32.xlu1 %v5757_v36, %s8477_s22  ;;  %v5750_v26 = vsel %vm14131_vm5, %v14863_v32, %v14862_v30  ;;  %v5760_v12 = vmul.f32 %v14863_v32, %v10471_v27  ;;  %v14869_v32 = vld [vmem:[#allocation264_spill] sm:$0xff]  ;;  %vm3031_vm5 = vcmask 719872   ;;  %s15402_s17 = smov 35  }
0x1d64   : > { %v5761_v36 = vmul.f32 %v5750_v26, %v10476_v6 }
0x1d65   : > { %v11925_v50 = vpop.permute.xlu0 %5142  ;;  %v11927_v1 = vpop.permute.xlu1 %7122 }
0x1d66   : > { %14860 = vst [vmem:[#allocation260_spill] sm:$0xff] %v11925_v50  ;;  %14861 = vst [vmem:[#allocation331_spill] sm:$0xff] %v11927_v1 }
0x1d67   : > { %5771 = vrot.lane.b32.xlu0 %v5758_v17, %s8477_s22  ;;  %5773 = vrot.lane.b32.xlu1 %v5759_v56, %s8477_s22  ;;  %v14866_v17 = vld [vmem:[#allocation263_spill] sm:$0xff] }
0x1d68   : > { %v5824_v1 = vmul.f32 %v14866_v17, %v10404_v44  ;;  %v5816_v26 = vsel %vm5815_vm11, %v14866_v17, %v14869_v32 }
0x1d69   : > { %v11937_v8 = vpop.permute.xlu0 %7124  ;;  %v11939_v60 = vpop.permute.xlu1 %7126 }
0x1d6a   : > { %14864 = vst [vmem:[#allocation262_spill] sm:$0xff] %v11937_v8  ;;  %14865 = vst [vmem:[#allocation261_spill] sm:$0xff] %v11939_v60  ;;  %v14872_v8 = vld [vmem:[#allocation265_spill] sm:$0xff] }
0x1d6b   : > { %5775 = vrot.lane.b32.xlu0 %v5760_v12, %s8477_s22  ;;  %5777 = vrot.lane.b32.xlu1 %v5761_v36, %s8477_s22  ;;  %v5825_v12 = vmul.f32 %v5816_v26, %v10400_v46  ;;  %v5826_v36 = vmul.f32 0.0, %v14869_v32  ;;  %v5827_v17 = vmul.f32 %v14872_v8, %v10471_v27  ;;  %v5829_v32 = vmul.f32 0.0, %v11471_v25  ;;  %v14875_v26 = vld [vmem:[#allocation266_spill] sm:$0xff] }
0x1d6d   : > { %v11946_v56 = vpop.permute.xlu0 %7128  ;;  %v11948_v50 = vpop.permute.xlu1 %5204 }
0x1d6e   : > { %14867 = vst [vmem:[#allocation263_spill] sm:$0xff] %v11946_v56  ;;  %14868 = vst [vmem:[#allocation332_spill] sm:$0xff] %v11948_v50  ;;  %v5817_v56 = vsel %vm5815_vm11, %v14872_v8, %v11471_v25  ;;  %vm5948_vm11 = vcmask 367616  }
0x1d6f   : > { %5779 = vrot.lane.b32.xlu0 %v5762_v20, %s8477_s22  ;;  %5836 = vrot.lane.b32.xlu1 %v5824_v1, %s8489_s29  ;;  %v5828_v20 = vmul.f32 %v5817_v56, %v10476_v6 }
0x1d71   : > { %v11955_v60 = vpop.permute.xlu0 %5206  ;;  %v11957_v30 = vpop.permute.xlu1 %5210 }
0x1d72   : > { %14870 = vst [vmem:[#allocation264_spill] sm:$0xff] %v11955_v60  ;;  %14871 = vst [vmem:[#allocation333_spill] sm:$0xff] %v11957_v30  ;;  %v5891_v30 = vmul.f32 %v14875_v26, %v10404_v44 }
0x1d73   : > { %5838 = vrot.lane.b32.xlu0 %v5825_v12, %s8489_s29  ;;  %5840 = vrot.lane.b32.xlu1 %v5826_v36, %s8489_s29  ;;  %v14878_v36 = vld [vmem:[#allocation267_spill] sm:$0xff] }
0x1d74   : > { %v5883_v8 = vsel %vm5882_vm15, %v14875_v26, %v14878_v36  ;;  %v14884_v26 = vld [vmem:[#allocation125_spill] sm:$0xff] }
0x1d75   : > { %v11964_v50 = vpop.permute.xlu0 %5212  ;;  %v11966_v1 = vpop.permute.xlu1 %5202  ;;  %v5892_v56 = vmul.f32 %v5883_v8, %v10400_v46  ;;  %v2444_v42 = vmul.f32 0.0, %v14884_v26 }
0x1d76   : > { %14873 = vst [vmem:[#allocation265_spill] sm:$0xff] %v11964_v50  ;;  %14874 = vst [vmem:[#allocation334_spill] sm:$0xff] %v11966_v1  ;;  %v14882_v1 = vld [vmem:[#allocation268_spill] sm:$0xff] }
0x1d77   : > { %5842 = vrot.lane.b32.xlu0 %v5827_v17, %s8489_s29  ;;  %5844 = vrot.lane.b32.xlu1 %v5828_v20, %s8489_s29  ;;  %v5893_v17 = vmul.f32 0.0, %v14878_v36  ;;  %v5884_v50 = vsel %vm5882_vm15, %v14882_v1, %v11479_v55  ;;  %v14887_v36 = vld [vmem:[#allocation92_spill] sm:$0xff]  ;;  %vm2703_vm15 = vcmask 982016  }
0x1d78   : > { %v5895_v37 = vmul.f32 %v5884_v50, %v10476_v6 }
0x1d79   : > { %v11971_v60 = vpop.permute.xlu0 %5208  ;;  %v11973_v12 = vpop.permute.xlu1 %5271 }
0x1d7a   : > { %14876 = vst [vmem:[#allocation266_spill] sm:$0xff] %v11971_v60  ;;  %14877 = vst [vmem:[#allocation335_spill] sm:$0xff] %v11973_v12  ;;  %v14883_v12 = vld [vmem:[#allocation38_spill] sm:$0xff]  ;;  %v14886_v60 = vld [vmem:[#allocation129_spill] sm:$0xff] }
0x1d7b   : > { %5846 = vrot.lane.b32.xlu0 %v5829_v32, %s8489_s29  ;;  %5903 = vrot.lane.b32.xlu1 %v5891_v30, %s14879_s8  ;;  %v2436_v32 = vsel %vm2343_vm3, %v14884_v26, %v14883_v12  ;;  %v14885_v30 = vld [vmem:[#allocation63_spill] sm:$0xff]  ;;  %v2446_v7 = vmul.f32 %v14883_v12, %v10400_v46  ;;  %v14893_v12 = vld [vmem:[#allocation65_spill] sm:$0xff] }
0x1d7c   : > { %v2505_v8 = vsel %vm909_vm10, %v14886_v60, %v14885_v30  ;;  %v2445_v60 = vmul.f32 %v2436_v32, %v10404_v44  ;;  %v14894_v32 = vld [vmem:[#allocation135_spill] sm:$0xff] }
0x1d7d   : > { %v11980_v20 = vpop.permute.xlu0 %5273  ;;  %v11982_v25 = vpop.permute.xlu1 %5277  ;;  %v2515_v50 = vadd.f32 %v2505_v8, %v2444_v42  ;;  %v14899_v8 = vld [vmem:[#allocation270_spill] sm:$0xff] }
0x1d7e   : > { %14880 = vst [vmem:[#allocation267_spill] sm:$0xff] %v11980_v20  ;;  %14881 = vst [vmem:[#allocation336_spill] sm:$0xff] %v11982_v25  ;;  %v2506_v20 = vsel %vm909_vm10, %v14885_v30, %v14887_v36  ;;  %v5894_v25 = vmul.f32 %v14882_v1, %v10471_v27  ;;  %v2570_v30 = vsel %vm1043_vm9, %v14891_v45, %v14890_v38 }
0x1d7f   : > { %5905 = vrot.lane.b32.xlu0 %v5892_v56, %s14879_s8  ;;  %5907 = vrot.lane.b32.xlu1 %v5893_v17, %s14879_s8  ;;  %v2571_v1 = vsel %vm1043_vm9, %v14890_v38, %v14892_v14  ;;  %v2516_v26 = vadd.f32 %v2506_v20, %v2445_v60  ;;  %v2638_v45 = vsel %vm2636_vm6, %v14893_v12, %v14895_v10  ;;  %v5896_v38 = vmul.f32 0.0, %v11479_v55  ;;  %v14900_v60 = vld [vmem:[#allocation67_spill] sm:$0xff]  ;;  %v14902_v55 = vld [vmem:[#allocation34_spill] sm:$0xff] }
0x1d80   : > { %v2580_v42 = vadd.f32 %v2570_v30, %v2515_v50  ;;  %v2705_v47 = vsel %vm2703_vm15, %v14900_v60, %v14902_v55  ;;  %v14905_v50 = vld [vmem:[#allocation46_spill] sm:$0xff] }
0x1d81   : > { %v12000_v56 = vpop.permute.xlu0 %5279  ;;  %v12002_v17 = vpop.permute.xlu1 %5269 }
0x1d82   : > { %14888 = vst [vmem:[#allocation268_spill] sm:$0xff] %v12000_v56  ;;  %14889 = vst [vmem:[#allocation38_spill] sm:$0xff] %v12002_v17  ;;  %v2517_v56 = vadd.f32 %v14887_v36, %v2446_v7  ;;  %v2637_v17 = vsel %vm2636_vm6, %v14894_v32, %v14893_v12  ;;  %v2581_v7 = vadd.f32 %v2571_v1, %v2516_v26  ;;  %v14901_v32 = vld [vmem:[#allocation47_spill] sm:$0xff]  ;;  %v14906_v26 = vld [vmem:[#allocation80_spill] sm:$0xff] }
0x1d83   : > { %5909 = vrot.lane.b32.xlu0 %v5894_v25, %s14879_s8  ;;  %5911 = vrot.lane.b32.xlu1 %v5895_v37, %s14879_s8  ;;  %v5957_v25 = vmul.f32 %v14896_v63, %v10404_v44  ;;  %v5949_v36 = vsel %vm5948_vm11, %v14896_v63, %v14899_v8  ;;  %v2704_v12 = vsel %vm2703_vm15, %v14901_v32, %v14900_v60  ;;  %v5959_v60 = vmul.f32 0.0, %v14899_v8  ;;  %v14914_v8 = vld [vmem:[#allocation36_spill] sm:$0xff] }
0x1d84   : > { %v2582_v20 = vadd.f32 %v14892_v14, %v2517_v56  ;;  %v2647_v30 = vadd.f32 %v2637_v17, %v2580_v42  ;;  %v2648_v1 = vadd.f32 %v2638_v45, %v2581_v7  ;;  %v14904_v56 = vld [vmem:[#allocation85_spill] sm:$0xff]  ;;  %v14910_v42 = vld [vmem:[#allocation271_spill] sm:$0xff] }
0x1d85   : > { %v12026_v5 = vpop.permute.xlu0 %5275  ;;  %v12028_v37 = vpop.permute.xlu1 %5338  ;;  %v2769_v63 = vsel %vm876_vm2, %v14905_v50, %v14904_v56  ;;  %v2770_v32 = vsel %vm876_vm2, %v14904_v56, %v14906_v26  ;;  %v14913_v56 = vld [vmem:[#allocation69_spill] sm:$0xff] }
0x1d86   : > { %14897 = vst [vmem:[#allocation125_spill] sm:$0xff] %v12026_v5  ;;  %14898 = vst [vmem:[#allocation63_spill] sm:$0xff] %v12028_v37  ;;  %v2649_v14 = vadd.f32 %v14895_v10, %v2582_v20  ;;  %v5958_v37 = vmul.f32 %v5949_v36, %v10400_v46  ;;  %v2714_v17 = vadd.f32 %v2704_v12, %v2647_v30  ;;  %v14911_v20 = vld [vmem:[#allocation126_spill] sm:$0xff] }
0x1d87   : > { %5913 = vrot.lane.b32.xlu0 %v5896_v38, %s14879_s8  ;;  %5969 = vrot.lane.b32.xlu1 %v5957_v25, %s14903_s16  ;;  %v2715_v45 = vadd.f32 %v2705_v47, %v2648_v1  ;;  %v14909_v25 = vld [vmem:[#allocation272_spill] sm:$0xff]  ;;  %v2447_v50 = vmul.f32 0.0, %v14911_v20  ;;  %v2437_v36 = vsel %vm2343_vm3, %v14911_v20, %v14912_v3  ;;  %v2835_v47 = vsel %vm771_vm8, %v14913_v56, %v14915_v29  ;;  %v14916_v1 = vld [vmem:[#allocation87_spill] sm:$0xff] }
0x1d88   : > { %v2716_v10 = vadd.f32 %v14902_v55, %v2649_v14  ;;  %v5950_v7 = vsel %vm5948_vm11, %v14910_v42, %v14909_v25  ;;  %v2779_v12 = vadd.f32 %v2769_v63, %v2714_v17  ;;  %vm2964_vm11 = vcmask 736256   ;;  %v14917_v14 = vld [vmem:[#allocation37_spill] sm:$0xff] }
0x1d89   : > { %v12051_v5 = vpop.permute.xlu0 %5340  ;;  %v12053_v38 = vpop.permute.xlu1 %5344  ;;  %v2780_v55 = vadd.f32 %v2770_v32, %v2715_v45  ;;  %v2899_v20 = vsel %vm14140_vm0, %v14917_v14, %v14916_v1  ;;  %v2449_v45 = vmul.f32 %v14912_v3, %v10476_v6 }
0x1d8a   : > { %14907 = vst [vmem:[#allocation129_spill] sm:$0xff] %v12051_v5  ;;  %14908 = vst [vmem:[#allocation92_spill] sm:$0xff] %v12053_v38  ;;  %v2834_v5 = vsel %vm771_vm8, %v14914_v8, %v14913_v56  ;;  %v2781_v30 = vadd.f32 %v14906_v26, %v2716_v10  ;;  %v14918_v38 = vld [vmem:[#allocation73_spill] sm:$0xff]  ;;  %v5960_v56 = vmul.f32 %v14910_v42, %v10471_v27  ;;  %v14921_v10 = vld [vmem:[#allocation75_spill] sm:$0xff] }
0x1d8b   : > { %5971 = vrot.lane.b32.xlu0 %v5958_v37, %s14903_s16  ;;  %5973 = vrot.lane.b32.xlu1 %v5959_v60, %s14903_s16  ;;  %v2900_v8 = vsel %vm14140_vm0, %v14916_v1, %v14918_v38  ;;  %v5961_v37 = vmul.f32 %v5950_v7, %v10476_v6  ;;  %v2448_v26 = vmul.f32 %v2437_v36, %v10471_v27  ;;  %v14922_v1 = vld [vmem:[#allocation40_spill] sm:$0xff]  ;;  %v14923_v42 = vld [vmem:[#allocation91_spill] sm:$0xff] }
0x1d8c   : > { %v2844_v32 = vadd.f32 %v2834_v5, %v2779_v12  ;;  %v2845_v60 = vadd.f32 %v2835_v47, %v2780_v55  ;;  %v2846_v17 = vadd.f32 %v14915_v29, %v2781_v30  ;;  %v2507_v14 = vsel %vm909_vm10, %v14922_v1, %v14921_v10  ;;  %v14924_v47 = vld [vmem:[#allocation78_spill] sm:$0xff]  ;;  %v14925_v12 = vld [vmem:[#allocation49_spill] sm:$0xff] }
0x1d8d   : > { %v12081_v52 = vpop.permute.xlu0 %5346  ;;  %v12083_v63 = vpop.permute.xlu1 %5336  ;;  %v2508_v7 = vsel %vm909_vm10, %v14921_v10, %v14923_v42  ;;  %v2965_v3 = vsel %vm2964_vm11, %v14925_v12, %v14924_v47  ;;  %v14926_v55 = vld [vmem:[#allocation97_spill] sm:$0xff]  ;;  %v14931_v12 = vld [vmem:[#allocation94_spill] sm:$0xff] }
0x1d8e   : > { %14919 = vst [vmem:[#allocation64_spill] sm:$0xff] %v12081_v52  ;;  %14920 = vst [vmem:[#allocation132_spill] sm:$0xff] %v12083_v63  ;;  %v2909_v5 = vadd.f32 %v2899_v20, %v2844_v32  ;;  %v2910_v36 = vadd.f32 %v2900_v8, %v2845_v60  ;;  %v2911_v29 = vadd.f32 %v14918_v38, %v2846_v17  ;;  %v14927_v30 = vld [vmem:[#allocation41_spill] sm:$0xff] }
0x1d8f   : > { %5975 = vrot.lane.b32.xlu0 %v5960_v56, %s14903_s16  ;;  %5977 = vrot.lane.b32.xlu1 %v5961_v37, %s14903_s16  ;;  %v2572_v1 = vsel %vm1043_vm9, %v14927_v30, %v14926_v55  ;;  %v14928_v52 = vld [vmem:[#allocation29_spill] sm:$0xff]  ;;  %v5962_v56 = vmul.f32 0.0, %v14909_v25  ;;  %v6023_v20 = vmul.f32 %v11497_v51, %v10404_v44  ;;  %v2520_v37 = vadd.f32 %v14923_v42, %v2449_v45  ;;  %v14932_v25 = vld [vmem:[#allocation54_spill] sm:$0xff]  ;;  %v14933_v30 = vld [vmem:[#allocation48_spill] sm:$0xff] }
0x1d90   : > { %v2573_v10 = vsel %vm1043_vm9, %v14926_v55, %v14928_v52  ;;  %v2518_v32 = vadd.f32 %v2507_v14, %v2447_v50  ;;  %v2519_v60 = vadd.f32 %v2508_v7, %v2448_v26  ;;  %v6015_v17 = vsel %vm6014_vm4, %v11497_v51, %v11502_v62  ;;  %v14935_v14 = vld [vmem:[#allocation82_spill] sm:$0xff] }
0x1d91   : > { %v12110_v8 = vpop.permute.xlu0 %5342  ;;  %v12112_v38 = vpop.permute.xlu1 %5405  ;;  %v2966_v55 = vsel %vm2964_vm11, %v14924_v47, %v14931_v12  ;;  %v2639_v63 = vsel %vm2636_vm6, %v14933_v30, %v14932_v25  ;;  %v2977_v50 = vadd.f32 %v14931_v12, %v2911_v29  ;;  %v2585_v51 = vadd.f32 %v14928_v52, %v2520_v37  ;;  %v14936_v42 = vld [vmem:[#allocation42_spill] sm:$0xff]  ;;  %v14937_v47 = vld [vmem:[#allocation32_spill] sm:$0xff]  ;;  %v14941_v12 = vld [vmem:[#allocation57_spill] sm:$0xff] }
0x1d92   : > { %14929 = vst [vmem:[#allocation95_spill] sm:$0xff] %v12110_v8  ;;  %14930 = vst [vmem:[#allocation65_spill] sm:$0xff] %v12112_v38  ;;  %v2640_v38 = vsel %vm2636_vm6, %v14932_v25, %v14934_v39  ;;  %v2583_v26 = vadd.f32 %v2572_v1, %v2518_v32  ;;  %v2584_v45 = vadd.f32 %v2573_v10, %v2519_v60  ;;  %v14939_v32 = vld [vmem:[#allocation53_spill] sm:$0xff]  ;;  %v14940_v60 = vld [vmem:[#allocation58_spill] sm:$0xff] }
0x1d93   : > { %5979 = vrot.lane.b32.xlu0 %v5962_v56, %s14903_s16  ;;  %6035 = vrot.lane.b32.xlu1 %v6023_v20, %s8490_s23  ;;  %v2706_v7 = vsel %vm2703_vm15, %v14936_v42, %v14935_v14  ;;  %v2707_v30 = vsel %vm2703_vm15, %v14935_v14, %v14937_v47  ;;  %v6024_v25 = vmul.f32 %v6015_v17, %v10400_v46  ;;  %v6025_v56 = vmul.f32 0.0, %v11502_v62 }
0x1d94   : > { %v2652_v52 = vadd.f32 %v14934_v39, %v2585_v51  ;;  %v2650_v29 = vadd.f32 %v2639_v63, %v2583_v26  ;;  %v2651_v1 = vadd.f32 %v2640_v38, %v2584_v45  ;;  %v6016_v10 = vsel %vm6014_vm4, %v11504_v15, %v11507_v53  ;;  %v14942_v26 = vld [vmem:[#allocation68_spill] sm:$0xff]  ;;  %v14944_v45 = vld [vmem:[#allocation93_spill] sm:$0xff] }
0x1d95   : > { %v12139_v8 = vpop.permute.xlu0 %5407  ;;  %v12141_v20 = vpop.permute.xlu1 %5411  ;;  %v2975_v37 = vadd.f32 %v2965_v3, %v2909_v5  ;;  %v2771_v17 = vsel %vm876_vm2, %v14940_v60, %v14939_v32  ;;  %v2772_v62 = vsel %vm876_vm2, %v14939_v32, %v14941_v12  ;;  %v2976_v39 = vadd.f32 %v2966_v55, %v2910_v36  ;;  %v14943_v5 = vld [vmem:[#allocation43_spill] sm:$0xff]  ;;  %v14949_v60 = vld [vmem:[#allocation77_spill] sm:$0xff] }
0x1d96   : > { %14938 = vst [vmem:[#allocation135_spill] sm:$0xff] %v12139_v8  ;;  %v2719_v63 = vadd.f32 %v14937_v47, %v2652_v52  ;;  %v2717_v38 = vadd.f32 %v2706_v7, %v2650_v29  ;;  %v2718_v51 = vadd.f32 %v2707_v30, %v2651_v1  ;;  %v2836_v3 = vsel %vm771_vm8, %v14943_v5, %v14942_v26  ;;  %v14946_v55 = vld [vmem:[#allocation71_spill] sm:$0xff]  ;;  %v14947_v7 = vld [vmem:[#allocation62_spill] sm:$0xff]  ;;  %v14948_v29 = vld [vmem:[#allocation45_spill] sm:$0xff] }
0x1d97   : > { %6037 = vrot.lane.b32.xlu0 %v6024_v25, %s8490_s23  ;;  %6039 = vrot.lane.b32.xlu1 %v6025_v56, %s8490_s23  ;;  %v2837_v14 = vsel %vm771_vm8, %v14942_v26, %v14944_v45  ;;  %v6026_v42 = vmul.f32 %v11504_v15, %v10471_v27  ;;  %v6027_v25 = vmul.f32 %v6016_v10, %v10476_v6  ;;  %v14950_v15 = vld [vmem:[#allocation44_spill] sm:$0xff]  ;;  %v14951_v26 = vld [vmem:[#allocation51_spill] sm:$0xff]  ;;  %vm14142_vm8 = vcmask 416768  }
0x1d98   : > { %v3032_v47 = vsel %vm3031_vm5, %v14947_v7, %v14946_v55  ;;  %v2784_v30 = vadd.f32 %v14941_v12, %v2719_v63  ;;  %v2782_v56 = vadd.f32 %v2771_v17, %v2717_v38  ;;  %v2783_v52 = vadd.f32 %v2772_v62, %v2718_v51  ;;  %v14952_v38 = vld [vmem:[#allocation100_spill] sm:$0xff]  ;;  %v14954_v7 = vld [vmem:[#allocation33_spill] sm:$0xff] }
0x1d99   : > { %v12165_v32 = vpop.permute.xlu0 %5413  ;;  %v12167_v36 = vpop.permute.xlu1 %5403  ;;  %v3033_v1 = vsel %vm3031_vm5, %v14946_v55, %v14948_v29  ;;  %v2901_v10 = vsel %vm14140_vm0, %v14950_v15, %v14949_v60  ;;  %v2902_v5 = vsel %vm14140_vm0, %v14949_v60, %v14951_v26  ;;  %v3044_v17 = vadd.f32 %v14948_v29, %v2977_v50  ;;  %v14953_v51 = vld [vmem:[#allocation60_spill] sm:$0xff]  ;;  %v14959_v29 = vld [vmem:[#allocation31_spill] sm:$0xff] }
0x1d9a   : > { %14945 = vst [vmem:[#allocation30_spill] sm:$0xff] %v12165_v32  ;;  %v2849_v12 = vadd.f32 %v14944_v45, %v2784_v30  ;;  %v2847_v62 = vadd.f32 %v2836_v3, %v2782_v56  ;;  %v2848_v63 = vadd.f32 %v2837_v14, %v2783_v52  ;;  %v2967_v55 = vsel %vm2964_vm11, %v14953_v51, %v14952_v38  ;;  %v14958_v30 = vld [vmem:[#allocation274_spill] sm:$0xff] }
0x1d9b   : > { %6041 = vrot.lane.b32.xlu0 %v6026_v42, %s8490_s23  ;;  %6043 = vrot.lane.b32.xlu1 %v6027_v25, %s8490_s23  ;;  %v2968_v15 = vsel %vm2964_vm11, %v14952_v38, %v14954_v7  ;;  %v6028_v60 = vmul.f32 0.0, %v11507_v53  ;;  %v14955_v42 = vld [vmem:[#allocation273_spill] sm:$0xff]  ;;  %v3042_v52 = vadd.f32 %v3032_v47, %v2975_v37  ;;  %v14960_v38 = vld [vmem:[#allocation83_spill] sm:$0xff]  ;;  %v14961_v51 = vld [vmem:[#allocation66_spill] sm:$0xff]  ;;  %vm15003_vm4 = vcmask 261120  }
0x1d9c   : > { %v6089_v32 = vmul.f32 %v14955_v42, %v10404_v44  ;;  %v2914_v3 = vadd.f32 %v14951_v26, %v2849_v12  ;;  %v2912_v45 = vadd.f32 %v2901_v10, %v2847_v62  ;;  %v2913_v14 = vadd.f32 %v2902_v5, %v2848_v63  ;;  %v14962_v62 = vld [vmem:[#allocation96_spill] sm:$0xff]  ;;  %v14964_v47 = vld [vmem:[#allocation79_spill] sm:$0xff] }
0x1d9d   : > { %v12195_v25 = vpop.permute.xlu0 %5409  ;;  %v12197_v50 = vpop.permute.xlu1 %5471  ;;  %v6081_v56 = vsel %vm14142_vm8, %v14955_v42, %v14958_v30  ;;  %v3034_v53 = vsel %vm3031_vm5, %v14960_v38, %v14959_v29  ;;  %v3035_v8 = vsel %vm3031_vm5, %v14959_v29, %v14961_v51  ;;  %v3043_v26 = vadd.f32 %v3033_v1, %v2976_v39  ;;  %v14963_v63 = vld [vmem:[#allocation72_spill] sm:$0xff] }
0x1d9e   : > { %14956 = vst [vmem:[#allocation269_spill] sm:$0xff] %v12195_v25  ;;  %14957 = vst [vmem:[#allocation270_spill] sm:$0xff] %v12197_v50  ;;  %v2980_v10 = vadd.f32 %v14954_v7, %v2914_v3  ;;  %v2978_v5 = vadd.f32 %v2967_v55, %v2912_v45  ;;  %v2979_v12 = vadd.f32 %v2968_v15, %v2913_v14  ;;  %v6091_v29 = vmul.f32 0.0, %v14958_v30  ;;  %v14967_v7 = vld [vmem:[#allocation275_spill] sm:$0xff]  ;;  %v14968_v3 = vld [vmem:[#allocation74_spill] sm:$0xff] }
0x1d9f   : > { %6045 = vrot.lane.b32.xlu0 %v6028_v60, %s8490_s23  ;;  %6101 = vrot.lane.b32.xlu1 %v6089_v32, %s8472_s13  ;;  %v3097_v37 = vsel %vm2075_vm1, %v14963_v63, %v14962_v62  ;;  %v3098_v42 = vsel %vm2075_vm1, %v14962_v62, %v14964_v47  ;;  %v6090_v38 = vmul.f32 %v6081_v56, %v10400_v46  ;;  %v14969_v45 = vld [vmem:[#allocation70_spill] sm:$0xff]  ;;  %v14972_v63 = vld [vmem:[#allocation81_spill] sm:$0xff]  ;;  %v14980_v25 = vld [vmem:[#allocation88_spill] sm:$0xff]  ;;  %vm3329_vm5 = vcmask 457728   ;;  %s15435_s23 = sld [smem:[#allocation350_spill]] }
0x1da0   : > { %v3047_v39 = vadd.f32 %v14961_v51, %v2980_v10  ;;  %v3045_v1 = vadd.f32 %v3034_v53, %v2978_v5  ;;  %v3046_v55 = vadd.f32 %v3035_v8, %v2979_v12  ;;  %v6082_v15 = vsel %vm14142_vm8, %v14967_v7, %v11521_v16  ;;  %v14970_v62 = vld [vmem:[#allocation90_spill] sm:$0xff]  ;;  %v14974_v12 = vld [vmem:[#allocation55_spill] sm:$0xff]  ;;  %v14979_v50 = vld [vmem:[#allocation101_spill] sm:$0xff] }
0x1da1   : > { %v12220_v60 = vpop.permute.xlu0 %5473  ;;  %v12222_v32 = vpop.permute.xlu1 %5477  ;;  %v3099_v14 = vsel %vm2075_vm1, %v14969_v45, %v14968_v3  ;;  %v3100_v30 = vsel %vm2075_vm1, %v14968_v3, %v14970_v62  ;;  %v14971_v56 = vld [vmem:[#allocation98_spill] sm:$0xff]  ;;  %v3109_v8 = vadd.f32 %v14964_v47, %v3044_v17  ;;  %v3107_v53 = vadd.f32 %v3097_v37, %v3042_v52 }
0x1da2   : > { %14965 = vst [vmem:[#allocation67_spill] sm:$0xff] %v12220_v60  ;;  %14966 = vst [vmem:[#allocation47_spill] sm:$0xff] %v12222_v32  ;;  %v3162_v60 = vsel %vm2209_vm13, %v14972_v63, %v14971_v56  ;;  %v3108_v51 = vadd.f32 %v3098_v42, %v3043_v26  ;;  %v14973_v10 = vld [vmem:[#allocation86_spill] sm:$0xff]  ;;  %v14976_v32 = vld [vmem:[#allocation84_spill] sm:$0xff]  ;;  %v3112_v26 = vadd.f32 %v14970_v62, %v3047_v39  ;;  %vm5714_vm1 = vcmask 441344  }
0x1da3   : > { %6103 = vrot.lane.b32.xlu0 %v6090_v38, %s8472_s13  ;;  %6105 = vrot.lane.b32.xlu1 %v6091_v29, %s8472_s13  ;;  %v3163_v5 = vsel %vm2209_vm13, %v14971_v56, %v14973_v10  ;;  %v14975_v45 = vld [vmem:[#allocation50_spill] sm:$0xff]  ;;  %v3165_v63 = vsel %vm2209_vm13, %v14974_v12, %v14976_v32  ;;  %v6092_v38 = vmul.f32 %v14967_v7, %v10471_v27  ;;  %v14983_v62 = vld [vmem:[#allocation276_spill] sm:$0xff]  ;;  %vm15014_vm0 = vcmask 244736  }
0x1da4   : > { %v3164_v3 = vsel %vm2209_vm13, %v14975_v45, %v14974_v12  ;;  %v6093_v29 = vmul.f32 %v6082_v15, %v10476_v6  ;;  %v3110_v37 = vadd.f32 %v3099_v14, %v3045_v1  ;;  %v3111_v47 = vadd.f32 %v3100_v30, %v3046_v55  ;;  %v14982_v1 = vld [vmem:[#allocation76_spill] sm:$0xff] }
0x1da5   : > { %v12252_v17 = vpop.permute.xlu0 %5479  ;;  %v12254_v52 = vpop.permute.xlu1 %5469  ;;  %v3172_v42 = vadd.f32 %v3162_v60, %v3107_v53  ;;  %v3173_v56 = vadd.f32 %v3163_v5, %v3108_v51  ;;  %v3174_v45 = vadd.f32 %v14973_v10, %v3109_v8  ;;  %v3199_v12 = vsel %vm2343_vm3, %v14980_v25, %v14979_v50  ;;  %v14981_v60 = vld [vmem:[#allocation99_spill] sm:$0xff]  ;;  %v14986_v5 = vld [vmem:[#allocation104_spill] sm:$0xff] }
0x1da6   : > { %14977 = vst [vmem:[#allocation34_spill] sm:$0xff] %v12252_v17  ;;  %14978 = vst [vmem:[#allocation85_spill] sm:$0xff] %v12254_v52  ;;  %v3175_v7 = vadd.f32 %v3164_v3, %v3110_v37  ;;  %v3176_v15 = vadd.f32 %v3165_v63, %v3111_v47  ;;  %v3177_v17 = vadd.f32 %v14976_v32, %v3112_v26  ;;  %vm3262_vm13 = vcmask 474112   ;;  %v14987_v3 = vld [vmem:[#allocation103_spill] sm:$0xff]  ;;  %v14988_v63 = vld [vmem:[#allocation106_spill] sm:$0xff] }
0x1da7   : > { %6107 = vrot.lane.b32.xlu0 %v6092_v38, %s8472_s13  ;;  %6109 = vrot.lane.b32.xlu1 %v6093_v29, %s8472_s13  ;;  %v3207_v39 = vadd.f32 %v14980_v25, %v3172_v42  ;;  %v3200_v55 = vsel %vm2343_vm3, %v14982_v1, %v14981_v60  ;;  %v6094_v14 = vmul.f32 0.0, %v11521_v16  ;;  %v6154_v30 = vmul.f32 %v14983_v62, %v10404_v44  ;;  %v14989_v37 = vld [vmem:[#allocation102_spill] sm:$0xff]  ;;  %v14990_v47 = vld [vmem:[#allocation28_spill] sm:$0xff] }
0x1da8   : > { %v3208_v51 = vadd.f32 %v3199_v12, %v3173_v56  ;;  %v3209_v10 = vadd.f32 %v14979_v50, %v3174_v45  ;;  %v6146_v25 = vsel %vm5714_vm1, %v14983_v62, %v11532_v54  ;;  %v3210_v32 = vadd.f32 %v14982_v1, %v3175_v7  ;;  %v14991_v56 = vld [vmem:[#allocation110_spill] sm:$0xff]  ;;  %v14992_v12 = vld [vmem:[#allocation111_spill] sm:$0xff]  ;;  %v14993_v7 = vld [vmem:[#allocation109_spill] sm:$0xff] }
0x1da9   : > { %v12271_v8 = vpop.permute.xlu0 %5475  ;;  %v12273_v53 = vpop.permute.xlu1 %5536  ;;  %v3263_v16 = vsel %vm3262_vm13, %v14987_v3, %v14986_v5  ;;  %v3264_v38 = vsel %vm3262_vm13, %v14986_v5, %v14988_v63  ;;  %v3211_v50 = vadd.f32 %v3200_v55, %v3176_v15  ;;  %v3212_v29 = vadd.f32 %v14981_v60, %v3177_v17 }
0x1daa   : > { %14984 = vst [vmem:[#allocation46_spill] sm:$0xff] %v12271_v8  ;;  %14985 = vst [vmem:[#allocation80_spill] sm:$0xff] %v12273_v53  ;;  %v3273_v26 = vadd.f32 %v14987_v3, %v3207_v39  ;;  %v3265_v42 = vsel %vm3262_vm13, %v14990_v47, %v14989_v37  ;;  %v3266_v45 = vsel %vm3262_vm13, %v14989_v37, %v14991_v56  ;;  %v6156_v15 = vmul.f32 0.0, %v11532_v54  ;;  %v14997_v3 = vld [vmem:[#allocation89_spill] sm:$0xff]  ;;  %v14998_v37 = vld [vmem:[#allocation108_spill] sm:$0xff] }
0x1dab   : > { %6111 = vrot.lane.b32.xlu0 %v6094_v14, %s8472_s13  ;;  %6166 = vrot.lane.b32.xlu1 %v6154_v30, %s8471_s12  ;;  %v3330_v1 = vsel %vm3329_vm5, %v14993_v7, %v14992_v12  ;;  %v6155_v14 = vmul.f32 %v6146_v25, %v10400_v46  ;;  %v3274_v39 = vadd.f32 %v3263_v16, %v3208_v51  ;;  %v14996_v30 = vld [vmem:[#allocation277_spill] sm:$0xff]  ;;  %v14999_v25 = vld [vmem:[#allocation107_spill] sm:$0xff]  ;;  %v15000_v56 = vld [vmem:[#allocation116_spill] sm:$0xff]  ;;  %s15445_s13 = sld [smem:[#allocation351_spill]] }
0x1dac   : > { %v3275_v60 = vadd.f32 %v3264_v38, %v3209_v10  ;;  %v3276_v62 = vadd.f32 %v14990_v47, %v3210_v32  ;;  %v6147_v5 = vsel %vm5714_vm1, %v14996_v30, %v11541_v49  ;;  %v3331_v63 = vsel %vm3329_vm5, %v14992_v12, %v14997_v3  ;;  %v15001_v38 = vld [vmem:[#allocation117_spill] sm:$0xff]  ;;  %v15002_v47 = vld [vmem:[#allocation115_spill] sm:$0xff]  ;;  %v15004_v3 = vld [vmem:[#allocation114_spill] sm:$0xff] }
0x1dad   : > { %v12301_v55 = vpop.permute.xlu0 %5538  ;;  %v12303_v17 = vpop.permute.xlu1 %5542  ;;  %v3332_v54 = vsel %vm3329_vm5, %v14999_v25, %v14998_v37  ;;  %v3277_v51 = vadd.f32 %v3265_v42, %v3211_v50  ;;  %v3278_v10 = vadd.f32 %v3266_v45, %v3212_v29  ;;  %v3340_v32 = vadd.f32 %v14993_v7, %v3273_v26  ;;  %vm15005_vm13 = vmmov %vm15003_vm4 }
0x1dae   : > { %14994 = vst [vmem:[#allocation272_spill] sm:$0xff] %v12301_v55  ;;  %14995 = vst [vmem:[#allocation271_spill] sm:$0xff] %v12303_v17  ;;  %v3333_v55 = vsel %vm3329_vm5, %v14998_v37, %v15000_v56  ;;  %v3341_v16 = vadd.f32 %v3330_v1, %v3274_v39  ;;  %v3396_v12 = vsel %vm15003_vm4, %v15002_v47, %v15001_v38  ;;  %v15008_v1 = vld [vmem:[#allocation121_spill] sm:$0xff] }
0x1daf   : > { %6168 = vrot.lane.b32.xlu0 %v6155_v14, %s8471_s12  ;;  %6170 = vrot.lane.b32.xlu1 %v6156_v15, %s8471_s12  ;;  %v3397_v17 = vsel %vm15005_vm13, %v15001_v38, %v15004_v3  ;;  %v6157_v37 = vmul.f32 %v14996_v30, %v10471_v27  ;;  %v6158_v14 = vmul.f32 %v6147_v5, %v10476_v6  ;;  %v15009_v15 = vld [vmem:[#allocation113_spill] sm:$0xff]  ;;  %vm15010_vm5 = vmmov %vm15003_vm4  ;;  %v15011_v38 = vld [vmem:[#allocation122_spill] sm:$0xff]  ;;  %vm5647_vm13 = vcmask 465920  }
0x1db0   : > { %v3342_v29 = vadd.f32 %v3331_v63, %v3275_v60  ;;  %v3343_v26 = vadd.f32 %v14999_v25, %v3276_v62  ;;  %v3344_v42 = vadd.f32 %v3332_v54, %v3277_v51  ;;  %v3345_v45 = vadd.f32 %v3333_v55, %v3278_v10  ;;  %v15012_v55 = vld [vmem:[#allocation119_spill] sm:$0xff]  ;;  %v15013_v63 = vld [vmem:[#allocation105_spill] sm:$0xff]  ;;  %v15015_v54 = vld [vmem:[#allocation120_spill] sm:$0xff] }
0x1db1   : > { %v12330_v56 = vpop.permute.xlu0 %5544  ;;  %v12332_v50 = vpop.permute.xlu1 %5534  ;;  %v3406_v7 = vadd.f32 %v15002_v47, %v3340_v32  ;;  %v3398_v39 = vsel %vm15010_vm5, %v15009_v15, %v15008_v1  ;;  %v3399_v30 = vsel %vm15003_vm4, %v15008_v1, %v15011_v38  ;;  %v3407_v60 = vadd.f32 %v3396_v12, %v3341_v16  ;;  %vm15016_vm5 = vmmov %vm15014_vm0  ;;  %v15017_v10 = vld [vmem:[#allocation123_spill] sm:$0xff]  ;;  %v15018_v32 = vld [vmem:[#allocation112_spill] sm:$0xff] }
0x1db2   : > { %15006 = vst [vmem:[#allocation126_spill] sm:$0xff] %v12330_v56  ;;  %15007 = vst [vmem:[#allocation39_spill] sm:$0xff] %v12332_v50  ;;  %v3408_v5 = vadd.f32 %v3397_v17, %v3342_v29  ;;  %v3409_v62 = vadd.f32 %v15009_v15, %v3343_v26  ;;  %v3461_v25 = vsel %vm15014_vm0, %v15013_v63, %v15012_v55  ;;  %v6159_v3 = vmul.f32 0.0, %v11541_v49  ;;  %v15023_v38 = vld [vmem:[#allocation124_spill] sm:$0xff] }
0x1db3   : > { %6172 = vrot.lane.b32.xlu0 %v6157_v37, %s8471_s12  ;;  %6174 = vrot.lane.b32.xlu1 %v6158_v14, %s8471_s12  ;;  %v3462_v51 = vsel %vm15016_vm5, %v15012_v55, %v15015_v54  ;;  %vm15019_vm4 = vmmov %vm15014_vm0  ;;  %v15020_v37 = vld [vmem:[#allocation278_spill] sm:$0xff]  ;;  %v3410_v14 = vadd.f32 %v3398_v39, %v3344_v42  ;;  %v3411_v29 = vadd.f32 %v3399_v30, %v3345_v45  ;;  %vm15026_vm5 = vcmask 228352   ;;  %v15027_v39 = vld [vmem:[#allocation127_spill] sm:$0xff] }
0x1db4   : > { %v3463_v47 = vsel %vm15019_vm4, %v15018_v32, %v15017_v10  ;;  %v6219_v16 = vmul.f32 %v15020_v37, %v10404_v44  ;;  %v3471_v26 = vadd.f32 %v15013_v63, %v3406_v7  ;;  %v6211_v1 = vsel %vm5647_vm13, %v15020_v37, %v11548_v61  ;;  %v15024_v55 = vld [vmem:[#allocation130_spill] sm:$0xff]  ;;  %vm15028_vm4 = vmmov %vm15026_vm5  ;;  %v15030_v63 = vld [vmem:[#allocation133_spill] sm:$0xff] }
0x1db5   : > { %v12357_v17 = vpop.permute.xlu0 %5540  ;;  %v12359_v12 = vpop.permute.xlu1 %5575  ;;  %v3472_v15 = vadd.f32 %v3461_v25, %v3407_v60  ;;  %v3464_v49 = vsel %vm15014_vm0, %v15017_v10, %v15023_v38  ;;  %v15025_v54 = vld [vmem:[#allocation118_spill] sm:$0xff]  ;;  %v3473_v42 = vadd.f32 %v3462_v51, %v3408_v5  ;;  %v3474_v45 = vadd.f32 %v15018_v32, %v3409_v62  ;;  %v15029_v60 = vld [vmem:[#allocation136_spill] sm:$0xff]  ;;  %vm15031_vm8 = vmmov %vm15028_vm4 }
0x1db6   : > { %15021 = vst [vmem:[#allocation69_spill] sm:$0xff] %v12357_v17  ;;  %15022 = vst [vmem:[#allocation36_spill] sm:$0xff] %v12359_v12  ;;  %v3526_v56 = vsel %vm15026_vm5, %v15025_v54, %v15024_v55  ;;  %v3475_v7 = vadd.f32 %v3463_v47, %v3410_v14  ;;  %v3527_v30 = vsel %vm15028_vm4, %v15024_v55, %v15027_v39  ;;  %v15032_v10 = vld [vmem:[#allocation128_spill] sm:$0xff]  ;;  %v15036_v14 = vld [vmem:[#allocation279_spill] sm:$0xff]  ;;  %vm3658_vm5 = vcmask 195584  }
0x1db7   : > { %6176 = vrot.lane.b32.xlu0 %v6159_v3, %s8471_s12  ;;  %6231 = vrot.lane.b32.xlu1 %v6219_v16, %s8470_s10  ;;  %v3528_v25 = vsel %vm15031_vm8, %v15030_v63, %v15029_v60  ;;  %vm15033_vm0 = vmmov %vm15028_vm4  ;;  %v6220_v3 = vmul.f32 %v6211_v1, %v10400_v46  ;;  %v6221_v16 = vmul.f32 0.0, %v11548_v61  ;;  %v3476_v51 = vadd.f32 %v3464_v49, %v3411_v29  ;;  %v15037_v39 = vld [vmem:[#allocation137_spill] sm:$0xff]  ;;  %v15038_v12 = vld [vmem:[#allocation131_spill] sm:$0xff]  ;;  %s8491_s12 = smov 101  }
0x1db8   : > { %v3529_v37 = vsel %vm15033_vm0, %v15029_v60, %v15032_v10  ;;  %v3536_v32 = vadd.f32 %v15025_v54, %v3471_v26  ;;  %v3537_v47 = vadd.f32 %v3526_v56, %v3472_v15  ;;  %v6212_v38 = vsel %vm5647_vm13, %v15036_v14, %v11554_v19  ;;  %v15039_v1 = vld [vmem:[#allocation134_spill] sm:$0xff]  ;;  %v15040_v15 = vld [vmem:[#allocation139_spill] sm:$0xff] }
0x1db9   : > { %v12385_v5 = vpop.permute.xlu0 %5577  ;;  %v12387_v62 = vpop.permute.xlu1 %5579  ;;  %v3538_v55 = vadd.f32 %v3527_v30, %v3473_v42  ;;  %v3592_v60 = vsel %vm3591_vm14, %v15038_v12, %v15037_v39  ;;  %v3593_v61 = vsel %vm3591_vm14, %v15037_v39, %v15039_v1  ;;  %vm6276_vm8 = vcmask 711680   ;;  %v15041_v49 = vld [vmem:[#allocation138_spill] sm:$0xff]  ;;  %v15048_v1 = vld [vmem:[#allocation147_spill] sm:$0xff] }
0x1dba   : > { %15034 = vst [vmem:[#allocation35_spill] sm:$0xff] %v12385_v5  ;;  %15035 = vst [vmem:[#allocation87_spill] sm:$0xff] %v12387_v62  ;;  %v3539_v56 = vadd.f32 %v15030_v63, %v3474_v45  ;;  %v3540_v29 = vadd.f32 %v3528_v25, %v3475_v7  ;;  %v3541_v26 = vadd.f32 %v3529_v37, %v3476_v51  ;;  %v15044_v63 = vld [vmem:[#allocation281_spill] sm:$0xff]  ;;  %v15045_v25 = vld [vmem:[#allocation280_spill] sm:$0xff] }
0x1dbb   : > { %6233 = vrot.lane.b32.xlu0 %v6220_v3, %s8470_s10  ;;  %6235 = vrot.lane.b32.xlu1 %v6221_v16, %s8470_s10  ;;  %v3594_v54 = vsel %vm3591_vm14, %v15041_v49, %v15040_v15  ;;  %v3602_v42 = vadd.f32 %v15038_v12, %v3536_v32  ;;  %v6222_v30 = vmul.f32 %v15036_v14, %v10471_v27  ;;  %v15046_v12 = vld [vmem:[#allocation140_spill] sm:$0xff]  ;;  %v6287_v52 = vmul.f32 0.0, %v15044_v63 }
0x1dbc   : > { %v6223_v10 = vmul.f32 %v6212_v38, %v10476_v6  ;;  %v3603_v16 = vadd.f32 %v3592_v60, %v3537_v47  ;;  %v3604_v45 = vadd.f32 %v3593_v61, %v3538_v55  ;;  %v3605_v7 = vadd.f32 %v15041_v49, %v3539_v56  ;;  %v15047_v14 = vld [vmem:[#allocation148_spill] sm:$0xff]  ;;  %v15049_v47 = vld [vmem:[#allocation143_spill] sm:$0xff]  ;;  %v15050_v55 = vld [vmem:[#allocation141_spill] sm:$0xff] }
0x1dbd   : > { %v12409_v39 = vpop.permute.xlu0 %5581  ;;  %v12411_v3 = vpop.permute.xlu1 %5635  ;;  %v6277_v37 = vsel %vm6276_vm8, %v15045_v25, %v15044_v63  ;;  %v3606_v51 = vadd.f32 %v3594_v54, %v3540_v29  ;;  %v3595_v32 = vsel %vm3591_vm14, %v15040_v15, %v15046_v12  ;;  %v3692_v38 = vsel %vm2343_vm3, %v15048_v1, %v15047_v14  ;;  %v15051_v61 = vld [vmem:[#allocation142_spill] sm:$0xff]  ;;  %v15052_v29 = vld [vmem:[#allocation145_spill] sm:$0xff]  ;;  %v15053_v49 = vld [vmem:[#allocation144_spill] sm:$0xff] }
0x1dbe   : > { %15042 = vst [vmem:[#allocation37_spill] sm:$0xff] %v12409_v39  ;;  %15043 = vst [vmem:[#allocation73_spill] sm:$0xff] %v12411_v3  ;;  %v3659_v60 = vsel %vm3658_vm5, %v15050_v55, %v15049_v47  ;;  %v3660_v56 = vsel %vm3658_vm5, %v15049_v47, %v15051_v61  ;;  %v3661_v15 = vsel %vm3658_vm5, %v15053_v49, %v15052_v29  ;;  %v15054_v54 = vld [vmem:[#allocation146_spill] sm:$0xff]  ;;  %v15056_v3 = vld [vmem:[#allocation149_spill] sm:$0xff]  ;;  %v6224_v39 = vmul.f32 0.0, %v11554_v19 }
0x1dbf   : > { %6237 = vrot.lane.b32.xlu0 %v6222_v30, %s8470_s10  ;;  %6239 = vrot.lane.b32.xlu1 %v6223_v10, %s8470_s10  ;;  %v3662_v12 = vsel %vm3658_vm5, %v15052_v29, %v15054_v54  ;;  %v3700_v30 = vmul.f32 %v15048_v1, %v10404_v44  ;;  %v15055_v10 = vld [vmem:[#allocation150_spill] sm:$0xff]  ;;  %v6286_v5 = vmul.f32 %v6277_v37, %v10400_v46  ;;  %v3702_v50 = vmul.f32 0.0, %v15047_v14 }
0x1dc0   : > { %v3693_v62 = vsel %vm2343_vm3, %v15056_v3, %v15055_v10  ;;  %v3701_v17 = vmul.f32 %v3692_v38, %v10400_v46  ;;  %v3703_v29 = vmul.f32 %v15056_v3, %v10471_v27  ;;  %v15059_v1 = vld [vmem:[#allocation282_spill] sm:$0xff]  ;;  %v3607_v53 = vadd.f32 %v3595_v32, %v3541_v26 }
0x1dc1   : > { %v12444_v47 = vpop.permute.xlu0 %5637  ;;  %v12446_v61 = vpop.permute.xlu1 %5639  ;;  %v6278_v54 = vsel %vm6276_vm8, %v15059_v1, %v11576_v58  ;;  %v3669_v19 = vadd.f32 %v15050_v55, %v3602_v42  ;;  %v3670_v8 = vadd.f32 %v3659_v60, %v3603_v16  ;;  %v3671_v37 = vadd.f32 %v3660_v56, %v3604_v45  ;;  %v15060_v55 = vld [vmem:[#allocation153_spill] sm:$0xff]  ;;  %v15062_v60 = vld [vmem:[#allocation152_spill] sm:$0xff]  ;;  %v15064_v63 = vld [vmem:[#allocation154_spill] sm:$0xff] }
0x1dc2   : > { %15057 = vst [vmem:[#allocation75_spill] sm:$0xff] %v12444_v47  ;;  %15058 = vst [vmem:[#allocation40_spill] sm:$0xff] %v12446_v61  ;;  %v3672_v38 = vadd.f32 %v15053_v49, %v3605_v7  ;;  %v3704_v14 = vmul.f32 %v3693_v62, %v10476_v6  ;;  %v3705_v3 = vmul.f32 0.0, %v15055_v10  ;;  %v3673_v61 = vadd.f32 %v3661_v15, %v3606_v51  ;;  %v15061_v7 = vld [vmem:[#allocation151_spill] sm:$0xff] }
0x1dc3   : > { %6241 = vrot.lane.b32.xlu0 %v6224_v39, %s8470_s10  ;;  %6299 = vrot.lane.b32.xlu1 %v6286_v5, %s8491_s12  ;;  %v3674_v47 = vadd.f32 %v3662_v12, %v3607_v53  ;;  %v6289_v26 = vmul.f32 %v6278_v54, %v10476_v6  ;;  %v3706_v39 = vadd.f32 %v3700_v30, %v3669_v19  ;;  %v15063_v51 = vld [vmem:[#allocation155_spill] sm:$0xff]  ;;  %v15067_v30 = vld [vmem:[#allocation157_spill] sm:$0xff]  ;;  %vm15120_vm8 = vcmask 621568   ;;  %s15396_s10 = sld [smem:[#allocation346_spill]] }
0x1dc4   : > { %v3707_v32 = vadd.f32 %v3701_v17, %v3670_v8  ;;  %v3708_v5 = vadd.f32 %v3702_v50, %v3671_v37  ;;  %v3709_v45 = vadd.f32 %v3703_v29, %v3672_v38  ;;  %v3761_v62 = vsel %vm909_vm10, %v15061_v7, %v15060_v55  ;;  %v15065_v17 = vld [vmem:[#allocation156_spill] sm:$0xff]  ;;  %v15066_v12 = vld [vmem:[#allocation159_spill] sm:$0xff]  ;;  %v15068_v29 = vld [vmem:[#allocation158_spill] sm:$0xff] }
0x1dc5   : > { %v12463_v42 = vpop.permute.xlu0 %5641  ;;  %v12465_v16 = vpop.permute.xlu1 %5643  ;;  %v3762_v53 = vsel %vm909_vm10, %v15060_v55, %v15062_v60  ;;  %v3763_v56 = vsel %vm909_vm10, %v15064_v63, %v15063_v51  ;;  %v3710_v49 = vadd.f32 %v3704_v14, %v3673_v61  ;;  %v3711_v8 = vadd.f32 %v3705_v3, %v3674_v47  ;;  %v15069_v3 = vld [vmem:[#allocation283_spill] sm:$0xff]  ;;  %v15070_v55 = vld [vmem:[#allocation161_spill] sm:$0xff]  ;;  %v15071_v7 = vld [vmem:[#allocation160_spill] sm:$0xff] }
0x1dc6   : > { %v3773_v50 = vadd.f32 %v15062_v60, %v3708_v5  ;;  %v3764_v15 = vsel %vm909_vm10, %v15063_v51, %v15065_v17  ;;  %v3826_v10 = vsel %vm1043_vm9, %v15067_v30, %v15066_v12  ;;  %v3827_v54 = vsel %vm1043_vm9, %v15066_v12, %v15068_v29  ;;  %v15074_v51 = vld [vmem:[#allocation163_spill] sm:$0xff] }
0x1dc7   : > { %6301 = vrot.lane.b32.xlu0 %v6287_v52, %s8491_s12  ;;  %6305 = vrot.lane.b32.xlu1 %v6289_v26, %s8491_s12  ;;  %v6285_v52 = vmul.f32 %v15045_v25, %v10404_v44  ;;  %v6290_v61 = vmul.f32 0.0, %v11576_v58  ;;  %v3771_v37 = vadd.f32 %v3761_v62, %v3706_v39  ;;  %v3772_v38 = vadd.f32 %v3762_v53, %v3707_v32  ;;  %v15072_v25 = vld [vmem:[#allocation162_spill] sm:$0xff]  ;;  %v15073_v53 = vld [vmem:[#allocation165_spill] sm:$0xff] }
0x1dc8   : > { %v3774_v14 = vadd.f32 %v3763_v56, %v3709_v45  ;;  %v6343_v26 = vsel %vm2964_vm11, %v15069_v3, %v11585_v43  ;;  %v3776_v5 = vadd.f32 %v15065_v17, %v3711_v8  ;;  %v3828_v60 = vsel %vm1043_vm9, %v15071_v7, %v15070_v55  ;;  %v15075_v56 = vld [vmem:[#allocation164_spill] sm:$0xff]  ;;  %v15081_v7 = vld [vmem:[#allocation169_spill] sm:$0xff] }
0x1dc9   : > { %v12491_v47 = vpop.permute.xlu0 %5645  ;;  %v12493_v19 = vpop.permute.xlu1 %5702  ;;  %v3829_v58 = vsel %vm1043_vm9, %v15070_v55, %v15072_v25  ;;  %v3775_v39 = vadd.f32 %v3764_v15, %v3710_v49  ;;  %v3838_v32 = vadd.f32 %v15068_v29, %v3773_v50  ;;  %v3836_v45 = vadd.f32 %v3826_v10, %v3771_v37  ;;  %v15076_v29 = vld [vmem:[#allocation284_spill] sm:$0xff]  ;;  %v15078_v37 = vld [vmem:[#allocation166_spill] sm:$0xff]  ;;  %v15080_v55 = vld [vmem:[#allocation171_spill] sm:$0xff] }
0x1dca   : > { %v3837_v62 = vadd.f32 %v3827_v54, %v3772_v38  ;;  %v3891_v63 = vsel %vm2636_vm6, %v15074_v51, %v15073_v53  ;;  %v3892_v8 = vsel %vm2636_vm6, %v15073_v53, %v15075_v56  ;;  %v6288_v17 = vmul.f32 %v15059_v1, %v10471_v27  ;;  %v15079_v38 = vld [vmem:[#allocation168_spill] sm:$0xff] }
0x1dcb   : > { %6307 = vrot.lane.b32.xlu0 %v6290_v61, %s8491_s12  ;;  %6297 = vrot.lane.b32.xlu1 %v6285_v52, %s8491_s12  ;;  %v6352_v12 = vmul.f32 %v6343_v26, %v10400_v46  ;;  %v3839_v50 = vadd.f32 %v3828_v60, %v3774_v14  ;;  %v3840_v15 = vadd.f32 %v3829_v58, %v3775_v39  ;;  %v15077_v61 = vld [vmem:[#allocation167_spill] sm:$0xff]  ;;  %v15083_v39 = vld [vmem:[#allocation173_spill] sm:$0xff]  ;;  %vm4022_vm9 = vcmask 695296  }
0x1dcc   : > { %v3841_v10 = vadd.f32 %v15072_v25, %v3776_v5  ;;  %v6344_v54 = vsel %vm2964_vm11, %v15076_v29, %v11592_v40  ;;  %v3903_v52 = vadd.f32 %v15075_v56, %v3838_v32  ;;  %v3893_v1 = vsel %vm2636_vm6, %v15078_v37, %v15077_v61  ;;  %v15082_v25 = vld [vmem:[#allocation170_spill] sm:$0xff]  ;;  %v15084_v32 = vld [vmem:[#allocation172_spill] sm:$0xff] }
0x1dcd   : > { %v12517_v30 = vpop.permute.xlu0 %5704  ;;  %v12519_v49 = vpop.permute.xlu1 %5706  ;;  %v3894_v26 = vsel %vm2636_vm6, %v15077_v61, %v15079_v38  ;;  %v3901_v14 = vadd.f32 %v3891_v63, %v3836_v45  ;;  %v3902_v5 = vadd.f32 %v3892_v8, %v3837_v62  ;;  %v3956_v60 = vsel %vm2703_vm15, %v15081_v7, %v15080_v55 }
0x1dce   : > { %v3957_v58 = vsel %vm2703_vm15, %v15080_v55, %v15082_v25  ;;  %v3958_v53 = vsel %vm2703_vm15, %v15084_v32, %v15083_v39  ;;  %v6353_v51 = vmul.f32 0.0, %v11585_v43  ;;  %v6355_v56 = vmul.f32 %v6344_v54, %v10476_v6  ;;  %v15086_v55 = vld [vmem:[#allocation174_spill] sm:$0xff]  ;;  %v15087_v54 = vld [vmem:[#allocation177_spill] sm:$0xff]  ;;  %v15088_v32 = vld [vmem:[#allocation175_spill] sm:$0xff] }
0x1dcf   : > { %6303 = vrot.lane.b32.xlu0 %v6288_v17, %s8491_s12  ;;  %6365 = vrot.lane.b32.xlu1 %v6352_v12, %s14525_s15  ;;  %v3904_v62 = vadd.f32 %v3893_v1, %v3839_v50  ;;  %v3905_v63 = vadd.f32 %v3894_v26, %v3840_v15  ;;  %v3906_v8 = vadd.f32 %v15079_v38, %v3841_v10  ;;  %v15089_v15 = vld [vmem:[#allocation176_spill] sm:$0xff]  ;;  %vm4089_vm6 = vcmask 670720   ;;  %v15091_v1 = vld [vmem:[#allocation178_spill] sm:$0xff] }
0x1dd0   : > { %v3968_v12 = vadd.f32 %v15082_v25, %v3903_v52  ;;  %v3966_v61 = vadd.f32 %v3956_v60, %v3901_v14  ;;  %v3967_v37 = vadd.f32 %v3957_v58, %v3902_v5  ;;  %v3959_v7 = vsel %vm2703_vm15, %v15083_v39, %v15086_v55  ;;  %v15090_v52 = vld [vmem:[#allocation179_spill] sm:$0xff]  ;;  %v15092_v26 = vld [vmem:[#allocation180_spill] sm:$0xff] }
0x1dd1   : > { %v12545_v17 = vpop.permute.xlu0 %5708  ;;  %v12547_v45 = vpop.permute.xlu1 %5710  ;;  %v3969_v43 = vadd.f32 %v3958_v53, %v3904_v62  ;;  %v4023_v50 = vsel %vm4022_vm9, %v15088_v32, %v15087_v54  ;;  %v4024_v10 = vsel %vm4022_vm9, %v15087_v54, %v15089_v15  ;;  %v4025_v38 = vsel %vm4022_vm9, %v15091_v1, %v15090_v52  ;;  %v15097_v32 = vld [vmem:[#allocation183_spill] sm:$0xff]  ;;  %v15099_v1 = vld [vmem:[#allocation182_spill] sm:$0xff] }
0x1dd2   : > { %15085 = vst [vmem:[#allocation91_spill] sm:$0xff] %v12545_v17  ;;  %v4026_v14 = vsel %vm4022_vm9, %v15090_v52, %v15092_v26  ;;  %v6351_v5 = vmul.f32 %v15069_v3, %v10404_v44  ;;  %v6356_v60 = vmul.f32 0.0, %v11592_v40  ;;  %v3970_v39 = vadd.f32 %v3959_v7, %v3905_v63  ;;  %v15098_v52 = vld [vmem:[#allocation181_spill] sm:$0xff]  ;;  %vm15122_vm9 = vmmov %vm15120_vm8 }
0x1dd3   : > { %6367 = vrot.lane.b32.xlu0 %v6353_v51, %s14525_s15  ;;  %6371 = vrot.lane.b32.xlu1 %v6355_v56, %s14525_s15  ;;  %v3971_v53 = vadd.f32 %v15086_v55, %v3906_v8  ;;  %v4035_v51 = vadd.f32 %v15089_v15, %v3968_v12  ;;  %v15095_v56 = vld [vmem:[#allocation285_spill] sm:$0xff]  ;;  %vm15096_vm10 = vcmask 760832   ;;  %v4033_v54 = vadd.f32 %v4023_v50, %v3966_v61  ;;  %v15101_v15 = vld [vmem:[#allocation184_spill] sm:$0xff]  ;;  %v15102_v50 = vld [vmem:[#allocation186_spill] sm:$0xff] }
0x1dd4   : > { %v6408_v62 = vsel %vm15096_vm10, %v15095_v56, %v11598_v48  ;;  %v4090_v3 = vsel %vm4089_vm6, %v15098_v52, %v15097_v32  ;;  %v4091_v40 = vsel %vm4089_vm6, %v15097_v32, %v15099_v1  ;;  %v4034_v63 = vadd.f32 %v4024_v10, %v3967_v37  ;;  %v15100_v7 = vld [vmem:[#allocation185_spill] sm:$0xff]  ;;  %vm15107_vm14 = vmmov %vm15096_vm10 }
0x1dd5   : > { %v12571_v25 = vpop.permute.xlu0 %5712  ;;  %v12573_v58 = vpop.permute.xlu1 %5769  ;;  %v4036_v8 = vadd.f32 %v4025_v38, %v3969_v43  ;;  %v4037_v12 = vadd.f32 %v4026_v14, %v3970_v39  ;;  %v4038_v55 = vadd.f32 %v15092_v26, %v3971_v53  ;;  %v4092_v61 = vsel %vm4089_vm6, %v15101_v15, %v15100_v7  ;;  %v15105_v26 = vld [vmem:[#allocation287_spill] sm:$0xff]  ;;  %v15106_v14 = vld [vmem:[#allocation286_spill] sm:$0xff]  ;;  %v15108_v39 = vld [vmem:[#allocation189_spill] sm:$0xff] }
0x1dd6   : > { %15093 = vst [vmem:[#allocation78_spill] sm:$0xff] %v12571_v25  ;;  %15094 = vst [vmem:[#allocation49_spill] sm:$0xff] %v12573_v58  ;;  %v4093_v52 = vsel %vm4089_vm6, %v15100_v7, %v15102_v50  ;;  %v6354_v32 = vmul.f32 %v15076_v29, %v10471_v27  ;;  %v4102_v43 = vadd.f32 %v15099_v1, %v4035_v51  ;;  %v15109_v53 = vld [vmem:[#allocation187_spill] sm:$0xff]  ;;  %vm15110_vm15 = vcmask 646144   ;;  %v15111_v15 = vld [vmem:[#allocation188_spill] sm:$0xff] }
0x1dd7   : > { %6373 = vrot.lane.b32.xlu0 %v6356_v60, %s14525_s15  ;;  %6363 = vrot.lane.b32.xlu1 %v6351_v5, %s14525_s15  ;;  %v6417_v60 = vmul.f32 %v6408_v62, %v10400_v46  ;;  %v4100_v10 = vadd.f32 %v4090_v3, %v4033_v54  ;;  %v4101_v38 = vadd.f32 %v4091_v40, %v4034_v63  ;;  %vm15112_vm11 = vmmov %vm15110_vm15  ;;  %v15113_v62 = vld [vmem:[#allocation191_spill] sm:$0xff]  ;;  %v15116_v40 = vld [vmem:[#allocation192_spill] sm:$0xff]  ;;  %vm4286_vm5 = vcmask 596992  }
0x1dd8   : > { %v6409_v5 = vsel %vm15107_vm14, %v15106_v14, %v15105_v26  ;;  %v4155_v7 = vsel %vm15110_vm15, %v15109_v53, %v15108_v39  ;;  %v4156_v29 = vsel %vm15112_vm11, %v15108_v39, %v15111_v15  ;;  %vm15115_vm4 = vmmov %vm15112_vm11  ;;  %v4103_v51 = vadd.f32 %v4092_v61, %v4036_v8  ;;  %v15118_v53 = vld [vmem:[#allocation195_spill] sm:$0xff]  ;;  %v15119_v39 = vld [vmem:[#allocation193_spill] sm:$0xff] }
0x1dd9   : > { %v12598_v58 = vpop.permute.xlu0 %5771  ;;  %v12600_v37 = vpop.permute.xlu1 %5773  ;;  %v4104_v54 = vadd.f32 %v4093_v52, %v4037_v12  ;;  %v4105_v3 = vadd.f32 %v15102_v50, %v4038_v55  ;;  %v4167_v1 = vadd.f32 %v15111_v15, %v4102_v43  ;;  %vm15117_vm0 = vmmov %vm15115_vm4  ;;  %v4220_v25 = vsel %vm15120_vm8, %v15119_v39, %v15118_v53  ;;  %v15121_v52 = vld [vmem:[#allocation194_spill] sm:$0xff]  ;;  %v15123_v43 = vld [vmem:[#allocation197_spill] sm:$0xff] }
0x1dda   : > { %15103 = vst [vmem:[#allocation97_spill] sm:$0xff] %v12598_v58  ;;  %15104 = vst [vmem:[#allocation41_spill] sm:$0xff] %v12600_v37  ;;  %v15114_v58 = vld [vmem:[#allocation190_spill] sm:$0xff]  ;;  %v4158_v63 = vsel %vm15117_vm0, %v15113_v62, %v15116_v40  ;;  %v4165_v12 = vadd.f32 %v4155_v7, %v4100_v10  ;;  %v4166_v55 = vadd.f32 %v4156_v29, %v4101_v38  ;;  %v15124_v15 = vld [vmem:[#allocation196_spill] sm:$0xff]  ;;  %vm4353_vm14 = vcmask 572416  }
0x1ddb   : > { %v4157_v37 = vsel %vm15115_vm4, %v15114_v58, %v15113_v62  ;;  %6369 = vrot.lane.b32.xlu0 %v6354_v32, %s14525_s15  ;;  %6430 = vrot.lane.b32.xlu1 %v6417_v60, %s14296_s5  ;;  %v6418_v58 = vmul.f32 0.0, %v11598_v48  ;;  %v6420_v32 = vmul.f32 %v6409_v5, %v10476_v6  ;;  %v4170_v50 = vadd.f32 %v15116_v40, %v4105_v3  ;;  %vm15125_vm6 = vmmov %vm15120_vm8  ;;  %v15128_v29 = vld [vmem:[#allocation201_spill] sm:$0xff]  ;;  %v15129_v62 = vld [vmem:[#allocation199_spill] sm:$0xff]  ;;  %s8494_s15 = smov 47  }
0x1ddc   : > { %v4168_v61 = vadd.f32 %v4157_v37, %v4103_v51  ;;  %v4221_v60 = vsel %vm15122_vm9, %v15118_v53, %v15121_v52  ;;  %v4222_v48 = vsel %vm15125_vm6, %v15124_v15, %v15123_v43  ;;  %v4169_v5 = vadd.f32 %v4158_v63, %v4104_v54  ;;  %v15126_v37 = vld [vmem:[#allocation198_spill] sm:$0xff]  ;;  %vm15127_vm10 = vmmov %vm15125_vm6  ;;  %v15130_v3 = vld [vmem:[#allocation200_spill] sm:$0xff] }
0x1ddd   : > { %v12627_v17 = vpop.permute.xlu0 %5775  ;;  %v12629_v8 = vpop.permute.xlu1 %5777  ;;  %v4232_v10 = vadd.f32 %v15121_v52, %v4167_v1  ;;  %v4230_v38 = vadd.f32 %v4220_v25, %v4165_v12  ;;  %v4223_v7 = vsel %vm15127_vm10, %v15123_v43, %v15126_v37  ;;  %v4287_v51 = vsel %vm4286_vm5, %v15129_v62, %v15128_v29  ;;  %v15134_v52 = vld [vmem:[#allocation203_spill] sm:$0xff]  ;;  %v15135_v43 = vld [vmem:[#allocation202_spill] sm:$0xff]  ;;  %v15138_v62 = vld [vmem:[#allocation205_spill] sm:$0xff] }
0x1dde   : > { %v4288_v40 = vsel %vm4286_vm5, %v15128_v29, %v15130_v3  ;;  %v6416_v53 = vmul.f32 %v15095_v56, %v10404_v44  ;;  %v6421_v54 = vmul.f32 0.0, %v15105_v26  ;;  %v4231_v1 = vadd.f32 %v4221_v60, %v4166_v55  ;;  %v15136_v56 = vld [vmem:[#allocation204_spill] sm:$0xff]  ;;  %v15137_v29 = vld [vmem:[#allocation207_spill] sm:$0xff] }
0x1ddf   : > { %6432 = vrot.lane.b32.xlu0 %v6418_v58, %s14296_s5  ;;  %6436 = vrot.lane.b32.xlu1 %v6420_v32, %s14296_s5  ;;  %v4233_v39 = vadd.f32 %v4222_v48, %v4168_v61  ;;  %v15133_v58 = vld [vmem:[#allocation288_spill] sm:$0xff]  ;;  %v4235_v12 = vadd.f32 %v15126_v37, %v4170_v50  ;;  %v4289_v15 = vsel %vm4286_vm5, %v15135_v43, %v15134_v52  ;;  %vm4420_vm15 = vcmask 547840  }
0x1de0   : > { %v6473_v32 = vsel %vm876_vm2, %v15133_v58, %v11620_v41  ;;  %v4290_v26 = vsel %vm4286_vm5, %v15134_v52, %v15136_v56  ;;  %v4234_v55 = vadd.f32 %v4223_v7, %v4169_v5  ;;  %v4299_v61 = vadd.f32 %v15130_v3, %v4232_v10 }
0x1de1   : > { %v12653_v63 = vpop.permute.xlu0 %5779  ;;  %v12655_v25 = vpop.permute.xlu1 %5836  ;;  %v4297_v60 = vadd.f32 %v4287_v51, %v4230_v38  ;;  %v4298_v48 = vadd.f32 %v4288_v40, %v4231_v1  ;;  %v4354_v50 = vsel %vm4353_vm14, %v15138_v62, %v15137_v29  ;;  %v6419_v37 = vmul.f32 %v15106_v14, %v10471_v27  ;;  %v15141_v38 = vld [vmem:[#allocation289_spill] sm:$0xff]  ;;  %v15142_v51 = vld [vmem:[#allocation206_spill] sm:$0xff]  ;;  %v15144_v14 = vld [vmem:[#allocation208_spill] sm:$0xff] }
0x1de2   : > { %15131 = vst [vmem:[#allocation29_spill] sm:$0xff] %v12653_v63  ;;  %15132 = vst [vmem:[#allocation94_spill] sm:$0xff] %v12655_v25  ;;  %v6482_v43 = vmul.f32 %v6473_v32, %v10400_v46  ;;  %v4301_v5 = vadd.f32 %v4290_v26, %v4234_v55  ;;  %v4302_v10 = vadd.f32 %v15136_v56, %v4235_v12  ;;  %v15143_v40 = vld [vmem:[#allocation209_spill] sm:$0xff]  ;;  %v15145_v32 = vld [vmem:[#allocation210_spill] sm:$0xff]  ;;  %vm5348_vm11 = vcmask 809984  }
0x1de3   : > { %6438 = vrot.lane.b32.xlu0 %v6421_v54, %s14296_s5  ;;  %6428 = vrot.lane.b32.xlu1 %v6416_v53, %s14296_s5  ;;  %v4300_v53 = vadd.f32 %v4289_v15, %v4233_v39  ;;  %v6474_v7 = vsel %vm876_vm2, %v15141_v38, %v11629_v34  ;;  %v4355_v3 = vsel %vm4353_vm14, %v15137_v29, %v15142_v51  ;;  %v15146_v15 = vld [vmem:[#allocation213_spill] sm:$0xff]  ;;  %v15147_v56 = vld [vmem:[#allocation211_spill] sm:$0xff]  ;;  %v15148_v55 = vld [vmem:[#allocation212_spill] sm:$0xff]  ;;  %vm4487_vm2 = vcmask 302080  }
0x1de4   : > { %v4356_v1 = vsel %vm4353_vm14, %v15144_v14, %v15143_v40  ;;  %v4357_v62 = vsel %vm4353_vm14, %v15143_v40, %v15145_v32  ;;  %v4366_v39 = vadd.f32 %v15142_v51, %v4299_v61  ;;  %v4364_v12 = vadd.f32 %v4354_v50, %v4297_v60  ;;  %v15149_v14 = vld [vmem:[#allocation215_spill] sm:$0xff]  ;;  %v15152_v63 = vld [vmem:[#allocation216_spill] sm:$0xff] }
0x1de5   : > { %v12676_v52 = vpop.permute.xlu0 %5838  ;;  %v12678_v54 = vpop.permute.xlu1 %5840  ;;  %v4421_v26 = vsel %vm4420_vm15, %v15147_v56, %v15146_v15  ;;  %v4422_v29 = vsel %vm4420_vm15, %v15146_v15, %v15148_v55  ;;  %v4365_v60 = vadd.f32 %v4355_v3, %v4298_v48  ;;  %v4367_v50 = vadd.f32 %v4356_v1, %v4300_v53  ;;  %v15154_v48 = vld [vmem:[#allocation217_spill] sm:$0xff]  ;;  %v15157_v1 = vld [vmem:[#allocation220_spill] sm:$0xff] }
0x1de6   : > { %15139 = vst [vmem:[#allocation54_spill] sm:$0xff] %v12676_v52  ;;  %15140 = vst [vmem:[#allocation48_spill] sm:$0xff] %v12678_v54  ;;  %v15150_v54 = vld [vmem:[#allocation214_spill] sm:$0xff]  ;;  %v4368_v51 = vadd.f32 %v4357_v62, %v4301_v5  ;;  %v4369_v56 = vadd.f32 %v15145_v32, %v4302_v10  ;;  %v4433_v15 = vadd.f32 %v15148_v55, %v4366_v39  ;;  %v15156_v3 = vld [vmem:[#allocation221_spill] sm:$0xff]  ;;  %vm15182_vm5 = vcmask 228352  }
0x1de7   : > { %6434 = vrot.lane.b32.xlu0 %v6419_v37, %s14296_s5  ;;  %6495 = vrot.lane.b32.xlu1 %v6482_v43, %s14299_s14  ;;  %v4423_v25 = vsel %vm4420_vm15, %v15150_v54, %v15149_v14  ;;  %v6483_v37 = vmul.f32 0.0, %v11620_v41  ;;  %v6485_v43 = vmul.f32 %v6474_v7, %v10476_v6  ;;  %v4431_v52 = vadd.f32 %v4421_v26, %v4364_v12  ;;  %v15155_v5 = vld [vmem:[#allocation218_spill] sm:$0xff]  ;;  %vm15186_vm6 = vmmov %vm15182_vm5  ;;  %s8493_s5 = smov 50  }
0x1de8   : > { %v4424_v54 = vsel %vm4420_vm15, %v15149_v14, %v15152_v63  ;;  %v4432_v41 = vadd.f32 %v4422_v29, %v4365_v60  ;;  %v4434_v7 = vadd.f32 %v4423_v25, %v4367_v50  ;;  %v4490_v32 = vsel %vm4487_vm2, %v15157_v1, %v15156_v3  ;;  %v15158_v62 = vld [vmem:[#allocation222_spill] sm:$0xff]  ;;  %v15161_v50 = vld [vmem:[#allocation225_spill] sm:$0xff]  ;;  %vm15189_vm10 = vmmov %vm15182_vm5 }
0x1de9   : > { %v12707_v40 = vpop.permute.xlu0 %5842  ;;  %v12709_v61 = vpop.permute.xlu1 %5844  ;;  %v4491_v39 = vsel %vm4487_vm2, %v15156_v3, %v15158_v62  ;;  %v6481_v12 = vmul.f32 %v15133_v58, %v10404_v44  ;;  %v6486_v25 = vmul.f32 0.0, %v11629_v34  ;;  %v4435_v29 = vadd.f32 %v4424_v54, %v4368_v51  ;;  %v15163_v3 = vld [vmem:[#allocation224_spill] sm:$0xff]  ;;  %v15164_v54 = vld [vmem:[#allocation227_spill] sm:$0xff]  ;;  %vm15191_vm15 = vmmov %vm15182_vm5 }
0x1dea   : > { %15151 = vst [vmem:[#allocation56_spill] sm:$0xff] %v12707_v40  ;;  %v15153_v40 = vld [vmem:[#allocation219_spill] sm:$0xff]  ;;  %v4436_v14 = vadd.f32 %v15152_v63, %v4369_v56  ;;  %v4554_v34 = vsel %vm2310_vm12, %v15161_v50, %v15163_v3  ;;  %vm4750_vm9 = vcmask 203776   ;;  %vm5281_vm14 = vcmask 834560  }
0x1deb   : > { %6497 = vrot.lane.b32.xlu0 %v6483_v37, %s14299_s14  ;;  %6501 = vrot.lane.b32.xlu1 %v6485_v43, %s14299_s14  ;;  %v4488_v53 = vsel %vm4487_vm2, %v15154_v48, %v15153_v40  ;;  %v4489_v10 = vsel %vm4487_vm2, %v15153_v40, %v15155_v5  ;;  %v4498_v37 = vadd.f32 %v15154_v48, %v4431_v52  ;;  %v15160_v43 = vld [vmem:[#allocation290_spill] sm:$0xff]  ;;  %v15162_v5 = vld [vmem:[#allocation223_spill] sm:$0xff]  ;;  %vm4817_vm2 = vcmask 179200  }
0x1dec   : > { %v6538_v40 = vsel %vm5348_vm11, %v15160_v43, %v11636_v9  ;;  %v4499_v60 = vadd.f32 %v4488_v53, %v4432_v41  ;;  %v4553_v58 = vsel %vm2310_vm12, %v15162_v5, %v15161_v50  ;;  %v4500_v63 = vadd.f32 %v4489_v10, %v4433_v15  ;;  %v15165_v48 = vld [vmem:[#allocation226_spill] sm:$0xff]  ;;  %v15166_v53 = vld [vmem:[#allocation228_spill] sm:$0xff] }
0x1ded   : > { %v12733_v26 = vpop.permute.xlu0 %5846  ;;  %v12735_v55 = vpop.permute.xlu1 %5903  ;;  %v4501_v52 = vadd.f32 %v15157_v1, %v4434_v7  ;;  %v4502_v51 = vadd.f32 %v4490_v32, %v4435_v29  ;;  %v4503_v56 = vadd.f32 %v4491_v39, %v4436_v14  ;;  %v4555_v41 = vsel %vm2310_vm12, %v15165_v48, %v15164_v54  ;;  %v15169_v32 = vld [vmem:[#allocation291_spill] sm:$0xff]  ;;  %v15171_v14 = vld [vmem:[#allocation229_spill] sm:$0xff] }
0x1dee   : > { %15159 = vst [vmem:[#allocation82_spill] sm:$0xff] %v12735_v55  ;;  %v4556_v62 = vsel %vm2310_vm12, %v15164_v54, %v15166_v53  ;;  %v6484_v50 = vmul.f32 %v15141_v38, %v10471_v27  ;;  %v4563_v7 = vadd.f32 %v15162_v5, %v4498_v37  ;;  %v4564_v10 = vadd.f32 %v4553_v58, %v4499_v60  ;;  %v15170_v29 = vld [vmem:[#allocation231_spill] sm:$0xff]  ;;  %v15173_v54 = vld [vmem:[#allocation230_spill] sm:$0xff]  ;;  %v15175_v58 = vld [vmem:[#allocation233_spill] sm:$0xff] }
0x1def   : > { %6503 = vrot.lane.b32.xlu0 %v6486_v25, %s14299_s14  ;;  %6493 = vrot.lane.b32.xlu1 %v6481_v12, %s14299_s14  ;;  %v6547_v25 = vmul.f32 %v6538_v40, %v10400_v46  ;;  %v4565_v1 = vadd.f32 %v4554_v34, %v4500_v63  ;;  %v6539_v39 = vsel %vm5348_vm11, %v15169_v32, %v11642_v23  ;;  %vm15172_vm12 = vcmask 252928   ;;  %v15176_v34 = vld [vmem:[#allocation232_spill] sm:$0xff]  ;;  %v15180_v53 = vld [vmem:[#allocation237_spill] sm:$0xff]  ;;  %v15188_v55 = vld [vmem:[#allocation238_spill] sm:$0xff] }
0x1df0   : > { %v4566_v12 = vadd.f32 %v15165_v48, %v4501_v52  ;;  %v4619_v38 = vsel %vm15172_vm12, %v15171_v14, %v15170_v29  ;;  %vm15174_vm4 = vmmov %vm15172_vm12  ;;  %v4567_v37 = vadd.f32 %v4555_v41, %v4502_v51  ;;  %v4568_v60 = vadd.f32 %v4556_v62, %v4503_v56  ;;  %v15178_v52 = vld [vmem:[#allocation234_spill] sm:$0xff] }
0x1df1   : > { %v12760_v3 = vpop.permute.xlu0 %5905  ;;  %v12762_v15 = vpop.permute.xlu1 %5907  ;;  %v4620_v40 = vsel %vm15174_vm4, %v15170_v29, %v15173_v54  ;;  %v4629_v5 = vadd.f32 %v15171_v14, %v4563_v7  ;;  %vm15177_vm0 = vmmov %vm15174_vm4  ;;  %v4630_v41 = vadd.f32 %v4619_v38, %v4564_v10  ;;  %v15185_v54 = vld [vmem:[#allocation236_spill] sm:$0xff]  ;;  %vm4884_vm12 = vcmask 154624  }
0x1df2   : > { %15167 = vst [vmem:[#allocation42_spill] sm:$0xff] %v12760_v3  ;;  %15168 = vst [vmem:[#allocation32_spill] sm:$0xff] %v12762_v15  ;;  %v4621_v63 = vsel %vm15177_vm0, %v15176_v34, %v15175_v58  ;;  %v15181_v15 = vld [vmem:[#allocation235_spill] sm:$0xff]  ;;  %v4631_v62 = vadd.f32 %v4620_v40, %v4565_v1  ;;  %v4632_v7 = vadd.f32 %v15176_v34, %v4566_v12  ;;  %v15190_v12 = vld [vmem:[#allocation240_spill] sm:$0xff]  ;;  %vm5214_vm4 = vcmask 859136  }
0x1df3   : > { %6499 = vrot.lane.b32.xlu0 %v6484_v50, %s14299_s14  ;;  %6560 = vrot.lane.b32.xlu1 %v6547_v25, %s8468_s20  ;;  %vm15179_vm8 = vmmov %vm15177_vm0  ;;  %v4684_v29 = vsel %vm15182_vm5, %v15181_v15, %v15180_v53  ;;  %v6548_v50 = vmul.f32 0.0, %v11636_v9  ;;  %v6550_v25 = vmul.f32 %v6539_v39, %v10476_v6  ;;  %v4633_v14 = vadd.f32 %v4621_v63, %v4567_v37  ;;  %v15192_v40 = vld [vmem:[#allocation243_spill] sm:$0xff]  ;;  %v15193_v37 = vld [vmem:[#allocation241_spill] sm:$0xff]  ;;  %s8492_s14 = smov 53  }
0x1df4   : > { %v4622_v48 = vsel %vm15179_vm8, %v15175_v58, %v15178_v52  ;;  %v4685_v58 = vsel %vm15186_vm6, %v15180_v53, %v15185_v54  ;;  %v15187_v52 = vld [vmem:[#allocation239_spill] sm:$0xff]  ;;  %v4694_v10 = vadd.f32 %v15181_v15, %v4629_v5  ;;  %v4695_v1 = vadd.f32 %v4684_v29, %v4630_v41  ;;  %v15196_v29 = vld [vmem:[#allocation293_spill] sm:$0xff] }
0x1df5   : > { %v12789_v51 = vpop.permute.xlu0 %5909  ;;  %v12791_v56 = vpop.permute.xlu1 %5911  ;;  %v4686_v9 = vsel %vm15189_vm10, %v15188_v55, %v15187_v52  ;;  %v4634_v39 = vadd.f32 %v4622_v48, %v4568_v60  ;;  %v4687_v38 = vsel %vm15191_vm15, %v15187_v52, %v15190_v12  ;;  %v4751_v34 = vsel %vm4750_vm9, %v15193_v37, %v15192_v40  ;;  %v15198_v52 = vld [vmem:[#allocation242_spill] sm:$0xff]  ;;  %v15238_v3 = vld [vmem:[#allocation309_spill] sm:$0xff] }
0x1df6   : > { %15183 = vst [vmem:[#allocation53_spill] sm:$0xff] %v12789_v51  ;;  %15184 = vst [vmem:[#allocation58_spill] sm:$0xff] %v12791_v56  ;;  %v6546_v63 = vmul.f32 %v15160_v43, %v10404_v44  ;;  %v6551_v53 = vmul.f32 0.0, %v11642_v23  ;;  %v4696_v15 = vadd.f32 %v4685_v58, %v4631_v62  ;;  %v4697_v5 = vadd.f32 %v15188_v55, %v4632_v7  ;;  %v15199_v43 = vld [vmem:[#allocation245_spill] sm:$0xff]  ;;  %v15200_v51 = vld [vmem:[#allocation244_spill] sm:$0xff] }
0x1df7   : > { %6562 = vrot.lane.b32.xlu0 %v6548_v50, %s8468_s20  ;;  %6566 = vrot.lane.b32.xlu1 %v6550_v25, %s8468_s20  ;;  %v4698_v48 = vadd.f32 %v4686_v9, %v4633_v14  ;;  %v15197_v25 = vld [vmem:[#allocation292_spill] sm:$0xff]  ;;  %v4699_v54 = vadd.f32 %v4687_v38, %v4634_v39  ;;  %v4752_v12 = vsel %vm4750_vm9, %v15192_v40, %v15198_v52  ;;  %v15201_v7 = vld [vmem:[#allocation246_spill] sm:$0xff]  ;;  %v15202_v58 = vld [vmem:[#allocation249_spill] sm:$0xff]  ;;  %vm6733_vm0 = vcmask 56320  }
0x1df8   : > { %v6603_v41 = vsel %vm5281_vm14, %v15197_v25, %v15196_v29  ;;  %v4753_v23 = vsel %vm4750_vm9, %v15200_v51, %v15199_v43  ;;  %v4761_v55 = vadd.f32 %v15193_v37, %v4694_v10  ;;  %v4762_v62 = vadd.f32 %v4751_v34, %v4695_v1  ;;  %v15203_v9 = vld [vmem:[#allocation247_spill] sm:$0xff]  ;;  %v15204_v38 = vld [vmem:[#allocation248_spill] sm:$0xff]  ;;  %v15237_v56 = vld [vmem:[#allocation310_spill] sm:$0xff] }
0x1df9   : > { %v12812_v50 = vpop.permute.xlu0 %5913  ;;  %v12814_v60 = vpop.permute.xlu1 %5969  ;;  %v4754_v14 = vsel %vm4750_vm9, %v15199_v43, %v15201_v7  ;;  %v4818_v39 = vsel %vm4817_vm2, %v15203_v9, %v15202_v58  ;;  %v4819_v40 = vsel %vm4817_vm2, %v15202_v58, %v15204_v38  ;;  %v4763_v37 = vadd.f32 %v4752_v12, %v4696_v15  ;;  %v15207_v43 = vld [vmem:[#allocation294_spill] sm:$0xff]  ;;  %v15208_v38 = vld [vmem:[#allocation251_spill] sm:$0xff]  ;;  %v15210_v12 = vld [vmem:[#allocation252_spill] sm:$0xff] }
0x1dfa   : > { %15194 = vst [vmem:[#allocation57_spill] sm:$0xff] %v12812_v50  ;;  %15195 = vst [vmem:[#allocation68_spill] sm:$0xff] %v12814_v60  ;;  %v4764_v34 = vadd.f32 %v15200_v51, %v4697_v5  ;;  %v4765_v52 = vadd.f32 %v4753_v23, %v4698_v48  ;;  %v6604_v7 = vsel %vm5281_vm14, %v15207_v43, %v11664_v0  ;;  %v15209_v50 = vld [vmem:[#allocation250_spill] sm:$0xff]  ;;  %v15211_v5 = vld [vmem:[#allocation255_spill] sm:$0xff]  ;;  %vm6800_vm8 = vcmask 80896  }
0x1dfb   : > { %6568 = vrot.lane.b32.xlu0 %v6551_v53, %s8468_s20  ;;  %6558 = vrot.lane.b32.xlu1 %v6546_v63, %s8468_s20  ;;  %v6549_v53 = vmul.f32 %v15169_v32, %v10471_v27  ;;  %v6612_v63 = vmul.f32 %v6603_v41, %v10400_v46  ;;  %v4766_v60 = vadd.f32 %v4754_v14, %v4699_v54  ;;  %v15212_v48 = vld [vmem:[#allocation253_spill] sm:$0xff]  ;;  %v15213_v23 = vld [vmem:[#allocation254_spill] sm:$0xff]  ;;  %vm6867_vm5 = vcmask 105472  }
0x1dfc   : > { %v4828_v58 = vadd.f32 %v15203_v9, %v4761_v55  ;;  %v4820_v32 = vsel %vm4817_vm2, %v15209_v50, %v15208_v38  ;;  %v4829_v41 = vadd.f32 %v4818_v39, %v4762_v62  ;;  %v4830_v15 = vadd.f32 %v4819_v40, %v4763_v37  ;;  %v15214_v14 = vld [vmem:[#allocation257_spill] sm:$0xff]  ;;  %v15215_v9 = vld [vmem:[#allocation256_spill] sm:$0xff] }
0x1dfd   : > { %v12841_v10 = vpop.permute.xlu0 %5971  ;;  %v12843_v1 = vpop.permute.xlu1 %5973  ;;  %v4821_v51 = vsel %vm4817_vm2, %v15208_v38, %v15210_v12  ;;  %v4885_v54 = vsel %vm4884_vm12, %v15212_v48, %v15211_v5  ;;  %v4886_v55 = vsel %vm4884_vm12, %v15211_v5, %v15213_v23  ;;  %v6615_v62 = vmul.f32 %v6604_v7, %v10476_v6  ;;  %v15218_v12 = vld [vmem:[#allocation258_spill] sm:$0xff] }
0x1dfe   : > { %15205 = vst [vmem:[#allocation43_spill] sm:$0xff] %v12841_v10  ;;  %15206 = vst [vmem:[#allocation93_spill] sm:$0xff] %v12843_v1  ;;  %v4831_v37 = vadd.f32 %v15209_v50, %v4764_v34  ;;  %v4832_v38 = vadd.f32 %v4820_v32, %v4765_v52  ;;  %v4888_v1 = vsel %vm4884_vm12, %v15214_v14, %v15218_v12  ;;  %v6616_v52 = vmul.f32 0.0, %v11664_v0 }
0x1dff   : > { %6564 = vrot.lane.b32.xlu0 %v6549_v53, %s8468_s20  ;;  %6625 = vrot.lane.b32.xlu1 %v6612_v63, %s8467_s2  ;;  %v4887_v53 = vsel %vm4884_vm12, %v15215_v9, %v15214_v14  ;;  %v6613_v63 = vmul.f32 0.0, %v15196_v29  ;;  %v4833_v5 = vadd.f32 %v4821_v51, %v4766_v60  ;;  %v4895_v23 = vadd.f32 %v15212_v48, %v4828_v58 }
0x1e00   : > { %v4896_v10 = vadd.f32 %v4885_v54, %v4829_v41  ;;  %v4897_v29 = vadd.f32 %v4886_v55, %v4830_v15  ;;  %v4898_v7 = vadd.f32 %v15215_v9, %v4831_v37  ;;  %v6611_v34 = vmul.f32 %v15197_v25, %v10404_v44  ;;  %v15221_v15 = vld [vmem:[#allocation295_spill] sm:$0xff]  ;;  %v15222_v25 = vld [vmem:[#allocation296_spill] sm:$0xff] }
0x1e01   : > { %v12869_v39 = vpop.permute.xlu0 %5975  ;;  %v12871_v40 = vpop.permute.xlu1 %5977  ;;  %v4900_v50 = vadd.f32 %v4888_v1, %v4833_v5  ;;  %v6668_v60 = vsel %vm5214_vm4, %v11666_v22, %v11673_v2  ;;  %v6614_v41 = vmul.f32 %v15207_v43, %v10471_v27  ;;  %v6669_v1 = vsel %vm5214_vm4, %v15221_v15, %v11684_v18 }
0x1e02   : > { %15216 = vst [vmem:[#allocation71_spill] sm:$0xff] %v12869_v39  ;;  %15217 = vst [vmem:[#allocation62_spill] sm:$0xff] %v12871_v40  ;;  %v4899_v39 = vadd.f32 %v4887_v53, %v4832_v38  ;;  %v12898_v0 = vmul.f32 %v11666_v22, %v10404_v44  ;;  %v6734_v51 = vsel %vm6733_vm0, %v15222_v25, %v11696_v13  ;;  %vm4951_vm6 = vcmask 957440   ;;  %v15234_v40 = vld [vmem:[#allocation308_spill] sm:$0xff] }
0x1e03   : > { %6627 = vrot.lane.b32.xlu0 %v6613_v63, %s8467_s2  ;;  %6631 = vrot.lane.b32.xlu1 %v6615_v62, %s8467_s2  ;;  %v6735_v48 = vsel %vm6733_vm0, %v11698_v59, %v11705_v24  ;;  %v6677_v43 = vmul.f32 %v6668_v60, %v10400_v46  ;;  %v6678_v54 = vmul.f32 0.0, %v11673_v2  ;;  %v12910_v55 = vmul.f32 %v15221_v15, %v10471_v27 }
0x1e04   : > { %v6681_v22 = vmul.f32 0.0, %v11684_v18  ;;  %v6680_v14 = vmul.f32 %v6669_v1, %v10476_v6  ;;  %v12916_v9 = vmul.f32 %v15222_v25, %v10400_v46  ;;  %v12919_v53 = vmul.f32 0.0, %v11696_v13  ;;  %v15225_v13 = vld [vmem:[#allocation297_spill] sm:$0xff]  ;;  %v15227_v25 = vld [vmem:[#allocation299_spill] sm:$0xff] }
0x1e05   : > { %v12887_v58 = vpop.permute.xlu0 %5979  ;;  %v12889_v32 = vpop.permute.xlu1 %6035  ;;  %v12923_v63 = vmul.f32 %v11698_v59, %v10476_v6  ;;  %v12929_v37 = vmul.f32 0.0, %v6734_v51  ;;  %v12931_v18 = vmul.f32 0.0, %v6735_v48  ;;  %v12934_v38 = vmul.f32 0.0, %v11705_v24  ;;  %v15228_v51 = vld [vmem:[#allocation300_spill] sm:$0xff] }
0x1e06   : > { %15219 = vst [vmem:[#allocation45_spill] sm:$0xff] %v12887_v58  ;;  %15220 = vst [vmem:[#allocation77_spill] sm:$0xff] %v12889_v32  ;;  %v12938_v12 = vmul.f32 %v11707_v4, %v10400_v46  ;;  %v6801_v59 = vsel %vm6800_vm8, %v11707_v4, %v15225_v13  ;;  %v12944_v5 = vmul.f32 0.0, %v15225_v13  ;;  %v4955_v24 = vsel %vm4951_vm6, %v11759_v57, %v11764_v11 }
0x1e07   : > { %6633 = vrot.lane.b32.xlu0 %v6616_v52, %s8467_s2  ;;  %6623 = vrot.lane.b32.xlu1 %v6611_v34, %s8467_s2  ;;  %v4953_v34 = vsel %vm4951_vm6, %v11749_v28, %v11757_v21  ;;  %v15226_v52 = vld [vmem:[#allocation298_spill] sm:$0xff]  ;;  %v12963_v15 = vmul.f32 %v11730_v33, %v10400_v46  ;;  %v4952_v1 = vsel %vm4951_vm6, %v11766_v31, %v11749_v28  ;;  %vm15236_vm10 = vcmask 932864  }
0x1e08   : > { %v12956_v60 = vmul.f32 %v15226_v52, %v10476_v6  ;;  %v6802_v4 = vsel %vm6800_vm8, %v15226_v52, %v11728_v35  ;;  %v12975_v48 = vmul.f32 %v15228_v51, %v10476_v6  ;;  %v15231_v52 = vld [vmem:[#allocation302_spill] sm:$0xff]  ;;  %v4963_v31 = vadd.f32 %v4953_v34, %v4896_v10  ;;  %vm15239_vm15 = vmmov %vm15236_vm10 }
0x1e09   : > { %v12925_v2 = vpop.permute.xlu0 %6037  ;;  %v12927_v62 = vpop.permute.xlu1 %6039  ;;  %v4954_v27 = vsel %vm4951_vm6, %v15231_v52, %v11759_v57  ;;  %v4966_v32 = vadd.f32 %v4955_v24, %v4899_v39  ;;  %v4962_v58 = vadd.f32 %v4952_v1, %v4895_v23  ;;  %v5021_v57 = vsel %vm15239_vm15, %v15238_v3, %v15237_v56  ;;  %vm15245_vm8 = vmmov %vm15236_vm10  ;;  %v15251_v24 = vld [vmem:[#allocation317_spill] sm:$0xff] }
0x1e0a   : > { %15223 = vst [vmem:[#allocation44_spill] sm:$0xff] %v12925_v2  ;;  %15224 = vst [vmem:[#allocation51_spill] sm:$0xff] %v12927_v62  ;;  %v4967_v2 = vadd.f32 %v11764_v11, %v4900_v50  ;;  %v12991_v62 = vmul.f32 0.0, %v6801_v59  ;;  %v4965_v10 = vadd.f32 %v4954_v27, %v4898_v7  ;;  %v15242_v11 = vld [vmem:[#allocation304_spill] sm:$0xff]  ;;  %vm15243_vm0 = vcmask 130048   ;;  %v15246_v59 = vld [vmem:[#allocation305_spill] sm:$0xff] }
0x1e0b   : > { %6629 = vrot.lane.b32.xlu0 %v6614_v41, %s8467_s2  ;;  %6690 = vrot.lane.b32.xlu1 %v6677_v43, %s8466_s11  ;;  %v12971_v41 = vsel %vm6867_vm5, %v11730_v33, %v15227_v25  ;;  %15229 = vst [vmem:[#allocation100_spill] sm:$0xff] %v12975_v48  ;;  %v15230_v43 = vld [vmem:[#allocation301_spill] sm:$0xff]  ;;  %v4964_v33 = vadd.f32 %v11757_v21, %v4897_v29  ;;  %v15240_v21 = vld [vmem:[#allocation303_spill] sm:$0xff]  ;;  %v15248_v27 = vld [vmem:[#allocation312_spill] sm:$0xff]  ;;  %vm15252_vm6 = vcmask 908288   ;;  %s15390_s2 = smov 38  }
0x1e0c   : > { %v12980_v13 = vsel %vm6867_vm5, %v15228_v51, %v15230_v43  ;;  %v15235_v51 = vld [vmem:[#allocation307_spill] sm:$0xff]  ;;  %v13003_v39 = vmul.f32 %v15240_v21, %v10400_v46  ;;  %v13008_v23 = vsel %vm15243_vm0, %v15240_v21, %v15242_v11  ;;  %v13015_v34 = vmul.f32 %v15246_v59, %v10476_v6  ;;  %vm15249_vm5 = vmmov %vm15245_vm8  ;;  %v15255_v6 = vld [vmem:[#allocation320_spill] sm:$0xff] }
0x1e0d   : > { %v12985_v44 = vpop.permute.xlu0 %6041  ;;  %v12987_v28 = vpop.permute.xlu1 %6043  ;;  %v5019_v48 = vsel %vm15236_vm10, %v15235_v51, %v15234_v40  ;;  %v15244_v29 = vld [vmem:[#allocation311_spill] sm:$0xff]  ;;  %v5020_v7 = vsel %vm15249_vm5, %v15248_v27, %v15238_v3  ;;  %vm15257_vm10 = vmmov %vm15252_vm6  ;;  %v15258_v27 = vld [vmem:[#allocation321_spill] sm:$0xff] }
0x1e0e   : > { %15232 = vst [vmem:[#allocation60_spill] sm:$0xff] %v12985_v44  ;;  %15233 = vst [vmem:[#allocation33_spill] sm:$0xff] %v12987_v28  ;;  %v5018_v50 = vsel %vm15245_vm8, %v15244_v29, %v15235_v51  ;;  %v5029_v44 = vadd.f32 %v5019_v48, %v4963_v31  ;;  %v5032_v51 = vadd.f32 %v5021_v57, %v4966_v32  ;;  %v15263_v48 = vld [vmem:[#allocation327_spill] sm:$0xff]  ;;  %vm15264_vm8 = vcmask 883712  }
0x1e0f   : > { %6692 = vrot.lane.b32.xlu0 %v6678_v54, %s8466_s11  ;;  %6696 = vrot.lane.b32.xlu1 %v6680_v14, %s8466_s11  ;;  %15241 = vst [vmem:[#allocation273_spill] sm:$0xff] %v13003_v39  ;;  %15247 = vst [vmem:[#allocation274_spill] sm:$0xff] %v13015_v34  ;;  %v5030_v54 = vadd.f32 %v15234_v40, %v4964_v33  ;;  %v15250_v14 = vld [vmem:[#allocation318_spill] sm:$0xff]  ;;  %v5033_v29 = vadd.f32 %v15237_v56, %v4967_v2  ;;  %v15256_v34 = vld [vmem:[#allocation319_spill] sm:$0xff]  ;;  %v13033_v33 = vmul.f32 0.0, %v11728_v35 }
0x1e10   : > { %v5084_v1 = vsel %vm15252_vm6, %v15251_v24, %v15250_v14  ;;  %v5086_v40 = vsel %vm15257_vm10, %v15256_v34, %v15255_v6  ;;  %v5028_v3 = vadd.f32 %v5018_v50, %v4962_v58  ;;  %vm15259_vm15 = vmmov %vm15252_vm6  ;;  %v5031_v56 = vadd.f32 %v5020_v7, %v4965_v10  ;;  %v15262_v35 = vld [vmem:[#allocation328_spill] sm:$0xff]  ;;  %v15265_v50 = vld [vmem:[#allocation259_spill] sm:$0xff] }
0x1e11   : > { %v13024_v52 = vpop.permute.xlu0 %6045  ;;  %v13026_v21 = vpop.permute.xlu1 %6101  ;;  %v5083_v28 = vsel %vm15259_vm15, %v15258_v27, %v15251_v24  ;;  %vm15261_vm0 = vmmov %vm15252_vm6  ;;  %v5094_v32 = vadd.f32 %v5084_v1, %v5029_v44  ;;  %v5095_v2 = vadd.f32 %v15250_v14, %v5030_v54  ;;  %v5149_v58 = vsel %vm15264_vm8, %v15263_v48, %v15262_v35  ;;  %v15266_v24 = vld [vmem:[#allocation329_spill] sm:$0xff]  ;;  %v15270_v14 = vld [vmem:[#allocation260_spill] sm:$0xff] }
0x1e12   : > { %15253 = vst [vmem:[#allocation31_spill] sm:$0xff] %v13024_v52  ;;  %15254 = vst [vmem:[#allocation83_spill] sm:$0xff] %v13026_v21  ;;  %v15260_v52 = vld [vmem:[#allocation322_spill] sm:$0xff]  ;;  %v5097_v31 = vadd.f32 %v5086_v40, %v5032_v51  ;;  %v5098_v57 = vadd.f32 %v15255_v6, %v5033_v29  ;;  %vm5415_vm10 = vcmask 564224   ;;  %v5093_v10 = vadd.f32 %v5083_v28, %v5028_v3  ;;  %v15272_v29 = vld [vmem:[#allocation264_spill] sm:$0xff] }
0x1e13   : > { %v5085_v21 = vsel %vm15261_vm0, %v15260_v52, %v15256_v34  ;;  %6698 = vrot.lane.b32.xlu0 %v6681_v22, %s8466_s11  ;;  %6688 = vrot.lane.b32.xlu1 %v12898_v0, %s8466_s11  ;;  %vm15267_vm5 = vmmov %vm15264_vm8  ;;  %v15268_v22 = vld [vmem:[#allocation330_spill] sm:$0xff]  ;;  %v5160_v7 = vadd.f32 %v15262_v35, %v5095_v2  ;;  %v13063_v1 = vmul.f32 0.0, %v6802_v4  ;;  %v5159_v51 = vadd.f32 %v5149_v58, %v5094_v32  ;;  %v15273_v40 = vld [vmem:[#allocation332_spill] sm:$0xff] }
0x1e14   : > { %v5151_v34 = vsel %vm15267_vm5, %v15266_v24, %v15265_v50  ;;  %vm15269_vm6 = vmmov %vm15267_vm5  ;;  %v5096_v54 = vadd.f32 %v5085_v21, %v5031_v56  ;;  %v5216_v27 = vsel %vm5214_vm4, %v15273_v40, %v15272_v29  ;;  %v5163_v4 = vadd.f32 %v15265_v50, %v5098_v57  ;;  %v15276_v3 = vld [vmem:[#allocation334_spill] sm:$0xff] }
0x1e15   : > { %v5148_v52 = vsel %vm15269_vm6, %v15268_v22, %v15263_v48  ;;  %v13055_v0 = vpop.permute.xlu0 %6103  ;;  %v13057_v44 = vpop.permute.xlu1 %6105  ;;  %vm15271_vm15 = vmmov %vm15267_vm5  ;;  %v15274_v48 = vld [vmem:[#allocation265_spill] sm:$0xff]  ;;  %v5162_v28 = vadd.f32 %v5151_v34, %v5097_v31  ;;  %v5215_v56 = vsel %vm5214_vm4, %v15276_v3, %v15273_v40  ;;  %v5227_v2 = vadd.f32 %v15272_v29, %v5160_v7  ;;  %v15277_v35 = vld [vmem:[#allocation266_spill] sm:$0xff] }
0x1e16   : > { %v5150_v6 = vsel %vm15271_vm15, %v15270_v14, %v15266_v24  ;;  %v15275_v22 = vld [vmem:[#allocation333_spill] sm:$0xff]  ;;  %v5158_v21 = vadd.f32 %v5148_v52, %v5093_v10  ;;  %v15279_v24 = vld [vmem:[#allocation335_spill] sm:$0xff]  ;;  %v5226_v57 = vadd.f32 %v5216_v27, %v5159_v51  ;;  %v5230_v34 = vadd.f32 %v15274_v48, %v5163_v4  ;;  %v15280_v52 = vld [vmem:[#allocation38_spill] sm:$0xff] }
0x1e17   : > { %v5218_v39 = vsel %vm5214_vm4, %v15275_v22, %v15274_v48  ;;  %6694 = vrot.lane.b32.xlu0 %v12910_v55, %s8466_s11  ;;  %6754 = vrot.lane.b32.xlu1 %v12916_v9, %s8492_s14  ;;  %v5161_v32 = vadd.f32 %v5150_v6, %v5096_v54  ;;  %v5217_v58 = vsel %vm5214_vm4, %v15277_v35, %v15275_v22  ;;  %v15278_v55 = vld [vmem:[#allocation267_spill] sm:$0xff]  ;;  %v13095_v54 = vmul.f32 0.0, %v15227_v25  ;;  %v15281_v6 = vld [vmem:[#allocation268_spill] sm:$0xff]  ;;  %v15283_v22 = vld [vmem:[#allocation125_spill] sm:$0xff]  ;;  %s8495_s11 = smov 44  }
0x1e18   : > { %v5283_v14 = vsel %vm5281_vm14, %v15279_v24, %v15278_v55  ;;  %v5229_v50 = vadd.f32 %v5218_v39, %v5162_v28  ;;  %v5282_v10 = vsel %vm5281_vm14, %v15280_v52, %v15279_v24  ;;  %v5225_v7 = vadd.f32 %v5215_v56, %v5158_v21  ;;  %v15282_v29 = vld [vmem:[#allocation336_spill] sm:$0xff]  ;;  %v15284_v27 = vld [vmem:[#allocation63_spill] sm:$0xff]  ;;  %v15286_v56 = vld [vmem:[#allocation129_spill] sm:$0xff] }
0x1e19   : > { %v13086_v9 = vpop.permute.xlu0 %6107  ;;  %v13088_v31 = vpop.permute.xlu1 %6109  ;;  %v5285_v40 = vsel %vm5281_vm14, %v15282_v29, %v15281_v6  ;;  %v5284_v3 = vsel %vm5281_vm14, %v15283_v22, %v15282_v29  ;;  %v5228_v39 = vadd.f32 %v5217_v58, %v5161_v32  ;;  %v5293_v51 = vadd.f32 %v5283_v14, %v5226_v57  ;;  %v15285_v48 = vld [vmem:[#allocation132_spill] sm:$0xff]  ;;  %v15290_v57 = vld [vmem:[#allocation65_spill] sm:$0xff] }
0x1e1a   : > { %v5294_v25 = vadd.f32 %v15278_v55, %v5227_v2  ;;  %v5349_v28 = vsel %vm5348_vm11, %v15285_v48, %v15284_v27  ;;  %v5297_v4 = vadd.f32 %v15281_v6, %v5230_v34  ;;  %v5292_v21 = vadd.f32 %v5282_v10, %v5225_v7  ;;  %v15287_v24 = vld [vmem:[#allocation92_spill] sm:$0xff]  ;;  %v15291_v29 = vld [vmem:[#allocation269_spill] sm:$0xff] }
0x1e1b   : > { %6756 = vrot.lane.b32.xlu0 %v12929_v37, %s8492_s14  ;;  %6758 = vrot.lane.b32.xlu1 %v12919_v53, %s8492_s14  ;;  %v5350_v35 = vsel %vm5348_vm11, %v15284_v27, %v15286_v56  ;;  %v15288_v37 = vld [vmem:[#allocation95_spill] sm:$0xff]  ;;  %v5296_v2 = vadd.f32 %v5285_v40, %v5229_v50  ;;  %v5295_v58 = vadd.f32 %v5284_v3, %v5228_v39  ;;  %v15289_v55 = vld [vmem:[#allocation64_spill] sm:$0xff]  ;;  %v13129_v10 = vmul.f32 0.0, %v12971_v41  ;;  %v15292_v3 = vld [vmem:[#allocation270_spill] sm:$0xff] }
0x1e1c   : > { %v5351_v52 = vsel %vm5348_vm11, %v15288_v37, %v15287_v24  ;;  %v5352_v14 = vsel %vm5348_vm11, %v15287_v24, %v15289_v55  ;;  %v5416_v34 = vsel %vm5415_vm10, %v12167_v36, %v15290_v57  ;;  %v5361_v7 = vadd.f32 %v15286_v56, %v5294_v25  ;;  %v15293_v41 = vld [vmem:[#allocation85_spill] sm:$0xff]  ;;  %v15294_v27 = vld [vmem:[#allocation135_spill] sm:$0xff]  ;;  %v15296_v56 = vld [vmem:[#allocation46_spill] sm:$0xff] }
0x1e1d   : > { %v13118_v53 = vpop.permute.xlu0 %6111  ;;  %v13120_v32 = vpop.permute.xlu1 %6166  ;;  %v5359_v6 = vadd.f32 %v5349_v28, %v5292_v21  ;;  %v5418_v22 = vsel %vm5415_vm10, %v15291_v29, %v12141_v20  ;;  %v5360_v50 = vadd.f32 %v5350_v35, %v5293_v51  ;;  %v5364_v40 = vadd.f32 %v15289_v55, %v5297_v4  ;;  %v15295_v21 = vld [vmem:[#allocation47_spill] sm:$0xff]  ;;  %v15297_v4 = vld [vmem:[#allocation30_spill] sm:$0xff]  ;;  %v15303_v29 = vld [vmem:[#allocation69_spill] sm:$0xff] }
0x1e1e   : > { %v5362_v36 = vadd.f32 %v5351_v52, %v5295_v58  ;;  %v5481_v39 = vsel %vm2603_vm7, %v15293_v41, %v15292_v3  ;;  %v5363_v25 = vadd.f32 %v5352_v14, %v5296_v2  ;;  %v5417_v48 = vsel %vm5415_vm10, %v15290_v57, %v15294_v27  ;;  %v15298_v52 = vld [vmem:[#allocation80_spill] sm:$0xff]  ;;  %v15299_v2 = vld [vmem:[#allocation39_spill] sm:$0xff] }
0x1e1f   : > { %6760 = vrot.lane.b32.xlu0 %v12923_v63, %s8492_s14  ;;  %6762 = vrot.lane.b32.xlu1 %v12931_v18, %s8492_s14  ;;  %v5426_v28 = vadd.f32 %v5416_v34, %v5359_v6  ;;  %v5483_v63 = vsel %vm2603_vm7, %v15296_v56, %v15295_v21  ;;  %v5428_v51 = vadd.f32 %v15294_v27, %v5361_v7  ;;  %vm15300_vm11 = vcmask 515072   ;;  %v15301_v14 = vld [vmem:[#allocation67_spill] sm:$0xff]  ;;  %v15306_v27 = vld [vmem:[#allocation272_spill] sm:$0xff] }
0x1e20   : > { %v5419_v35 = vsel %vm5415_vm10, %v12141_v20, %v15297_v4  ;;  %v5429_v37 = vadd.f32 %v5418_v22, %v5362_v36  ;;  %v5546_v58 = vsel %vm15300_vm11, %v15299_v2, %v15298_v52  ;;  %v13161_v55 = vmul.f32 0.0, %v15230_v43  ;;  %v15302_v6 = vld [vmem:[#allocation271_spill] sm:$0xff]  ;;  %vm15304_vm14 = vmmov %vm15300_vm11  ;;  %v15305_v22 = vld [vmem:[#allocation34_spill] sm:$0xff] }
0x1e21   : > { %v13149_v24 = vpop.permute.xlu0 %6168  ;;  %v13151_v18 = vpop.permute.xlu1 %6170  ;;  %v5482_v57 = vsel %vm2603_vm7, %v15292_v3, %v15301_v14  ;;  %v5491_v34 = vadd.f32 %v5481_v39, %v5426_v28  ;;  %v5548_v7 = vsel %vm15304_vm14, %v15303_v29, %v15302_v6  ;;  %v5427_v20 = vadd.f32 %v5417_v48, %v5360_v50  ;;  %vm15307_vm4 = vmmov %vm15300_vm11  ;;  %v15315_v29 = vld [vmem:[#allocation37_spill] sm:$0xff] }
0x1e22   : > { %v5431_v43 = vadd.f32 %v15297_v4, %v5364_v40  ;;  %v5484_v36 = vsel %vm2603_vm7, %v15295_v21, %v15305_v22  ;;  %v5494_v3 = vadd.f32 %v5483_v63, %v5429_v37  ;;  %v5430_v41 = vadd.f32 %v5419_v35, %v5363_v25  ;;  %v15308_v40 = vld [vmem:[#allocation126_spill] sm:$0xff]  ;;  %vm15309_vm0 = vmmov %vm15307_vm4  ;;  %v15312_v35 = vld [vmem:[#allocation35_spill] sm:$0xff] }
0x1e23   : > { %6764 = vrot.lane.b32.xlu0 %v12934_v38, %s8492_s14  ;;  %6821 = vrot.lane.b32.xlu1 %v12938_v12, %s8493_s5  ;;  %v5493_v39 = vadd.f32 %v15301_v14, %v5428_v51  ;;  %v5547_v28 = vsel %vm15307_vm4, %v15298_v52, %v15306_v27  ;;  %v5556_v38 = vadd.f32 %v5546_v58, %v5491_v34  ;;  %v13190_v25 = vmul.f32 0.0, %v12980_v13  ;;  %v15310_v63 = vld [vmem:[#allocation306_spill] sm:$0xff]  ;;  %v15313_v37 = vld [vmem:[#allocation36_spill] sm:$0xff]  ;;  %v15314_v58 = vld [vmem:[#allocation313_spill] sm:$0xff] }
0x1e24   : > { %v5492_v12 = vadd.f32 %v5482_v57, %v5427_v20  ;;  %v5496_v50 = vadd.f32 %v15305_v22, %v5431_v43  ;;  %v5549_v48 = vsel %vm15309_vm0, %v15302_v6, %v15308_v40  ;;  %v5559_v21 = vadd.f32 %v5548_v7, %v5494_v3  ;;  %v15316_v7 = vld [vmem:[#allocation87_spill] sm:$0xff]  ;;  %v15318_v43 = vld [vmem:[#allocation73_spill] sm:$0xff] }
0x1e25   : > { %v13181_v56 = vpop.permute.xlu0 %6172  ;;  %v13183_v2 = vpop.permute.xlu1 %6174  ;;  %vm15311_vm7 = vcmask 130048   ;;  %v5495_v4 = vadd.f32 %v5484_v36, %v5430_v41  ;;  %v5583_v52 = vsel %vm2343_vm3, %v15313_v37, %v15312_v35  ;;  %v13206_v13 = vmul.f32 %v15314_v58, %v10400_v46 }
0x1e26   : > { %v13195_v51 = vsel %vm15311_vm7, %v15246_v59, %v15310_v63  ;;  %v5557_v14 = vadd.f32 %v5547_v28, %v5492_v12  ;;  %v5558_v57 = vadd.f32 %v15306_v27, %v5493_v39  ;;  %v5561_v59 = vadd.f32 %v15308_v40, %v5496_v50  ;;  %v15319_v27 = vld [vmem:[#allocation40_spill] sm:$0xff]  ;;  %v7354_v40 = vld [vmem:[#allocation8] sm:$0xff]  ;;  %vm15320_vm5 = vmmov %vm15311_vm7 }
0x1e27   : > { %6823 = vrot.lane.b32.xlu0 %v12991_v62, %s8493_s5  ;;  %6825 = vrot.lane.b32.xlu1 %v12944_v5, %s8493_s5  ;;  %v5560_v34 = vadd.f32 %v5549_v48, %v5495_v4  ;;  %v5591_v6 = vadd.f32 %v15313_v37, %v5556_v38  ;;  %v5584_v20 = vsel %vm2343_vm3, %v15316_v7, %v15315_v29  ;;  %v15317_v62 = vld [vmem:[#allocation75_spill] sm:$0xff]  ;;  %vm5848_vm8 = vcmask 171008   ;;  %vm15330_vm10 = vmmov %vm15320_vm5 }
0x1e28   : > { %v5648_v5 = vsel %vm5647_vm13, %v15318_v43, %v15317_v62  ;;  %v5592_v3 = vadd.f32 %v5583_v52, %v5557_v14  ;;  %v5593_v41 = vadd.f32 %v15312_v35, %v5558_v57  ;;  %v5594_v39 = vadd.f32 %v15316_v7, %v5559_v21  ;;  %7785 = vmatmul.mubr.msk.f32.vlgmr.msra.gmra.mrb[4].mxu0 %vm15320_vm5, %v7354_v40  ;;  %v15324_v7 = vld [vmem:[#allocation97_spill] sm:$0xff] }
0x1e29   : > { %v13217_v22 = vpop.permute.xlu0 %6176  ;;  %v13219_v36 = vpop.permute.xlu1 %6231  ;;  %v5649_v28 = vsel %vm5647_vm13, %v15317_v62, %v15319_v27  ;;  %v5596_v38 = vadd.f32 %v15315_v29, %v5561_v59  ;;  %v5650_v12 = vsel %vm5647_vm13, %v12463_v42, %v12465_v16  ;;  %v5651_v50 = vsel %vm5647_vm13, %v12465_v16, %v12491_v47  ;;  %v15323_v29 = vld [vmem:[#allocation78_spill] sm:$0xff] }
0x1e2a   : > { %v5595_v48 = vadd.f32 %v5584_v20, %v5560_v34  ;;  %v5658_v21 = vadd.f32 %v15318_v43, %v5591_v6  ;;  %v5659_v4 = vadd.f32 %v5648_v5, %v5592_v3  ;;  %v5715_v35 = vsel %vm5714_vm1, %v12493_v19, %v12517_v30  ;;  %v15325_v20 = vld [vmem:[#allocation49_spill] sm:$0xff] }
0x1e2b   : > { %6827 = vrot.lane.b32.xlu0 %v12956_v60, %s8493_s5  ;;  %6829 = vrot.lane.b32.xlu1 %v13063_v1, %s8493_s5  ;;  %v5660_v37 = vadd.f32 %v5649_v28, %v5593_v41  ;;  %v5661_v16 = vadd.f32 %v12463_v42, %v5594_v39  ;;  %v5716_v47 = vsel %vm5714_vm1, %v12517_v30, %v12519_v49  ;;  %v15321_v60 = vld [vmem:[#allocation91_spill] sm:$0xff]  ;;  %v15322_v57 = vmov 0.0   ;;  %v15327_v43 = vld [vmem:[#allocation41_spill] sm:$0xff] }
0x1e2c   : > { %v5717_v1 = vsel %vm5714_vm1, %v15321_v60, %v12547_v45  ;;  %7444 = vmatprep.mubr.f32.mxu0 %v15322_v57  ;;  %v5662_v59 = vadd.f32 %v5650_v12, %v5595_v48  ;;  %v5663_v34 = vadd.f32 %v5651_v50, %v5596_v38  ;;  %v5725_v6 = vadd.f32 %v12493_v19, %v5658_v21  ;;  %v7355_v19 = vld [vmem:[#allocation8 + $0x8] sm:$0xff]  ;;  %v15331_v28 = vld [vmem:[#allocation29_spill] sm:$0xff]  ;;  %v15333_v38 = vld [vmem:[#allocation54_spill] sm:$0xff] }
0x1e2d   : > { %v13249_v52 = vpop.permute.xlu0 %6233  ;;  %v13251_v14 = vpop.permute.xlu1 %6235  ;;  %v5718_v42 = vsel %vm5714_vm1, %v12547_v45, %v15323_v29  ;;  %v13259_v30 = vmul.f32 0.0, %v15242_v11  ;;  %v5726_v49 = vadd.f32 %v5715_v35, %v5659_v4  ;;  %vm15326_vm13 = vcmask 416768   ;;  %7786 = vmatmul.mubr.msk.f32.gmra.mrb[6].mxu0 %vm15330_vm10, %v7355_v19  ;;  %v15335_v35 = vld [vmem:[#allocation48_spill] sm:$0xff] }
0x1e2e   : > { %v5782_v62 = vsel %vm15326_vm13, %v15325_v20, %v15324_v7  ;;  %vm15328_vm6 = vmmov %vm15326_vm13  ;;  %v5727_v45 = vadd.f32 %v5716_v47, %v5660_v37  ;;  %v5728_v11 = vadd.f32 %v15321_v60, %v5661_v16  ;;  %v5729_v3 = vadd.f32 %v5717_v1, %v5662_v59  ;;  %v15336_v47 = vld [vmem:[#allocation56_spill] sm:$0xff] }
0x1e2f   : > { %v5783_v5 = vsel %vm15328_vm6, %v15324_v7, %v15327_v43  ;;  %6831 = vrot.lane.b32.xlu0 %v13033_v33, %s8493_s5  ;;  %6888 = vrot.lane.b32.xlu1 %v12963_v15, %s8494_s15  ;;  %vm15329_vm1 = vmmov %vm15328_vm6  ;;  %v5730_v39 = vadd.f32 %v5718_v42, %v5663_v34  ;;  %v5792_v27 = vadd.f32 %v15325_v20, %v5725_v6  ;;  %v15334_v15 = vld [vmem:[#allocation94_spill] sm:$0xff]  ;;  %vm6047_vm11 = vcmask 97280   ;;  %v15340_v7 = vld [vmem:[#allocation32_spill] sm:$0xff]  ;;  %s15444_s5 = sshll.u32 %s8845_s1, 5 }
0x1e30   : > { %v5784_v41 = vsel %vm15329_vm1, %v12627_v17, %v12629_v8  ;;  %vm15332_vm15 = vmmov %vm15329_vm1  ;;  %v5849_v12 = vsel %vm5848_vm8, %v15334_v15, %v15333_v38  ;;  %v5793_v48 = vadd.f32 %v5782_v62, %v5726_v49  ;;  %v5794_v21 = vadd.f32 %v5783_v5, %v5727_v45  ;;  %v15337_v34 = vld [vmem:[#allocation42_spill] sm:$0xff]  ;;  %v15345_v45 = vld [vmem:[#allocation57_spill] sm:$0xff] }
0x1e31   : > { %v5785_v33 = vsel %vm15332_vm15, %v12629_v8, %v15331_v28  ;;  %v13283_v50 = vpop.permute.xlu0 %6237  ;;  %v13285_v40 = vpop.permute.xlu1 %6239  ;;  %v5795_v4 = vadd.f32 %v12627_v17, %v5728_v11  ;;  %v5850_v37 = vsel %vm5848_vm8, %v15333_v38, %v15335_v35  ;;  %v5796_v16 = vadd.f32 %v5784_v41, %v5729_v3  ;;  %v15338_v6 = vld [vmem:[#allocation82_spill] sm:$0xff] }
0x1e32   : > { %v5851_v8 = vsel %vm5848_vm8, %v15336_v47, %v12709_v61  ;;  %v5852_v60 = vsel %vm5848_vm8, %v12709_v61, %v12733_v26  ;;  %v5797_v17 = vadd.f32 %v5785_v33, %v5730_v39  ;;  %v5859_v1 = vadd.f32 %v15334_v15, %v5792_v27  ;;  %v15342_v26 = vld [vmem:[#allocation58_spill] sm:$0xff]  ;;  %v15347_v39 = vld [vmem:[#allocation43_spill] sm:$0xff]  ;;  %v15348_v27 = vld [vmem:[#allocation68_spill] sm:$0xff] }
0x1e33   : > { %6890 = vrot.lane.b32.xlu0 %v13129_v10, %s8494_s15  ;;  %6892 = vrot.lane.b32.xlu1 %v13095_v54, %s8494_s15  ;;  %v5860_v59 = vadd.f32 %v5849_v12, %v5793_v48  ;;  %vm15339_vm14 = vcmask 146432   ;;  %v5861_v42 = vadd.f32 %v5850_v37, %v5794_v21  ;;  %v5862_v49 = vadd.f32 %v15336_v47, %v5795_v4  ;;  %v15343_v10 = vld [vmem:[#allocation53_spill] sm:$0xff]  ;;  %v15352_v15 = vld [vmem:[#allocation100_spill] sm:$0xff]  ;;  %v15354_v4 = vld [vmem:[#allocation71_spill] sm:$0xff] }
0x1e34   : > { %v5915_v29 = vsel %vm15339_vm14, %v15338_v6, %v15337_v34  ;;  %vm15341_vm4 = vmmov %vm15339_vm14  ;;  %v5863_v43 = vadd.f32 %v5851_v8, %v5796_v16  ;;  %v5864_v5 = vadd.f32 %v5852_v60, %v5797_v17  ;;  %v5925_v19 = vadd.f32 %v15338_v6, %v5859_v1  ;;  %v15350_v33 = vld [vmem:[#allocation93_spill] sm:$0xff]  ;;  %v15358_v60 = vld [vmem:[#allocation51_spill] sm:$0xff] }
0x1e35   : > { %v5916_v61 = vsel %vm15341_vm4, %v15337_v34, %v15340_v7  ;;  %vm15344_vm0 = vmmov %vm15341_vm4  ;;  %v13312_v54 = vpop.permute.xlu0 %6241  ;;  %v13314_v62 = vpop.permute.xlu1 %6299  ;;  %v6943_v3 = vmul.f32 0.0, %v13008_v23  ;;  %v5926_v41 = vadd.f32 %v5915_v29, %v5860_v59  ;;  %vm15349_vm8 = vcmask 121856   ;;  %v15353_v23 = vld [vmem:[#allocation62_spill] sm:$0xff]  ;;  %v15356_v47 = vld [vmem:[#allocation45_spill] sm:$0xff] }
0x1e36   : > { %v5917_v20 = vsel %vm15344_vm0, %v15343_v10, %v15342_v26  ;;  %vm15346_vm7 = vmmov %vm15344_vm0  ;;  %v5981_v28 = vsel %vm15349_vm8, %v15348_v27, %v15347_v39  ;;  %v5927_v12 = vadd.f32 %v5916_v61, %v5861_v42  ;;  %v5928_v48 = vadd.f32 %v15343_v10, %v5862_v49  ;;  %v15359_v17 = vld [vmem:[#allocation44_spill] sm:$0xff]  ;;  %v15360_v42 = vld [vmem:[#allocation77_spill] sm:$0xff] }
0x1e37   : > { %v5918_v11 = vsel %vm15346_vm7, %v15342_v26, %v15345_v45  ;;  %vm15351_vm5 = vmmov %vm15349_vm8  ;;  %6894 = vrot.lane.b32.xlu0 %v15352_v15, %s8494_s15  ;;  %6896 = vrot.lane.b32.xlu1 %v13190_v25, %s8494_s15  ;;  %v5929_v21 = vadd.f32 %v5917_v20, %v5863_v43  ;;  %v5991_v16 = vadd.f32 %v15348_v27, %v5925_v19  ;;  %vm15361_vm1 = vcmask 72704   ;;  %v15362_v10 = vld [vmem:[#allocation273_spill] sm:$0xff] }
0x1e38   : > { %v5982_v38 = vsel %vm15351_vm5, %v15347_v39, %v15350_v33  ;;  %vm15355_vm13 = vmmov %vm15351_vm5  ;;  %v5930_v37 = vadd.f32 %v5918_v11, %v5864_v5  ;;  %v6049_v1 = vsel %vm6047_vm11, %v15359_v17, %v15358_v60  ;;  %v5992_v34 = vadd.f32 %v5981_v28, %v5926_v41  ;;  %v15363_v5 = vld [vmem:[#allocation31_spill] sm:$0xff]  ;;  %v15364_v19 = vld [vmem:[#allocation33_spill] sm:$0xff] }
0x1e39   : > { %v5983_v35 = vsel %vm15355_vm13, %v15354_v4, %v15353_v23  ;;  %vm15357_vm6 = vmmov %vm15351_vm5  ;;  %v6302_v25 = vpop.permute.xlu0 %6301  ;;  %v6306_v59 = vpop.permute.xlu1 %6305  ;;  %v5993_v6 = vadd.f32 %v5982_v38, %v5927_v12  ;;  %v5994_v29 = vadd.f32 %v15354_v4, %v5928_v48  ;;  %v6048_v49 = vsel %vm6047_vm11, %v15360_v42, %v15359_v17  ;;  %v15365_v11 = vld [vmem:[#allocation83_spill] sm:$0xff] }
0x1e3a   : > { %v5984_v8 = vsel %vm15357_vm6, %v15353_v23, %v15356_v47  ;;  %v5995_v7 = vadd.f32 %v5983_v35, %v5929_v21  ;;  %v6058_v61 = vadd.f32 %v15360_v42, %v5991_v16  ;;  %v6114_v26 = vsel %vm15361_vm1, %v13055_v0, %v13057_v44  ;;  %vm15366_vm15 = vmmov %vm15361_vm1  ;;  %v15367_v44 = vld [vmem:[#allocation60_spill] sm:$0xff] }
0x1e3b   : > { %vm6309_vm10 = vcmask 826368   ;;  %6898 = vrot.lane.b32.xlu0 %v13161_v55, %s8494_s15  ;;  %6954 = vrot.lane.b32.xlu1 %v15362_v10, %s8495_s11  ;;  %v5996_v20 = vadd.f32 %v5984_v8, %v5930_v37  ;;  %v6060_v43 = vadd.f32 %v6049_v1, %v5993_v6  ;;  %v6051_v45 = vsel %vm6047_vm11, %v15364_v19, %v15363_v5  ;;  %vm15369_vm4 = vmmov %vm15361_vm1  ;;  %v15377_v6 = vld [vmem:[#allocation274_spill] sm:$0xff]  ;;  %s572_s15 = scalar_lea.vmem [#allocation15], %s15444_s5 }
0x1e3c   : > { %v6113_v41 = vsel %vm15366_vm15, %v15365_v11, %v13055_v0  ;;  %v6059_v39 = vadd.f32 %v6048_v49, %v5992_v34  ;;  %v6061_v27 = vadd.f32 %v15367_v44, %v5994_v29  ;;  %v6050_v55 = vsel %vm6047_vm11, %v15367_v44, %v15364_v19  ;;  %vm15372_vm7 = vmmov %vm15361_vm1 }
0x1e3d   : > { %vm15368_vm14 = vcmask 48128   ;;  %v6308_v33 = vpop.permute.xlu0 %6307  ;;  %v6298_v38 = vpop.permute.xlu1 %6297  ;;  %v6125_v15 = vadd.f32 %v6114_v26, %v6060_v43  ;;  %v6116_v12 = vsel %vm15369_vm4, %v13088_v31, %v13118_v53  ;;  %v6946_v21 = vmul.f32 0.0, %v13195_v51 }
0x1e3e   : > { %v6179_v28 = vsel %vm15368_vm14, %v13149_v24, %v13151_v18  ;;  %vm15370_vm0 = vmmov %vm15368_vm14  ;;  %v6313_v48 = vsel %vm6309_vm10, %v6306_v59, %v6308_v33  ;;  %v6063_v23 = vadd.f32 %v6051_v45, %v5996_v20  ;;  %v6124_v4 = vadd.f32 %v6113_v41, %v6059_v39 }
0x1e3f   : > { %v6178_v0 = vsel %vm15370_vm0, %v13120_v32, %v13149_v24  ;;  %vm15371_vm11 = vcmask 23552   ;;  %6956 = vrot.lane.b32.xlu0 %v6943_v3, %s8495_s11  ;;  %6958 = vrot.lane.b32.xlu1 %v13259_v30, %s8495_s11  ;;  %v6062_v53 = vadd.f32 %v6050_v55, %v5995_v7  ;;  %v6115_v24 = vsel %vm15372_vm7, %v13086_v9, %v13088_v31  ;;  %vm15374_vm5 = vmmov %vm15370_vm0  ;;  %v15382_v55 = vld [vmem:[#allocation315_spill] sm:$0xff] }
0x1e40   : > { %v6244_v18 = vsel %vm15371_vm11, %v13249_v52, %v13251_v14  ;;  %v6190_v35 = vadd.f32 %v6179_v28, %v6125_v15  ;;  %vm15373_vm8 = vmmov %vm15371_vm11  ;;  %v6123_v37 = vadd.f32 %v15365_v11, %v6058_v61  ;;  %v6128_v16 = vadd.f32 %v6116_v12, %v6063_v23 }
0x1e41   : > { %v6243_v51 = vsel %vm15373_vm8, %v13219_v36, %v13249_v52  ;;  %v6189_v47 = vadd.f32 %v6178_v0, %v6124_v4  ;;  %v6181_v14 = vsel %vm15374_vm5, %v13183_v2, %v13217_v22  ;;  %v6304_v3 = vpop.permute.xlu0 %6303  ;;  %v6366_v30 = vpop.permute.xlu1 %6365  ;;  %vm15375_vm13 = vmmov %vm15370_vm0  ;;  %v6311_v60 = vsel %vm6309_vm10, %v13314_v62, %v6302_v25 }
0x1e42   : > { %v6180_v8 = vsel %vm15375_vm13, %v13181_v56, %v13183_v2  ;;  %v6255_v31 = vadd.f32 %v6244_v18, %v6190_v35  ;;  %v6312_v52 = vsel %vm6309_vm10, %v6304_v3, %v6306_v59  ;;  %v6947_v17 = vmul.f32 0.0, %v15310_v63  ;;  %vm15376_vm6 = vmmov %vm15373_vm8  ;;  %v15378_v2 = vld [vmem:[#allocation314_spill] sm:$0xff] }
0x1e43   : > { %v6127_v1 = vadd.f32 %v6115_v24, %v6062_v53  ;;  %v6254_v34 = vadd.f32 %v6243_v51, %v6189_v47  ;;  %v6246_v22 = vsel %vm15376_vm6, %v13285_v40, %v13312_v54  ;;  %6960 = vrot.lane.b32.xlu0 %v15377_v6, %s8495_s11  ;;  %6962 = vrot.lane.b32.xlu1 %v6946_v21, %s8495_s11  ;;  %vm15379_vm1 = vmmov %vm15376_vm6  ;;  %vm15380_vm15 = vcmask 801792   ;;  %v15387_v24 = vld [vmem:[#allocation323_spill] sm:$0xff] }
0x1e44   : > { %v7000_v29 = vsel %vm4884_vm12, %v15314_v58, %v15378_v2  ;;  %v6193_v42 = vadd.f32 %v6181_v14, %v6128_v16  ;;  %v6245_v63 = vsel %vm15379_vm1, %v13283_v50, %v13285_v40  ;;  %v6322_v59 = vadd.f32 %v6302_v25, %v6255_v31  ;;  %v15388_v16 = vld [vmem:[#allocation324_spill] sm:$0xff] }
0x1e45   : > { %v6126_v49 = vadd.f32 %v13086_v9, %v6061_v27  ;;  %v6188_v7 = vadd.f32 %v13120_v32, %v6123_v37  ;;  %v6192_v54 = vadd.f32 %v6180_v8, %v6127_v1  ;;  %v6321_v61 = vadd.f32 %v6311_v60, %v6254_v34  ;;  %v6368_v26 = vpop.permute.xlu0 %6367  ;;  %v6372_v10 = vpop.permute.xlu1 %6371  ;;  %v15381_v27 = vld [vmem:[#allocation316_spill] sm:$0xff]  ;;  %v15392_v1 = vld [vmem:[#allocation325_spill] sm:$0xff] }
0x1e46   : > { %v6258_v20 = vadd.f32 %v6246_v22, %v6193_v42  ;;  %v6310_v43 = vsel %vm6309_vm10, %v6298_v38, %v13314_v62  ;;  %v6376_v58 = vsel %vm15380_vm15, %v6366_v30, %v6368_v26  ;;  %v6387_v5 = vadd.f32 %v6368_v26, %v6322_v59  ;;  %vm15383_vm10 = vmmov %vm15380_vm15  ;;  %v7213_v26 = vld [vmem:[%s15396_s10] sm:$0xff] }
0x1e47   : > { %v6253_v19 = vadd.f32 %v13219_v36, %v6188_v7  ;;  %v6257_v45 = vadd.f32 %v6245_v63, %v6192_v54  ;;  %v6386_v40 = vadd.f32 %v6376_v58, %v6321_v61  ;;  %6964 = vrot.lane.b32.xlu0 %v6947_v17, %s8495_s11  ;;  %7020 = vrot.lane.b32.xlu1 %v13206_v13, %s8462_s28  ;;  %v7010_v9 = vmul.f32 0.0, %v15378_v2  ;;  %vm15384_vm14 = vmmov %vm15383_vm10  ;;  %v15391_v17 = vld [vmem:[#allocation326_spill] sm:$0xff]  ;;  %s7630_s11 = sshll.u32 %s572_s15, 4  ;;  %s13591_s11 = int_to_ptr.vmem [resolvable:$true] %s7630_s11 }
0x1e48   : > { %v6325_v32 = vadd.f32 %v6308_v33, %v6258_v20  ;;  %v7009_v25 = vmul.f32 0.0, %v7000_v29  ;;  %v6191_v11 = vadd.f32 %v13181_v56, %v6126_v49  ;;  %v7001_v36 = vsel %vm4884_vm12, %v15382_v55, %v15381_v27  ;;  %v15385_v56 = vld [vmem:[#allocation61_spill] sm:$0xff]  ;;  %vm15386_vm12 = vmmov %vm15383_vm10 }
0x1e49   : > { %v6324_v41 = vadd.f32 %v6313_v48, %v6257_v45  ;;  %v6320_v62 = vadd.f32 %v6310_v43, %v6253_v19  ;;  %v6374_v39 = vpop.permute.xlu0 %6373  ;;  %v6364_v44 = vpop.permute.xlu1 %6363  ;;  %v7011_v0 = vmul.f32 %v15382_v55, %v15385_v56  ;;  %v7012_v48 = vmul.f32 0.0, %v7001_v36  ;;  %v7214_v45 = vld [vmem:[%s15396_s10 + $0x8] sm:$0xff] }
0x1e4a   : > { %v6378_v28 = vsel %vm15383_vm10, %v6372_v10, %v6374_v39  ;;  %v6390_v38 = vadd.f32 %v6374_v39, %v6325_v32  ;;  %v6375_v15 = vsel %vm15384_vm14, %v6364_v44, %v6366_v30  ;;  %v6256_v13 = vadd.f32 %v13283_v50, %v6191_v11  ;;  %v15399_v11 = vld [vmem:[#allocation262_spill] sm:$0xff] }
0x1e4b   : > { %v6389_v12 = vadd.f32 %v6378_v28, %v6324_v41  ;;  %v6385_v33 = vadd.f32 %v6375_v15, %v6320_v62  ;;  %7022 = vrot.lane.b32.xlu0 %v7009_v25, %s8462_s28  ;;  %7024 = vrot.lane.b32.xlu1 %v7010_v9, %s8462_s28  ;;  %v7013_v50 = vmul.f32 0.0, %v15381_v27  ;;  %v7073_v35 = vmul.f32 %v15387_v24, %v10400_v46 }
0x1e4c   : > { %v6323_v21 = vadd.f32 %v6312_v52, %v6256_v13  ;;  %v7065_v47 = vsel %vm4817_vm2, %v15387_v24, %v15388_v16  ;;  %vm15389_vm4 = vcmask 777216   ;;  %v7075_v31 = vmul.f32 0.0, %v15388_v16  ;;  %v15403_v13 = vld [vmem:[#allocation263_spill] sm:$0xff]  ;;  %v7179_v24 = vld [vmem:[#allocation11 + $0x940] sm:$0xff] }
0x1e4d   : > { %v6370_v23 = vpop.permute.xlu0 %6369  ;;  %v6431_v4 = vpop.permute.xlu1 %6430  ;;  %v7074_v8 = vmul.f32 0.0, %v7065_v47  ;;  %v7066_v34 = vsel %vm4817_vm2, %v15392_v1, %v15391_v17  ;;  %vm15393_vm0 = vmmov %vm15389_vm4  ;;  %v7076_v63 = vmul.f32 %v15392_v1, %v15385_v56  ;;  %vm15397_vm2 = vcmask 752640   ;;  %v15407_v47 = vld [vmem:[#allocation59_spill] sm:$0xff] }
0x1e4e   : > { %v6377_v18 = vsel %vm15386_vm12, %v6370_v23, %v6372_v10  ;;  %vm15394_vm11 = vmmov %vm15393_vm0  ;;  %v7077_v59 = vmul.f32 0.0, %v7066_v34  ;;  %v7078_v10 = vmul.f32 0.0, %v15391_v17  ;;  %v7140_v28 = vmul.f32 0.0, %v15399_v11 }
0x1e4f   : > { %v6388_v53 = vadd.f32 %v6377_v18, %v6323_v21  ;;  %7026 = vrot.lane.b32.xlu0 %v7011_v0, %s8462_s28  ;;  %7028 = vrot.lane.b32.xlu1 %v7012_v48, %s8462_s28  ;;  %vm15395_vm7 = vmmov %vm15393_vm0  ;;  %vm15406_vm6 = vcmask 728064   ;;  %vm15412_vm10 = vcmask 703488  }
0x1e50   : > { %vm15400_vm8 = vmmov %vm15397_vm2 }
0x1e51   : > { %v6433_v51 = vpop.permute.xlu0 %6432  ;;  %v6437_v37 = vpop.permute.xlu1 %6436  ;;  %vm15401_vm5 = vmmov %vm15397_vm2 }
0x1e52   : > { %v6441_v14 = vsel %vm15389_vm4, %v6431_v4, %v6433_v51  ;;  %v6452_v3 = vadd.f32 %v6433_v51, %v6387_v5  ;;  %vm15405_vm13 = vmmov %vm15397_vm2  ;;  %v7143_v51 = vmul.f32 0.0, %v15403_v13 }
0x1e53   : > { %v6451_v30 = vadd.f32 %v6441_v14, %v6386_v40  ;;  %7030 = vrot.lane.b32.xlu0 %v7013_v50, %s8462_s28  ;;  %7085 = vrot.lane.b32.xlu1 %v7073_v35, %s15390_s2  ;;  %v15398_v40 = vld [vmem:[#allocation331_spill] sm:$0xff]  ;;  %v7183_v14 = vmul.f32 %v7179_v24, %v15407_v47  ;;  %vm15409_vm1 = vmmov %vm15406_vm6 }
0x1e54   : > { %v7138_v9 = vmul.f32 %v15398_v40, %v10400_v46  ;;  %v7130_v41 = vsel %vm4750_vm9, %v15398_v40, %v15399_v11  ;;  %vm15411_vm15 = vmmov %vm15409_vm1 }
0x1e55   : > { %v6439_v60 = vpop.permute.xlu0 %6438  ;;  %v6429_v52 = vpop.permute.xlu1 %6428  ;;  %v7139_v36 = vmul.f32 0.0, %v7130_v41  ;;  %vm15413_vm14 = vmmov %vm15412_vm10 }
0x1e56   : > { %v6443_v22 = vsel %vm15393_vm0, %v6437_v37, %v6439_v60  ;;  %v6455_v6 = vadd.f32 %v6439_v60, %v6390_v38  ;;  %v6440_v2 = vsel %vm15394_vm11, %v6429_v52, %v6431_v4  ;;  %v7181_v60 = vld [vmem:[#allocation11 + $0x950] sm:$0xff]  ;;  %vm15414_vm12 = vmmov %vm15412_vm10  ;;  %vm15416_vm0 = vcmask 678912  }
0x1e57   : > { %v6454_v29 = vadd.f32 %v6443_v22, %v6389_v12  ;;  %v6450_v42 = vadd.f32 %v6440_v2, %v6385_v33  ;;  %7087 = vrot.lane.b32.xlu0 %v7074_v8, %s15390_s2  ;;  %7089 = vrot.lane.b32.xlu1 %v7075_v31, %s15390_s2  ;;  %v15404_v12 = vld [vmem:[#allocation261_spill] sm:$0xff]  ;;  %vm15415_vm4 = vmmov %vm15412_vm10 }
0x1e58   : > { %v7131_v33 = vsel %vm4750_vm9, %v15404_v12, %v15403_v13  ;;  %v7141_v21 = vmul.f32 %v15404_v12, %v15385_v56  ;;  %vm15408_vm9 = vmmov %vm15406_vm6  ;;  %v7180_v31 = vld [vmem:[#allocation11 + $0x948] sm:$0xff] }
0x1e59   : > { %v6435_v49 = vpop.permute.xlu0 %6434  ;;  %v6496_v7 = vpop.permute.xlu1 %6495  ;;  %v7142_v23 = vmul.f32 0.0, %v7131_v33  ;;  %v7184_v22 = vmul.f32 %v7180_v31, %v10400_v46  ;;  %vm15417_vm11 = vmmov %vm15416_vm0 }
0x1e5a   : > { %v6442_v54 = vsel %vm15395_vm7, %v6435_v49, %v6437_v37  ;;  %vm15418_vm7 = vmmov %vm15416_vm0 }
0x1e5b   : > { %v6453_v61 = vadd.f32 %v6442_v54, %v6388_v53  ;;  %7091 = vrot.lane.b32.xlu0 %v7076_v63, %s15390_s2  ;;  %7093 = vrot.lane.b32.xlu1 %v7077_v59, %s15390_s2 }
0x1e5d   : > { %v6498_v20 = vpop.permute.xlu0 %6497  ;;  %v6502_v43 = vpop.permute.xlu1 %6501 }
0x1e5e   : > { %v6506_v58 = vsel %vm15397_vm2, %v6496_v7, %v6498_v20  ;;  %v6517_v5 = vadd.f32 %v6498_v20, %v6452_v3  ;;  %vm15419_vm2 = vmmov %vm15416_vm0 }
0x1e5f   : > { %v6516_v19 = vadd.f32 %v6506_v58, %v6451_v30  ;;  %7095 = vrot.lane.b32.xlu0 %v7078_v10, %s15390_s2  ;;  %7217 = vperm.xlu1 %8032, %v7213_v26   ;;  %s7795_s2 = sshll.u32 %s8594_s19, 9  ;;  %s8298_s19 = scalar_lea.vmem %s13591_s11, 512 }
0x1e60   : > { %s13598_s22 = scalar_lea.hbm %s15445_s13, %s7795_s2  ;;  %p8299_p6 = scmp.ne.s32.totalorder %s13591_s11, %s8298_s19 }
0x1e61   : > { %v6504_v32 = vpop.permute.xlu0 %6503  ;;  %v6494_v25 = vpop.permute.xlu1 %6493 }
0x1e62   : > { %v6508_v62 = vsel %vm15400_vm8, %v6502_v43, %v6504_v32  ;;  %v6520_v39 = vadd.f32 %v6504_v32, %v6455_v6  ;;  %v6505_v44 = vsel %vm15401_vm5, %v6494_v25, %v6496_v7  ;;  %v15410_v6 = vld [vmem:[#allocation52_spill] sm:$0xff]  ;;  %vm6766_vm8 = vcmask 433152   ;;  %p8300_p10 = pnand %p8299_p6, %p15446_p5 }
0x1e63   : > { %v6519_v27 = vadd.f32 %v6508_v62, %v6454_v29  ;;  %v6515_v55 = vadd.f32 %v6505_v44, %v6450_v42  ;;  %7222 = vperm.xlu0 %8031, %v7214_v45   ;;  %7150 = vrot.lane.b32.xlu1 %v7138_v9, %s15402_s17  ;;  %v7185_v2 = vmul.f32 %v7181_v60, %v15410_v6  ;;  %v7182_v42 = vld [vmem:[#allocation11 + $0x958] sm:$0xff]  ;;  %vm6833_vm5 = vcmask 408576  }
0x1e64   : > { %v7186_v7 = vmul.f32 %v7182_v42, %v15385_v56  ;;  %p8301_p1 = pneg %p8300_p10 }
0x1e65   : > { %v6500_v38 = vpop.permute.xlu0 %6499  ;;  %v6561_v15 = vpop.permute.xlu1 %6560 }
0x1e66   : > { %v6507_v0 = vsel %vm15405_vm13, %v6500_v38, %v6502_v43  ;;  %vm6900_vm13 = vcmask 384000  }
0x1e67   : > { %v6518_v48 = vadd.f32 %v6507_v0, %v6453_v61  ;;  %7152 = vrot.lane.b32.xlu0 %v7139_v36, %s15402_s17  ;;  %7154 = vrot.lane.b32.xlu1 %v7140_v28, %s15402_s17 }
0x1e69   : > { %v6563_v4 = vpop.permute.xlu0 %6562  ;;  %v6567_v18 = vpop.permute.xlu1 %6566 }
0x1e6a   : > { %v6571_v53 = vsel %vm15406_vm6, %v6561_v15, %v6563_v4  ;;  %v6582_v50 = vadd.f32 %v6563_v4, %v6517_v5  ;;  %vm6966_vm6 = vcmask 359424  }
0x1e6b   : > { %v6581_v35 = vadd.f32 %v6571_v53, %v6516_v19  ;;  %7156 = vrot.lane.b32.xlu0 %v7141_v21, %s15402_s17  ;;  %7158 = vrot.lane.b32.xlu1 %v7142_v23, %s15402_s17 }
0x1e6d   : > { %v6569_v37 = vpop.permute.xlu0 %6568  ;;  %v6559_v16 = vpop.permute.xlu1 %6558 }
0x1e6e   : > { %v6573_v3 = vsel %vm15408_vm9, %v6567_v18, %v6569_v37  ;;  %v6585_v30 = vadd.f32 %v6569_v37, %v6520_v39  ;;  %v6570_v8 = vsel %vm15409_vm1, %v6559_v16, %v6561_v15  ;;  %vm15420_vm9 = vcmask 334848  }
0x1e6f   : > { %v6584_v52 = vadd.f32 %v6573_v3, %v6519_v27  ;;  %v6580_v17 = vadd.f32 %v6570_v8, %v6515_v55  ;;  %7160 = vrot.lane.b32.xlu0 %v7143_v51, %s15402_s17  ;;  %7191 = vrot.lane.b32.xlu1 %v7183_v14, %s14597_s21  ;;  %vm15421_vm1 = vmmov %vm15420_vm9  ;;  %s7617_s17 = scalar_lea.sflag [#allocation5], %s8845_s1 }
0x1e71   : > { %v6565_v1 = vpop.permute.xlu0 %6564  ;;  %v6626_v34 = vpop.permute.xlu1 %6625 }
0x1e72   : > { %v6572_v29 = vsel %vm15411_vm15, %v6565_v1, %v6567_v18  ;;  %vm15422_vm15 = vcmask 310272  }
0x1e73   : > { %v6583_v63 = vadd.f32 %v6572_v29, %v6518_v48  ;;  %7193 = vrot.lane.b32.xlu0 %v7184_v22, %s14597_s21  ;;  %7195 = vrot.lane.b32.xlu1 %v7185_v2, %s14597_s21 }
0x1e75   : > { %v6628_v59 = vpop.permute.xlu0 %6627  ;;  %v6632_v49 = vpop.permute.xlu1 %6631 }
0x1e76   : > { %v6636_v54 = vsel %vm15412_vm10, %v6626_v34, %v6628_v59  ;;  %v6647_v61 = vadd.f32 %v6628_v59, %v6582_v50  ;;  %vm15423_vm10 = vmmov %vm15421_vm1 }
0x1e77   : > { %v6646_v26 = vadd.f32 %v6636_v54, %v6581_v35  ;;  %7197 = vrot.lane.b32.xlu0 %v7186_v7, %s14597_s21  ;;  %s8496_s21 = smov [#allocation15]  }
0x1e78   : > { %s8302_s25 = sshll.u32 %s8496_s21, 4  ;;  %s8303_s25 = int_to_ptr.vmem [resolvable:$false] %s8302_s25 }
0x1e79   : > { %v6634_v46 = vpop.permute.xlu0 %6633  ;;  %v6624_v10 = vpop.permute.xlu1 %6623  ;;  %p8305_p11 = scmp.lt.s32.totalorder %s13591_s11, %s8303_s25 }
0x1e7a   : > { %v6638_v20 = vsel %vm15413_vm14, %v6632_v49, %v6634_v46  ;;  %v6650_v43 = vadd.f32 %v6634_v46, %v6585_v30  ;;  %v6635_v58 = vsel %vm15414_vm12, %v6624_v10, %v6626_v34  ;;  %vm15424_vm14 = vmmov %vm15422_vm15 }
0x1e7b   : > { %v6649_v5 = vadd.f32 %v6638_v20, %v6584_v52  ;;  %v6645_v19 = vadd.f32 %v6635_v58, %v6580_v17  ;;  %vm15425_vm12 = vmmov %vm15421_vm1 }
0x1e7d   : > { %v6630_v45 = vpop.permute.xlu0 %6629  ;;  %v6691_v40 = vpop.permute.xlu1 %6690 }
0x1e7e   : > { %v6637_v9 = vsel %vm15415_vm4, %v6630_v45, %v6632_v49  ;;  %vm15426_vm4 = vcmask 285696  }
0x1e7f   : > { %v6648_v56 = vadd.f32 %v6637_v9, %v6583_v63 }
0x1e81   : > { %v6693_v32 = vpop.permute.xlu0 %6692  ;;  %v6697_v25 = vpop.permute.xlu1 %6696 }
0x1e82   : > { %v6701_v11 = vsel %vm15416_vm0, %v6691_v40, %v6693_v32  ;;  %v6712_v41 = vadd.f32 %v6693_v32, %v6647_v61  ;;  %vm15427_vm0 = vmmov %vm15424_vm14 }
0x1e83   : > { %v6711_v62 = vadd.f32 %v6701_v11, %v6646_v26 }
0x1e85   : > { %v6699_v39 = vpop.permute.xlu0 %6698  ;;  %v6689_v44 = vpop.permute.xlu1 %6688 }
0x1e86   : > { %v6703_v27 = vsel %vm15417_vm11, %v6697_v25, %v6699_v39  ;;  %v6715_v55 = vadd.f32 %v6699_v39, %v6650_v43  ;;  %v6700_v36 = vsel %vm15418_vm7, %v6689_v44, %v6691_v40  ;;  %vm15428_vm11 = vmmov %vm15426_vm4 }
0x1e87   : > { %v6714_v28 = vadd.f32 %v6703_v27, %v6649_v5  ;;  %v6710_v38 = vadd.f32 %v6700_v36, %v6645_v19  ;;  %vm15429_vm7 = vmmov %vm15427_vm0 }
0x1e89   : > { %v6695_v15 = vpop.permute.xlu0 %6694  ;;  %v6755_v13 = vpop.permute.xlu1 %6754 }
0x1e8a   : > { %v6702_v12 = vsel %vm15419_vm2, %v6695_v15, %v6697_v25  ;;  %v6777_v33 = vadd.f32 %v6755_v13, %v6710_v38  ;;  %vm15430_vm2 = vmmov %vm15426_vm4 }
0x1e8b   : > { %v6713_v0 = vadd.f32 %v6702_v12, %v6648_v56 }
0x1e8d   : > { %v6757_v48 = vpop.permute.xlu0 %6756  ;;  %v6759_v21 = vpop.permute.xlu1 %6758 }
0x1e8e   : > { %v6767_v23 = vsel %vm6766_vm8, %v6755_v13, %v6757_v48  ;;  %v6768_v4 = vsel %vm6766_vm8, %v6757_v48, %v6759_v21 }
0x1e8f   : > { %v6778_v18 = vadd.f32 %v6767_v23, %v6711_v62  ;;  %v6779_v53 = vadd.f32 %v6768_v4, %v6712_v41 }
0x1e91   : > { %v6761_v50 = vpop.permute.xlu0 %6760  ;;  %v6763_v24 = vpop.permute.xlu1 %6762 }
0x1e92   : > { %v6780_v35 = vadd.f32 %v6761_v50, %v6713_v0  ;;  %v6769_v51 = vsel %vm6766_vm8, %v6761_v50, %v6763_v24 }
0x1e93   : > { %v6781_v37 = vadd.f32 %v6769_v51, %v6714_v28 }
0x1e95   : > { %v6765_v16 = vpop.permute.xlu0 %6764  ;;  %v6822_v47 = vpop.permute.xlu1 %6821 }
0x1e96   : > { %v6770_v14 = vsel %vm6766_vm8, %v6763_v24, %v6765_v16  ;;  %v6844_v3 = vadd.f32 %v6822_v47, %v6777_v33  ;;  %vm15431_vm8 = vmmov %vm15430_vm2 }
0x1e97   : > { %v6782_v30 = vadd.f32 %v6770_v14, %v6715_v55 }
0x1e99   : > { %v6824_v8 = vpop.permute.xlu0 %6823  ;;  %v6826_v31 = vpop.permute.xlu1 %6825 }
0x1e9a   : > { %v6834_v60 = vsel %vm6833_vm5, %v6822_v47, %v6824_v8  ;;  %v6835_v52 = vsel %vm6833_vm5, %v6824_v8, %v6826_v31 }
0x1e9b   : > { %v6845_v17 = vadd.f32 %v6834_v60, %v6778_v18  ;;  %v6846_v1 = vadd.f32 %v6835_v52, %v6779_v53 }
0x1e9d   : > { %v6828_v34 = vpop.permute.xlu0 %6827  ;;  %v6830_v22 = vpop.permute.xlu1 %6829 }
0x1e9e   : > { %v6847_v6 = vadd.f32 %v6828_v34, %v6780_v35  ;;  %v6836_v2 = vsel %vm6833_vm5, %v6828_v34, %v6830_v22 }
0x1e9f   : > { %v6848_v29 = vadd.f32 %v6836_v2, %v6781_v37 }
0x1ea1   : > { %v6832_v42 = vpop.permute.xlu0 %6831  ;;  %v6889_v63 = vpop.permute.xlu1 %6888 }
0x1ea2   : > { %v6837_v36 = vsel %vm6833_vm5, %v6830_v22, %v6832_v42  ;;  %v6911_v38 = vadd.f32 %v6889_v63, %v6844_v3 }
0x1ea3   : > { %v6849_v21 = vadd.f32 %v6837_v36, %v6782_v30 }
0x1ea5   : > { %v6891_v59 = vpop.permute.xlu0 %6890  ;;  %v6893_v49 = vpop.permute.xlu1 %6892 }
0x1ea6   : > { %v6902_v28 = vsel %vm6900_vm13, %v6891_v59, %v6893_v49  ;;  %v6901_v12 = vsel %vm6900_vm13, %v6889_v63, %v6891_v59 }
0x1ea7   : > { %v6913_v23 = vadd.f32 %v6902_v28, %v6846_v1  ;;  %v6912_v35 = vadd.f32 %v6901_v12, %v6845_v17 }
0x1ea9   : > { %v6895_v7 = vpop.permute.xlu0 %6894  ;;  %v6897_v54 = vpop.permute.xlu1 %6896 }
0x1eaa   : > { %v6903_v33 = vsel %vm6900_vm13, %v6895_v7, %v6897_v54  ;;  %v6914_v4 = vadd.f32 %v6895_v7, %v6847_v6 }
0x1eab   : > { %v6915_v51 = vadd.f32 %v6903_v33, %v6848_v29 }
0x1ead   : > { %v6899_v61 = vpop.permute.xlu0 %6898  ;;  %v6955_v26 = vpop.permute.xlu1 %6954 }
0x1eae   : > { %v6904_v0 = vsel %vm6900_vm13, %v6897_v54, %v6899_v61  ;;  %v6977_v18 = vadd.f32 %v6955_v26, %v6911_v38 }
0x1eaf   : > { %v6916_v37 = vadd.f32 %v6904_v0, %v6849_v21 }
0x1eb1   : > { %v6957_v46 = vpop.permute.xlu0 %6956  ;;  %v6959_v10 = vpop.permute.xlu1 %6958 }
0x1eb2   : > { %v6968_v48 = vsel %vm6966_vm6, %v6957_v46, %v6959_v10  ;;  %v6967_v53 = vsel %vm6966_vm6, %v6955_v26, %v6957_v46 }
0x1eb3   : > { %v6979_v16 = vadd.f32 %v6968_v48, %v6913_v23  ;;  %v6978_v60 = vadd.f32 %v6967_v53, %v6912_v35 }
0x1eb5   : > { %v6961_v20 = vpop.permute.xlu0 %6960  ;;  %v6963_v43 = vpop.permute.xlu1 %6962 }
0x1eb6   : > { %v6980_v3 = vadd.f32 %v6961_v20, %v6914_v4  ;;  %v6969_v52 = vsel %vm6966_vm6, %v6961_v20, %v6963_v43 }
0x1eb7   : > { %v6981_v10 = vadd.f32 %v6969_v52, %v6915_v51  ;;  %v7233_v51 = vld [vmem:[%s15433_s0] sm:$0xff] }
0x1eb9   : > { %v6965_v58 = vpop.permute.xlu0 %6964  ;;  %v7021_v5 = vpop.permute.xlu1 %7020 }
0x1eba   : > { %v6970_v50 = vsel %vm6966_vm6, %v6963_v43, %v6965_v58  ;;  %v7042_v8 = vadd.f32 %v7021_v5, %v6977_v18 }
0x1ebb   : > { %v6982_v1 = vadd.f32 %v6970_v50, %v6916_v37 }
0x1ebd   : > { %v7023_v19 = vpop.permute.xlu0 %7022  ;;  %v7025_v45 = vpop.permute.xlu1 %7024 }
0x1ebe   : > { %v7033_v24 = vsel %vm15420_vm9, %v7023_v19, %v7025_v45  ;;  %v7032_v31 = vsel %vm15421_vm1, %v7021_v5, %v7023_v19  ;;  %vm15440_vm9 = vcmask 130048  }
0x1ebf   : > { %v7044_v34 = vadd.f32 %v7033_v24, %v6979_v16  ;;  %v7043_v29 = vadd.f32 %v7032_v31, %v6978_v60  ;;  %v7513_v31 = vld [vmem:[%s15435_s23] sm:$0xff]  ;;  %vm15441_vm1 = vmmov %vm15440_vm9 }
0x1ec1   : > { %v7027_v40 = vpop.permute.xlu0 %7026  ;;  %v7029_v9 = vpop.permute.xlu1 %7028 }
0x1ec2   : > { %v7045_v22 = vadd.f32 %v7027_v40, %v6980_v3  ;;  %v7034_v42 = vsel %vm15425_vm12, %v7027_v40, %v7029_v9 }
0x1ec3   : > { %v7046_v40 = vadd.f32 %v7034_v42, %v6981_v10 }
0x1ec5   : > { %v7031_v56 = vpop.permute.xlu0 %7030  ;;  %v7086_v32 = vpop.permute.xlu1 %7085 }
0x1ec6   : > { %v7035_v6 = vsel %vm15423_vm10, %v7029_v9, %v7031_v56  ;;  %v7107_v17 = vadd.f32 %v7086_v32, %v7042_v8  ;;  %v7514_v8 = vld [vmem:[%s15435_s23 + $0x8] sm:$0xff]  ;;  %vm15443_vm10 = vmmov %vm15441_vm1 }
0x1ec7   : > { %v7047_v20 = vadd.f32 %v7035_v6, %v6982_v1 }
0x1ec9   : > { %v7088_v25 = vpop.permute.xlu0 %7087  ;;  %v7090_v11 = vpop.permute.xlu1 %7089 }
0x1eca   : > { %v7098_v30 = vsel %vm15422_vm15, %v7088_v25, %v7090_v11  ;;  %v7097_v2 = vsel %vm15424_vm14, %v7086_v32, %v7088_v25  ;;  %vm15442_vm15 = vmmov %vm15441_vm1 }
0x1ecb   : > { %v7109_v63 = vadd.f32 %v7098_v30, %v7044_v34  ;;  %v7108_v43 = vadd.f32 %v7097_v2, %v7043_v29 }
0x1ecd   : > { %v7092_v41 = vpop.permute.xlu0 %7091  ;;  %v7094_v62 = vpop.permute.xlu1 %7093 }
0x1ece   : > { %v7110_v54 = vadd.f32 %v7092_v41, %v7045_v22  ;;  %v7099_v58 = vsel %vm15429_vm7, %v7092_v41, %v7094_v62 }
0x1ecf   : > { %v7111_v38 = vadd.f32 %v7099_v58, %v7046_v40 }
0x1ed1   : > { %v7096_v39 = vpop.permute.xlu0 %7095 }
0x1ed2   : > { %v7100_v61 = vsel %vm15427_vm0, %v7094_v62, %v7096_v39 }
0x1ed3   : > { %v7112_v9 = vadd.f32 %v7100_v61, %v7047_v20  ;;  %v7232_v61 = vld [vmem:[#allocation12 + $0x8] sm:$0xff] }
0x1ede   : > { %v13509_v44 = vpop.permute.xlu1 %7217 }
0x1ee2   : > { %v13511_v27 = vpop.permute.xlu0 %7222  ;;  %v7151_v55 = vpop.permute.xlu1 %7150 }
0x1ee3   : > { %v7172_v26 = vadd.f32 %v7151_v55, %v7107_v17 }
0x1ee6   : > { %v7153_v15 = vpop.permute.xlu0 %7152  ;;  %v7155_v13 = vpop.permute.xlu1 %7154 }
0x1ee7   : > { %v7163_v59 = vsel %vm15426_vm4, %v7153_v15, %v7155_v13  ;;  %v7162_v46 = vsel %vm15428_vm11, %v7151_v55, %v7153_v15 }
0x1ee8   : > { %v7174_v5 = vadd.f32 %v7163_v59, %v7109_v63  ;;  %v7173_v56 = vadd.f32 %v7162_v46, %v7108_v43 }
0x1eea   : > { %v7157_v47 = vpop.permute.xlu0 %7156  ;;  %v7159_v14 = vpop.permute.xlu1 %7158 }
0x1eeb   : > { %v7175_v19 = vadd.f32 %v7157_v47, %v7110_v54  ;;  %v7164_v39 = vsel %vm15431_vm8, %v7157_v47, %v7159_v14  ;;  %v7356_v47 = vld [vmem:[%s15434_s7] sm:$0xff] }
0x1eec   : > { %v7176_v33 = vadd.f32 %v7164_v39, %v7111_v38  ;;  %v7231_v54 = vld [vmem:[#allocation12] sm:$0xff] }
0x1eee   : > { %v7161_v49 = vpop.permute.xlu0 %7160  ;;  %v7192_v7 = vpop.permute.xlu1 %7191 }
0x1eef   : > { %v7207_v45 = vadd.f32 %v7192_v7, %v7172_v26  ;;  %v7165_v32 = vsel %vm15430_vm2, %v7159_v14, %v7161_v49 }
0x1ef0   : > { %v7177_v13 = vadd.f32 %v7165_v32, %v7112_v9 }
0x1ef1   : > { %v7225_v41 = vadd.f32 %v13509_v44, %v7207_v45 }
0x1ef2   : > { %v7194_v25 = vpop.permute.xlu0 %7193  ;;  %v7196_v11 = vpop.permute.xlu1 %7195 }
0x1ef3   : > { %v7199_v36 = vsel %vm2343_vm3, %v7192_v7, %v7194_v25  ;;  %v7209_v55 = vadd.f32 %v7194_v25, %v7174_v5  ;;  %v7210_v28 = vadd.f32 %v7196_v11, %v7175_v19 }
0x1ef4   : > { %v7208_v15 = vadd.f32 %v7199_v36, %v7173_v56 }
0x1ef5   : > { %v7227_v62 = vadd.f32 %v13509_v44, %v7209_v55  ;;  %v7228_v12 = vadd.f32 %v13511_v27, %v7210_v28 }
0x1ef6   : > { %v7226_v0 = vadd.f32 %v13509_v44, %v7208_v15  ;;  %v7198_v48 = vpop.permute.xlu0 %7197  ;;  %v7234_v44 = vld [vmem:[%s15432_s30 + $0x8] sm:$0xff]  ;;  %s8304_s30 = scalar_lea.vmem %s8303_s25, 1024 }
0x1ef7   : > { %v8043_v21 = vpack.i.bf16 %v7228_v12, %v7225_v41  ;;  %v7200_v23 = vsel %vm2343_vm3, %v7196_v11, %v7198_v48  ;;  %v7212_v4 = vadd.f32 %v7198_v48, %v7177_v13  ;;  %vm15436_vm3 = vcmask 556032   ;;  %p8306_p12 = scmp.lt.s32.totalorder %s8304_s30, %s8298_s19 }
0x1ef8   : > { %v8033_v18 = vpack.i.bf16 %v7227_v62, %v7226_v0  ;;  %v7211_v53 = vadd.f32 %v7200_v23, %v7176_v33  ;;  %vm15437_vm5 = vmmov %vm15436_vm3 }
0x1ef9   : > { %v7230_v50 = vadd.f32 %v13511_v27, %v7212_v4  ;;  %vm15438_vm13 = vmmov %vm15436_vm3  ;;  %p8307_p13 = por %p8306_p12, %p8305_p11 }
0x1efa   : > { %v7229_v24 = vadd.f32 %v13511_v27, %v7211_v53  ;;  %8034 = vrot.lane.b32.xlu1 %v8033_v18, %s14677_s9  ;;  %v7357_v27 = vld [vmem:[%s15434_s7 + $0x8] sm:$0xff]  ;;  %vm15439_vm6 = vmmov %vm15436_vm3 }
0x1efb   : > { %v7440_v37 = vpop.f32.mrb[4].mxu0  ;;  %p8308_p8 = pnand %p8307_p13, %p8301_p1 }
0x1efc   : > { %v8038_v35 = vpack.i.bf16 %v7230_v50, %v7229_v24  ;;  %v7442_v16 = vpop.f32.mrb[5].mxu0 }
0x1efe   : > { %8044 = vrot.lane.b32.xlu1 %v8043_v21, %s14677_s9  ;;  %8039 = vrot.lane.b32.xlu0 %v8038_v35, %s14677_s9 }
0x1f00   : > { %v7446_v14 = vpop.f32.mrb[6].mxu0 }
0x1f01   : > { %v7448_v3 = vpop.f32.mrb[7].mxu0 }
0x1f02   : > { %7242 = vperm.xlu1 %8032, %v7234_v44   ;;  %7237 = vperm.xlu0 %8031, %v7233_v51  }
0x1f06   : > { %7365 = vperm.xlu1 %8032, %v7357_v27   ;;  %7360 = vperm.xlu0 %8031, %v7356_v47  }
0x1f0a   : > { %7522 = vperm.xlu1 %8032, %v7514_v8   ;;  %7517 = vperm.xlu0 %8031, %v7513_v31  }
0x1f6c   : > { %v8035_v30 = vpop.permute.xlu1 %8034 }
0x1f6d   : > { %v8037_v60 = vunpack.i.h.bf16 %v8035_v30  ;;  %v8036_v52 = vunpack.i.l.bf16 %v8035_v30 }
0x1f6f   : > { %v7264_v29 = vsel %vm15436_vm3, %v8036_v52, %v8037_v60 }
0x1f70   : > { %v8040_v1 = vpop.permute.xlu0 %8039  ;;  %v8045_v34 = vpop.permute.xlu1 %8044 }
0x1f71   : > { %v8042_v22 = vunpack.i.h.bf16 %v8040_v1  ;;  %v8041_v6 = vunpack.i.l.bf16 %v8040_v1  ;;  %v8047_v17 = vunpack.i.h.bf16 %v8045_v34  ;;  %v8046_v2 = vunpack.i.l.bf16 %v8045_v34 }
0x1f73   : > { %v7266_v42 = vsel %vm15437_vm5, %v8041_v6, %v8042_v22  ;;  %v7263_v63 = vsel %vm15438_vm13, %v8046_v2, %v8036_v52  ;;  %v7265_v59 = vsel %vm15439_vm6, %v8047_v17, %v8041_v6 }
0x1f74   : > { %v7800_v49 = vpack.c.bf16 %v7266_v42, %v7264_v29  ;;  %v7802_v7 = vpack.c.bf16 %v7265_v59, %v7263_v63 }
0x1f76   : > { %7801 = vmatprep.subr.bf16.mxu1 %v7800_v49 }
0x1f77   : > { %7803 = vmatpush1.bf16.msra.mxu1 %v7802_v7 }
0x1f7a   : > { %7783 = vmatmul.mubr.msk.f32.vlgmr.msra.gmra.mrb[0].mxu1 %vm15440_vm9, %v7231_v54 }
0x1f7b   : > { %7347 = vmatprep.mubr.f32.mxu1 %v15322_v57 }
0x1f7e   : > { %7784 = vmatmul.mubr.msk.f32.gmra.mrb[2].mxu1 %vm15441_vm1, %v7232_v61 }
0x1f7f   : > { %7595 = vmatprep.mubr.f32.mxu1 %v15322_v57 }
0x1f81   : > { %v7238_v26 = vpop.permute.xlu0 %7237  ;;  %v7243_v46 = vpop.permute.xlu1 %7242 }
0x1f85   : > { %v7361_v10 = vpop.permute.xlu0 %7360  ;;  %v7366_v58 = vpop.permute.xlu1 %7365 }
0x1f86   : > { %v13567_v20 = vadd.f32 %v7440_v37, %v7361_v10  ;;  %v13569_v43 = vadd.f32 %v7442_v16, %v7361_v10  ;;  %v13572_v19 = vadd.f32 %v7446_v14, %v7366_v58  ;;  %v13575_v40 = vadd.f32 %v7448_v3, %v7366_v58 }
0x1f88   : > { %v7451_v5 = vsub.f32 0.0, %v13567_v20  ;;  %v7452_v45 = vsub.f32 0.0, %v13569_v43  ;;  %v7453_v56 = vsub.f32 0.0, %v13572_v19  ;;  %v7454_v25 = vsub.f32 0.0, %v13575_v40 }
0x1f8a   : > { %v7455_v9 = vmul.f32 1.442695, %v7451_v5  ;;  %v7457_v32 = vmul.f32 1.442695, %v7452_v45  ;;  %v7459_v39 = vmul.f32 1.442695, %v7453_v56 }
0x1f8b   : > { %v7461_v28 = vmul.f32 1.442695, %v7454_v25 }
0x1f8c   : > { %8064 = vpow2.f32 %v7455_v9  ;;  %v7512_v9 = vld [vmem:[#allocation14 + $0x8] sm:$0xff] }
0x1f8d   : > { %8066 = vpow2.f32 %v7457_v32 }
0x1f8e   : > { %8068 = vpow2.f32 %v7459_v39 }
0x1f8f   : > { %8070 = vpow2.f32 %v7461_v28 }
0x1f96   : > { %v8065_v53 = vpop.eup %8064 }
0x1f97   : > { %v8067_v50 = vpop.eup %8066  ;;  %v7463_v24 = vadd.f32 1.0, %v8065_v53 }
0x1f98   : > { %v8069_v35 = vpop.eup %8068  ;;  %v7464_v44 = vadd.f32 1.0, %v8067_v50 }
0x1f99   : > { %v8071_v51 = vpop.eup %8070  ;;  %v7465_v27 = vadd.f32 1.0, %v8069_v35 }
0x1f9a   : > { %v7466_v14 = vadd.f32 1.0, %v8071_v51 }
0x204d   : > { %v7343_v11 = vpop.f32.mrb[0].mxu1 }
0x204e   : > { %v7344_v36 = vadd.f32 %v7343_v11, %v7238_v26  ;;  %v7345_v55 = vpop.f32.mrb[1].mxu1  ;;  %v8096_v11 = vld [vmem:[%s8851_s27] sm:$0xff] }
0x204f   : > { %v7346_v38 = vadd.f32 %v7345_v55, %v7238_v26  ;;  %v8097_v55 = vld [vmem:[%s8851_s27 + $0x8] sm:$0xff] }
0x2050   : > { %v7479_v15 = vsub.f32 0.0, %v7344_v36 }
0x2051   : > { %v7480_v13 = vsub.f32 0.0, %v7346_v38  ;;  %v7349_v41 = vpop.f32.mrb[2].mxu1 }
0x2052   : > { %v7483_v62 = vmul.f32 1.442695, %v7479_v15  ;;  %v7350_v12 = vadd.f32 %v7349_v41, %v7243_v46  ;;  %v7351_v33 = vpop.f32.mrb[3].mxu1  ;;  %v8098_v41 = vld [vmem:[%s8851_s27 + $0x10] sm:$0xff] }
0x2053   : > { %v7485_v0 = vmul.f32 1.442695, %v7480_v13  ;;  %v7352_v48 = vadd.f32 %v7351_v33, %v7243_v46 }
0x2054   : > { %8072 = vpow2.f32 %v7483_v62  ;;  %v7481_v21 = vsub.f32 0.0, %v7350_v12 }
0x2055   : > { %8074 = vpow2.f32 %v7485_v0  ;;  %v7482_v23 = vsub.f32 0.0, %v7352_v48 }
0x2056   : > { %v7487_v4 = vmul.f32 1.442695, %v7481_v21 }
0x2057   : > { %v7489_v18 = vmul.f32 1.442695, %v7482_v23 }
0x2058   : > { %8076 = vpow2.f32 %v7487_v4 }
0x2059   : > { %8078 = vpow2.f32 %v7489_v18 }
0x205a   : > { %8080 = vrcp.f32 %v7463_v24 }
0x205b   : > { %8082 = vrcp.f32 %v7464_v44 }
0x205e   : > { %v8073_v37 = vpop.eup %8072 }
0x205f   : > { %v8075_v16 = vpop.eup %8074  ;;  %v7491_v47 = vadd.f32 1.0, %v8073_v37 }
0x2060   : > { %v7492_v3 = vadd.f32 1.0, %v8075_v16 }
0x2061   : > { %8084 = vrcp.f32 %v7491_v47 }
0x2062   : > { %v8077_v8 = vpop.eup %8076  ;;  %8086 = vrcp.f32 %v7492_v3 }
0x2063   : > { %v8079_v31 = vpop.eup %8078  ;;  %8088 = vrcp.f32 %v7465_v27  ;;  %v7493_v30 = vadd.f32 1.0, %v8077_v8 }
0x2064   : > { %8090 = vrcp.f32 %v7466_v14  ;;  %v7494_v60 = vadd.f32 1.0, %v8079_v31  ;;  %v8081_v52 = vpop.eup %8080 }
0x2065   : > { %8092 = vrcp.f32 %v7493_v30  ;;  %v8083_v1 = vpop.eup %8082  ;;  %v7475_v6 = vmul.f32 %v8081_v52, %v13567_v20 }
0x2066   : > { %8094 = vrcp.f32 %v7494_v60  ;;  %v7476_v29 = vmul.f32 %v8083_v1, %v13569_v43  ;;  %v7511_v43 = vld [vmem:[#allocation14] sm:$0xff] }
0x206b   : > { %v8085_v34 = vpop.eup %8084 }
0x206c   : > { %v8087_v22 = vpop.eup %8086  ;;  %v7503_v17 = vmul.f32 %v8085_v34, %v7344_v36  ;;  %v7523_v36 = vpop.permute.xlu1 %7522 }
0x206d   : > { %v8089_v2 = vpop.eup %8088  ;;  %v7504_v42 = vmul.f32 %v8087_v22, %v7346_v38 }
0x206e   : > { %v8091_v63 = vpop.eup %8090  ;;  %v7507_v59 = vmul.f32 %v7503_v17, %v7475_v6  ;;  %v7477_v61 = vmul.f32 %v8089_v2, %v13572_v19  ;;  %v7518_v19 = vpop.permute.xlu0 %7517 }
0x206f   : > { %v8093_v49 = vpop.eup %8092  ;;  %v7508_v7 = vmul.f32 %v7504_v42, %v7476_v29  ;;  %v7478_v46 = vmul.f32 %v8091_v63, %v13575_v40 }
0x2070   : > { %v8095_v54 = vpop.eup %8094  ;;  %v7505_v26 = vmul.f32 %v8093_v49, %v7350_v12  ;;  %v8099_v12 = vld [vmem:[%s8851_s27 + $0x18] sm:$0xff] }
0x2071   : > { %v7506_v10 = vmul.f32 %v8095_v54, %v7352_v48 }
0x2072   : > { %v7509_v58 = vmul.f32 %v7505_v26, %v7477_v61 }
0x2073   : > { %v7510_v5 = vmul.f32 %v7506_v10, %v7478_v46 }
0x2074   : > { %v7810_v20 = vpack.c.bf16 %v7509_v58, %v7507_v59 }
0x2075   : > { %v7808_v45 = vpack.c.bf16 %v7510_v5, %v7508_v7 }
0x2077   : > { %7809 = vmatprep.subr.bf16.mxu1 %v7808_v45 }
0x2078   : > { %7811 = vmatpush1.bf16.msra.mxu1 %v7810_v20 }
0x207b   : > { %7787 = vmatmul.mubr.msk.f32.vlgmr.msra.gmra.mrb[4].mxu1 %vm15442_vm15, %v7511_v43 }
0x207c   : > { %7601 = vmatprep.mubr.f32.mxu1 %v15322_v57 }
0x207f   : > { %7788 = vmatmul.mubr.msk.f32.gmra.mrb[6].mxu1 %vm15443_vm10, %v7512_v9 }
0x214e   : > { %v7597_v40 = vpop.f32.mrb[4].mxu1 }
0x214f   : > { %v7598_v56 = vadd.f32 %v7597_v40, %v7518_v19  ;;  %v7599_v32 = vpop.f32.mrb[5].mxu1 }
0x2150   : > { %v7600_v25 = vadd.f32 %v7599_v32, %v7518_v19 }
0x2151   : > { %v7608_v39 = vadd.f32 %v8096_v11, %v7598_v56 }
0x2152   : > { %v7609_v28 = vadd.f32 %v8097_v55, %v7600_v25  ;;  %v7603_v57 = vpop.f32.mrb[6].mxu1 }
0x2153   : > { %7612 = vst [vmem:[%s572_s15] sm:$0xff] %v7608_v39  ;;  %v7604_v38 = vadd.f32 %v7603_v57, %v7523_v36  ;;  %v7605_v15 = vpop.f32.mrb[7].mxu1 }
0x2154   : > { %7613 = vst [vmem:[%s572_s15 + $0x8] sm:$0xff] %v7609_v28  ;;  %v7606_v13 = vadd.f32 %v7605_v15, %v7523_v36 }
0x2155   : > { %v7610_v62 = vadd.f32 %v8098_v41, %v7604_v38 }
0x2156   : > { %v7611_v33 = vadd.f32 %v8099_v12, %v7606_v13 }
0x2157   : > { %7614 = vst [vmem:[%s572_s15 + $0x10] sm:$0xff] %v7610_v62 }
0x2158   : > { %7615 = vst [vmem:[%s572_s15 + $0x18] sm:$0xff] %v7611_v33 }
0x2159   : > { %8311 = shalt.err (!%p8308_p8)
}
0x215a   : > { %s8312_s27 = scalar_lea.hbm %s13598_s22, 512  ;;  %s8316_s6 = scalar_lea.hbm %s15445_s13, 1024 }
0x215b   : > { %p8313_p7 = scmp.ne.s32.totalorder %s13598_s22, %s8312_s27  ;;  %p8317_p3 = scmp.lt.u32.totalorder %s13598_s22, %s15445_s13 }
0x215c   : > { %p8318_p0 = scmp.lt.u32.totalorder %s8316_s6, %s8312_s27  ;;  %p8320_p6 = scmp.lt.u32.totalorder %s8312_s27, %s13598_s22 }
0x215d   : > { %p8314_p9 = pnand %p8313_p7, %p15446_p5 }
0x215e   : > { %p8319_p2 = por %p8318_p0, %p8317_p3 }
0x215f   : > { %p8315_p4 = pneg %p8314_p9 }
0x2160   : > { %p8321_p10 = por %p8320_p6, %p8319_p2 }
0x2162   : > { %p8322_p1 = pnand %p8321_p10, %p8315_p4 }
0x2164   : > { %8325 = shalt.err (!%p8322_p1)
}
0x2165   : > { %s8497_s8 = smov 256  }
0x2166   : > { %7838 = dma.vmem_to_hbm [thread:$0]  (%p15446_p5), %s13591_s11, 512, %s13598_s22, %s7617_s17, %s8497_s8, %s8497_s8, %s14795_s24  }
0x2167 PF: > { %s15447_s9 = sld [smem:[#allocation21_spill]]  ;;  %s15448_s16 = sld [smem:[#allocation27_spill]] }
0x2168   : > { %s15449_s12 = sld [smem:[#allocation24_spill]] }
0x216d   : > { %s7645_s14 = sand.u32 1, %s15447_s9   ;;  %p15450_p11 = scmp.ne.s32.totalorder %s15448_s16, 0 }
0x216e   : > { %p15451_p12 = scmp.ge.s32.totalorder %s15449_s12, 2  ;;  %s7646_s5 = scalar_lea.sflag [#allocation5], %s7645_s14 }
0x2170   : > { %p7864_p13 = pnand %p15451_p12, %p15450_p11 }
0x2172   : > { %8359 = dma.done.wait (!%p7864_p13), %s7646_s5, 512  }
0x2173   : > { %8361 = vsyncadd (!%p7864_p13), %s7646_s5, 4294966784  ;;  %s15452_s16 = sld [smem:[#allocation25_spill]]  ;;  %s15453_s29 = sld [smem:[#allocation22_spill]] }
0x2174   : > { %s15454_s30 = sld [smem:[#allocation23_spill]]  ;;  %s15455_s15 = sld [smem:[#allocation26_spill]] }
0x2179   : > { %p30_p8 = scmp.ge.s32.totalorder %s15452_s16, 4  }
0x217b   :  { %32 = sbr.rel (!%p30_p8) target bundleno = 24 (0x18), region = 243 }
0x2182   :  { %7651 = vsyncpa [#allocation4], 1 }
0x2183   :  { %7653 = vsyncpa [#allocation4 + $0x1], 1 }
0x2184   :  { %7654 = vsyncpa [#allocation7], 1 }
0x2185   :  { %7655 = vsyncpa [#allocation10], 1 }
0x2186   :  { %7656 = vsyncpa [#allocation13], 1 }
0x2187   :  { %7657 = vsyncpa [#allocation5], 1 }
0x2188   :  { %7659 = vsyncpa [#allocation5 + $0x1], 1 }

</bundles_post_ra>
